<compile_context>
chip_gen: v7x
topology: tpu7x:2x2x1
jax: 0.10.0
libtpu: 0.0.40
codegen_flags: <defaults>
</compile_context>

<pallas_src>
import jax
import jax.numpy as jnp
from jax.experimental import pallas as pl
from jax.experimental.pallas import tpu as pltpu

K_UP = 2            # kernel_size == stride for all ConvTranspose2d layers
CH_SKIP = (16, 8)   # channels[0], channels[1]


def _pick_tm(m0):
    # 256 rows fill the v6e/v7x 256x256 MXU (128 already fills v5e's 128x128); small inputs
    # use a single block.  For large inputs the grid splits on a "parallel" axis so v7x can
    # shard the steps across its two TensorCores.
    if m0 <= 256:
        return m0
    for tm in (256, 128, 64, 32, 16, 8):
        if m0 % tm == 0:
            return tm
    return m0


# ------------------------------ Pallas kernel -------------------------------

def _decoder_kernel(x_ref, p4_ref, p3_ref,
                    wc1_ref, bc1_ref, wc2_ref, bc2_ref,
                    w1_ref, b1_ref,
                    w2a_ref, w2b_ref, b2_ref,
                    w3a_ref, w3b_ref, b3_ref,
                    o_ref):
    f32 = jnp.float32
    k2 = p4_ref.shape[0]          # number of 2x2 sub-pixel positions per upsample (= 4)
    c1 = w2a_ref.shape[0]         # up1 output channels (= 128)
    w3cols = w3a_ref.shape[1]     # k2 * k2 * C3 output columns per s1 block (= 16)

    # conv_8_column: 1x1 conv -> ReLU -> Dropout -> 1x1 conv
    h = jnp.dot(x_ref[...], wc1_ref[...], preferred_element_type=f32) + bc1_ref[...]
    h = jnp.maximum(h, 0.0)
    # TODO(synk): Dropout(0.8) is the identity in eval mode; train mode would need
    #             pltpu.prng_seed / pltpu.prng_random_bits masking here.
    h = jnp.dot(h, wc2_ref[...], preferred_element_type=f32) + bc2_ref[...]

    # up1: stride==kernel ConvTranspose2d == matmul against (Cin, k2*C1) packed weight.
    y1 = jnp.dot(h, w1_ref[...], preferred_element_type=f32) + b1_ref[...]

    # For each first-level sub-pixel position s1: up2 with the pool_4 skip as a split
    # contraction, then the block-diagonal up3 (+ pool_3 skip) epilogue.
    for s1 in range(k2):
        y1_s1 = y1[:, s1 * c1:(s1 + 1) * c1]                      # (tm, C1)
        y2 = (jnp.dot(y1_s1, w2a_ref[...], preferred_element_type=f32)
              + jnp.dot(p4_ref[s1], w2b_ref[...], preferred_element_type=f32)
              + b2_ref[...])                                      # (tm, k2*C2)
        y3 = (jnp.dot(y2, w3a_ref[...], preferred_element_type=f32)
              + jnp.dot(p3_ref[s1], w3b_ref[...], preferred_element_type=f32)
              + b3_ref[...])                                      # (tm, k2*k2*C3)
        o_ref[:, s1 * w3cols:(s1 + 1) * w3cols] = y3.astype(o_ref.dtype)


# -------------------------- trace-time packing glue --------------------------

def pack_params(params, k=K_UP):
    """Hoist all weight/bias reshapes out of the hot path (trace-time constants)."""
    k2 = k * k
    w1 = params["up1_w"]             # (Cin0, C1, k, k)  -- PyTorch ConvTranspose2d layout
    w2 = params["up2_w"]             # (C1 + S4, C2, k, k)
    w3 = params["up3_w"]             # (C2 + S3, C3, k, k)
    c1, c2 = w1.shape[1], w2.shape[1]

    def deconv_pack(w):              # (Cin, Cout, k, k) -> (Cin, k2*Cout), sub-pixel major
        cin, cout = w.shape[0], w.shape[1]
        return jnp.transpose(w, (0, 2, 3, 1)).reshape(cin, k2 * cout)

    w3a = deconv_pack(w3[:c2])       # (C2, k2*C3)
    w3b = deconv_pack(w3[c2:])       # (S3, k2*C3)
    eye = jnp.eye(k2, dtype=w3.dtype)
    return {
        "wc1": params["conv1_w"], "bc1": params["conv1_b"].reshape(1, -1),
        "wc2": params["conv2_w"], "bc2": params["conv2_b"].reshape(1, -1),
        "w1": deconv_pack(w1), "b1": jnp.tile(params["up1_b"], k2).reshape(1, -1),
        "w2a": deconv_pack(w2[:c1]), "w2b": deconv_pack(w2[c1:]),
        "b2": jnp.tile(params["up2_b"], k2).reshape(1, -1),
        # Block-diagonal (kron) so up3 applies independently to each of the k2 sub-pixel
        # blocks of the up2 output without any concat / reshape inside the kernel.
        "w3a": jnp.kron(eye, w3a), "w3b": jnp.kron(eye, w3b),
        "b3": jnp.tile(params["up3_b"], k2 * k2).reshape(1, -1),
    }


def _pack_pool4(pool4, k=K_UP):
    # (N, C, 2H, 2W) -> (k2, N*H*W, C): leading axis = first-level sub-pixel position s1.
    n, c, h2, w2 = pool4.shape
    h, w = h2 // k, w2 // k
    t = pool4.reshape(n, c, h, k, w, k)              # [n, c, i, p1, j, q1]
    t = jnp.transpose(t, (3, 5, 0, 2, 4, 1))         # [p1, q1, n, i, j, c]
    return t.reshape(k * k, n * h * w, c)


def _pack_pool3(pool3, k=K_UP):
    # (N, C, 4H, 4W) -> (k2, N*H*W, k2*C): trailing axis = (s2, c) for second-level position.
    n, c, h4, w4 = pool3.shape
    h, w = h4 // (k * k), w4 // (k * k)
    t = pool3.reshape(n, c, h, k, k, w, k, k)        # [n, c, i, p1, p2, j, q1, q2]
    t = jnp.transpose(t, (3, 6, 0, 2, 5, 4, 7, 1))   # [p1, q1, n, i, j, p2, q2, c]
    return t.reshape(k * k, n * h * w, k * k * c)


def _unpack_output(o2d, n, h, w, c_out, k=K_UP):
    # (N*H*W, k2*k2*k2*C3), column = (s1, s2, s3, co)  ->  NCHW (N, C3, 8H, 8W)
    t = o2d.reshape(n, h, w, k, k, k, k, k, k, c_out)  # [n,i,j,p1,q1,p2,q2,p3,q3,co]
    t = jnp.transpose(t, (0, 9, 1, 3, 5, 7, 2, 4, 6, 8))
    return t.reshape(n, c_out, h * k ** 3, w * k ** 3)


# ------------------------------ forward wrapper ------------------------------

def column_decoder_forward(packed, x, pool_3_out, pool_4_out, k=K_UP):
    n, cin, h, w = x.shape
    k2 = k * k
    m0 = n * h * w

    x2d = jnp.transpose(x, (0, 2, 3, 1)).reshape(m0, cin)   # pixel slab, channels on lanes
    p4 = _pack_pool4(pool_4_out, k)                         # (k2, m0, S4)
    p3 = _pack_pool3(pool_3_out, k)                         # (k2, m0, k2*S3)

    s4 = p4.shape[2]
    s3k = p3.shape[2]
    w3cols = packed["w3a"].shape[1]                         # k2 * k2 * C3
    out_cols = k2 * w3cols
    c_out = w3cols // (k2 * k2)

    tm = _pick_tm(m0)
    assert m0 % tm == 0, f"N*H*W={m0} must be divisible by row tile {tm}"
    grid = (m0 // tm,)

    rep2 = lambda i: (0, 0)   # grid-invariant (replicated) weight blocks

    out2d = pl.pallas_call(
        _decoder_kernel,
        out_shape=jax.ShapeDtypeStruct((m0, out_cols), x.dtype),
        grid_spec=pltpu.PrefetchScalarGridSpec(
            num_scalar_prefetch=0,
            grid=grid,
            in_specs=[
                pl.BlockSpec((tm, cin), lambda i: (i, 0)),
                pl.BlockSpec((k2, tm, s4), lambda i: (0, i, 0)),
                pl.BlockSpec((k2, tm, s3k), lambda i: (0, i, 0)),
                pl.BlockSpec(packed["wc1"].shape, rep2),
                pl.BlockSpec(packed["bc1"].shape, rep2),
                pl.BlockSpec(packed["wc2"].shape, rep2),
                pl.BlockSpec(packed["bc2"].shape, rep2),
                pl.BlockSpec(packed["w1"].shape, rep2),
                pl.BlockSpec(packed["b1"].shape, rep2),
                pl.BlockSpec(packed["w2a"].shape, rep2),
                pl.BlockSpec(packed["w2b"].shape, rep2),
                pl.BlockSpec(packed["b2"].shape, rep2),
                pl.BlockSpec(packed["w3a"].shape, rep2),
                pl.BlockSpec(packed["w3b"].shape, rep2),
                pl.BlockSpec(packed["b3"].shape, rep2),
            ],
            out_specs=pl.BlockSpec((tm, out_cols), lambda i: (i, 0)),
        ),
        compiler_params=pltpu.CompilerParams(
            dimension_semantics=("parallel",)),
    )(x2d, p4, p3,
      packed["wc1"], packed["bc1"], packed["wc2"], packed["bc2"],
      packed["w1"], packed["b1"],
      packed["w2a"], packed["w2b"], packed["b2"],
      packed["w3a"], packed["w3b"], packed["b3"])

    return _unpack_output(out2d, n, h, w, c_out, k)


# ---------------------------- pure-JAX reference -----------------------------

def _ref_conv1x1(x, w, b):
    # w: (Cout, Cin) ; x: NCHW
    return jnp.einsum('ncij,dc->ndij', x, w) + b[None, :, None, None]


def _ref_deconv(x, w, b, k):
    # w: (Cin, Cout, k, k) ; out[n,co,i*k+p,j*k+q] = sum_ci x[n,ci,i,j]*w[ci,co,p,q] + b[co]
    n, cin, h, wd = x.shape
    cout = w.shape[1]
    y = jnp.einsum('ncij,cdpq->ndipjq', x, w).reshape(n, cout, h * k, wd * k)
    return y + b[None, :, None, None]


def reference_forward(params, x, pool_3_out, pool_4_out):
    y = _ref_conv1x1(x, params["conv1_w"].T, params["conv1_b"])
    y = jnp.maximum(y, 0.0)  # Dropout(0.8) identity in eval
    y = _ref_conv1x1(y, params["conv2_w"].T, params["conv2_b"])
    out = _ref_deconv(y, params["up1_w"], params["up1_b"], K_UP)
    out = jnp.concatenate([out, pool_4_out], axis=1)
    out = _ref_deconv(out, params["up2_w"], params["up2_b"], K_UP)
    out = jnp.concatenate([out, pool_3_out], axis=1)
    out = _ref_deconv(out, params["up3_w"], params["up3_b"], K_UP)
    return out


# ---------------------------------- main -------------------------------------

def make_params(key):
    ks = jax.random.split(key, 12)
    s = 0.05
    # 1x1 conv weights stored directly as (Cin, Cout) matmul matrices
    # (torch Conv2d weight (Cout, Cin, 1, 1) -> reshape(Cout, Cin).T).
    return {
        "conv1_w": s * jax.random.normal(ks[0], (256, 256), jnp.float32),
        "conv1_b": s * jax.random.normal(ks[1], (256,), jnp.float32),
        "conv2_w": s * jax.random.normal(ks[2], (256, 256), jnp.float32),
        "conv2_b": s * jax.random.normal(ks[3], (256,), jnp.float32),
        # ConvTranspose2d weights in PyTorch layout (Cin, Cout, k, k)
        "up1_w": s * jax.random.normal(ks[4], (256, 128, K_UP, K_UP), jnp.float32),
        "up1_b": s * jax.random.normal(ks[5], (128,), jnp.float32),
        "up2_w": s * jax.random.normal(ks[6], (128 + CH_SKIP[0], 256, K_UP, K_UP), jnp.float32),
        "up2_b": s * jax.random.normal(ks[7], (256,), jnp.float32),
        "up3_w": s * jax.random.normal(ks[8], (256 + CH_SKIP[1], 1, K_UP, K_UP), jnp.float32),
        "up3_b": s * jax.random.normal(ks[9], (1,), jnp.float32),
    }


if __name__ == "__main__":
    key = jax.random.PRNGKey(0)
    kp, kx, k3, k4 = jax.random.split(key, 4)

    params = make_params(kp)
    packed = pack_params(params)

    N, H, W = 2, 4, 4
    x = jax.random.normal(kx, (N, 256, H, W), jnp.float32)
    pool_4_out = jax.random.normal(k4, (N, CH_SKIP[0], H * 2, W * 2), jnp.float32)
    pool_3_out = jax.random.normal(k3, (N, CH_SKIP[1], H * 4, W * 4), jnp.float32)

    fwd = jax.jit(column_decoder_forward)
    out = jax.block_until_ready(fwd(packed, x, pool_3_out, pool_4_out))

    ref = jax.block_until_ready(reference_forward(params, x, pool_3_out, pool_4_out))

    assert out.shape == (N, 1, H * 8, W * 8), out.shape
    max_err = float(jnp.max(jnp.abs(out - ref)))
    assert jnp.allclose(out, ref, atol=2e-4, rtol=2e-4), max_err

    print("KERNEL_OK")
</pallas_src>

<mosaic_0001>
module attributes {stable_mosaic.version = 11 : i64} {
  func.func @_decoder_kernel(%arg0: i32, %arg1: memref<32x256xf32, #tpu.memory_space<vmem>>, %arg2: memref<4x32x16xf32, #tpu.memory_space<vmem>>, %arg3: memref<4x32x32xf32, #tpu.memory_space<vmem>>, %arg4: memref<256x256xf32, #tpu.memory_space<vmem>>, %arg5: memref<1x256xf32, #tpu.memory_space<vmem>>, %arg6: memref<256x256xf32, #tpu.memory_space<vmem>>, %arg7: memref<1x256xf32, #tpu.memory_space<vmem>>, %arg8: memref<256x512xf32, #tpu.memory_space<vmem>>, %arg9: memref<1x512xf32, #tpu.memory_space<vmem>>, %arg10: memref<128x1024xf32, #tpu.memory_space<vmem>>, %arg11: memref<16x1024xf32, #tpu.memory_space<vmem>>, %arg12: memref<1x1024xf32, #tpu.memory_space<vmem>>, %arg13: memref<1024x16xf32, #tpu.memory_space<vmem>>, %arg14: memref<32x16xf32, #tpu.memory_space<vmem>>, %arg15: memref<1x16xf32, #tpu.memory_space<vmem>>, %arg16: memref<32x64xf32, #tpu.memory_space<vmem>>) attributes {dimension_semantics = [#tpu.dimension_semantics<parallel>], iteration_bounds = array<i64: 1>, scalar_prefetch = 0 : i64, scratch_operands = 0 : i64, tpu.core_type = #tpu.core_type<tc>, window_params = [{transform_indices = @transform_0, window_bounds = array<i64: 32, 256>}, {transform_indices = @transform_1, window_bounds = array<i64: 4, 32, 16>}, {transform_indices = @transform_2, window_bounds = array<i64: 4, 32, 32>}, {pipeline_mode = #tpu.pipeline_mode<synchronous>, transform_indices = @transform_3, window_bounds = array<i64: 256, 256>}, {pipeline_mode = #tpu.pipeline_mode<synchronous>, transform_indices = @transform_4, window_bounds = array<i64: 1, 256>}, {pipeline_mode = #tpu.pipeline_mode<synchronous>, transform_indices = @transform_5, window_bounds = array<i64: 256, 256>}, {pipeline_mode = #tpu.pipeline_mode<synchronous>, transform_indices = @transform_6, window_bounds = array<i64: 1, 256>}, {pipeline_mode = #tpu.pipeline_mode<synchronous>, transform_indices = @transform_7, window_bounds = array<i64: 256, 512>}, {pipeline_mode = #tpu.pipeline_mode<synchronous>, transform_indices = @transform_8, window_bounds = array<i64: 1, 512>}, {pipeline_mode = #tpu.pipeline_mode<synchronous>, transform_indices = @transform_9, window_bounds = array<i64: 128, 1024>}, {pipeline_mode = #tpu.pipeline_mode<synchronous>, transform_indices = @transform_10, window_bounds = array<i64: 16, 1024>}, {pipeline_mode = #tpu.pipeline_mode<synchronous>, transform_indices = @transform_11, window_bounds = array<i64: 1, 1024>}, {pipeline_mode = #tpu.pipeline_mode<synchronous>, transform_indices = @transform_12, window_bounds = array<i64: 1024, 16>}, {pipeline_mode = #tpu.pipeline_mode<synchronous>, transform_indices = @transform_13, window_bounds = array<i64: 32, 16>}, {pipeline_mode = #tpu.pipeline_mode<synchronous>, transform_indices = @transform_14, window_bounds = array<i64: 1, 16>}, {transform_indices = @transform_15, window_bounds = array<i64: 32, 64>}]} {
    %c0 = arith.constant 0 : index
    %c0_0 = arith.constant 0 : index
    %0 = vector.load %arg1[%c0, %c0_0] : memref<32x256xf32, #tpu.memory_space<vmem>>, vector<32x256xf32>
    %c0_1 = arith.constant 0 : index
    %c0_2 = arith.constant 0 : index
    %1 = vector.load %arg4[%c0_1, %c0_2] : memref<256x256xf32, #tpu.memory_space<vmem>>, vector<256x256xf32>
    %cst = arith.constant dense<0.000000e+00> : vector<32x256xf32>
    %2 = tpu.matmul %0, %1, %cst {dimension_numbers = #tpu.dot_dimension_numbers<[1], [0], [0], [1], [0, 0, 1, 1], [], []>} : vector<32x256xf32>, vector<256x256xf32>, vector<32x256xf32> -> vector<32x256xf32>
    %c0_3 = arith.constant 0 : index
    %c0_4 = arith.constant 0 : index
    %3 = vector.load %arg5[%c0_3, %c0_4] : memref<1x256xf32, #tpu.memory_space<vmem>>, vector<1x256xf32>
    %4 = vector.broadcast %3 : vector<1x256xf32> to vector<32x256xf32>
    %5 = arith.addf %2, %4 : vector<32x256xf32>
    %cst_5 = arith.constant 0.000000e+00 : f32
    %6 = vector.broadcast %cst_5 : f32 to vector<32x256xf32>
    %7 = arith.maximumf %5, %6 : vector<32x256xf32>
    %c0_6 = arith.constant 0 : index
    %c0_7 = arith.constant 0 : index
    %8 = vector.load %arg6[%c0_6, %c0_7] : memref<256x256xf32, #tpu.memory_space<vmem>>, vector<256x256xf32>
    %cst_8 = arith.constant dense<0.000000e+00> : vector<32x256xf32>
    %9 = tpu.matmul %7, %8, %cst_8 {dimension_numbers = #tpu.dot_dimension_numbers<[1], [0], [0], [1], [0, 0, 1, 1], [], []>} : vector<32x256xf32>, vector<256x256xf32>, vector<32x256xf32> -> vector<32x256xf32>
    %c0_9 = arith.constant 0 : index
    %c0_10 = arith.constant 0 : index
    %10 = vector.load %arg7[%c0_9, %c0_10] : memref<1x256xf32, #tpu.memory_space<vmem>>, vector<1x256xf32>
    %11 = vector.broadcast %10 : vector<1x256xf32> to vector<32x256xf32>
    %12 = arith.addf %9, %11 : vector<32x256xf32>
    %c0_11 = arith.constant 0 : index
    %c0_12 = arith.constant 0 : index
    %13 = vector.load %arg8[%c0_11, %c0_12] : memref<256x512xf32, #tpu.memory_space<vmem>>, vector<256x512xf32>
    %cst_13 = arith.constant dense<0.000000e+00> : vector<32x512xf32>
    %14 = tpu.matmul %12, %13, %cst_13 {dimension_numbers = #tpu.dot_dimension_numbers<[1], [0], [0], [1], [0, 0, 1, 1], [], []>} : vector<32x256xf32>, vector<256x512xf32>, vector<32x512xf32> -> vector<32x512xf32>
    %c0_14 = arith.constant 0 : index
    %c0_15 = arith.constant 0 : index
    %15 = vector.load %arg9[%c0_14, %c0_15] : memref<1x512xf32, #tpu.memory_space<vmem>>, vector<1x512xf32>
    %16 = vector.broadcast %15 : vector<1x512xf32> to vector<32x512xf32>
    %17 = arith.addf %14, %16 : vector<32x512xf32>
    %18 = vector.extract_strided_slice %17 {offsets = [0, 0], sizes = [32, 128], strides = [1, 1]} : vector<32x512xf32> to vector<32x128xf32>
    %c0_16 = arith.constant 0 : index
    %c0_17 = arith.constant 0 : index
    %19 = vector.load %arg10[%c0_16, %c0_17] : memref<128x1024xf32, #tpu.memory_space<vmem>>, vector<128x1024xf32>
    %cst_18 = arith.constant dense<0.000000e+00> : vector<32x1024xf32>
    %20 = tpu.matmul %18, %19, %cst_18 {dimension_numbers = #tpu.dot_dimension_numbers<[1], [0], [0], [1], [0, 0, 1, 1], [], []>} : vector<32x128xf32>, vector<128x1024xf32>, vector<32x1024xf32> -> vector<32x1024xf32>
    %c0_19 = arith.constant 0 : index
    %c0_20 = arith.constant 0 : index
    %c0_21 = arith.constant 0 : index
    %21 = vector.load %arg2[%c0_19, %c0_20, %c0_21] : memref<4x32x16xf32, #tpu.memory_space<vmem>>, vector<1x32x16xf32>
    %22 = vector.shape_cast %21 : vector<1x32x16xf32> to vector<32x16xf32>
    %c0_22 = arith.constant 0 : index
    %c0_23 = arith.constant 0 : index
    %23 = vector.load %arg11[%c0_22, %c0_23] : memref<16x1024xf32, #tpu.memory_space<vmem>>, vector<16x1024xf32>
    %cst_24 = arith.constant dense<0.000000e+00> : vector<32x1024xf32>
    %24 = tpu.matmul %22, %23, %cst_24 {dimension_numbers = #tpu.dot_dimension_numbers<[1], [0], [0], [1], [0, 0, 1, 1], [], []>} : vector<32x16xf32>, vector<16x1024xf32>, vector<32x1024xf32> -> vector<32x1024xf32>
    %25 = arith.addf %20, %24 : vector<32x1024xf32>
    %c0_25 = arith.constant 0 : index
    %c0_26 = arith.constant 0 : index
    %26 = vector.load %arg12[%c0_25, %c0_26] : memref<1x1024xf32, #tpu.memory_space<vmem>>, vector<1x1024xf32>
    %27 = vector.broadcast %26 : vector<1x1024xf32> to vector<32x1024xf32>
    %28 = arith.addf %25, %27 : vector<32x1024xf32>
    %c0_27 = arith.constant 0 : index
    %c0_28 = arith.constant 0 : index
    %29 = vector.load %arg13[%c0_27, %c0_28] : memref<1024x16xf32, #tpu.memory_space<vmem>>, vector<1024x16xf32>
    %cst_29 = arith.constant dense<0.000000e+00> : vector<32x16xf32>
    %30 = tpu.matmul %28, %29, %cst_29 {dimension_numbers = #tpu.dot_dimension_numbers<[1], [0], [0], [1], [0, 0, 1, 1], [], []>} : vector<32x1024xf32>, vector<1024x16xf32>, vector<32x16xf32> -> vector<32x16xf32>
    %c0_30 = arith.constant 0 : index
    %c0_31 = arith.constant 0 : index
    %c0_32 = arith.constant 0 : index
    %31 = vector.load %arg3[%c0_30, %c0_31, %c0_32] : memref<4x32x32xf32, #tpu.memory_space<vmem>>, vector<1x32x32xf32>
    %32 = vector.shape_cast %31 : vector<1x32x32xf32> to vector<32x32xf32>
    %c0_33 = arith.constant 0 : index
    %c0_34 = arith.constant 0 : index
    %33 = vector.load %arg14[%c0_33, %c0_34] : memref<32x16xf32, #tpu.memory_space<vmem>>, vector<32x16xf32>
    %cst_35 = arith.constant dense<0.000000e+00> : vector<32x16xf32>
    %34 = tpu.matmul %32, %33, %cst_35 {dimension_numbers = #tpu.dot_dimension_numbers<[1], [0], [0], [1], [0, 0, 1, 1], [], []>} : vector<32x32xf32>, vector<32x16xf32>, vector<32x16xf32> -> vector<32x16xf32>
    %35 = arith.addf %30, %34 : vector<32x16xf32>
    %c0_36 = arith.constant 0 : index
    %c0_37 = arith.constant 0 : index
    %36 = vector.load %arg15[%c0_36, %c0_37] : memref<1x16xf32, #tpu.memory_space<vmem>>, vector<1x16xf32>
    %37 = vector.broadcast %36 : vector<1x16xf32> to vector<32x16xf32>
    %38 = arith.addf %35, %37 : vector<32x16xf32>
    %c0_38 = arith.constant 0 : index
    %c0_39 = arith.constant 0 : index
    %39 = vector.load %arg16[%c0_38, %c0_39] : memref<32x64xf32, #tpu.memory_space<vmem>>, vector<32x16xf32>
    tpu.vector_store %arg16[%c0_38, %c0_39], %38 {strides = array<i32>} : memref<32x64xf32, #tpu.memory_space<vmem>>, vector<32x16xf32>,
    %40 = vector.extract_strided_slice %17 {offsets = [0, 128], sizes = [32, 128], strides = [1, 1]} : vector<32x512xf32> to vector<32x128xf32>
    %c0_40 = arith.constant 0 : index
    %c0_41 = arith.constant 0 : index
    %41 = vector.load %arg10[%c0_40, %c0_41] : memref<128x1024xf32, #tpu.memory_space<vmem>>, vector<128x1024xf32>
    %cst_42 = arith.constant dense<0.000000e+00> : vector<32x1024xf32>
    %42 = tpu.matmul %40, %41, %cst_42 {dimension_numbers = #tpu.dot_dimension_numbers<[1], [0], [0], [1], [0, 0, 1, 1], [], []>} : vector<32x128xf32>, vector<128x1024xf32>, vector<32x1024xf32> -> vector<32x1024xf32>
    %c1 = arith.constant 1 : index
    %c0_43 = arith.constant 0 : index
    %c0_44 = arith.constant 0 : index
    %43 = vector.load %arg2[%c1, %c0_43, %c0_44] : memref<4x32x16xf32, #tpu.memory_space<vmem>>, vector<1x32x16xf32>
    %44 = vector.shape_cast %43 : vector<1x32x16xf32> to vector<32x16xf32>
    %c0_45 = arith.constant 0 : index
    %c0_46 = arith.constant 0 : index
    %45 = vector.load %arg11[%c0_45, %c0_46] : memref<16x1024xf32, #tpu.memory_space<vmem>>, vector<16x1024xf32>
    %cst_47 = arith.constant dense<0.000000e+00> : vector<32x1024xf32>
    %46 = tpu.matmul %44, %45, %cst_47 {dimension_numbers = #tpu.dot_dimension_numbers<[1], [0], [0], [1], [0, 0, 1, 1], [], []>} : vector<32x16xf32>, vector<16x1024xf32>, vector<32x1024xf32> -> vector<32x1024xf32>
    %47 = arith.addf %42, %46 : vector<32x1024xf32>
    %c0_48 = arith.constant 0 : index
    %c0_49 = arith.constant 0 : index
    %48 = vector.load %arg12[%c0_48, %c0_49] : memref<1x1024xf32, #tpu.memory_space<vmem>>, vector<1x1024xf32>
    %49 = vector.broadcast %48 : vector<1x1024xf32> to vector<32x1024xf32>
    %50 = arith.addf %47, %49 : vector<32x1024xf32>
    %c0_50 = arith.constant 0 : index
    %c0_51 = arith.constant 0 : index
    %51 = vector.load %arg13[%c0_50, %c0_51] : memref<1024x16xf32, #tpu.memory_space<vmem>>, vector<1024x16xf32>
    %cst_52 = arith.constant dense<0.000000e+00> : vector<32x16xf32>
    %52 = tpu.matmul %50, %51, %cst_52 {dimension_numbers = #tpu.dot_dimension_numbers<[1], [0], [0], [1], [0, 0, 1, 1], [], []>} : vector<32x1024xf32>, vector<1024x16xf32>, vector<32x16xf32> -> vector<32x16xf32>
    %c1_53 = arith.constant 1 : index
    %c0_54 = arith.constant 0 : index
    %c0_55 = arith.constant 0 : index
    %53 = vector.load %arg3[%c1_53, %c0_54, %c0_55] : memref<4x32x32xf32, #tpu.memory_space<vmem>>, vector<1x32x32xf32>
    %54 = vector.shape_cast %53 : vector<1x32x32xf32> to vector<32x32xf32>
    %c0_56 = arith.constant 0 : index
    %c0_57 = arith.constant 0 : index
    %55 = vector.load %arg14[%c0_56, %c0_57] : memref<32x16xf32, #tpu.memory_space<vmem>>, vector<32x16xf32>
    %cst_58 = arith.constant dense<0.000000e+00> : vector<32x16xf32>
    %56 = tpu.matmul %54, %55, %cst_58 {dimension_numbers = #tpu.dot_dimension_numbers<[1], [0], [0], [1], [0, 0, 1, 1], [], []>} : vector<32x32xf32>, vector<32x16xf32>, vector<32x16xf32> -> vector<32x16xf32>
    %57 = arith.addf %52, %56 : vector<32x16xf32>
    %c0_59 = arith.constant 0 : index
    %c0_60 = arith.constant 0 : index
    %58 = vector.load %arg15[%c0_59, %c0_60] : memref<1x16xf32, #tpu.memory_space<vmem>>, vector<1x16xf32>
    %59 = vector.broadcast %58 : vector<1x16xf32> to vector<32x16xf32>
    %60 = arith.addf %57, %59 : vector<32x16xf32>
    %c0_61 = arith.constant 0 : index
    %c16 = arith.constant 16 : index
    %61 = vector.load %arg16[%c0_61, %c16] : memref<32x64xf32, #tpu.memory_space<vmem>>, vector<32x16xf32>
    tpu.vector_store %arg16[%c0_61, %c16], %60 {strides = array<i32>} : memref<32x64xf32, #tpu.memory_space<vmem>>, vector<32x16xf32>,
    %62 = vector.extract_strided_slice %17 {offsets = [0, 256], sizes = [32, 128], strides = [1, 1]} : vector<32x512xf32> to vector<32x128xf32>
    %c0_62 = arith.constant 0 : index
    %c0_63 = arith.constant 0 : index
    %63 = vector.load %arg10[%c0_62, %c0_63] : memref<128x1024xf32, #tpu.memory_space<vmem>>, vector<128x1024xf32>
    %cst_64 = arith.constant dense<0.000000e+00> : vector<32x1024xf32>
    %64 = tpu.matmul %62, %63, %cst_64 {dimension_numbers = #tpu.dot_dimension_numbers<[1], [0], [0], [1], [0, 0, 1, 1], [], []>} : vector<32x128xf32>, vector<128x1024xf32>, vector<32x1024xf32> -> vector<32x1024xf32>
    %c2 = arith.constant 2 : index
    %c0_65 = arith.constant 0 : index
    %c0_66 = arith.constant 0 : index
    %65 = vector.load %arg2[%c2, %c0_65, %c0_66] : memref<4x32x16xf32, #tpu.memory_space<vmem>>, vector<1x32x16xf32>
    %66 = vector.shape_cast %65 : vector<1x32x16xf32> to vector<32x16xf32>
    %c0_67 = arith.constant 0 : index
    %c0_68 = arith.constant 0 : index
    %67 = vector.load %arg11[%c0_67, %c0_68] : memref<16x1024xf32, #tpu.memory_space<vmem>>, vector<16x1024xf32>
    %cst_69 = arith.constant dense<0.000000e+00> : vector<32x1024xf32>
    %68 = tpu.matmul %66, %67, %cst_69 {dimension_numbers = #tpu.dot_dimension_numbers<[1], [0], [0], [1], [0, 0, 1, 1], [], []>} : vector<32x16xf32>, vector<16x1024xf32>, vector<32x1024xf32> -> vector<32x1024xf32>
    %69 = arith.addf %64, %68 : vector<32x1024xf32>
    %c0_70 = arith.constant 0 : index
    %c0_71 = arith.constant 0 : index
    %70 = vector.load %arg12[%c0_70, %c0_71] : memref<1x1024xf32, #tpu.memory_space<vmem>>, vector<1x1024xf32>
    %71 = vector.broadcast %70 : vector<1x1024xf32> to vector<32x1024xf32>
    %72 = arith.addf %69, %71 : vector<32x1024xf32>
    %c0_72 = arith.constant 0 : index
    %c0_73 = arith.constant 0 : index
    %73 = vector.load %arg13[%c0_72, %c0_73] : memref<1024x16xf32, #tpu.memory_space<vmem>>, vector<1024x16xf32>
    %cst_74 = arith.constant dense<0.000000e+00> : vector<32x16xf32>
    %74 = tpu.matmul %72, %73, %cst_74 {dimension_numbers = #tpu.dot_dimension_numbers<[1], [0], [0], [1], [0, 0, 1, 1], [], []>} : vector<32x1024xf32>, vector<1024x16xf32>, vector<32x16xf32> -> vector<32x16xf32>
    %c2_75 = arith.constant 2 : index
    %c0_76 = arith.constant 0 : index
    %c0_77 = arith.constant 0 : index
    %75 = vector.load %arg3[%c2_75, %c0_76, %c0_77] : memref<4x32x32xf32, #tpu.memory_space<vmem>>, vector<1x32x32xf32>
    %76 = vector.shape_cast %75 : vector<1x32x32xf32> to vector<32x32xf32>
    %c0_78 = arith.constant 0 : index
    %c0_79 = arith.constant 0 : index
    %77 = vector.load %arg14[%c0_78, %c0_79] : memref<32x16xf32, #tpu.memory_space<vmem>>, vector<32x16xf32>
    %cst_80 = arith.constant dense<0.000000e+00> : vector<32x16xf32>
    %78 = tpu.matmul %76, %77, %cst_80 {dimension_numbers = #tpu.dot_dimension_numbers<[1], [0], [0], [1], [0, 0, 1, 1], [], []>} : vector<32x32xf32>, vector<32x16xf32>, vector<32x16xf32> -> vector<32x16xf32>
    %79 = arith.addf %74, %78 : vector<32x16xf32>
    %c0_81 = arith.constant 0 : index
    %c0_82 = arith.constant 0 : index
    %80 = vector.load %arg15[%c0_81, %c0_82] : memref<1x16xf32, #tpu.memory_space<vmem>>, vector<1x16xf32>
    %81 = vector.broadcast %80 : vector<1x16xf32> to vector<32x16xf32>
    %82 = arith.addf %79, %81 : vector<32x16xf32>
    %c0_83 = arith.constant 0 : index
    %c32 = arith.constant 32 : index
    %83 = vector.load %arg16[%c0_83, %c32] : memref<32x64xf32, #tpu.memory_space<vmem>>, vector<32x16xf32>
    tpu.vector_store %arg16[%c0_83, %c32], %82 {strides = array<i32>} : memref<32x64xf32, #tpu.memory_space<vmem>>, vector<32x16xf32>,
    %84 = vector.extract_strided_slice %17 {offsets = [0, 384], sizes = [32, 128], strides = [1, 1]} : vector<32x512xf32> to vector<32x128xf32>
    %c0_84 = arith.constant 0 : index
    %c0_85 = arith.constant 0 : index
    %85 = vector.load %arg10[%c0_84, %c0_85] : memref<128x1024xf32, #tpu.memory_space<vmem>>, vector<128x1024xf32>
    %cst_86 = arith.constant dense<0.000000e+00> : vector<32x1024xf32>
    %86 = tpu.matmul %84, %85, %cst_86 {dimension_numbers = #tpu.dot_dimension_numbers<[1], [0], [0], [1], [0, 0, 1, 1], [], []>} : vector<32x128xf32>, vector<128x1024xf32>, vector<32x1024xf32> -> vector<32x1024xf32>
    %c3 = arith.constant 3 : index
    %c0_87 = arith.constant 0 : index
    %c0_88 = arith.constant 0 : index
    %87 = vector.load %arg2[%c3, %c0_87, %c0_88] : memref<4x32x16xf32, #tpu.memory_space<vmem>>, vector<1x32x16xf32>
    %88 = vector.shape_cast %87 : vector<1x32x16xf32> to vector<32x16xf32>
    %c0_89 = arith.constant 0 : index
    %c0_90 = arith.constant 0 : index
    %89 = vector.load %arg11[%c0_89, %c0_90] : memref<16x1024xf32, #tpu.memory_space<vmem>>, vector<16x1024xf32>
    %cst_91 = arith.constant dense<0.000000e+00> : vector<32x1024xf32>
    %90 = tpu.matmul %88, %89, %cst_91 {dimension_numbers = #tpu.dot_dimension_numbers<[1], [0], [0], [1], [0, 0, 1, 1], [], []>} : vector<32x16xf32>, vector<16x1024xf32>, vector<32x1024xf32> -> vector<32x1024xf32>
    %91 = arith.addf %86, %90 : vector<32x1024xf32>
    %c0_92 = arith.constant 0 : index
    %c0_93 = arith.constant 0 : index
    %92 = vector.load %arg12[%c0_92, %c0_93] : memref<1x1024xf32, #tpu.memory_space<vmem>>, vector<1x1024xf32>
    %93 = vector.broadcast %92 : vector<1x1024xf32> to vector<32x1024xf32>
    %94 = arith.addf %91, %93 : vector<32x1024xf32>
    %c0_94 = arith.constant 0 : index
    %c0_95 = arith.constant 0 : index
    %95 = vector.load %arg13[%c0_94, %c0_95] : memref<1024x16xf32, #tpu.memory_space<vmem>>, vector<1024x16xf32>
    %cst_96 = arith.constant dense<0.000000e+00> : vector<32x16xf32>
    %96 = tpu.matmul %94, %95, %cst_96 {dimension_numbers = #tpu.dot_dimension_numbers<[1], [0], [0], [1], [0, 0, 1, 1], [], []>} : vector<32x1024xf32>, vector<1024x16xf32>, vector<32x16xf32> -> vector<32x16xf32>
    %c3_97 = arith.constant 3 : index
    %c0_98 = arith.constant 0 : index
    %c0_99 = arith.constant 0 : index
    %97 = vector.load %arg3[%c3_97, %c0_98, %c0_99] : memref<4x32x32xf32, #tpu.memory_space<vmem>>, vector<1x32x32xf32>
    %98 = vector.shape_cast %97 : vector<1x32x32xf32> to vector<32x32xf32>
    %c0_100 = arith.constant 0 : index
    %c0_101 = arith.constant 0 : index
    %99 = vector.load %arg14[%c0_100, %c0_101] : memref<32x16xf32, #tpu.memory_space<vmem>>, vector<32x16xf32>
    %cst_102 = arith.constant dense<0.000000e+00> : vector<32x16xf32>
    %100 = tpu.matmul %98, %99, %cst_102 {dimension_numbers = #tpu.dot_dimension_numbers<[1], [0], [0], [1], [0, 0, 1, 1], [], []>} : vector<32x32xf32>, vector<32x16xf32>, vector<32x16xf32> -> vector<32x16xf32>
    %101 = arith.addf %96, %100 : vector<32x16xf32>
    %c0_103 = arith.constant 0 : index
    %c0_104 = arith.constant 0 : index
    %102 = vector.load %arg15[%c0_103, %c0_104] : memref<1x16xf32, #tpu.memory_space<vmem>>, vector<1x16xf32>
    %103 = vector.broadcast %102 : vector<1x16xf32> to vector<32x16xf32>
    %104 = arith.addf %101, %103 : vector<32x16xf32>
    %c0_105 = arith.constant 0 : index
    %c48 = arith.constant 48 : index
    %105 = vector.load %arg16[%c0_105, %c48] : memref<32x64xf32, #tpu.memory_space<vmem>>, vector<32x16xf32>
    tpu.vector_store %arg16[%c0_105, %c48], %104 {strides = array<i32>} : memref<32x64xf32, #tpu.memory_space<vmem>>, vector<32x16xf32>,
    return
  }
  func.func @transform_0(%arg0: i32) -> (i32, i32) {
    %c0_i32 = arith.constant 0 : i32
    %c0_i32_0 = arith.constant 0 : i32
    return %arg0, %c0_i32 : i32, i32
  }
  func.func @transform_1(%arg0: i32) -> (i32, i32, i32) {
    %c0_i32 = arith.constant 0 : i32
    %c0_i32_0 = arith.constant 0 : i32
    %c0_i32_1 = arith.constant 0 : i32
    return %c0_i32, %arg0, %c0_i32_0 : i32, i32, i32
  }
  func.func @transform_2(%arg0: i32) -> (i32, i32, i32) {
    %c0_i32 = arith.constant 0 : i32
    %c0_i32_0 = arith.constant 0 : i32
    %c0_i32_1 = arith.constant 0 : i32
    return %c0_i32, %arg0, %c0_i32_0 : i32, i32, i32
  }
  func.func @transform_3(%arg0: i32) -> (i32, i32) {
    %c0_i32 = arith.constant 0 : i32
    %c0_i32_0 = arith.constant 0 : i32
    %c0_i32_1 = arith.constant 0 : i32
    return %c0_i32, %c0_i32_0 : i32, i32
  }
  func.func @transform_4(%arg0: i32) -> (i32, i32) {
    %c0_i32 = arith.constant 0 : i32
    %c0_i32_0 = arith.constant 0 : i32
    %c0_i32_1 = arith.constant 0 : i32
    return %c0_i32, %c0_i32_0 : i32, i32
  }
  func.func @transform_5(%arg0: i32) -> (i32, i32) {
    %c0_i32 = arith.constant 0 : i32
    %c0_i32_0 = arith.constant 0 : i32
    %c0_i32_1 = arith.constant 0 : i32
    return %c0_i32, %c0_i32_0 : i32, i32
  }
  func.func @transform_6(%arg0: i32) -> (i32, i32) {
    %c0_i32 = arith.constant 0 : i32
    %c0_i32_0 = arith.constant 0 : i32
    %c0_i32_1 = arith.constant 0 : i32
    return %c0_i32, %c0_i32_0 : i32, i32
  }
  func.func @transform_7(%arg0: i32) -> (i32, i32) {
    %c0_i32 = arith.constant 0 : i32
    %c0_i32_0 = arith.constant 0 : i32
    %c0_i32_1 = arith.constant 0 : i32
    return %c0_i32, %c0_i32_0 : i32, i32
  }
  func.func @transform_8(%arg0: i32) -> (i32, i32) {
    %c0_i32 = arith.constant 0 : i32
    %c0_i32_0 = arith.constant 0 : i32
    %c0_i32_1 = arith.constant 0 : i32
    return %c0_i32, %c0_i32_0 : i32, i32
  }
  func.func @transform_9(%arg0: i32) -> (i32, i32) {
    %c0_i32 = arith.constant 0 : i32
    %c0_i32_0 = arith.constant 0 : i32
    %c0_i32_1 = arith.constant 0 : i32
    return %c0_i32, %c0_i32_0 : i32, i32
  }
  func.func @transform_10(%arg0: i32) -> (i32, i32) {
    %c0_i32 = arith.constant 0 : i32
    %c0_i32_0 = arith.constant 0 : i32
    %c0_i32_1 = arith.constant 0 : i32
    return %c0_i32, %c0_i32_0 : i32, i32
  }
  func.func @transform_11(%arg0: i32) -> (i32, i32) {
    %c0_i32 = arith.constant 0 : i32
    %c0_i32_0 = arith.constant 0 : i32
    %c0_i32_1 = arith.constant 0 : i32
    return %c0_i32, %c0_i32_0 : i32, i32
  }
  func.func @transform_12(%arg0: i32) -> (i32, i32) {
    %c0_i32 = arith.constant 0 : i32
    %c0_i32_0 = arith.constant 0 : i32
    %c0_i32_1 = arith.constant 0 : i32
    return %c0_i32, %c0_i32_0 : i32, i32
  }
  func.func @transform_13(%arg0: i32) -> (i32, i32) {
    %c0_i32 = arith.constant 0 : i32
    %c0_i32_0 = arith.constant 0 : i32
    %c0_i32_1 = arith.constant 0 : i32
    return %c0_i32, %c0_i32_0 : i32, i32
  }
  func.func @transform_14(%arg0: i32) -> (i32, i32) {
    %c0_i32 = arith.constant 0 : i32
    %c0_i32_0 = arith.constant 0 : i32
    %c0_i32_1 = arith.constant 0 : i32
    return %c0_i32, %c0_i32_0 : i32, i32
  }
  func.func @transform_15(%arg0: i32) -> (i32, i32) {
    %c0_i32 = arith.constant 0 : i32
    %c0_i32_0 = arith.constant 0 : i32
    return %arg0, %c0_i32 : i32, i32
  }
}

</mosaic_0001>

<bundles_post_ra>
// kernel: column_decoder_forward.1
= control target key start
LH: loop header
LB: loop body
LE: loop exit
PB: predicated region body
PF: predicated region fallthrough
CT: control target
= control target key end

     0   :  { %vm872_vm0 = vcmask 130048   ;;  %vm1807_vm1 = vcmask 261120   ;;  %s9335_s22 = smov 16   ;;  %vm3808_vm2 = vcmask 261248   ;;  %vm5361_vm3 = vcmask 392448   ;;  %s14451_s3 = inlined_call_operand.vmem [shape: f32[256,256], index: 3, kind: input, shape index: {}]   ;;  %s14452_s0 = inlined_call_operand.vmem [shape: f32[32,256], index: 0, kind: input, shape index: {}]   ;;  %s14453_s5 = inlined_call_operand.vmem [shape: f32[256,256], index: 5, kind: input, shape index: {}]   ;;  %s14454_s7 = inlined_call_operand.vmem [shape: f32[256,512], index: 7, kind: input, shape index: {}]   ;;  %s14455_s4 = inlined_call_operand.vmem [shape: f32[1,256], index: 4, kind: input, shape index: {}]   ;;  %s14456_s10 = inlined_call_operand.vmem [shape: f32[16,1024], index: 10, kind: input, shape index: {}]   ;;  %s14457_s6 = inlined_call_operand.vmem [shape: f32[1,256], index: 6, kind: input, shape index: {}]   ;;  %s14458_s9 = inlined_call_operand.vmem [shape: f32[128,1024], index: 9, kind: input, shape index: {}]   ;;  %s14459_s1 = inlined_call_operand.vmem [shape: f32[4,32,16], index: 1, kind: input, shape index: {}]   ;;  %s14460_s8 = inlined_call_operand.vmem [shape: f32[1,512], index: 8, kind: input, shape index: {}]   ;;  %s14461_s13 = inlined_call_operand.vmem [shape: f32[32,16], index: 13, kind: input, shape index: {}]   ;;  %s14462_s12 = inlined_call_operand.vmem [shape: f32[1024,16], index: 12, kind: input, shape index: {}]   ;;  %s14463_s2 = inlined_call_operand.vmem [shape: f32[4,32,32], index: 2, kind: input, shape index: {}]   ;;  %s14464_s11 = inlined_call_operand.vmem [shape: f32[1,1024], index: 11, kind: input, shape index: {}]   ;;  %s14465_s14 = inlined_call_operand.vmem [shape: f32[1,16], index: 14, kind: input, shape index: {}]   ;;  %s14466_s15 = inlined_call_operand.vmem [shape: f32[32,64], index: 15, kind: output, shape index: {}]  }
   0x1   :  { %v59_v0 = vld [vmem:[%s14451_s3 + $0x8] sm:$0xff]  ;;  %v61_v1 = vld [vmem:[%s14451_s3 + $0x18] sm:$0xff]  ;;  %v58_v2 = vld [vmem:[%s14451_s3] sm:$0xff]  ;;  %vm6914_vm4 = vcmask 523648  }
   0x2   :  { %v7823_v3 = vpack.c.bf16 %v61_v1, %v59_v0  ;;  %v60_v4 = vld [vmem:[%s14451_s3 + $0x10] sm:$0xff]  ;;  %v63_v5 = vld [vmem:[%s14451_s3 + $0x28] sm:$0xff]  ;;  %v65_v6 = vld [vmem:[%s14451_s3 + $0x38] sm:$0xff] }
   0x3   :  { %v7825_v7 = vpack.c.bf16 %v60_v4, %v58_v2  ;;  %v7827_v8 = vpack.c.bf16 %v65_v6, %v63_v5  ;;  %v62_v9 = vld [vmem:[%s14451_s3 + $0x20] sm:$0xff]  ;;  %v64_v10 = vld [vmem:[%s14451_s3 + $0x30] sm:$0xff]  ;;  %v67_v11 = vld [vmem:[%s14451_s3 + $0x48] sm:$0xff] }
   0x4   :  { %7824 = vmatprep.subr.bf16.mxu0 %v7823_v3  ;;  %v69_v12 = vld [vmem:[%s14451_s3 + $0x58] sm:$0xff]  ;;  %v7829_v13 = vpack.c.bf16 %v64_v10, %v62_v9  ;;  %v66_v15 = vld [vmem:[%s14451_s3 + $0x40] sm:$0xff]  ;;  %v68_v16 = vld [vmem:[%s14451_s3 + $0x50] sm:$0xff] }
   0x5   :  { %7826 = vmatpush1.bf16.msra.mxu0 %v7825_v7  ;;  %v7831_v14 = vpack.c.bf16 %v69_v12, %v67_v11  ;;  %v71_v17 = vld [vmem:[%s14451_s3 + $0x68] sm:$0xff]  ;;  %v73_v18 = vld [vmem:[%s14451_s3 + $0x78] sm:$0xff]  ;;  %v7833_v19 = vpack.c.bf16 %v68_v16, %v66_v15  ;;  %v70_v21 = vld [vmem:[%s14451_s3 + $0x60] sm:$0xff] }
   0x6   :  { %7828 = vmatprep.subr.bf16.mxu0 %v7827_v8  ;;  %v7835_v20 = vpack.c.bf16 %v73_v18, %v71_v17  ;;  %v72_v22 = vld [vmem:[%s14451_s3 + $0x70] sm:$0xff]  ;;  %v75_v23 = vld [vmem:[%s14451_s3 + $0x88] sm:$0xff]  ;;  %v77_v24 = vld [vmem:[%s14451_s3 + $0x98] sm:$0xff] }
   0x7   :  { %v7837_v25 = vpack.c.bf16 %v72_v22, %v70_v21  ;;  %v7839_v26 = vpack.c.bf16 %v77_v24, %v75_v23  ;;  %v74_v27 = vld [vmem:[%s14451_s3 + $0x80] sm:$0xff]  ;;  %v76_v28 = vld [vmem:[%s14451_s3 + $0x90] sm:$0xff]  ;;  %v79_v29 = vld [vmem:[%s14451_s3 + $0xa8] sm:$0xff] }
   0x8   :  { %v81_v30 = vld [vmem:[%s14451_s3 + $0xb8] sm:$0xff]  ;;  %v7841_v31 = vpack.c.bf16 %v76_v28, %v74_v27  ;;  %v78_v33 = vld [vmem:[%s14451_s3 + $0xa0] sm:$0xff]  ;;  %v80_v34 = vld [vmem:[%s14451_s3 + $0xb0] sm:$0xff] }
   0x9   :  { %7830 = vmatpush1.bf16.msra.mxu0 %v7829_v13  ;;  %v7843_v32 = vpack.c.bf16 %v81_v30, %v79_v29  ;;  %v83_v35 = vld [vmem:[%s14451_s3 + $0xc8] sm:$0xff]  ;;  %v85_v36 = vld [vmem:[%s14451_s3 + $0xd8] sm:$0xff]  ;;  %v7845_v37 = vpack.c.bf16 %v80_v34, %v78_v33  ;;  %v82_v39 = vld [vmem:[%s14451_s3 + $0xc0] sm:$0xff] }
   0xa   :  { %7832 = vmatprep.subr.bf16.mxu0 %v7831_v14  ;;  %v7847_v38 = vpack.c.bf16 %v85_v36, %v83_v35  ;;  %v84_v40 = vld [vmem:[%s14451_s3 + $0xd0] sm:$0xff]  ;;  %v51_v41 = vld [vmem:[%s14452_s0 + $0x8] sm:$0xff]  ;;  %v89_v43 = vld [vmem:[%s14451_s3 + $0xf8] sm:$0xff] }
   0xb   :  { %v87_v42 = vld [vmem:[%s14451_s3 + $0xe8] sm:$0xff]  ;;  %198 = vmatprep.mubr.f32.mxu0 %v51_v41  ;;  %v86_v44 = vld [vmem:[%s14451_s3 + $0xe0] sm:$0xff]  ;;  %v88_v45 = vld [vmem:[%s14451_s3 + $0xf0] sm:$0xff]  ;;  %v7849_v46 = vpack.c.bf16 %v84_v40, %v82_v39 }
   0xc   :  { %v91_v47 = vld [vmem:[%s14451_s3 + $0x108] sm:$0xff]  ;;  %v93_v48 = vld [vmem:[%s14451_s3 + $0x118] sm:$0xff]  ;;  %v231_v51 = vld [vmem:[%s14453_s5] sm:$0xff]  ;;  %v7851_v52 = vpack.c.bf16 %v89_v43, %v87_v42  ;;  %v7853_v63 = vpack.c.bf16 %v88_v45, %v86_v44 }
   0xd   :  { %7834 = vmatpush1.bf16.msra.mxu0 %v7833_v19  ;;  %v232_v49 = vld [vmem:[%s14453_s5 + $0x8] sm:$0xff]  ;;  %v234_v50 = vld [vmem:[%s14453_s5 + $0x18] sm:$0xff]  ;;  %v233_v54 = vld [vmem:[%s14453_s5 + $0x10] sm:$0xff]  ;;  %v7855_v3 = vpack.c.bf16 %v93_v48, %v91_v47 }
   0xe   :  { %7836 = vmatprep.subr.bf16.mxu0 %v7835_v20  ;;  %v7887_v53 = vpack.c.bf16 %v234_v50, %v232_v49  ;;  %v236_v55 = vld [vmem:[%s14453_s5 + $0x28] sm:$0xff]  ;;  %v238_v56 = vld [vmem:[%s14453_s5 + $0x38] sm:$0xff]  ;;  %v7889_v57 = vpack.c.bf16 %v233_v54, %v231_v51  ;;  %v235_v59 = vld [vmem:[%s14453_s5 + $0x20] sm:$0xff] }
   0xf   :  { %v7891_v58 = vpack.c.bf16 %v238_v56, %v236_v55  ;;  %v237_v60 = vld [vmem:[%s14453_s5 + $0x30] sm:$0xff]  ;;  %v240_v61 = vld [vmem:[%s14453_s5 + $0x48] sm:$0xff]  ;;  %v242_v62 = vld [vmem:[%s14453_s5 + $0x58] sm:$0xff] }
  0x10   :  { %7888 = vmatprep.subr.bf16.mxu1 %v7887_v53  ;;  %v90_v0 = vld [vmem:[%s14451_s3 + $0x100] sm:$0xff]  ;;  %v92_v1 = vld [vmem:[%s14451_s3 + $0x110] sm:$0xff]  ;;  %v7893_v2 = vpack.c.bf16 %v237_v60, %v235_v59  ;;  %v95_v4 = vld [vmem:[%s14451_s3 + $0x128] sm:$0xff]  ;;  %v7895_v5 = vpack.c.bf16 %v242_v62, %v240_v61 }
  0x11   :  { %7838 = vmatpush1.bf16.msra.mxu0 %v7837_v25  ;;  %7890 = vmatpush1.bf16.msra.mxu1 %v7889_v57  ;;  %v239_v6 = vld [vmem:[%s14453_s5 + $0x40] sm:$0xff]  ;;  %v241_v7 = vld [vmem:[%s14453_s5 + $0x50] sm:$0xff]  ;;  %v97_v8 = vld [vmem:[%s14451_s3 + $0x138] sm:$0xff]  ;;  %v7857_v11 = vpack.c.bf16 %v92_v1, %v90_v0 }
  0x12   :  { %7840 = vmatprep.subr.bf16.mxu0 %v7839_v26  ;;  %7892 = vmatprep.subr.bf16.mxu1 %v7891_v58  ;;  %v244_v9 = vld [vmem:[%s14453_s5 + $0x68] sm:$0xff]  ;;  %v246_v10 = vld [vmem:[%s14453_s5 + $0x78] sm:$0xff]  ;;  %v94_v12 = vld [vmem:[%s14451_s3 + $0x120] sm:$0xff]  ;;  %v7897_v14 = vpack.c.bf16 %v241_v7, %v239_v6  ;;  %v7859_v15 = vpack.c.bf16 %v97_v8, %v95_v4 }
  0x13   :  { %v96_v13 = vld [vmem:[%s14451_s3 + $0x130] sm:$0xff]  ;;  %v99_v16 = vld [vmem:[%s14451_s3 + $0x148] sm:$0xff]  ;;  %v7899_v17 = vpack.c.bf16 %v246_v10, %v244_v9  ;;  %v243_v18 = vld [vmem:[%s14453_s5 + $0x60] sm:$0xff] }
  0x14   :  { %v245_v19 = vld [vmem:[%s14453_s5 + $0x70] sm:$0xff]  ;;  %v101_v20 = vld [vmem:[%s14451_s3 + $0x158] sm:$0xff]  ;;  %v248_v21 = vld [vmem:[%s14453_s5 + $0x88] sm:$0xff]  ;;  %v7861_v23 = vpack.c.bf16 %v96_v13, %v94_v12 }
  0x15   :  { %7842 = vmatpush1.bf16.msra.mxu0 %v7841_v31  ;;  %7894 = vmatpush1.bf16.msra.mxu1 %v7893_v2  ;;  %v250_v22 = vld [vmem:[%s14453_s5 + $0x98] sm:$0xff]  ;;  %v98_v24 = vld [vmem:[%s14451_s3 + $0x140] sm:$0xff]  ;;  %v100_v25 = vld [vmem:[%s14451_s3 + $0x150] sm:$0xff]  ;;  %v7901_v26 = vpack.c.bf16 %v245_v19, %v243_v18  ;;  %v7863_v27 = vpack.c.bf16 %v101_v20, %v99_v16 }
  0x16   :  { %7844 = vmatprep.subr.bf16.mxu0 %v7843_v32  ;;  %7896 = vmatprep.subr.bf16.mxu1 %v7895_v5  ;;  %v103_v28 = vld [vmem:[%s14451_s3 + $0x168] sm:$0xff]  ;;  %v7903_v29 = vpack.c.bf16 %v250_v22, %v248_v21  ;;  %v247_v30 = vld [vmem:[%s14453_s5 + $0x80] sm:$0xff]  ;;  %v249_v31 = vld [vmem:[%s14453_s5 + $0x90] sm:$0xff]  ;;  %v7865_v35 = vpack.c.bf16 %v100_v25, %v98_v24 }
  0x17   :  { %v105_v32 = vld [vmem:[%s14451_s3 + $0x178] sm:$0xff]  ;;  %v252_v33 = vld [vmem:[%s14453_s5 + $0xa8] sm:$0xff]  ;;  %v102_v36 = vld [vmem:[%s14451_s3 + $0x160] sm:$0xff] }
  0x18   :  { %v254_v34 = vld [vmem:[%s14453_s5 + $0xb8] sm:$0xff]  ;;  %v7867_v39 = vpack.c.bf16 %v105_v32, %v103_v28  ;;  %v107_v40 = vld [vmem:[%s14451_s3 + $0x188] sm:$0xff]  ;;  %v251_v42 = vld [vmem:[%s14453_s5 + $0xa0] sm:$0xff] }
  0x19   :  { %7846 = vmatpush1.bf16.msra.mxu0 %v7845_v37  ;;  %7898 = vmatpush1.bf16.msra.mxu1 %v7897_v14  ;;  %v104_v37 = vld [vmem:[%s14451_s3 + $0x170] sm:$0xff]  ;;  %v7907_v41 = vpack.c.bf16 %v254_v34, %v252_v33  ;;  %v109_v44 = vld [vmem:[%s14451_s3 + $0x198] sm:$0xff]  ;;  %v256_v45 = vld [vmem:[%s14453_s5 + $0xc8] sm:$0xff] }
  0x1a   :  { %7848 = vmatprep.subr.bf16.mxu0 %v7847_v38  ;;  %7900 = vmatprep.subr.bf16.mxu1 %v7899_v17  ;;  %v7905_v38 = vpack.c.bf16 %v249_v31, %v247_v30  ;;  %v253_v43 = vld [vmem:[%s14453_s5 + $0xb0] sm:$0xff]  ;;  %v7869_v47 = vpack.c.bf16 %v104_v37, %v102_v36  ;;  %v106_v48 = vld [vmem:[%s14451_s3 + $0x180] sm:$0xff]  ;;  %v7871_v51 = vpack.c.bf16 %v109_v44, %v107_v40  ;;  %v113_v56 = vld [vmem:[%s14451_s3 + $0x1b8] sm:$0xff] }
  0x1b   :  { %v108_v49 = vld [vmem:[%s14451_s3 + $0x190] sm:$0xff]  ;;  %v7909_v50 = vpack.c.bf16 %v253_v43, %v251_v42  ;;  %v255_v54 = vld [vmem:[%s14453_s5 + $0xc0] sm:$0xff]  ;;  %v260_v57 = vld [vmem:[%s14453_s5 + $0xe8] sm:$0xff] }
  0x1c   :  { %v257_v55 = vld [vmem:[%s14453_s5 + $0xd0] sm:$0xff]  ;;  %v262_v58 = vld [vmem:[%s14453_s5 + $0xf8] sm:$0xff]  ;;  %v7873_v59 = vpack.c.bf16 %v108_v49, %v106_v48  ;;  %v110_v60 = vld [vmem:[%s14451_s3 + $0x1a0] sm:$0xff] }
  0x1d   :  { %7850 = vmatpush1.bf16.msra.mxu0 %v7849_v46  ;;  %7902 = vmatpush1.bf16.msra.mxu1 %v7901_v26  ;;  %v258_v46 = vld [vmem:[%s14453_s5 + $0xd8] sm:$0xff]  ;;  %v112_v61 = vld [vmem:[%s14451_s3 + $0x1b0] sm:$0xff]  ;;  %v7913_v62 = vpack.c.bf16 %v257_v55, %v255_v54  ;;  %v115_v0 = vld [vmem:[%s14451_s3 + $0x1c8] sm:$0xff]  ;;  %v7915_v1 = vpack.c.bf16 %v262_v58, %v260_v57 }
  0x1e   :  { %7852 = vmatprep.subr.bf16.mxu0 %v7851_v52  ;;  %7904 = vmatprep.subr.bf16.mxu1 %v7903_v29  ;;  %v111_v52 = vld [vmem:[%s14451_s3 + $0x1a8] sm:$0xff]  ;;  %v7911_v53 = vpack.c.bf16 %v258_v46, %v256_v45  ;;  %v259_v2 = vld [vmem:[%s14453_s5 + $0xe0] sm:$0xff]  ;;  %v117_v4 = vld [vmem:[%s14451_s3 + $0x1d8] sm:$0xff]  ;;  %v7877_v7 = vpack.c.bf16 %v112_v61, %v110_v60 }
  0x1f   :  { %v264_v5 = vld [vmem:[%s14453_s5 + $0x108] sm:$0xff]  ;;  %v266_v6 = vld [vmem:[%s14453_s5 + $0x118] sm:$0xff]  ;;  %v114_v8 = vld [vmem:[%s14451_s3 + $0x1c0] sm:$0xff] }
  0x20   :  { %v116_v9 = vld [vmem:[%s14451_s3 + $0x1d0] sm:$0xff]  ;;  %v119_v12 = vld [vmem:[%s14451_s3 + $0x1e8] sm:$0xff]  ;;  %v7919_v13 = vpack.c.bf16 %v266_v6, %v264_v5  ;;  %v263_v14 = vld [vmem:[%s14453_s5 + $0x100] sm:$0xff] }
  0x21   :  { %7854 = vmatpush1.bf16.msra.mxu0 %v7853_v63  ;;  %7906 = vmatpush1.bf16.msra.mxu1 %v7905_v38  ;;  %v7875_v63 = vpack.c.bf16 %v113_v56, %v111_v52  ;;  %v121_v16 = vld [vmem:[%s14451_s3 + $0x1f8] sm:$0xff]  ;;  %v268_v17 = vld [vmem:[%s14453_s5 + $0x128] sm:$0xff]  ;;  %v7881_v19 = vpack.c.bf16 %v116_v9, %v114_v8  ;;  %v118_v20 = vld [vmem:[%s14451_s3 + $0x1e0] sm:$0xff] }
  0x22   :  { %7856 = vmatprep.subr.bf16.mxu0 %v7855_v3  ;;  %7908 = vmatprep.subr.bf16.mxu1 %v7907_v41  ;;  %v261_v3 = vld [vmem:[%s14453_s5 + $0xf0] sm:$0xff]  ;;  %v270_v18 = vld [vmem:[%s14453_s5 + $0x138] sm:$0xff]  ;;  %v7883_v22 = vpack.c.bf16 %v121_v16, %v119_v12  ;;  %v267_v25 = vld [vmem:[%s14453_s5 + $0x120] sm:$0xff] }
  0x23   :  { %v7917_v10 = vpack.c.bf16 %v261_v3, %v259_v2  ;;  %v7923_v24 = vpack.c.bf16 %v270_v18, %v268_v17  ;;  %v269_v26 = vld [vmem:[%s14453_s5 + $0x130] sm:$0xff]  ;;  %v274_v28 = vld [vmem:[%s14453_s5 + $0x158] sm:$0xff]  ;;  %v271_v32 = vld [vmem:[%s14453_s5 + $0x140] sm:$0xff] }
  0x24   :  { %v7925_v30 = vpack.c.bf16 %v269_v26, %v267_v25  ;;  %v273_v33 = vld [vmem:[%s14453_s5 + $0x150] sm:$0xff]  ;;  %v276_v34 = vld [vmem:[%s14453_s5 + $0x168] sm:$0xff]  ;;  %v50_v36 = vld [vmem:[%s14452_s0] sm:$0xff] }
  0x25   :  { %7858 = vmatpush1.bf16.msra.mxu0 %v7857_v11  ;;  %7910 = vmatpush1.bf16.msra.mxu1 %v7909_v50  ;;  %v7879_v11 = vpack.c.bf16 %v117_v4, %v115_v0  ;;  %v7929_v37 = vpack.c.bf16 %v273_v33, %v271_v32  ;;  %v53_v38 = vld [vmem:[%s14452_s0 + $0x18] sm:$0xff]  ;;  %v275_v40 = vld [vmem:[%s14453_s5 + $0x160] sm:$0xff]  ;;  %v277_v41 = vld [vmem:[%s14453_s5 + $0x170] sm:$0xff] }
  0x26   :  { %7860 = vmatprep.subr.bf16.mxu0 %v7859_v15  ;;  %7912 = vmatprep.subr.bf16.mxu1 %v7911_v53  ;;  %v265_v15 = vld [vmem:[%s14453_s5 + $0x110] sm:$0xff]  ;;  %v280_v42 = vld [vmem:[%s14453_s5 + $0x188] sm:$0xff]  ;;  %v282_v43 = vld [vmem:[%s14453_s5 + $0x198] sm:$0xff]  ;;  %v7933_v45 = vpack.c.bf16 %v277_v41, %v275_v40 }
  0x27   :  { %v7921_v21 = vpack.c.bf16 %v265_v15, %v263_v14  ;;  %v52_v44 = vld [vmem:[%s14452_s0 + $0x10] sm:$0xff]  ;;  %v55_v46 = vld [vmem:[%s14452_s0 + $0x28] sm:$0xff]  ;;  %v279_v48 = vld [vmem:[%s14453_s5 + $0x180] sm:$0xff] }
  0x28   :  { %v281_v49 = vld [vmem:[%s14453_s5 + $0x190] sm:$0xff]  ;;  %v284_v50 = vld [vmem:[%s14453_s5 + $0x1a8] sm:$0xff]  ;;  %v54_v52 = vld [vmem:[%s14452_s0 + $0x20] sm:$0xff] }
  0x29   :  { %7862 = vmatpush1.bf16.msra.mxu0 %v7861_v23  ;;  %7914 = vmatpush1.bf16.msra.mxu1 %v7913_v62  ;;  %v120_v23 = vld [vmem:[%s14451_s3 + $0x1f0] sm:$0xff]  ;;  %v7937_v53 = vpack.c.bf16 %v281_v49, %v279_v48  ;;  %v57_v54 = vld [vmem:[%s14452_s0 + $0x38] sm:$0xff]  ;;  %v283_v56 = vld [vmem:[%s14453_s5 + $0x1a0] sm:$0xff] }
  0x2a   :  { %7864 = vmatprep.subr.bf16.mxu0 %v7863_v27  ;;  %7916 = vmatprep.subr.bf16.mxu1 %v7915_v1  ;;  %v272_v27 = vld [vmem:[%s14453_s5 + $0x148] sm:$0xff]  ;;  %v7885_v29 = vpack.c.bf16 %v120_v23, %v118_v20  ;;  %v285_v57 = vld [vmem:[%s14453_s5 + $0x1b0] sm:$0xff]  ;;  %v294_v3 = vld [vmem:[%s14453_s5 + $0x1f8] sm:$0xff] }
  0x2b   :  { %v7927_v31 = vpack.c.bf16 %v274_v28, %v272_v27  ;;  %v288_v58 = vld [vmem:[%s14453_s5 + $0x1c8] sm:$0xff]  ;;  %v56_v60 = vld [vmem:[%s14452_s0 + $0x30] sm:$0xff]  ;;  %v7941_v61 = vpack.c.bf16 %v285_v57, %v283_v56  ;;  %v291_v5 = vld [vmem:[%s14453_s5 + $0x1e0] sm:$0xff] }
  0x2c   :  { %v289_v0 = vld [vmem:[%s14453_s5 + $0x1d0] sm:$0xff]  ;;  %v292_v2 = vld [vmem:[%s14453_s5 + $0x1e8] sm:$0xff]  ;;  %v403_v12 = vld [vmem:[%s14454_s7 + $0x38] sm:$0xff] }
  0x2d   :  { %7866 = vmatpush1.bf16.msra.mxu0 %v7865_v35  ;;  %7918 = vmatpush1.bf16.msra.mxu1 %v7917_v10  ;;  %v278_v35 = vld [vmem:[%s14453_s5 + $0x178] sm:$0xff]  ;;  %v7947_v4 = vpack.c.bf16 %v294_v3, %v292_v2  ;;  %v293_v6 = vld [vmem:[%s14453_s5 + $0x1f0] sm:$0xff]  ;;  %v397_v8 = vld [vmem:[%s14454_s7 + $0x8] sm:$0xff] }
  0x2e   :  { %7868 = vmatprep.subr.bf16.mxu0 %v7867_v39  ;;  %7920 = vmatprep.subr.bf16.mxu1 %v7919_v13  ;;  %v7931_v39 = vpack.c.bf16 %v278_v35, %v276_v34  ;;  %v401_v9 = vld [vmem:[%s14454_s7 + $0x28] sm:$0xff]  ;;  %v399_v10 = vld [vmem:[%s14454_s7 + $0x18] sm:$0xff]  ;;  %v396_v13 = vld [vmem:[%s14454_s7] sm:$0xff] }
  0x2f   :  { %v400_v14 = vld [vmem:[%s14454_s7 + $0x20] sm:$0xff]  ;;  %v8015_v15 = vpack.c.bf16 %v403_v12, %v399_v10  ;;  %v405_v17 = vld [vmem:[%s14454_s7 + $0x48] sm:$0xff] }
  0x30   :  { %v7953_v16 = vpack.c.bf16 %v400_v14, %v396_v13  ;;  %v409_v18 = vld [vmem:[%s14454_s7 + $0x68] sm:$0xff]  ;;  %v404_v20 = vld [vmem:[%s14454_s7 + $0x40] sm:$0xff] }
  0x31   :  { %7870 = vmatpush1.bf16.msra.mxu0 %v7869_v47  ;;  %7922 = vmatpush1.bf16.msra.mxu1 %v7921_v21  ;;  %v7935_v47 = vpack.c.bf16 %v282_v43, %v280_v42  ;;  %v408_v21 = vld [vmem:[%s14454_s7 + $0x60] sm:$0xff]  ;;  %v413_v23 = vld [vmem:[%s14454_s7 + $0x88] sm:$0xff] }
  0x32   :  { %7872 = vmatprep.subr.bf16.mxu0 %v7871_v51  ;;  %7924 = vmatprep.subr.bf16.mxu1 %v7923_v24  ;;  %v286_v51 = vld [vmem:[%s14453_s5 + $0x1b8] sm:$0xff]  ;;  %v417_v24 = vld [vmem:[%s14454_s7 + $0xa8] sm:$0xff]  ;;  %v412_v26 = vld [vmem:[%s14454_s7 + $0x80] sm:$0xff] }
  0x33   :  { %v7939_v55 = vpack.c.bf16 %v286_v51, %v284_v50  ;;  %v7959_v25 = vpack.c.bf16 %v417_v24, %v413_v23  ;;  %v416_v27 = vld [vmem:[%s14454_s7 + $0xa0] sm:$0xff]  ;;  %v429_v34 = vld [vmem:[%s14454_s7 + $0x108] sm:$0xff] }
  0x34   :  { %v7961_v28 = vpack.c.bf16 %v416_v27, %v412_v26  ;;  %v420_v32 = vld [vmem:[%s14454_s7 + $0xc0] sm:$0xff]  ;;  %v433_v35 = vld [vmem:[%s14454_s7 + $0x128] sm:$0xff] }
  0x35   :  { %7874 = vmatpush1.bf16.msra.mxu0 %v7873_v59  ;;  %7926 = vmatpush1.bf16.msra.mxu1 %v7925_v30  ;;  %v290_v59 = vld [vmem:[%s14453_s5 + $0x1d8] sm:$0xff]  ;;  %v425_v30 = vld [vmem:[%s14454_s7 + $0xe8] sm:$0xff]  ;;  %v424_v33 = vld [vmem:[%s14454_s7 + $0xe0] sm:$0xff] }
  0x36   :  { %7876 = vmatprep.subr.bf16.mxu0 %v7875_v63  ;;  %7928 = vmatprep.subr.bf16.mxu1 %v7927_v31  ;;  %v7943_v62 = vpack.c.bf16 %v290_v59, %v288_v58  ;;  %v287_v63 = vld [vmem:[%s14453_s5 + $0x1c0] sm:$0xff]  ;;  %v437_v40 = vld [vmem:[%s14454_s7 + $0x148] sm:$0xff]  ;;  %s9336_s5 = smov 32  }
  0x37   :  { %v7945_v1 = vpack.c.bf16 %v289_v0, %v287_v63  ;;  %v441_v41 = vld [vmem:[%s14454_s7 + $0x168] sm:$0xff]  ;;  %v444_v50 = vld [vmem:[%s14454_s7 + $0x180] sm:$0xff] }
  0x38   :  { %v7971_v43 = vpack.c.bf16 %v441_v41, %v437_v40  ;;  %v448_v51 = vld [vmem:[%s14454_s7 + $0x1a0] sm:$0xff]  ;;  %v461_v58 = vld [vmem:[%s14454_s7 + $0x208] sm:$0xff] }
  0x39   :  { %7878 = vmatpush1.bf16.msra.mxu0 %v7877_v7  ;;  %7930 = vmatpush1.bf16.msra.mxu1 %v7929_v37  ;;  %v7949_v7 = vpack.c.bf16 %v293_v6, %v291_v5  ;;  %v7967_v37 = vpack.c.bf16 %v433_v35, %v429_v34  ;;  %v452_v56 = vld [vmem:[%s14454_s7 + $0x1c0] sm:$0xff]  ;;  %v465_v59 = vld [vmem:[%s14454_s7 + $0x228] sm:$0xff] }
  0x3a   :  { %7880 = vmatprep.subr.bf16.mxu0 %v7879_v11  ;;  %7932 = vmatprep.subr.bf16.mxu1 %v7931_v39  ;;  %v7951_v11 = vpack.c.bf16 %v401_v9, %v397_v8  ;;  %v432_v39 = vld [vmem:[%s14454_s7 + $0x120] sm:$0xff]  ;;  %v469_v0 = vld [vmem:[%s14454_s7 + $0x248] sm:$0xff] }
  0x3b   :  { %v456_v57 = vld [vmem:[%s14454_s7 + $0x1e0] sm:$0xff]  ;;  %v477_v6 = vld [vmem:[%s14454_s7 + $0x288] sm:$0xff] }
  0x3c   :  { %v464_v63 = vld [vmem:[%s14454_s7 + $0x220] sm:$0xff]  ;;  %v485_v12 = vld [vmem:[%s14454_s7 + $0x2c8] sm:$0xff] }
  0x3d   :  { %7882 = vmatpush1.bf16.msra.mxu0 %v7881_v19  ;;  %7934 = vmatpush1.bf16.msra.mxu1 %v7933_v45  ;;  %v7955_v19 = vpack.c.bf16 %v409_v18, %v405_v17  ;;  %v440_v45 = vld [vmem:[%s14454_s7 + $0x160] sm:$0xff]  ;;  %v489_v13 = vld [vmem:[%s14454_s7 + $0x2e8] sm:$0xff] }
  0x3e   :  { %7884 = vmatprep.subr.bf16.mxu0 %v7883_v22  ;;  %7936 = vmatprep.subr.bf16.mxu1 %v7935_v47  ;;  %v7957_v22 = vpack.c.bf16 %v408_v21, %v404_v20  ;;  %v449_v47 = vld [vmem:[%s14454_s7 + $0x1a8] sm:$0xff]  ;;  %v472_v5 = vld [vmem:[%s14454_s7 + $0x260] sm:$0xff] }
  0x3f   :  { %v476_v10 = vld [vmem:[%s14454_s7 + $0x280] sm:$0xff]  ;;  %v493_v18 = vld [vmem:[%s14454_s7 + $0x308] sm:$0xff] }
  0x40   :  { %v488_v17 = vld [vmem:[%s14454_s7 + $0x2e0] sm:$0xff]  ;;  %v501_v24 = vld [vmem:[%s14454_s7 + $0x348] sm:$0xff] }
  0x41   :  { %7886 = vmatpush1.bf16.msra.mxu0 %v7885_v29  ;;  %7938 = vmatpush1.bf16.msra.mxu1 %v7937_v53  ;;  %v421_v29 = vld [vmem:[%s14454_s7 + $0xc8] sm:$0xff]  ;;  %v496_v23 = vld [vmem:[%s14454_s7 + $0x320] sm:$0xff] }
  0x42   :  { %7940 = vmatprep.subr.bf16.mxu1 %v7939_v55  ;;  %7952 = vmatprep.subr.bf16.mxu0 %v7951_v11  ;;  %v7963_v31 = vpack.c.bf16 %v425_v30, %v421_v29  ;;  %v457_v53 = vld [vmem:[%s14454_s7 + $0x1e8] sm:$0xff]  ;;  %v480_v11 = vld [vmem:[%s14454_s7 + $0x2a0] sm:$0xff] }
  0x43   :  { %v7993_v14 = vpack.c.bf16 %v480_v11, %v476_v10  ;;  %v504_v29 = vld [vmem:[%s14454_s7 + $0x360] sm:$0xff]  ;;  %v509_v30 = vld [vmem:[%s14454_s7 + $0x388] sm:$0xff]  ;;  %v423_v10 = vld [vmem:[%s14454_s7 + $0xd8] sm:$0xff] }
  0x44   :  { %199 = vmatmul.mubr.f32.vlgmr.msra.gmra.mrb[0].mxu0 %v50_v36  ;;  %v7965_v36 = vpack.c.bf16 %v424_v33, %v420_v32  ;;  %v508_v34 = vld [vmem:[%s14454_s7 + $0x380] sm:$0xff]  ;;  %v427_v11 = vld [vmem:[%s14454_s7 + $0xf8] sm:$0xff] }
  0x45   :  { %204 = vmatprep.mubr.f32.mxu0 %v53_v38  ;;  %7942 = vmatpush1.bf16.msra.mxu1 %v7941_v61  ;;  %v428_v38 = vld [vmem:[%s14454_s7 + $0x100] sm:$0xff]  ;;  %v7983_v61 = vpack.c.bf16 %v465_v59, %v461_v58  ;;  %v406_v59 = vld [vmem:[%s14454_s7 + $0x50] sm:$0xff] }
  0x46   :  { %7944 = vmatprep.subr.bf16.mxu1 %v7943_v62  ;;  %7954 = vmatpush1.bf16.msra.mxu0 %v7953_v16  ;;  %v7969_v42 = vpack.c.bf16 %v432_v39, %v428_v38  ;;  %v460_v62 = vld [vmem:[%s14454_s7 + $0x200] sm:$0xff] }
  0x47   :  { %7956 = vmatprep.subr.bf16.mxu0 %v7955_v19  ;;  %v7985_v2 = vpack.c.bf16 %v464_v63, %v460_v62  ;;  %v484_v16 = vld [vmem:[%s14454_s7 + $0x2c0] sm:$0xff]  ;;  %v497_v19 = vld [vmem:[%s14454_s7 + $0x328] sm:$0xff]  ;;  %v415_v62 = vld [vmem:[%s14454_s7 + $0x98] sm:$0xff] }
  0x48   :  { %205 = vmatmul.mubr.f32.gmra.mrb[2].mxu0 %v52_v44  ;;  %v436_v44 = vld [vmem:[%s14454_s7 + $0x140] sm:$0xff]  ;;  %v7997_v20 = vpack.c.bf16 %v488_v17, %v484_v16  ;;  %v7999_v21 = vpack.c.bf16 %v497_v19, %v493_v18  ;;  %v419_v63 = vld [vmem:[%s14454_s7 + $0xb8] sm:$0xff]  ;;  %v8027_v18 = vpack.c.bf16 %v427_v11, %v423_v10  ;;  %v422_v19 = vld [vmem:[%s14454_s7 + $0xd0] sm:$0xff] }
  0x49   :  { %210 = vmatprep.mubr.f32.mxu0 %v55_v46  ;;  %7946 = vmatpush1.bf16.msra.mxu1 %v7945_v1  ;;  %v445_v46 = vld [vmem:[%s14454_s7 + $0x188] sm:$0xff]  ;;  %v7973_v48 = vpack.c.bf16 %v440_v45, %v436_v44  ;;  %v512_v35 = vld [vmem:[%s14454_s7 + $0x3a0] sm:$0xff]  ;;  %v490_v10 = vld [vmem:[%s14454_s7 + $0x2f0] sm:$0xff] }
  0x4a   :  { %7948 = vmatprep.subr.bf16.mxu1 %v7947_v4  ;;  %7958 = vmatpush1.bf16.msra.mxu0 %v7957_v22  ;;  %v7975_v49 = vpack.c.bf16 %v449_v47, %v445_v46  ;;  %v473_v1 = vld [vmem:[%s14454_s7 + $0x268] sm:$0xff]  ;;  %v468_v4 = vld [vmem:[%s14454_s7 + $0x240] sm:$0xff]  ;;  %v398_v47 = vld [vmem:[%s14454_s7 + $0x10] sm:$0xff] }
  0x4b   :  { %7960 = vmatprep.subr.bf16.mxu0 %v7959_v25  ;;  %v7987_v3 = vpack.c.bf16 %v473_v1, %v469_v0  ;;  %v7989_v8 = vpack.c.bf16 %v472_v5, %v468_v4  ;;  %v492_v22 = vld [vmem:[%s14454_s7 + $0x300] sm:$0xff]  ;;  %v505_v25 = vld [vmem:[%s14454_s7 + $0x368] sm:$0xff]  ;;  %v495_v11 = vld [vmem:[%s14454_s7 + $0x318] sm:$0xff] }
  0x4c   :  { %211 = vmatmul.mubr.f32.gmra.mrb[4].mxu0 %v54_v52  ;;  %v453_v52 = vld [vmem:[%s14454_s7 + $0x1c8] sm:$0xff]  ;;  %v8001_v26 = vpack.c.bf16 %v496_v23, %v492_v22  ;;  %v8003_v27 = vpack.c.bf16 %v505_v25, %v501_v24  ;;  %v122_v40 = vld [vmem:[%s14455_s4] sm:$0x3]  ;;  %v431_v22 = vld [vmem:[%s14454_s7 + $0x118] sm:$0xff] }
  0x4d   :  { %216 = vmatprep.mubr.f32.mxu0 %v57_v54  ;;  %7950 = vmatpush1.bf16.msra.mxu1 %v7949_v7  ;;  %v7977_v54 = vpack.c.bf16 %v448_v51, %v444_v50  ;;  %v7979_v55 = vpack.c.bf16 %v457_v53, %v453_v52  ;;  %v481_v7 = vld [vmem:[%s14454_s7 + $0x2a8] sm:$0xff]  ;;  %v407_v50 = vld [vmem:[%s14454_s7 + $0x58] sm:$0xff] }
  0x4e   :  { %8016 = vmatprep.subr.bf16.mxu1 %v8015_v15  ;;  %7962 = vmatpush1.bf16.msra.mxu0 %v7961_v28  ;;  %v7991_v9 = vpack.c.bf16 %v481_v7, %v477_v6  ;;  %v7995_v15 = vpack.c.bf16 %v489_v13, %v485_v12  ;;  %v500_v28 = vld [vmem:[%s14454_s7 + $0x340] sm:$0xff]  ;;  %v411_v51 = vld [vmem:[%s14454_s7 + $0x78] sm:$0xff]  ;;  %v8023_v6 = vpack.c.bf16 %v419_v63, %v415_v62  ;;  %v414_v7 = vld [vmem:[%s14454_s7 + $0x90] sm:$0xff] }
  0x4f   :  { %7964 = vmatprep.subr.bf16.mxu0 %v7963_v31  ;;  %v513_v31 = vld [vmem:[%s14454_s7 + $0x3a8] sm:$0xff]  ;;  %v8005_v32 = vpack.c.bf16 %v504_v29, %v500_v28  ;;  %v8019_v58 = vpack.c.bf16 %v411_v51, %v407_v50  ;;  %v435_v23 = vld [vmem:[%s14454_s7 + $0x138] sm:$0xff]  ;;  %v430_v28 = vld [vmem:[%s14454_s7 + $0x110] sm:$0xff] }
  0x50   :  { %217 = vmatmul.mubr.f32.gmra.mrb[6].mxu0 %v56_v60  ;;  %v7981_v60 = vpack.c.bf16 %v456_v57, %v452_v56  ;;  %v8007_v33 = vpack.c.bf16 %v513_v31, %v509_v30  ;;  %v434_v29 = vld [vmem:[%s14454_s7 + $0x130] sm:$0xff]  ;;  %v439_v30 = vld [vmem:[%s14454_s7 + $0x158] sm:$0xff] }
  0x51   :  { %v443_v31 = vld [vmem:[%s14454_s7 + $0x178] sm:$0xff]  ;;  %v458_v50 = vld [vmem:[%s14454_s7 + $0x1f0] sm:$0xff] }
  0x52   :  { %7966 = vmatpush1.bf16.msra.mxu0 %v7965_v36  ;;  %v8009_v36 = vpack.c.bf16 %v512_v35, %v508_v34  ;;  %v438_v34 = vld [vmem:[%s14454_s7 + $0x150] sm:$0xff]  ;;  %v463_v51 = vld [vmem:[%s14454_s7 + $0x218] sm:$0xff] }
  0x53   :  { %7968 = vmatprep.subr.bf16.mxu0 %v7967_v37  ;;  %v124_v37 = vlaneseq  ;;  %v442_v35 = vld [vmem:[%s14454_s7 + $0x170] sm:$0xff]  ;;  %v479_v63 = vld [vmem:[%s14454_s7 + $0x298] sm:$0xff] }
  0x54   :  { %v474_v62 = vld [vmem:[%s14454_s7 + $0x270] sm:$0xff] }
  0x55   :  { %v10012_v38 = vshrl.u32 %v124_v37, 7  ;;  %v451_v37 = vld [vmem:[%s14454_s7 + $0x1b8] sm:$0xff] }
  0x56   :  { %7970 = vmatpush1.bf16.msra.mxu0 %v7969_v42 }
  0x57   :  { %7972 = vmatprep.subr.bf16.mxu0 %v7971_v43  ;;  %v10015_v39 = vsub.s32 0, %v10012_v38  ;;  %v10021_v41 = vsub.s32 1, %v10012_v38 }
  0x59   :  { %v127_v42 = vrot.slane %v122_v40, %v10015_v39  ;;  %v131_v43 = vrot.slane %v122_v40, %v10021_v41  ;;  %v8037_v40 = vpack.c.bf16 %v442_v35, %v438_v34  ;;  %v523_v34 = vld [vmem:[%s14454_s7 + $0x3f8] sm:$0xff]  ;;  %v516_v35 = vld [vmem:[%s14454_s7 + $0x3c0] sm:$0xff] }
  0x5a   :  { %7974 = vmatpush1.bf16.msra.mxu0 %v7973_v48  ;;  %v402_v48 = vld [vmem:[%s14454_s7 + $0x30] sm:$0xff] }
  0x5b   :  { %7976 = vmatprep.subr.bf16.mxu0 %v7975_v49 }
  0x5e   :  { %7978 = vmatpush1.bf16.msra.mxu0 %v7977_v54  ;;  %v8017_v54 = vpack.c.bf16 %v402_v48, %v398_v47 }
  0x5f   :  { %7980 = vmatprep.subr.bf16.mxu0 %v7979_v55 }
  0x62   :  { %7982 = vmatpush1.bf16.msra.mxu0 %v7981_v60  ;;  %v410_v60 = vld [vmem:[%s14454_s7 + $0x70] sm:$0xff] }
  0x63   :  { %7984 = vmatprep.subr.bf16.mxu0 %v7983_v61 }
  0x66   :  { %7986 = vmatpush1.bf16.msra.mxu0 %v7985_v2 }
  0x67   :  { %7988 = vmatprep.subr.bf16.mxu0 %v7987_v3  ;;  %v8021_v3 = vpack.c.bf16 %v410_v60, %v406_v59 }
  0x6a   :  { %7990 = vmatpush1.bf16.msra.mxu0 %v7989_v8  ;;  %v418_v8 = vld [vmem:[%s14454_s7 + $0xb0] sm:$0xff] }
  0x6b   :  { %7992 = vmatprep.subr.bf16.mxu0 %v7991_v9 }
  0x6e   :  { %7994 = vmatpush1.bf16.msra.mxu0 %v7993_v14 }
  0x6f   :  { %7996 = vmatprep.subr.bf16.mxu0 %v7995_v15  ;;  %v8025_v15 = vpack.c.bf16 %v418_v8, %v414_v7 }
  0x72   :  { %7998 = vmatpush1.bf16.msra.mxu0 %v7997_v20  ;;  %v426_v20 = vld [vmem:[%s14454_s7 + $0xf0] sm:$0xff] }
  0x73   :  { %8000 = vmatprep.subr.bf16.mxu0 %v7999_v21 }
  0x76   :  { %8002 = vmatpush1.bf16.msra.mxu0 %v8001_v26  ;;  %v8029_v26 = vpack.c.bf16 %v426_v20, %v422_v19 }
  0x77   :  { %8004 = vmatprep.subr.bf16.mxu0 %v8003_v27  ;;  %v8031_v27 = vpack.c.bf16 %v435_v23, %v431_v22  ;;  %v506_v22 = vld [vmem:[%s14454_s7 + $0x370] sm:$0xff]  ;;  %v511_v23 = vld [vmem:[%s14454_s7 + $0x398] sm:$0xff] }
  0x7a   :  { %8006 = vmatpush1.bf16.msra.mxu0 %v8005_v32  ;;  %v8033_v32 = vpack.c.bf16 %v434_v29, %v430_v28  ;;  %v514_v28 = vld [vmem:[%s14454_s7 + $0x3b0] sm:$0xff] }
  0x7b   :  { %8008 = vmatprep.subr.bf16.mxu0 %v8007_v33  ;;  %v8035_v33 = vpack.c.bf16 %v443_v31, %v439_v30  ;;  %v517_v30 = vld [vmem:[%s14454_s7 + $0x3c8] sm:$0xff] }
  0x7c   :  { %v521_v31 = vld [vmem:[%s14454_s7 + $0x3e8] sm:$0xff] }
  0x7e   :  { %8010 = vmatpush1.bf16.msra.mxu0 %v8009_v36  ;;  %v447_v36 = vld [vmem:[%s14454_s7 + $0x198] sm:$0xff] }
 0x117   :  { %v200_v44 = vpop.f32.mrb[0].mxu0 }
 0x118   :  { %v201_v45 = vadd.f32 %v200_v44, %v127_v42  ;;  %v202_v46 = vpop.f32.mrb[1].mxu0  ;;  %v450_v44 = vld [vmem:[%s14454_s7 + $0x1b0] sm:$0xff] }
 0x119   :  { %v203_v49 = vadd.f32 %v202_v46, %v131_v43  ;;  %v459_v46 = vld [vmem:[%s14454_s7 + $0x1f8] sm:$0xff] }
 0x11a   :  { %v223_v55 = vmax.f32 %v201_v45, 0.0  ;;  %v455_v45 = vld [vmem:[%s14454_s7 + $0x1d8] sm:$0xff] }
 0x11b   :  { %v206_v52 = vpop.f32.mrb[2].mxu0  ;;  %v224_v53 = vmax.f32 %v203_v49, 0.0  ;;  %v8043_v48 = vpack.c.bf16 %v459_v46, %v455_v45  ;;  %v454_v49 = vld [vmem:[%s14454_s7 + $0x1d0] sm:$0xff]  ;;  %v857_v45 = vld [vmem:[%s14456_s10 + $0x8] sm:$0xff] }
 0x11c   :  { %v207_v56 = vadd.f32 %v206_v52, %v127_v42  ;;  %v208_v57 = vpop.f32.mrb[3].mxu0  ;;  %v467_v52 = vld [vmem:[%s14454_s7 + $0x238] sm:$0xff]  ;;  %v865_v46 = vld [vmem:[%s14456_s10 + $0x48] sm:$0xff] }
 0x11d   :  { %v209_v61 = vadd.f32 %v208_v57, %v131_v43  ;;  %371 = vmatprep.mubr.f32.mxu1 %v224_v53  ;;  %v8045_v53 = vpack.c.bf16 %v458_v50, %v454_v49  ;;  %v471_v57 = vld [vmem:[%s14454_s7 + $0x258] sm:$0xff] }
 0x11e   :  { %v225_v0 = vmax.f32 %v207_v56, 0.0  ;;  %372 = vmatmul.mubr.f32.vlgmr.msra.gmra.mrb[0].mxu1 %v223_v55  ;;  %v462_v55 = vld [vmem:[%s14454_s7 + $0x210] sm:$0xff]  ;;  %v867_v49 = vld [vmem:[%s14456_s10 + $0x58] sm:$0xff] }
 0x11f   :  { %v226_v1 = vmax.f32 %v209_v61, 0.0  ;;  %v212_v2 = vpop.f32.mrb[4].mxu0  ;;  %8018 = vmatpush1.bf16.msra.mxu1 %v8017_v54  ;;  %v8047_v54 = vpack.c.bf16 %v467_v52, %v463_v51  ;;  %v466_v56 = vld [vmem:[%s14454_s7 + $0x230] sm:$0xff]  ;;  %v295_v51 = vld [vmem:[%s14457_s6] sm:$0x3] }
 0x120   :  { %v213_v4 = vadd.f32 %v212_v2, %v127_v42  ;;  %v214_v5 = vpop.f32.mrb[5].mxu0  ;;  %8020 = vmatprep.subr.bf16.mxu1 %v8019_v58  ;;  %v475_v58 = vld [vmem:[%s14454_s7 + $0x278] sm:$0xff]  ;;  %v8049_v59 = vpack.c.bf16 %v466_v56, %v462_v55  ;;  %v470_v61 = vld [vmem:[%s14454_s7 + $0x250] sm:$0xff]  ;;  %v304_v52 = vrot.slane %v295_v51, %v10021_v41  ;;  %v300_v55 = vrot.slane %v295_v51, %v10015_v39 }
 0x121   :  { %v215_v9 = vadd.f32 %v214_v5, %v131_v43  ;;  %377 = vmatprep.mubr.f32.mxu1 %v226_v1  ;;  %v8051_v60 = vpack.c.bf16 %v475_v58, %v471_v57  ;;  %v8053_v1 = vpack.c.bf16 %v474_v62, %v470_v61  ;;  %v487_v5 = vld [vmem:[%s14454_s7 + $0x2d8] sm:$0xff]  ;;  %v858_v56 = vld [vmem:[%s14456_s10 + $0x10] sm:$0xff]  ;;  %v861_v58 = vld [vmem:[%s14456_s10 + $0x28] sm:$0xff] }
 0x122   :  { %v227_v12 = vmax.f32 %v213_v4, 0.0  ;;  %378 = vmatmul.mubr.f32.gmra.mrb[2].mxu1 %v225_v0  ;;  %v483_v0 = vld [vmem:[%s14454_s7 + $0x2b8] sm:$0xff]  ;;  %v482_v4 = vld [vmem:[%s14454_s7 + $0x2b0] sm:$0xff] }
 0x123   :  { %v228_v13 = vmax.f32 %v215_v9, 0.0  ;;  %v218_v14 = vpop.f32.mrb[6].mxu0  ;;  %8022 = vmatpush1.bf16.msra.mxu1 %v8021_v3  ;;  %v8055_v2 = vpack.c.bf16 %v483_v0, %v479_v63  ;;  %v478_v3 = vld [vmem:[%s14454_s7 + $0x290] sm:$0xff]  ;;  %v863_v61 = vld [vmem:[%s14456_s10 + $0x38] sm:$0xff] }
 0x124   :  { %v219_v16 = vadd.f32 %v218_v14, %v127_v42  ;;  %v220_v17 = vpop.f32.mrb[7].mxu0  ;;  %8024 = vmatprep.subr.bf16.mxu1 %v8023_v6  ;;  %v8039_v42 = vpack.c.bf16 %v451_v37, %v447_v36  ;;  %v491_v6 = vld [vmem:[%s14454_s7 + $0x2f8] sm:$0xff]  ;;  %v8057_v7 = vpack.c.bf16 %v482_v4, %v478_v3  ;;  %v486_v9 = vld [vmem:[%s14454_s7 + $0x2d0] sm:$0xff]  ;;  %v520_v36 = vld [vmem:[%s14454_s7 + $0x3e0] sm:$0xff] }
 0x125   :  { %v221_v21 = vadd.f32 %v220_v17, %v131_v43  ;;  %383 = vmatprep.mubr.f32.mxu1 %v228_v13  ;;  %v446_v43 = vld [vmem:[%s14454_s7 + $0x190] sm:$0xff]  ;;  %v8059_v8 = vpack.c.bf16 %v491_v6, %v487_v5  ;;  %v8061_v13 = vpack.c.bf16 %v490_v10, %v486_v9  ;;  %v503_v17 = vld [vmem:[%s14454_s7 + $0x358] sm:$0xff] }
 0x126   :  { %v229_v24 = vmax.f32 %v219_v16, 0.0  ;;  %384 = vmatmul.mubr.f32.gmra.mrb[4].mxu1 %v227_v12  ;;  %v8041_v47 = vpack.c.bf16 %v450_v44, %v446_v43  ;;  %v499_v12 = vld [vmem:[%s14454_s7 + $0x338] sm:$0xff]  ;;  %v498_v16 = vld [vmem:[%s14454_s7 + $0x330] sm:$0xff] }
 0x127   :  { %v230_v25 = vmax.f32 %v221_v21, 0.0  ;;  %8026 = vmatpush1.bf16.msra.mxu1 %v8025_v15  ;;  %v8063_v14 = vpack.c.bf16 %v499_v12, %v495_v11  ;;  %v494_v15 = vld [vmem:[%s14454_s7 + $0x310] sm:$0xff]  ;;  %v871_v62 = vld [vmem:[%s14456_s10 + $0x78] sm:$0xff] }
 0x128   :  { %8028 = vmatprep.subr.bf16.mxu1 %v8027_v18  ;;  %v507_v18 = vld [vmem:[%s14454_s7 + $0x378] sm:$0xff]  ;;  %v8065_v19 = vpack.c.bf16 %v498_v16, %v494_v15  ;;  %v502_v21 = vld [vmem:[%s14454_s7 + $0x350] sm:$0xff]  ;;  %v8091_v5 = vpack.c.bf16 %v871_v62, %v863_v61  ;;  %v764_v61 = vld [vmem:[%s14458_s9 + $0x140] sm:$0xff] }
 0x129   :  { %389 = vmatprep.mubr.f32.mxu1 %v230_v25  ;;  %v8067_v20 = vpack.c.bf16 %v507_v18, %v503_v17  ;;  %v8069_v25 = vpack.c.bf16 %v506_v22, %v502_v21  ;;  %v522_v43 = vld [vmem:[%s14454_s7 + $0x3f0] sm:$0xff]  ;;  %v860_v18 = vld [vmem:[%s14456_s10 + $0x20] sm:$0xff]  ;;  %v725_v22 = vld [vmem:[%s14458_s9 + $0x8] sm:$0xff] }
 0x12a   :  { %390 = vmatmul.mubr.f32.gmra.mrb[6].mxu1 %v229_v24  ;;  %v515_v24 = vld [vmem:[%s14454_s7 + $0x3b8] sm:$0xff]  ;;  %v866_v57 = vld [vmem:[%s14456_s10 + $0x50] sm:$0xff] }
 0x12b   :  { %8030 = vmatpush1.bf16.msra.mxu1 %v8029_v26  ;;  %v8071_v26 = vpack.c.bf16 %v515_v24, %v511_v23  ;;  %v870_v21 = vld [vmem:[%s14456_s10 + $0x70] sm:$0xff]  ;;  %v733_v23 = vld [vmem:[%s14458_s9 + $0x48] sm:$0xff]  ;;  %v727_v24 = vld [vmem:[%s14458_s9 + $0x18] sm:$0xff] }
 0x12c   :  { %8032 = vmatprep.subr.bf16.mxu1 %v8031_v27  ;;  %v510_v27 = vld [vmem:[%s14454_s7 + $0x390] sm:$0xff] }
 0x12d   :  { %v8073_v29 = vpack.c.bf16 %v514_v28, %v510_v27  ;;  %v852_v27 = vld [vmem:[%s14459_s1] sm:$0xff] }
 0x12f   :  { %8034 = vmatpush1.bf16.msra.mxu1 %v8033_v32  ;;  %v519_v32 = vld [vmem:[%s14454_s7 + $0x3d8] sm:$0xff] }
 0x130   :  { %8036 = vmatprep.subr.bf16.mxu1 %v8035_v33  ;;  %v8011_v33 = vpack.c.bf16 %v521_v31, %v517_v30  ;;  %v8075_v37 = vpack.c.bf16 %v523_v34, %v519_v32  ;;  %v8095_v30 = vpack.c.bf16 %v733_v23, %v725_v22  ;;  %v853_v32 = vld [vmem:[%s14459_s1 + $0x8] sm:$0xff]  ;;  %v10318_v34 = vld [vmem:[%s14459_s1 + $0x18] sm:$0xff] }
 0x132   :  { %8012 = vmatprep.subr.bf16.mxu0 %v8011_v33  ;;  %v10307_v33 = vld [vmem:[%s14459_s1 + $0x10] sm:$0xff] }
 0x133   :  { %8038 = vmatpush1.bf16.msra.mxu1 %v8037_v40  ;;  %v8013_v40 = vpack.c.bf16 %v520_v36, %v516_v35  ;;  %v724_v35 = vld [vmem:[%s14458_s9] sm:$0xff] }
 0x134   :  { %8040 = vmatprep.subr.bf16.mxu1 %v8039_v42  ;;  %v518_v42 = vld [vmem:[%s14454_s7 + $0x3d0] sm:$0xff]  ;;  %v732_v36 = vld [vmem:[%s14458_s9 + $0x40] sm:$0xff] }
 0x135   :  { %v8077_v44 = vpack.c.bf16 %v522_v43, %v518_v42  ;;  %8014 = vmatpush1.bf16.msra.mxu0 %v8013_v40  ;;  %v734_v40 = vld [vmem:[%s14458_s9 + $0x50] sm:$0xff]  ;;  %v741_v42 = vld [vmem:[%s14458_s9 + $0x88] sm:$0xff] }
 0x136   :  { %v749_v43 = vld [vmem:[%s14458_s9 + $0xc8] sm:$0xff] }
 0x137   :  { %8042 = vmatpush1.bf16.msra.mxu1 %v8041_v47  ;;  %v8079_v47 = vpack.c.bf16 %v865_v46, %v857_v45  ;;  %v751_v45 = vld [vmem:[%s14458_s9 + $0xd8] sm:$0xff]  ;;  %v8097_v46 = vpack.c.bf16 %v732_v36, %v724_v35  ;;  %v812_v35 = vld [vmem:[%s14458_s9 + $0x2c0] sm:$0xff] }
 0x138   :  { %8044 = vmatprep.subr.bf16.mxu1 %v8043_v48  ;;  %v859_v48 = vld [vmem:[%s14456_s10 + $0x18] sm:$0xff] }
 0x139   :  { %v8083_v50 = vpack.c.bf16 %v867_v49, %v859_v48  ;;  %8080 = vmatprep.subr.bf16.mxu0 %v8079_v47  ;;  %v740_v48 = vld [vmem:[%s14458_s9 + $0x80] sm:$0xff] }
 0x13a   :  { %v748_v49 = vld [vmem:[%s14458_s9 + $0xc0] sm:$0xff] }
 0x13b   :  { %8046 = vmatpush1.bf16.msra.mxu1 %v8045_v53  ;;  %v856_v53 = vld [vmem:[%s14456_s10] sm:$0xff] }
 0x13c   :  { %8048 = vmatprep.subr.bf16.mxu1 %v8047_v54  ;;  %v864_v54 = vld [vmem:[%s14456_s10 + $0x40] sm:$0xff] }
 0x13f   :  { %8050 = vmatpush1.bf16.msra.mxu1 %v8049_v59 }
 0x140   :  { %8052 = vmatprep.subr.bf16.mxu1 %v8051_v60  ;;  %v869_v60 = vld [vmem:[%s14456_s10 + $0x68] sm:$0xff] }
 0x141   :  { %v8087_v4 = vpack.c.bf16 %v869_v60, %v861_v58  ;;  %v8101_v58 = vpack.c.bf16 %v748_v49, %v740_v48  ;;  %v756_v60 = vld [vmem:[%s14458_s9 + $0x100] sm:$0xff] }
 0x142   :  { %v820_v48 = vld [vmem:[%s14458_s9 + $0x300] sm:$0xff] }
 0x143   :  { %8054 = vmatpush1.bf16.msra.mxu1 %v8053_v1  ;;  %v8081_v1 = vpack.c.bf16 %v864_v54, %v856_v53  ;;  %v750_v53 = vld [vmem:[%s14458_s9 + $0xd0] sm:$0xff]  ;;  %v757_v54 = vld [vmem:[%s14458_s9 + $0x108] sm:$0xff]  ;;  %v828_v49 = vld [vmem:[%s14458_s9 + $0x340] sm:$0xff] }
 0x144   :  { %8056 = vmatprep.subr.bf16.mxu1 %v8055_v2  ;;  %v8085_v2 = vpack.c.bf16 %v866_v57, %v858_v56  ;;  %v759_v56 = vld [vmem:[%s14458_s9 + $0x118] sm:$0xff] }
 0x145   :  { %v767_v57 = vld [vmem:[%s14458_s9 + $0x158] sm:$0xff] }
 0x147   :  { %8058 = vmatpush1.bf16.msra.mxu1 %v8057_v7 }
 0x148   :  { %8060 = vmatprep.subr.bf16.mxu1 %v8059_v8 }
 0x14b   :  { %8062 = vmatpush1.bf16.msra.mxu1 %v8061_v13 }
 0x14c   :  { %8064 = vmatprep.subr.bf16.mxu1 %v8063_v14 }
 0x14f   :  { %8066 = vmatpush1.bf16.msra.mxu1 %v8065_v19  ;;  %v868_v19 = vld [vmem:[%s14456_s10 + $0x60] sm:$0xff] }
 0x150   :  { %8068 = vmatprep.subr.bf16.mxu1 %v8067_v20  ;;  %v862_v20 = vld [vmem:[%s14456_s10 + $0x30] sm:$0xff]  ;;  %v8089_v28 = vpack.c.bf16 %v868_v19, %v860_v18 }
 0x153   :  { %8070 = vmatpush1.bf16.msra.mxu1 %v8069_v25  ;;  %v735_v25 = vld [vmem:[%s14458_s9 + $0x58] sm:$0xff] }
 0x154   :  { %8072 = vmatprep.subr.bf16.mxu1 %v8071_v26  ;;  %v9334_v26 = vmov 0.0   ;;  %v8127_v31 = vpack.c.bf16 %v735_v25, %v727_v24  ;;  %v790_v24 = vld [vmem:[%s14458_s9 + $0x210] sm:$0xff] }
 0x155   :  { %v798_v25 = vld [vmem:[%s14458_s9 + $0x250] sm:$0xff] }
 0x157   :  { %8074 = vmatpush1.bf16.msra.mxu1 %v8073_v29  ;;  %v8093_v29 = vpack.c.bf16 %v870_v21, %v862_v20  ;;  %v788_v20 = vld [vmem:[%s14458_s9 + $0x200] sm:$0xff] }
 0x158   :  { %8076 = vmatprep.subr.bf16.mxu1 %v8075_v37  ;;  %v726_v37 = vld [vmem:[%s14458_s9 + $0x10] sm:$0xff]  ;;  %v796_v21 = vld [vmem:[%s14458_s9 + $0x240] sm:$0xff] }
 0x159   :  { %v8129_v47 = vpack.c.bf16 %v734_v40, %v726_v37  ;;  %v814_v40 = vld [vmem:[%s14458_s9 + $0x2d0] sm:$0xff] }
 0x15b   :  { %8078 = vmatpush1.bf16.msra.mxu1 %v8077_v44  ;;  %v743_v44 = vld [vmem:[%s14458_s9 + $0x98] sm:$0xff] }
 0x15c   :  { %8084 = vmatprep.subr.bf16.mxu1 %v8083_v50  ;;  %v8099_v50 = vpack.c.bf16 %v749_v43, %v741_v42  ;;  %v8131_v51 = vpack.c.bf16 %v751_v45, %v743_v44  ;;  %v821_v42 = vld [vmem:[%s14458_s9 + $0x308] sm:$0xff]  ;;  %v823_v44 = vld [vmem:[%s14458_s9 + $0x318] sm:$0xff] }
 0x15d   :  { %v829_v43 = vld [vmem:[%s14458_s9 + $0x348] sm:$0xff]  ;;  %v831_v45 = vld [vmem:[%s14458_s9 + $0x358] sm:$0xff] }
 0x1f1   :  { %v373_v59 = vpop.f32.mrb[0].mxu1 }
 0x1f2   :  { %v375_v63 = vpop.f32.mrb[1].mxu1  ;;  %v374_v3 = vadd.f32 %v373_v59, %v300_v55 }
 0x1f3   :  { %v376_v0 = vadd.f32 %v375_v63, %v304_v52  ;;  %v8135_v63 = vpack.c.bf16 %v767_v57, %v759_v56  ;;  %v839_v56 = vld [vmem:[%s14458_s9 + $0x398] sm:$0xff] }
 0x1f4   :  { %v847_v57 = vld [vmem:[%s14458_s9 + $0x3d8] sm:$0xff] }
 0x1f5   :  { %v379_v6 = vpop.f32.mrb[2].mxu1  ;;  %610 = vmatprep.mubr.f32.mxu0 %v376_v0  ;;  %699 = vmatprep.mubr.f32.mxu1 %v376_v0  ;;  %v758_v0 = vld [vmem:[%s14458_s9 + $0x110] sm:$0xff] }
 0x1f6   :  { %v380_v7 = vadd.f32 %v379_v6, %v300_v55  ;;  %v381_v8 = vpop.f32.mrb[3].mxu1  ;;  %611 = vmatmul.mubr.f32.vlgmr.msra.gmra.mrb[8].mxu0 %v374_v3  ;;  %700 = vmatmul.mubr.f32.vlgmr.msra.gmra.mrb[8].mxu1 %v374_v3  ;;  %v781_v3 = vld [vmem:[%s14458_s9 + $0x1c8] sm:$0xff]  ;;  %v8105_v6 = vpack.c.bf16 %v764_v61, %v756_v60  ;;  %v836_v60 = vld [vmem:[%s14458_s9 + $0x380] sm:$0xff] }
 0x1f7   :  { %v382_v9 = vadd.f32 %v381_v8, %v304_v52  ;;  %8082 = vmatpush1.bf16.msra.mxu0 %v8081_v1  ;;  %8086 = vmatpush1.bf16.msra.mxu1 %v8085_v2  ;;  %v766_v1 = vld [vmem:[%s14458_s9 + $0x150] sm:$0xff]  ;;  %v773_v2 = vld [vmem:[%s14458_s9 + $0x188] sm:$0xff]  ;;  %v772_v8 = vld [vmem:[%s14458_s9 + $0x180] sm:$0xff] }
 0x1f8   :  { %8088 = vmatprep.subr.bf16.mxu0 %v8087_v4  ;;  %8092 = vmatprep.subr.bf16.mxu1 %v8091_v5  ;;  %v775_v4 = vld [vmem:[%s14458_s9 + $0x198] sm:$0xff] }
 0x1f9   :  { %v385_v10 = vpop.f32.mrb[4].mxu1  ;;  %616 = vmatprep.mubr.f32.mxu0 %v382_v9  ;;  %705 = vmatprep.mubr.f32.mxu1 %v382_v9  ;;  %v783_v5 = vld [vmem:[%s14458_s9 + $0x1d8] sm:$0xff]  ;;  %v780_v9 = vld [vmem:[%s14458_s9 + $0x1c0] sm:$0xff] }
 0x1fa   :  { %v386_v11 = vadd.f32 %v385_v10, %v300_v55  ;;  %v387_v12 = vpop.f32.mrb[5].mxu1  ;;  %617 = vmatmul.mubr.f32.gmra.mrb[10].mxu0 %v380_v7  ;;  %706 = vmatmul.mubr.f32.gmra.mrb[10].mxu1 %v380_v7  ;;  %v8137_v7 = vpack.c.bf16 %v766_v1, %v758_v0  ;;  %v8107_v10 = vpack.c.bf16 %v781_v3, %v773_v2  ;;  %v838_v0 = vld [vmem:[%s14458_s9 + $0x390] sm:$0xff] }
 0x1fb   :  { %v388_v13 = vadd.f32 %v387_v12, %v304_v52  ;;  %v774_v12 = vld [vmem:[%s14458_s9 + $0x190] sm:$0xff]  ;;  %v8109_v18 = vpack.c.bf16 %v780_v9, %v772_v8  ;;  %v739_v8 = vld [vmem:[%s14458_s9 + $0x78] sm:$0xff] }
 0x1fc   :  { %v846_v1 = vld [vmem:[%s14458_s9 + $0x3d0] sm:$0xff] }
 0x1fd   :  { %v391_v14 = vpop.f32.mrb[6].mxu1  ;;  %622 = vmatprep.mubr.f32.mxu0 %v388_v13  ;;  %711 = vmatprep.mubr.f32.mxu1 %v388_v13  ;;  %v782_v13 = vld [vmem:[%s14458_s9 + $0x1d0] sm:$0xff]  ;;  %v8157_v3 = vpack.c.bf16 %v846_v1, %v838_v0 }
 0x1fe   :  { %v392_v15 = vadd.f32 %v391_v14, %v300_v55  ;;  %v393_v16 = vpop.f32.mrb[7].mxu1  ;;  %623 = vmatmul.mubr.f32.gmra.mrb[12].mxu0 %v386_v11  ;;  %712 = vmatmul.mubr.f32.gmra.mrb[12].mxu1 %v386_v11  ;;  %v765_v55 = vld [vmem:[%s14458_s9 + $0x148] sm:$0xff]  ;;  %v8139_v11 = vpack.c.bf16 %v783_v5, %v775_v4  ;;  %v8141_v19 = vpack.c.bf16 %v782_v13, %v774_v12  ;;  %v736_v13 = vld [vmem:[%s14458_s9 + $0x60] sm:$0xff] }
 0x1ff   :  { %v394_v17 = vadd.f32 %v393_v16, %v304_v52  ;;  %v742_v52 = vld [vmem:[%s14458_s9 + $0x90] sm:$0xff]  ;;  %v8103_v62 = vpack.c.bf16 %v765_v55, %v757_v54  ;;  %v789_v14 = vld [vmem:[%s14458_s9 + $0x208] sm:$0xff]  ;;  %v791_v16 = vld [vmem:[%s14458_s9 + $0x218] sm:$0xff] }
 0x200   :  { %v8133_v59 = vpack.c.bf16 %v750_v53, %v742_v52  ;;  %v822_v52 = vld [vmem:[%s14458_s9 + $0x310] sm:$0xff]  ;;  %v837_v54 = vld [vmem:[%s14458_s9 + $0x388] sm:$0xff] }
 0x201   :  { %628 = vmatprep.mubr.f32.mxu0 %v394_v17  ;;  %717 = vmatprep.mubr.f32.mxu1 %v394_v17  ;;  %v799_v17 = vld [vmem:[%s14458_s9 + $0x258] sm:$0xff]  ;;  %v830_v53 = vld [vmem:[%s14458_s9 + $0x350] sm:$0xff]  ;;  %v845_v55 = vld [vmem:[%s14458_s9 + $0x3c8] sm:$0xff] }
 0x202   :  { %629 = vmatmul.mubr.f32.gmra.mrb[14].mxu0 %v392_v15  ;;  %718 = vmatmul.mubr.f32.gmra.mrb[14].mxu1 %v392_v15  ;;  %v797_v15 = vld [vmem:[%s14458_s9 + $0x248] sm:$0xff]  ;;  %v8143_v23 = vpack.c.bf16 %v799_v17, %v791_v16  ;;  %v8123_v61 = vpack.c.bf16 %v845_v55, %v837_v54 }
 0x203   :  { %949 = vmatprep.mubr.f32.mxu0 %v9334_v26  ;;  %1038 = vmatprep.mubr.f32.mxu1 %v9334_v26  ;;  %v8111_v22 = vpack.c.bf16 %v797_v15, %v789_v14  ;;  %v729_v4 = vld [vmem:[%s14458_s9 + $0x28] sm:$0xff]  ;;  %v730_v14 = vld [vmem:[%s14458_s9 + $0x30] sm:$0xff] }
 0x204   :  { %v737_v5 = vld [vmem:[%s14458_s9 + $0x68] sm:$0xff]  ;;  %v738_v15 = vld [vmem:[%s14458_s9 + $0x70] sm:$0xff] }
 0x205   :  { %v745_v16 = vld [vmem:[%s14458_s9 + $0xa8] sm:$0xff] }
 0x206   :  { %6923 = vmatmul.mubr.msk.f32.vlgmr.msra.gmra.mrb[16].mxu0 %vm872_vm0, %v852_v27  ;;  %6927 = vmatmul.mubr.msk.f32.vlgmr.msra.gmra.mrb[16].mxu1 %vm872_vm0, %v852_v27  ;;  %v753_v17 = vld [vmem:[%s14458_s9 + $0xe8] sm:$0xff] }
 0x207   :  { %8090 = vmatpush1.bf16.msra.mxu0 %v8089_v28  ;;  %955 = vmatprep.mubr.f32.mxu0 %v9334_v26  ;;  %v813_v28 = vld [vmem:[%s14458_s9 + $0x2c8] sm:$0xff] }
 0x208   :  { %1044 = vmatprep.mubr.f32.mxu1 %v9334_v26  ;;  %8094 = vmatpush1.bf16.msra.mxu1 %v8093_v29  ;;  %v807_v29 = vld [vmem:[%s14458_s9 + $0x298] sm:$0xff]  ;;  %v777_v54 = vld [vmem:[%s14458_s9 + $0x1a8] sm:$0xff] }
 0x209   :  { %8096 = vmatprep.subr.bf16.mxu0 %v8095_v30  ;;  %8128 = vmatprep.subr.bf16.mxu1 %v8127_v31  ;;  %v815_v30 = vld [vmem:[%s14458_s9 + $0x2d8] sm:$0xff]  ;;  %v8113_v31 = vpack.c.bf16 %v796_v21, %v788_v20  ;;  %v785_v55 = vld [vmem:[%s14458_s9 + $0x1e8] sm:$0xff] }
 0x20a   :  { %6924 = vmatmul.mubr.msk.f32.gmra.mrb[18].mxu0 %vm872_vm0, %v853_v32  ;;  %6928 = vmatmul.mubr.msk.f32.gmra.mrb[18].mxu1 %vm872_vm0, %v853_v32  ;;  %v8147_v37 = vpack.c.bf16 %v815_v30, %v807_v29  ;;  %v752_v29 = vld [vmem:[%s14458_s9 + $0xe0] sm:$0xff]  ;;  %v746_v30 = vld [vmem:[%s14458_s9 + $0xb0] sm:$0xff] }
 0x20b   :  { %961 = vmatprep.mubr.f32.mxu0 %v9334_v26  ;;  %1050 = vmatprep.mubr.f32.mxu1 %v9334_v26 }
 0x20e   :  { %6925 = vmatmul.mubr.msk.f32.gmra.mrb[20].mxu0 %vm872_vm0, %v10307_v33  ;;  %6929 = vmatmul.mubr.msk.f32.gmra.mrb[20].mxu1 %vm872_vm0, %v10307_v33 }
 0x20f   :  { %967 = vmatprep.mubr.f32.mxu0 %v9334_v26  ;;  %1056 = vmatprep.mubr.f32.mxu1 %v9334_v26 }
 0x212   :  { %6926 = vmatmul.mubr.msk.f32.gmra.mrb[22].mxu0 %vm872_vm0, %v10318_v34  ;;  %6930 = vmatmul.mubr.msk.f32.gmra.mrb[22].mxu1 %vm872_vm0, %v10318_v34 }
 0x213   :  { %1127 = vmatprep.mubr.f32.mxu0 %v9334_v26  ;;  %1216 = vmatprep.mubr.f32.mxu1 %v9334_v26 }
 0x216   :  { %6931 = vmatmul.mubr.msk.f32.vlgmr.msra.gmra.mrb[24].mxu0 %vm872_vm0, %v852_v27  ;;  %6935 = vmatmul.mubr.msk.f32.vlgmr.msra.gmra.mrb[24].mxu1 %vm872_vm0, %v852_v27  ;;  %v805_v27 = vld [vmem:[%s14458_s9 + $0x288] sm:$0xff] }
 0x217   :  { %8098 = vmatpush1.bf16.msra.mxu0 %v8097_v46  ;;  %8130 = vmatpush1.bf16.msra.mxu1 %v8129_v47  ;;  %v8115_v36 = vpack.c.bf16 %v813_v28, %v805_v27 }
 0x218   :  { %8100 = vmatprep.subr.bf16.mxu0 %v8099_v50  ;;  %8132 = vmatprep.subr.bf16.mxu1 %v8131_v51  ;;  %v8119_v50 = vpack.c.bf16 %v829_v43, %v821_v42  ;;  %v8151_v51 = vpack.c.bf16 %v831_v45, %v823_v44  ;;  %v760_v44 = vld [vmem:[%s14458_s9 + $0x120] sm:$0xff] }
 0x219   :  { %1133 = vmatprep.mubr.f32.mxu0 %v9334_v26  ;;  %1222 = vmatprep.mubr.f32.mxu1 %v9334_v26 }
 0x21a   :  { %6932 = vmatmul.mubr.msk.f32.gmra.mrb[26].mxu0 %vm872_vm0, %v853_v32  ;;  %6936 = vmatmul.mubr.msk.f32.gmra.mrb[26].mxu1 %vm872_vm0, %v853_v32  ;;  %v8145_v32 = vpack.c.bf16 %v798_v25, %v790_v24  ;;  %v744_v24 = vld [vmem:[%s14458_s9 + $0xa0] sm:$0xff] }
 0x21b   :  { %8102 = vmatpush1.bf16.msra.mxu0 %v8101_v58  ;;  %8134 = vmatpush1.bf16.msra.mxu1 %v8133_v59  ;;  %v8121_v58 = vpack.c.bf16 %v828_v49, %v820_v48  ;;  %v8153_v59 = vpack.c.bf16 %v830_v53, %v822_v52  ;;  %v8165_v42 = vpack.c.bf16 %v752_v29, %v744_v24  ;;  %v768_v48 = vld [vmem:[%s14458_s9 + $0x160] sm:$0xff]  ;;  %v762_v49 = vld [vmem:[%s14458_s9 + $0x130] sm:$0xff]  ;;  %v809_v24 = vld [vmem:[%s14458_s9 + $0x2a8] sm:$0xff] }
 0x21c   :  { %8104 = vmatprep.subr.bf16.mxu0 %v8103_v62  ;;  %8136 = vmatprep.subr.bf16.mxu1 %v8135_v63  ;;  %v8155_v62 = vpack.c.bf16 %v847_v57, %v839_v56  ;;  %v844_v63 = vld [vmem:[%s14458_s9 + $0x3c0] sm:$0xff]  ;;  %v779_v56 = vld [vmem:[%s14458_s9 + $0x1b8] sm:$0xff] }
 0x21d   :  { %1139 = vmatprep.mubr.f32.mxu0 %v9334_v26  ;;  %1228 = vmatprep.mubr.f32.mxu1 %v9334_v26  ;;  %v8125_v2 = vpack.c.bf16 %v844_v63, %v836_v60  ;;  %v787_v57 = vld [vmem:[%s14458_s9 + $0x1f8] sm:$0xff] }
 0x21e   :  { %6933 = vmatmul.mubr.msk.f32.gmra.mrb[28].mxu0 %vm872_vm0, %v10307_v33  ;;  %6937 = vmatmul.mubr.msk.f32.gmra.mrb[28].mxu1 %vm872_vm0, %v10307_v33  ;;  %v804_v33 = vld [vmem:[%s14458_s9 + $0x280] sm:$0xff] }
 0x21f   :  { %8106 = vmatpush1.bf16.msra.mxu0 %v8105_v6  ;;  %8138 = vmatpush1.bf16.msra.mxu1 %v8137_v7  ;;  %v8117_v46 = vpack.c.bf16 %v812_v35, %v804_v33  ;;  %v731_v6 = vld [vmem:[%s14458_s9 + $0x38] sm:$0xff]  ;;  %v8159_v7 = vpack.c.bf16 %v737_v5, %v729_v4  ;;  %v761_v35 = vld [vmem:[%s14458_s9 + $0x128] sm:$0xff] }
 0x220   :  { %8108 = vmatprep.subr.bf16.mxu0 %v8107_v10  ;;  %8140 = vmatprep.subr.bf16.mxu1 %v8139_v11  ;;  %v8191_v9 = vpack.c.bf16 %v739_v8, %v731_v6  ;;  %v524_v10 = vld [vmem:[%s14460_s8] sm:$0xf]  ;;  %v793_v4 = vld [vmem:[%s14458_s9 + $0x228] sm:$0xff]  ;;  %v8171_v6 = vpack.c.bf16 %v785_v55, %v777_v54 }
 0x221   :  { %1145 = vmatprep.mubr.f32.mxu0 %v9334_v26  ;;  %1234 = vmatprep.mubr.f32.mxu1 %v9334_v26  ;;  %v728_v11 = vld [vmem:[%s14458_s9 + $0x20] sm:$0xff]  ;;  %v10545_v12 = vrot.slane %v524_v10, %v10015_v39  ;;  %v801_v8 = vld [vmem:[%s14458_s9 + $0x268] sm:$0xff]  ;;  %v803_v10 = vld [vmem:[%s14458_s9 + $0x278] sm:$0xff] }
 0x222   :  { %6934 = vmatmul.mubr.msk.f32.gmra.mrb[30].mxu0 %vm872_vm0, %v10318_v34  ;;  %6938 = vmatmul.mubr.msk.f32.gmra.mrb[30].mxu1 %vm872_vm0, %v10318_v34  ;;  %v806_v34 = vld [vmem:[%s14458_s9 + $0x290] sm:$0xff]  ;;  %v824_v54 = vld [vmem:[%s14458_s9 + $0x320] sm:$0xff] }
 0x223   :  { %8110 = vmatpush1.bf16.msra.mxu0 %v8109_v18  ;;  %8142 = vmatpush1.bf16.msra.mxu1 %v8141_v19  ;;  %v8149_v47 = vpack.c.bf16 %v814_v40, %v806_v34  ;;  %v747_v18 = vld [vmem:[%s14458_s9 + $0xb8] sm:$0xff]  ;;  %v832_v55 = vld [vmem:[%s14458_s9 + $0x360] sm:$0xff] }
 0x224   :  { %8112 = vmatprep.subr.bf16.mxu0 %v8111_v22  ;;  %8144 = vmatprep.subr.bf16.mxu1 %v8143_v23  ;;  %v755_v19 = vld [vmem:[%s14458_s9 + $0xf8] sm:$0xff]  ;;  %v8161_v22 = vpack.c.bf16 %v736_v13, %v728_v11  ;;  %v8193_v23 = vpack.c.bf16 %v738_v15, %v730_v14  ;;  %v792_v15 = vld [vmem:[%s14458_s9 + $0x220] sm:$0xff] }
 0x225   :  { %1305 = vmatprep.mubr.f32.mxu0 %v9334_v26  ;;  %1394 = vmatprep.mubr.f32.mxu1 %v9334_v26  ;;  %v8195_v33 = vpack.c.bf16 %v755_v19, %v747_v18  ;;  %v771_v34 = vld [vmem:[%s14458_s9 + $0x178] sm:$0xff]  ;;  %v8175_v19 = vpack.c.bf16 %v801_v8, %v793_v4 }
 0x227   :  { %8114 = vmatpush1.bf16.msra.mxu0 %v8113_v31  ;;  %8146 = vmatpush1.bf16.msra.mxu1 %v8145_v32  ;;  %v754_v31 = vld [vmem:[%s14458_s9 + $0xf0] sm:$0xff]  ;;  %v8163_v32 = vpack.c.bf16 %v753_v17, %v745_v16  ;;  %v800_v16 = vld [vmem:[%s14458_s9 + $0x260] sm:$0xff] }
 0x228   :  { %8116 = vmatprep.subr.bf16.mxu0 %v8115_v36  ;;  %8148 = vmatprep.subr.bf16.mxu1 %v8147_v37  ;;  %v769_v36 = vld [vmem:[%s14458_s9 + $0x168] sm:$0xff]  ;;  %v763_v37 = vld [vmem:[%s14458_s9 + $0x138] sm:$0xff]  ;;  %v8197_v43 = vpack.c.bf16 %v754_v31, %v746_v30 }
 0x229   :  { %v8167_v52 = vpack.c.bf16 %v769_v36, %v761_v35  ;;  %v8199_v53 = vpack.c.bf16 %v771_v34, %v763_v37  ;;  %v817_v30 = vld [vmem:[%s14458_s9 + $0x2e8] sm:$0xff]  ;;  %v811_v31 = vld [vmem:[%s14458_s9 + $0x2b8] sm:$0xff]  ;;  %v808_v36 = vld [vmem:[%s14458_s9 + $0x2a0] sm:$0xff] }
 0x22a   :  { %v816_v37 = vld [vmem:[%s14458_s9 + $0x2e0] sm:$0xff]  ;;  %v8179_v34 = vpack.c.bf16 %v817_v30, %v809_v24  ;;  %v1805_v24 = vld [vmem:[%s14461_s13 + $0x10] sm:$0xff] }
 0x22b   :  { %8118 = vmatpush1.bf16.msra.mxu0 %v8117_v46  ;;  %8150 = vmatpush1.bf16.msra.mxu1 %v8149_v47  ;;  %v1671_v30 = vld [vmem:[%s14462_s12] sm:$0xff] }
 0x22c   :  { %8120 = vmatprep.subr.bf16.mxu0 %v8119_v50  ;;  %8152 = vmatprep.subr.bf16.mxu1 %v8151_v51  ;;  %v770_v50 = vld [vmem:[%s14458_s9 + $0x170] sm:$0xff] }
 0x22d   :  { %v8201_v60 = vpack.c.bf16 %v770_v50, %v762_v49  ;;  %v827_v49 = vld [vmem:[%s14458_s9 + $0x338] sm:$0xff] }
 0x22e   :  { %v835_v50 = vld [vmem:[%s14458_s9 + $0x378] sm:$0xff] }
 0x22f   :  { %8122 = vmatpush1.bf16.msra.mxu0 %v8121_v58  ;;  %8154 = vmatpush1.bf16.msra.mxu1 %v8153_v59  ;;  %v8169_v59 = vpack.c.bf16 %v768_v48, %v760_v44  ;;  %v825_v44 = vld [vmem:[%s14458_s9 + $0x328] sm:$0xff] }
 0x230   :  { %8124 = vmatprep.subr.bf16.mxu0 %v8123_v61  ;;  %8156 = vmatprep.subr.bf16.mxu1 %v8155_v62  ;;  %v776_v61 = vld [vmem:[%s14458_s9 + $0x1a0] sm:$0xff]  ;;  %v833_v48 = vld [vmem:[%s14458_s9 + $0x368] sm:$0xff] }
 0x231   :  { %v784_v62 = vld [vmem:[%s14458_s9 + $0x1e0] sm:$0xff] }
 0x232   :  { %v8173_v13 = vpack.c.bf16 %v784_v62, %v776_v61  ;;  %v849_v61 = vld [vmem:[%s14458_s9 + $0x3e8] sm:$0xff]  ;;  %v843_v62 = vld [vmem:[%s14458_s9 + $0x3b8] sm:$0xff] }
 0x233   :  { %8126 = vmatpush1.bf16.msra.mxu0 %v8125_v2  ;;  %8158 = vmatpush1.bf16.msra.mxu1 %v8157_v3  ;;  %v778_v2 = vld [vmem:[%s14458_s9 + $0x1b0] sm:$0xff] }
 0x234   :  { %8160 = vmatprep.subr.bf16.mxu0 %v8159_v7  ;;  %8192 = vmatprep.subr.bf16.mxu1 %v8191_v9  ;;  %v786_v3 = vld [vmem:[%s14458_s9 + $0x1f0] sm:$0xff]  ;;  %v8203_v7 = vpack.c.bf16 %v787_v57, %v779_v56  ;;  %v795_v9 = vld [vmem:[%s14458_s9 + $0x238] sm:$0xff]  ;;  %v8183_v56 = vpack.c.bf16 %v833_v48, %v825_v44  ;;  %v8215_v57 = vpack.c.bf16 %v835_v50, %v827_v49  ;;  %v1720_v44 = vld [vmem:[%s14462_s12 + $0x188] sm:$0xff] }
 0x235   :  { %v8205_v14 = vpack.c.bf16 %v786_v3, %v778_v2  ;;  %v851_v2 = vld [vmem:[%s14458_s9 + $0x3f8] sm:$0xff]  ;;  %v8185_v3 = vpack.c.bf16 %v832_v55, %v824_v54  ;;  %v1691_v48 = vld [vmem:[%s14462_s12 + $0xa0] sm:$0xff]  ;;  %v1692_v49 = vld [vmem:[%s14462_s12 + $0xa8] sm:$0xff] }
 0x236   :  { %v1676_v54 = vld [vmem:[%s14462_s12 + $0x28] sm:$0xff]  ;;  %v1693_v55 = vld [vmem:[%s14462_s12 + $0xb0] sm:$0xff] }
 0x2c9   :  { %v612_v20 = vpop.f32.mrb[8].mxu0  ;;  %v10568_v21 = vpop.f32.mrb[8].mxu1 }
 0x2ca   :  { %v10574_v25 = vadd.f32 %v612_v20, %v10545_v12  ;;  %v10576_v27 = vpop.f32.mrb[9].mxu0  ;;  %v10578_v28 = vpop.f32.mrb[9].mxu1  ;;  %v8207_v20 = vpack.c.bf16 %v803_v10, %v795_v9  ;;  %v8219_v9 = vpack.c.bf16 %v851_v2, %v843_v62  ;;  %v842_v10 = vld [vmem:[%s14458_s9 + $0x3b0] sm:$0xff]  ;;  %v1799_v62 = vld [vmem:[%s14463_s2] sm:$0xff]  ;;  %v1704_v2 = vld [vmem:[%s14462_s12 + $0x108] sm:$0xff] }
 0x2cc   :  { %1306 = vmatmul.mubr.f32.vlgmr.msra.gmra.mrb[16].mxu0 %v10574_v25  ;;  %1395 = vmatmul.mubr.f32.vlgmr.msra.gmra.mrb[16].mxu1 %v10574_v25 }
 0x2cd   :  { %8162 = vmatpush1.bf16.msra.mxu0 %v8161_v22  ;;  %8194 = vmatpush1.bf16.msra.mxu1 %v8193_v23  ;;  %v618_v40 = vpop.f32.mrb[10].mxu0  ;;  %v10606_v45 = vpop.f32.mrb[10].mxu1  ;;  %v794_v22 = vld [vmem:[%s14458_s9 + $0x230] sm:$0xff] }
 0x2ce   :  { %v10609_v46 = vadd.f32 %v618_v40, %v10545_v12  ;;  %1311 = vmatprep.mubr.f32.mxu0 %v9334_v26  ;;  %1400 = vmatprep.mubr.f32.mxu1 %v9334_v26  ;;  %v10613_v47 = vpop.f32.mrb[11].mxu0  ;;  %v10624_v51 = vpop.f32.mrb[11].mxu1  ;;  %v802_v23 = vld [vmem:[%s14458_s9 + $0x270] sm:$0xff] }
 0x2cf   :  { %8164 = vmatprep.subr.bf16.mxu0 %v8163_v32  ;;  %8196 = vmatprep.subr.bf16.mxu1 %v8195_v33  ;;  %v819_v32 = vld [vmem:[%s14458_s9 + $0x2f8] sm:$0xff]  ;;  %v8177_v33 = vpack.c.bf16 %v800_v16, %v792_v15  ;;  %v8209_v35 = vpack.c.bf16 %v802_v23, %v794_v22  ;;  %v1687_v15 = vld [vmem:[%s14462_s12 + $0x80] sm:$0xff]  ;;  %v1688_v16 = vld [vmem:[%s14462_s12 + $0x88] sm:$0xff] }
 0x2d0   :  { %1312 = vmatmul.mubr.f32.gmra.mrb[18].mxu0 %v10609_v46  ;;  %1401 = vmatmul.mubr.f32.gmra.mrb[18].mxu1 %v10609_v46  ;;  %v8211_v40 = vpack.c.bf16 %v819_v32, %v811_v31  ;;  %v8231_v23 = vpack.c.bf16 %v1688_v16, %v1687_v15  ;;  %v1672_v31 = vld [vmem:[%s14462_s12 + $0x8] sm:$0xff]  ;;  %v1806_v32 = vld [vmem:[%s14461_s13 + $0x18] sm:$0xff] }
 0x2d1   :  { %8166 = vmatpush1.bf16.msra.mxu0 %v8165_v42  ;;  %8198 = vmatpush1.bf16.msra.mxu1 %v8197_v43  ;;  %v624_v58 = vpop.f32.mrb[12].mxu0  ;;  %v10646_v63 = vpop.f32.mrb[12].mxu1  ;;  %v810_v42 = vld [vmem:[%s14458_s9 + $0x2b0] sm:$0xff]  ;;  %v1706_v16 = vld [vmem:[%s14462_s12 + $0x118] sm:$0xff] }
 0x2d2   :  { %v10649_v0 = vadd.f32 %v624_v58, %v10545_v12  ;;  %1317 = vmatprep.mubr.f32.mxu0 %v9334_v26  ;;  %1406 = vmatprep.mubr.f32.mxu1 %v9334_v26  ;;  %v10653_v1 = vpop.f32.mrb[13].mxu0  ;;  %v10664_v5 = vpop.f32.mrb[13].mxu1  ;;  %v818_v43 = vld [vmem:[%s14458_s9 + $0x2f0] sm:$0xff] }
 0x2d3   :  { %8168 = vmatprep.subr.bf16.mxu0 %v8167_v52  ;;  %8200 = vmatprep.subr.bf16.mxu1 %v8199_v53  ;;  %v8181_v52 = vpack.c.bf16 %v816_v37, %v808_v36  ;;  %v8213_v53 = vpack.c.bf16 %v818_v43, %v810_v42  ;;  %v826_v58 = vld [vmem:[%s14458_s9 + $0x330] sm:$0xff]  ;;  %v8233_v36 = vpack.c.bf16 %v1672_v31, %v1671_v30  ;;  %v1674_v43 = vld [vmem:[%s14462_s12 + $0x18] sm:$0xff]  ;;  %v1699_v31 = vld [vmem:[%s14462_s12 + $0xe0] sm:$0xff] }
 0x2d4   :  { %1318 = vmatmul.mubr.f32.gmra.mrb[20].mxu0 %v10649_v0  ;;  %1407 = vmatmul.mubr.f32.gmra.mrb[20].mxu1 %v10649_v0  ;;  %v8227_v37 = vpack.c.bf16 %v1806_v32, %v1805_v24  ;;  %v1673_v42 = vld [vmem:[%s14462_s12 + $0x10] sm:$0xff]  ;;  %v1682_v30 = vld [vmem:[%s14462_s12 + $0x58] sm:$0xff]  ;;  %v1700_v32 = vld [vmem:[%s14462_s12 + $0xe8] sm:$0xff] }
 0x2d5   :  { %8170 = vmatpush1.bf16.msra.mxu0 %v8169_v59  ;;  %8202 = vmatpush1.bf16.msra.mxu1 %v8201_v60  ;;  %v630_v11 = vpop.f32.mrb[14].mxu0  ;;  %v10683_v17 = vpop.f32.mrb[14].mxu1  ;;  %v834_v59 = vld [vmem:[%s14458_s9 + $0x370] sm:$0xff]  ;;  %v841_v60 = vld [vmem:[%s14458_s9 + $0x3a8] sm:$0xff]  ;;  %v8237_v50 = vpack.c.bf16 %v1674_v43, %v1673_v42  ;;  %v1726_v42 = vld [vmem:[%s14462_s12 + $0x1b8] sm:$0xff]  ;;  %v8255_v43 = vpack.c.bf16 %v1700_v32, %v1699_v31 }
 0x2d6   :  { %v10686_v18 = vadd.f32 %v630_v11, %v10545_v12  ;;  %1323 = vmatprep.mubr.f32.mxu0 %v9334_v26  ;;  %1412 = vmatprep.mubr.f32.mxu1 %v9334_v26  ;;  %v10699_v12 = vpop.f32.mrb[15].mxu0  ;;  %v10701_v29 = vpop.f32.mrb[15].mxu1  ;;  %v8217_v4 = vpack.c.bf16 %v834_v59, %v826_v58  ;;  %v8187_v8 = vpack.c.bf16 %v849_v61, %v841_v60  ;;  %v850_v11 = vld [vmem:[%s14458_s9 + $0x3f0] sm:$0xff]  ;;  %v1678_v59 = vld [vmem:[%s14462_s12 + $0x38] sm:$0xff]  ;;  %v1695_v60 = vld [vmem:[%s14462_s12 + $0xc0] sm:$0xff] }
 0x2d7   :  { %8172 = vmatprep.subr.bf16.mxu0 %v8171_v6  ;;  %8204 = vmatprep.subr.bf16.mxu1 %v8203_v7  ;;  %v840_v6 = vld [vmem:[%s14458_s9 + $0x3a0] sm:$0xff]  ;;  %v1696_v61 = vld [vmem:[%s14462_s12 + $0xc8] sm:$0xff]  ;;  %v1681_v24 = vld [vmem:[%s14462_s12 + $0x50] sm:$0xff] }
 0x2d8   :  { %1324 = vmatmul.mubr.f32.gmra.mrb[22].mxu0 %v10686_v18  ;;  %1413 = vmatmul.mubr.f32.gmra.mrb[22].mxu1 %v10686_v18  ;;  %v848_v7 = vld [vmem:[%s14458_s9 + $0x3e0] sm:$0xff]  ;;  %v1718_v31 = vld [vmem:[%s14462_s12 + $0x178] sm:$0xff] }
 0x2d9   :  { %8174 = vmatpush1.bf16.msra.mxu0 %v8173_v13  ;;  %8206 = vmatpush1.bf16.msra.mxu1 %v8205_v14  ;;  %v1803_v13 = vld [vmem:[%s14461_s13] sm:$0xff]  ;;  %v1804_v14 = vld [vmem:[%s14461_s13 + $0x8] sm:$0xff] }
 0x2da   :  { %8176 = vmatprep.subr.bf16.mxu0 %v8175_v19  ;;  %8208 = vmatprep.subr.bf16.mxu1 %v8207_v20  ;;  %v8189_v19 = vpack.c.bf16 %v848_v7, %v840_v6  ;;  %v8221_v20 = vpack.c.bf16 %v850_v11, %v842_v10  ;;  %v8223_v22 = vpack.c.bf16 %v1804_v14, %v1803_v13  ;;  %v1722_v6 = vld [vmem:[%s14462_s12 + $0x198] sm:$0xff]  ;;  %v1697_v10 = vld [vmem:[%s14462_s12 + $0xd0] sm:$0xff]  ;;  %v1800_v13 = vld [vmem:[%s14463_s2 + $0x8] sm:$0xff] }
 0x2db   :  { %1483 = vmatprep.mubr.f32.mxu0 %v9334_v26  ;;  %1572 = vmatprep.mubr.f32.mxu1 %v9334_v26  ;;  %v8247_v7 = vpack.c.bf16 %v1696_v61, %v1695_v60  ;;  %v1698_v11 = vld [vmem:[%s14462_s12 + $0xd8] sm:$0xff] }
 0x2dc   :  { %v1730_v60 = vld [vmem:[%s14462_s12 + $0x1d8] sm:$0xff] }
 0x2dd   :  { %8178 = vmatpush1.bf16.msra.mxu0 %v8177_v33  ;;  %8210 = vmatpush1.bf16.msra.mxu1 %v8209_v35  ;;  %v1689_v33 = vld [vmem:[%s14462_s12 + $0x90] sm:$0xff]  ;;  %v1690_v35 = vld [vmem:[%s14462_s12 + $0x98] sm:$0xff] }
 0x2de   :  { %8180 = vmatprep.subr.bf16.mxu0 %v8179_v34  ;;  %8212 = vmatprep.subr.bf16.mxu1 %v8211_v40  ;;  %v1719_v34 = vld [vmem:[%s14462_s12 + $0x180] sm:$0xff]  ;;  %v8235_v40 = vpack.c.bf16 %v1690_v35, %v1689_v33 }
 0x2e1   :  { %8182 = vmatpush1.bf16.msra.mxu0 %v8181_v52  ;;  %8214 = vmatpush1.bf16.msra.mxu1 %v8213_v53  ;;  %v8239_v52 = vpack.c.bf16 %v1692_v49, %v1691_v48  ;;  %v1675_v53 = vld [vmem:[%s14462_s12 + $0x20] sm:$0xff]  ;;  %v1684_v48 = vld [vmem:[%s14462_s12 + $0x68] sm:$0xff] }
 0x2e2   :  { %8184 = vmatprep.subr.bf16.mxu0 %v8183_v56  ;;  %8216 = vmatprep.subr.bf16.mxu1 %v8215_v57  ;;  %v1694_v56 = vld [vmem:[%s14462_s12 + $0xb8] sm:$0xff]  ;;  %v8241_v57 = vpack.c.bf16 %v1676_v54, %v1675_v53  ;;  %v1727_v54 = vld [vmem:[%s14462_s12 + $0x1c0] sm:$0xff] }
 0x2e3   :  { %v8243_v58 = vpack.c.bf16 %v1694_v56, %v1693_v55  ;;  %v1728_v55 = vld [vmem:[%s14462_s12 + $0x1c8] sm:$0xff] }
 0x2e5   :  { %8186 = vmatpush1.bf16.msra.mxu0 %v8185_v3  ;;  %8218 = vmatpush1.bf16.msra.mxu1 %v8217_v4  ;;  %v1721_v3 = vld [vmem:[%s14462_s12 + $0x190] sm:$0xff] }
 0x2e6   :  { %8188 = vmatprep.subr.bf16.mxu0 %v8187_v8  ;;  %8220 = vmatprep.subr.bf16.mxu1 %v8219_v9  ;;  %v1679_v8 = vld [vmem:[%s14462_s12 + $0x40] sm:$0xff]  ;;  %v1680_v9 = vld [vmem:[%s14462_s12 + $0x48] sm:$0xff]  ;;  %v8267_v15 = vpack.c.bf16 %v1722_v6, %v1721_v3 }
 0x2e7   :  { %v1731_v3 = vld [vmem:[%s14462_s12 + $0x1e0] sm:$0xff] }
 0x2e9   :  { %8190 = vmatpush1.bf16.msra.mxu0 %v8189_v19  ;;  %8222 = vmatpush1.bf16.msra.mxu1 %v8221_v20  ;;  %v1723_v19 = vld [vmem:[%s14462_s12 + $0x1a0] sm:$0xff]  ;;  %v8249_v20 = vpack.c.bf16 %v1680_v9, %v1679_v8  ;;  %v1716_v9 = vld [vmem:[%s14462_s12 + $0x168] sm:$0xff] }
 0x2ea   :  { %8224 = vmatprep.subr.bf16.mxu0 %v8223_v22  ;;  %8232 = vmatprep.subr.bf16.mxu1 %v8231_v23  ;;  %v8251_v23 = vpack.c.bf16 %v1698_v11, %v1697_v10  ;;  %v1715_v8 = vld [vmem:[%s14462_s12 + $0x160] sm:$0xff]  ;;  %v1701_v11 = vld [vmem:[%s14462_s12 + $0xf0] sm:$0xff] }
 0x2eb   :  { %v8289_v10 = vpack.c.bf16 %v1716_v9, %v1715_v8  ;;  %v1769_v8 = vld [vmem:[%s14462_s12 + $0x310] sm:$0xff]  ;;  %v1770_v9 = vld [vmem:[%s14462_s12 + $0x318] sm:$0xff] }
 0x2ec   :  { %1484 = vmatmul.mubr.f32.vlgmr.msra.gmra.mrb[24].mxu0 %v10574_v25  ;;  %1573 = vmatmul.mubr.f32.vlgmr.msra.gmra.mrb[24].mxu1 %v10574_v25  ;;  %v8263_v25 = vpack.c.bf16 %v1720_v44, %v1719_v34  ;;  %v1725_v34 = vld [vmem:[%s14462_s12 + $0x1b0] sm:$0xff]  ;;  %v1683_v44 = vld [vmem:[%s14462_s12 + $0x60] sm:$0xff] }
 0x2ed   :  { %1489 = vmatprep.mubr.f32.mxu0 %v9334_v26  ;;  %1578 = vmatprep.mubr.f32.mxu1 %v9334_v26  ;;  %v8257_v53 = vpack.c.bf16 %v1684_v48, %v1683_v44  ;;  %v11031_v44 = vsub.s32 2, %v10012_v38 }
 0x2ee   :  { %8226 = vmatpush3.bf16.msra.mxu0 %v8223_v22  ;;  %8234 = vmatpush3.bf16.msra.mxu1 %v8233_v36  ;;  %v1724_v22 = vld [vmem:[%s14462_s12 + $0x1a8] sm:$0xff]  ;;  %v1707_v36 = vld [vmem:[%s14462_s12 + $0x120] sm:$0xff] }
 0x2ef   :  { %8228 = vmatprep.subr.bf16.mxu0 %v8227_v37  ;;  %8236 = vmatprep.subr.bf16.mxu1 %v8235_v40  ;;  %v8271_v35 = vpack.c.bf16 %v1724_v22, %v1723_v19  ;;  %v8253_v40 = vpack.c.bf16 %v1682_v30, %v1681_v24  ;;  %v1801_v19 = vld [vmem:[%s14463_s2 + $0x10] sm:$0xff]  ;;  %v1686_v22 = vld [vmem:[%s14462_s12 + $0x78] sm:$0xff] }
 0x2f0   :  { %1490 = vmatmul.mubr.f32.gmra.mrb[26].mxu0 %v10609_v46  ;;  %1579 = vmatmul.mubr.f32.gmra.mrb[26].mxu1 %v10609_v46  ;;  %v1677_v46 = vld [vmem:[%s14462_s12 + $0x30] sm:$0xff]  ;;  %v1802_v24 = vld [vmem:[%s14463_s2 + $0x18] sm:$0xff] }
 0x2f1   :  { %1495 = vmatprep.mubr.f32.mxu0 %v9334_v26  ;;  %1584 = vmatprep.mubr.f32.mxu1 %v9334_v26  ;;  %v8245_v4 = vpack.c.bf16 %v1678_v59, %v1677_v46  ;;  %v1712_v46 = vld [vmem:[%s14462_s12 + $0x148] sm:$0xff]  ;;  %v1729_v59 = vld [vmem:[%s14462_s12 + $0x1d0] sm:$0xff] }
 0x2f2   :  { %8230 = vmatpush3.bf16.msra.mxu0 %v8227_v37  ;;  %8238 = vmatpush3.bf16.msra.mxu1 %v8237_v50  ;;  %v1708_v37 = vld [vmem:[%s14462_s12 + $0x128] sm:$0xff]  ;;  %v8275_v50 = vpack.c.bf16 %v1726_v42, %v1725_v34  ;;  %v11025_v42 = vld [vmem:[%s14464_s11] sm:$0xff] }
 0x2f3   :  { %8264 = vmatprep.subr.bf16.mxu0 %v8263_v25  ;;  %8240 = vmatprep.subr.bf16.mxu1 %v8239_v52  ;;  %v8273_v49 = vpack.c.bf16 %v1708_v37, %v1707_v36  ;;  %v1709_v25 = vld [vmem:[%s14462_s12 + $0x130] sm:$0xff]  ;;  %v1710_v52 = vld [vmem:[%s14462_s12 + $0x138] sm:$0xff]  ;;  %v1783_v36 = vld [vmem:[%s14462_s12 + $0x380] sm:$0xff]  ;;  %v11035_v48 = vrot.slane %v11025_v42, %v10021_v41 }
 0x2f4   :  { %1496 = vmatmul.mubr.f32.gmra.mrb[28].mxu0 %v10649_v0  ;;  %1585 = vmatmul.mubr.f32.gmra.mrb[28].mxu1 %v10649_v0  ;;  %v1703_v0 = vld [vmem:[%s14462_s12 + $0x100] sm:$0xff]  ;;  %v8277_v56 = vpack.c.bf16 %v1710_v52, %v1709_v25  ;;  %v1784_v34 = vld [vmem:[%s14462_s12 + $0x388] sm:$0xff]  ;;  %v11049_v52 = vrot.slane %v11025_v42, %v10015_v39 }
 0x2f5   :  { %1501 = vmatprep.mubr.f32.mxu0 %v9334_v26  ;;  %1590 = vmatprep.mubr.f32.mxu1 %v9334_v26  ;;  %v8265_v14 = vpack.c.bf16 %v1704_v2, %v1703_v0  ;;  %v1713_v0 = vld [vmem:[%s14462_s12 + $0x150] sm:$0xff]  ;;  %v1714_v2 = vld [vmem:[%s14462_s12 + $0x158] sm:$0xff]  ;;  %v1736_v25 = vld [vmem:[%s14462_s12 + $0x208] sm:$0xff] }
 0x2f6   :  { %8242 = vmatpush3.bf16.msra.mxu1 %v8241_v57  ;;  %v8279_v57 = vpack.c.bf16 %v1728_v55, %v1727_v54  ;;  %v8285_v6 = vpack.c.bf16 %v1714_v2, %v1713_v0  ;;  %v1767_v54 = vld [vmem:[%s14462_s12 + $0x300] sm:$0xff]  ;;  %v1768_v55 = vld [vmem:[%s14462_s12 + $0x308] sm:$0xff]  ;;  %v1737_v0 = vld [vmem:[%s14462_s12 + $0x210] sm:$0xff] }
 0x2f7   :  { %8244 = vmatprep.subr.bf16.mxu1 %v8243_v58  ;;  %v1711_v58 = vld [vmem:[%s14462_s12 + $0x140] sm:$0xff] }
 0x2f8   :  { %1502 = vmatmul.mubr.f32.gmra.mrb[30].mxu0 %v10686_v18  ;;  %1591 = vmatmul.mubr.f32.gmra.mrb[30].mxu1 %v10686_v18  ;;  %v1705_v18 = vld [vmem:[%s14462_s12 + $0x110] sm:$0xff]  ;;  %v8281_v61 = vpack.c.bf16 %v1712_v46, %v1711_v58  ;;  %v1754_v46 = vld [vmem:[%s14462_s12 + $0x298] sm:$0xff] }
 0x2f9   :  { %7775 = vmatprep.mubr.msk.f32.mxu0 %vm1807_vm1, %v1799_v62  ;;  %v8269_v33 = vpack.c.bf16 %v1706_v16, %v1705_v18  ;;  %v8283_v62 = vpack.c.bf16 %v1730_v60, %v1729_v59  ;;  %v1734_v18 = vld [vmem:[%s14462_s12 + $0x1f8] sm:$0xff]  ;;  %v1685_v16 = vld [vmem:[%s14462_s12 + $0x70] sm:$0xff] }
 0x2fa   :  { %8246 = vmatpush3.bf16.msra.mxu1 %v8245_v4  ;;  %v1732_v4 = vld [vmem:[%s14462_s12 + $0x1e8] sm:$0xff]  ;;  %v8261_v30 = vpack.c.bf16 %v1686_v22, %v1685_v16  ;;  %v1785_v59 = vld [vmem:[%s14462_s12 + $0x390] sm:$0xff]  ;;  %v1786_v60 = vld [vmem:[%s14462_s12 + $0x398] sm:$0xff] }
 0x2fb   :  { %8248 = vmatprep.subr.bf16.mxu1 %v8247_v7  ;;  %v8287_v7 = vpack.c.bf16 %v1732_v4, %v1731_v3  ;;  %v1788_v22 = vld [vmem:[%s14462_s12 + $0x3a8] sm:$0xff] }
 0x2fc   :  { %7776 = vmatmul.mubr.msk.f32.vlgmr.msra.gmra.mrb[32].mxu0 %vm1807_vm1, %v1800_v13  ;;  %v1702_v13 = vld [vmem:[%s14462_s12 + $0xf8] sm:$0xff] }
 0x2fd   :  { %8266 = vmatpush3.bf16.msra.mxu0 %v8265_v14  ;;  %v1733_v14 = vld [vmem:[%s14462_s12 + $0x1f0] sm:$0xff]  ;;  %7778 = vmatprep.mubr.msk.f32.mxu0 %vm1807_vm1, %v1801_v19 }
 0x2fe   :  { %8268 = vmatprep.subr.bf16.mxu0 %v8267_v15  ;;  %8250 = vmatpush3.bf16.msra.mxu1 %v8249_v20  ;;  %v8259_v15 = vpack.c.bf16 %v1702_v13, %v1701_v11  ;;  %v8291_v20 = vpack.c.bf16 %v1734_v18, %v1733_v14  ;;  %v8331_v14 = vpack.c.bf16 %v1786_v60, %v1785_v59  ;;  %v1756_v18 = vld [vmem:[%s14462_s12 + $0x2a8] sm:$0xff]  ;;  %v1790_v59 = vld [vmem:[%s14462_s12 + $0x3b8] sm:$0xff] }
 0x2ff   :  { %8252 = vmatprep.subr.bf16.mxu1 %v8251_v23  ;;  %v1717_v23 = vld [vmem:[%s14462_s12 + $0x170] sm:$0xff] }
 0x300   :  { %7779 = vmatmul.mubr.msk.f32.gmra.mrb[34].mxu0 %vm1807_vm1, %v1802_v24  ;;  %v8293_v32 = vpack.c.bf16 %v1718_v31, %v1717_v23  ;;  %v8333_v31 = vpack.c.bf16 %v1770_v9, %v1769_v8  ;;  %v1773_v8 = vld [vmem:[%s14462_s12 + $0x330] sm:$0xff]  ;;  %v1774_v9 = vld [vmem:[%s14462_s12 + $0x338] sm:$0xff] }
 0x301   :  { %8270 = vmatpush3.bf16.msra.mxu0 %v8269_v33  ;;  %v1751_v33 = vld [vmem:[%s14462_s12 + $0x280] sm:$0xff] }
 0x302   :  { %8272 = vmatprep.subr.bf16.mxu0 %v8271_v35  ;;  %8254 = vmatpush3.bf16.msra.mxu1 %v8253_v40  ;;  %v1752_v35 = vld [vmem:[%s14462_s12 + $0x288] sm:$0xff]  ;;  %v8327_v40 = vpack.c.bf16 %v1784_v34, %v1783_v36  ;;  %v1771_v34 = vld [vmem:[%s14462_s12 + $0x320] sm:$0xff] }
 0x303   :  { %8256 = vmatprep.subr.bf16.mxu1 %v8255_v43  ;;  %v8295_v37 = vpack.c.bf16 %v1752_v35, %v1751_v33  ;;  %v11028_v43 = vsub.s32 3, %v10012_v38 }
 0x305   :  { %8274 = vmatpush3.bf16.msra.mxu0 %v8273_v49  ;;  %v11039_v49 = vrot.slane %v11025_v42, %v11028_v43 }
 0x306   :  { %8276 = vmatprep.subr.bf16.mxu0 %v8275_v50  ;;  %8258 = vmatpush3.bf16.msra.mxu1 %v8257_v53  ;;  %v1735_v50 = vld [vmem:[%s14462_s12 + $0x200] sm:$0xff]  ;;  %v11053_v53 = vrot.slane %v11025_v42, %v11031_v44 }
 0x307   :  { %8260 = vmatprep.subr.bf16.mxu1 %v8259_v15  ;;  %v8297_v4 = vpack.c.bf16 %v1736_v25, %v1735_v50  ;;  %v1755_v15 = vld [vmem:[%s14462_s12 + $0x2a0] sm:$0xff] }
 0x308   :  { %v8303_v36 = vpack.c.bf16 %v1756_v18, %v1755_v15  ;;  %v1760_v15 = vld [vmem:[%s14462_s12 + $0x2c8] sm:$0xff] }
 0x309   :  { %8278 = vmatpush3.bf16.msra.mxu0 %v8277_v56  ;;  %v1753_v56 = vld [vmem:[%s14462_s12 + $0x290] sm:$0xff] }
 0x30a   :  { %8280 = vmatprep.subr.bf16.mxu0 %v8279_v57  ;;  %8262 = vmatpush3.bf16.msra.mxu1 %v8261_v30  ;;  %v8299_v13 = vpack.c.bf16 %v1754_v46, %v1753_v56  ;;  %v1758_v56 = vld [vmem:[%s14462_s12 + $0x2b8] sm:$0xff]  ;;  %v1789_v46 = vld [vmem:[%s14462_s12 + $0x3b0] sm:$0xff] }
 0x30b   :  { %8296 = vmatprep.subr.bf16.mxu1 %v8295_v37  ;;  %v1740_v37 = vld [vmem:[%s14462_s12 + $0x228] sm:$0xff] }
 0x30d   :  { %8282 = vmatpush3.bf16.msra.mxu0 %v8281_v61 }
 0x30e   :  { %8284 = vmatprep.subr.bf16.mxu0 %v8283_v62 }
 0x311   :  { %8286 = vmatpush3.bf16.msra.mxu0 %v8285_v6  ;;  %v8329_v6 = vpack.c.bf16 %v1768_v55, %v1767_v54  ;;  %v1757_v55 = vld [vmem:[%s14462_s12 + $0x2b0] sm:$0xff] }
 0x312   :  { %8288 = vmatprep.subr.bf16.mxu0 %v8287_v7  ;;  %v1738_v7 = vld [vmem:[%s14462_s12 + $0x218] sm:$0xff] }
 0x313   :  { %v8301_v30 = vpack.c.bf16 %v1738_v7, %v1737_v0  ;;  %v1742_v7 = vld [vmem:[%s14462_s12 + $0x238] sm:$0xff] }
 0x315   :  { %8290 = vmatpush3.bf16.msra.mxu0 %v8289_v10 }
 0x316   :  { %8292 = vmatprep.subr.bf16.mxu0 %v8291_v20  ;;  %v1787_v20 = vld [vmem:[%s14462_s12 + $0x3a0] sm:$0xff] }
 0x317   :  { %v8335_v54 = vpack.c.bf16 %v1788_v22, %v1787_v20  ;;  %v1792_v20 = vld [vmem:[%s14462_s12 + $0x3c8] sm:$0xff] }
 0x319   :  { %8294 = vmatpush3.bf16.msra.mxu0 %v8293_v32  ;;  %v1739_v32 = vld [vmem:[%s14462_s12 + $0x220] sm:$0xff] }
 0x31a   :  { %8328 = vmatprep.subr.bf16.mxu0 %v8327_v40  ;;  %v1772_v40 = vld [vmem:[%s14462_s12 + $0x328] sm:$0xff] }
 0x31b   :  { %v8337_v0 = vpack.c.bf16 %v1772_v40, %v1771_v34  ;;  %v1776_v40 = vld [vmem:[%s14462_s12 + $0x348] sm:$0xff] }
 0x39f   :  { %v1307_v57 = vpop.f32.mrb[16].mxu0  ;;  %v1396_v58 = vpop.f32.mrb[16].mxu1 }
 0x3a0   :  { %v1309_v61 = vpop.f32.mrb[17].mxu0  ;;  %v1398_v62 = vpop.f32.mrb[17].mxu1  ;;  %v1639_v10 = vadd.f32 %v11049_v52, %v1307_v57  ;;  %v1641_v11 = vadd.f32 %v11053_v53, %v1396_v58 }
 0x3a1   :  { %v1640_v2 = vadd.f32 %v11035_v48, %v1309_v61  ;;  %v1642_v3 = vadd.f32 %v11039_v49, %v1398_v62  ;;  %v8305_v62 = vpack.c.bf16 %v1740_v37, %v1739_v32 }
 0x3a3   :  { %v1313_v16 = vpop.f32.mrb[18].mxu0  ;;  %v1402_v19 = vpop.f32.mrb[18].mxu1  ;;  %1969 = vmatprep.mubr.f32.mxu1 %v1640_v2  ;;  %2054 = vmatprep.mubr.f32.mxu0 %v1642_v3  ;;  %v1741_v2 = vld [vmem:[%s14462_s12 + $0x230] sm:$0xff] }
 0x3a4   :  { %v1315_v23 = vpop.f32.mrb[19].mxu0  ;;  %v1404_v24 = vpop.f32.mrb[19].mxu1  ;;  %1970 = vmatmul.mubr.f32.vlgmr.msra.gmra.mrb[32].mxu1 %v1639_v10  ;;  %2055 = vmatmul.mubr.f32.vlgmr.msra.gmra.mrb[36].mxu0 %v1641_v11  ;;  %v1647_v50 = vadd.f32 %v11049_v52, %v1313_v16  ;;  %v1649_v25 = vadd.f32 %v11053_v53, %v1402_v19  ;;  %v1791_v19 = vld [vmem:[%s14462_s12 + $0x3c0] sm:$0xff] }
 0x3a5   :  { %v1648_v33 = vadd.f32 %v11035_v48, %v1315_v23  ;;  %v1650_v35 = vadd.f32 %v11039_v49, %v1404_v24  ;;  %8298 = vmatpush3.bf16.msra.mxu1 %v8297_v4  ;;  %8330 = vmatpush3.bf16.msra.mxu0 %v8329_v6  ;;  %v8307_v6 = vpack.c.bf16 %v1758_v56, %v1757_v55  ;;  %v1745_v56 = vld [vmem:[%s14462_s12 + $0x250] sm:$0xff] }
 0x3a6   :  { %8300 = vmatprep.subr.bf16.mxu1 %v8299_v13  ;;  %8332 = vmatprep.subr.bf16.mxu0 %v8331_v14  ;;  %v8339_v13 = vpack.c.bf16 %v1790_v59, %v1789_v46  ;;  %v1759_v14 = vld [vmem:[%s14462_s12 + $0x2c0] sm:$0xff]  ;;  %v8309_v24 = vpack.c.bf16 %v1742_v7, %v1741_v2  ;;  %v1777_v59 = vld [vmem:[%s14462_s12 + $0x350] sm:$0xff]  ;;  %v1796_v2 = vld [vmem:[%s14462_s12 + $0x3e8] sm:$0xff] }
 0x3a7   :  { %v1319_v57 = vpop.f32.mrb[20].mxu0  ;;  %v1408_v58 = vpop.f32.mrb[20].mxu1  ;;  %1974 = vmatprep.mubr.f32.mxu1 %v1648_v33  ;;  %2059 = vmatprep.mubr.f32.mxu0 %v1650_v35  ;;  %v8311_v33 = vpack.c.bf16 %v1760_v15, %v1759_v14  ;;  %v1743_v35 = vld [vmem:[%s14462_s12 + $0x240] sm:$0xff]  ;;  %v1748_v7 = vld [vmem:[%s14462_s12 + $0x268] sm:$0xff]  ;;  %v1766_v14 = vld [vmem:[%s14462_s12 + $0x2f8] sm:$0xff] }
 0x3a8   :  { %v1321_v60 = vpop.f32.mrb[21].mxu0  ;;  %v1410_v61 = vpop.f32.mrb[21].mxu1  ;;  %1975 = vmatmul.mubr.f32.gmra.mrb[34].mxu1 %v1647_v50  ;;  %2060 = vmatmul.mubr.f32.gmra.mrb[38].mxu0 %v1649_v25  ;;  %v1655_v10 = vadd.f32 %v11049_v52, %v1319_v57  ;;  %v1657_v11 = vadd.f32 %v11053_v53, %v1408_v58  ;;  %v1761_v50 = vld [vmem:[%s14462_s12 + $0x2d0] sm:$0xff]  ;;  %v1794_v25 = vld [vmem:[%s14462_s12 + $0x3d8] sm:$0xff] }
 0x3a9   :  { %v1656_v3 = vadd.f32 %v11035_v48, %v1321_v60  ;;  %v1658_v4 = vadd.f32 %v11039_v49, %v1410_v61  ;;  %8302 = vmatpush3.bf16.msra.mxu1 %v8301_v30  ;;  %8334 = vmatpush3.bf16.msra.mxu0 %v8333_v31  ;;  %v8341_v30 = vpack.c.bf16 %v1774_v9, %v1773_v8  ;;  %v1746_v57 = vld [vmem:[%s14462_s12 + $0x258] sm:$0xff]  ;;  %v1763_v61 = vld [vmem:[%s14462_s12 + $0x2e0] sm:$0xff]  ;;  %v1797_v15 = vld [vmem:[%s14462_s12 + $0x3f0] sm:$0xff] }
 0x3aa   :  { %8304 = vmatprep.subr.bf16.mxu1 %v8303_v36  ;;  %8336 = vmatprep.subr.bf16.mxu0 %v8335_v54  ;;  %v1744_v36 = vld [vmem:[%s14462_s12 + $0x248] sm:$0xff]  ;;  %v1778_v60 = vld [vmem:[%s14462_s12 + $0x358] sm:$0xff] }
 0x3ab   :  { %v1325_v18 = vpop.f32.mrb[22].mxu0  ;;  %v1414_v16 = vpop.f32.mrb[22].mxu1  ;;  %1979 = vmatprep.mubr.f32.mxu1 %v1656_v3  ;;  %2064 = vmatprep.mubr.f32.mxu0 %v1658_v4  ;;  %v8313_v54 = vpack.c.bf16 %v1744_v36, %v1743_v35  ;;  %v8317_v3 = vpack.c.bf16 %v1746_v57, %v1745_v56  ;;  %v8349_v4 = vpack.c.bf16 %v1778_v60, %v1777_v59  ;;  %v1781_v35 = vld [vmem:[%s14462_s12 + $0x370] sm:$0xff]  ;;  %v1782_v36 = vld [vmem:[%s14462_s12 + $0x378] sm:$0xff]  ;;  %v2398_v59 = vld [vmem:[%s14456_s10 + $0x28] sm:$0xff] }
 0x3ac   :  { %v1327_v22 = vpop.f32.mrb[23].mxu0  ;;  %v1416_v23 = vpop.f32.mrb[23].mxu1  ;;  %1980 = vmatmul.mubr.f32.gmra.mrb[36].mxu1 %v1655_v10  ;;  %2065 = vmatmul.mubr.f32.gmra.mrb[40].mxu0 %v1657_v11  ;;  %v1663_v37 = vadd.f32 %v11049_v52, %v1325_v18  ;;  %v1665_v34 = vadd.f32 %v11053_v53, %v1414_v16  ;;  %v1762_v52 = vld [vmem:[%s14462_s12 + $0x2d8] sm:$0xff]  ;;  %v1793_v53 = vld [vmem:[%s14462_s12 + $0x3d0] sm:$0xff]  ;;  %v1779_v10 = vld [vmem:[%s14462_s12 + $0x360] sm:$0xff]  ;;  %v11234_v16 = vsub.s32 4, %v10012_v38 }
 0x3ad   :  { %v1664_v31 = vadd.f32 %v11035_v48, %v1327_v22  ;;  %v1666_v32 = vadd.f32 %v11039_v49, %v1416_v23  ;;  %8306 = vmatpush3.bf16.msra.mxu1 %v8305_v62  ;;  %8338 = vmatpush3.bf16.msra.mxu0 %v8337_v0  ;;  %v8343_v48 = vpack.c.bf16 %v1792_v20, %v1791_v19  ;;  %v1775_v49 = vld [vmem:[%s14462_s12 + $0x340] sm:$0xff]  ;;  %v1764_v62 = vld [vmem:[%s14462_s12 + $0x2e8] sm:$0xff]  ;;  %v1798_v18 = vld [vmem:[%s14462_s12 + $0x3f8] sm:$0xff]  ;;  %v11237_v19 = vsub.s32 5, %v10012_v38 }
 0x3ae   :  { %8308 = vmatprep.subr.bf16.mxu1 %v8307_v6  ;;  %8340 = vmatprep.subr.bf16.mxu0 %v8339_v13  ;;  %v8345_v55 = vpack.c.bf16 %v1776_v40, %v1775_v49  ;;  %v8315_v58 = vpack.c.bf16 %v1762_v52, %v1761_v50  ;;  %v8347_v46 = vpack.c.bf16 %v1794_v25, %v1793_v53  ;;  %v1795_v0 = vld [vmem:[%s14462_s12 + $0x3e0] sm:$0xff]  ;;  %v1780_v11 = vld [vmem:[%s14462_s12 + $0x368] sm:$0xff]  ;;  %v1765_v13 = vld [vmem:[%s14462_s12 + $0x2f0] sm:$0xff]  ;;  %v11240_v23 = vsub.s32 7, %v10012_v38 }
 0x3af   :  { %1984 = vmatprep.mubr.f32.mxu1 %v1664_v31  ;;  %2069 = vmatprep.mubr.f32.mxu0 %v1666_v32  ;;  %v1747_v6 = vld [vmem:[%s14462_s12 + $0x260] sm:$0xff]  ;;  %v8319_v8 = vpack.c.bf16 %v1764_v62, %v1763_v61  ;;  %v8351_v9 = vpack.c.bf16 %v1796_v2, %v1795_v0  ;;  %v8353_v22 = vpack.c.bf16 %v1780_v11, %v1779_v10  ;;  %v11249_v31 = vsub.s32 6, %v10012_v38  ;;  %v2396_v38 = vld [vmem:[%s14456_s10 + $0x18] sm:$0xff]  ;;  %v2403_v56 = vld [vmem:[%s14456_s10 + $0x50] sm:$0xff] }
 0x3b0   :  { %1985 = vmatmul.mubr.f32.gmra.mrb[38].mxu1 %v1663_v37  ;;  %2070 = vmatmul.mubr.f32.gmra.mrb[42].mxu0 %v1665_v34  ;;  %v8321_v20 = vpack.c.bf16 %v1748_v7, %v1747_v6  ;;  %v8323_v32 = vpack.c.bf16 %v1766_v14, %v1765_v13  ;;  %v2394_v37 = vld [vmem:[%s14456_s10 + $0x8] sm:$0xff]  ;;  %v11271_v49 = vrot.slane %v11025_v42, %v11234_v16  ;;  %v2393_v50 = vld [vmem:[%s14456_s10] sm:$0xff]  ;;  %v2400_v0 = vld [vmem:[%s14456_s10 + $0x38] sm:$0xff] }
 0x3b1   :  { %8310 = vmatpush3.bf16.msra.mxu1 %v8309_v24  ;;  %8342 = vmatpush3.bf16.msra.mxu0 %v8341_v30  ;;  %v1749_v24 = vld [vmem:[%s14462_s12 + $0x270] sm:$0xff]  ;;  %v1750_v30 = vld [vmem:[%s14462_s12 + $0x278] sm:$0xff]  ;;  %v2402_v34 = vld [vmem:[%s14456_s10 + $0x48] sm:$0xff]  ;;  %v11275_v40 = vrot.slane %v11025_v42, %v11237_v19  ;;  %v11282_v52 = vrot.slane %v11025_v42, %v11240_v23  ;;  %v8357_v25 = vpack.c.bf16 %v1782_v36, %v1781_v35 }
 0x3b2   :  { %8312 = vmatprep.subr.bf16.mxu1 %v8311_v33  ;;  %8344 = vmatprep.subr.bf16.mxu0 %v8343_v48  ;;  %v8355_v33 = vpack.c.bf16 %v1798_v18, %v1797_v15  ;;  %v2404_v48 = vld [vmem:[%s14456_s10 + $0x58] sm:$0xff]  ;;  %v8325_v53 = vpack.c.bf16 %v1750_v30, %v1749_v24  ;;  %v11295_v57 = vrot.slane %v11025_v42, %v11249_v31  ;;  %v2406_v60 = vld [vmem:[%s14456_s10 + $0x68] sm:$0xff] }
 0x3b3   :  { %v2408_v42 = vld [vmem:[%s14456_s10 + $0x78] sm:$0xff] }
 0x3b4   :  { %v8371_v13 = vpack.c.bf16 %v2408_v42, %v2400_v0  ;;  %v2263_v0 = vld [vmem:[%s14458_s9 + $0x18] sm:$0xff] }
 0x3b5   :  { %8314 = vmatpush3.bf16.msra.mxu1 %v8313_v54  ;;  %8346 = vmatpush3.bf16.msra.mxu0 %v8345_v55  ;;  %v2401_v54 = vld [vmem:[%s14456_s10 + $0x40] sm:$0xff]  ;;  %v2395_v55 = vld [vmem:[%s14456_s10 + $0x10] sm:$0xff]  ;;  %v2271_v42 = vld [vmem:[%s14458_s9 + $0x58] sm:$0xff] }
 0x3b6   :  { %8316 = vmatprep.subr.bf16.mxu1 %v8315_v58  ;;  %8348 = vmatprep.subr.bf16.mxu0 %v8347_v46  ;;  %v8359_v58 = vpack.c.bf16 %v2402_v34, %v2394_v37  ;;  %v8363_v46 = vpack.c.bf16 %v2404_v48, %v2396_v38  ;;  %v8365_v6 = vpack.c.bf16 %v2403_v56, %v2395_v55 }
 0x3b9   :  { %8318 = vmatpush3.bf16.msra.mxu1 %v8317_v3  ;;  %8350 = vmatpush3.bf16.msra.mxu0 %v8349_v4  ;;  %v8361_v4 = vpack.c.bf16 %v2401_v54, %v2393_v50 }
 0x3ba   :  { %8320 = vmatprep.subr.bf16.mxu1 %v8319_v8  ;;  %8352 = vmatprep.subr.bf16.mxu0 %v8351_v9  ;;  %v8367_v9 = vpack.c.bf16 %v2406_v60, %v2398_v59  ;;  %v2397_v60 = vld [vmem:[%s14456_s10 + $0x20] sm:$0xff] }
 0x3bd   :  { %8322 = vmatpush3.bf16.msra.mxu1 %v8321_v20  ;;  %8354 = vmatpush3.bf16.msra.mxu0 %v8353_v22 }
 0x3be   :  { %8324 = vmatprep.subr.bf16.mxu1 %v8323_v32  ;;  %8356 = vmatprep.subr.bf16.mxu0 %v8355_v33 }
 0x3bf   :  { %v1485_v61 = vpop.f32.mrb[24].mxu0  ;;  %v1574_v62 = vpop.f32.mrb[24].mxu1 }
 0x3c0   :  { %v1487_v2 = vpop.f32.mrb[25].mxu0  ;;  %v1576_v3 = vpop.f32.mrb[25].mxu1  ;;  %v1643_v10 = vadd.f32 %v11271_v49, %v1485_v61  ;;  %v1645_v11 = vadd.f32 %v11295_v57, %v1574_v62  ;;  %v2405_v61 = vld [vmem:[%s14456_s10 + $0x60] sm:$0xff]  ;;  %v2269_v62 = vld [vmem:[%s14458_s9 + $0x48] sm:$0xff] }
 0x3c1   :  { %v1644_v7 = vadd.f32 %v11275_v40, %v1487_v2  ;;  %v1646_v8 = vadd.f32 %v11282_v52, %v1576_v3  ;;  %8326 = vmatpush3.bf16.msra.mxu1 %v8325_v53  ;;  %8358 = vmatpush3.bf16.msra.mxu0 %v8357_v25  ;;  %v6944_v3 = vld [vmem:[%s14459_s1 + $0x20] sm:$0xff] }
 0x3c2   :  { %8360 = vmatprep.subr.bf16.mxu1 %v8359_v58  ;;  %8364 = vmatprep.subr.bf16.mxu0 %v8363_v46 }
 0x3c3   :  { %v1491_v14 = vpop.f32.mrb[26].mxu0  ;;  %v1580_v15 = vpop.f32.mrb[26].mxu1  ;;  %2139 = vmatprep.mubr.f32.mxu1 %v1644_v7  ;;  %2224 = vmatprep.mubr.f32.mxu0 %v1646_v8  ;;  %v8407_v8 = vpack.c.bf16 %v2271_v42, %v2263_v0  ;;  %v2319_v0 = vld [vmem:[%s14458_s9 + $0x1d8] sm:$0xff] }
 0x3c4   :  { %v1493_v18 = vpop.f32.mrb[27].mxu0  ;;  %v1582_v20 = vpop.f32.mrb[27].mxu1  ;;  %2140 = vmatmul.mubr.f32.vlgmr.msra.gmra.mrb[40].mxu1 %v1643_v10  ;;  %2225 = vmatmul.mubr.f32.vlgmr.msra.gmra.mrb[44].mxu0 %v1645_v11  ;;  %v1651_v30 = vadd.f32 %v11271_v49, %v1491_v14  ;;  %v1653_v32 = vadd.f32 %v11295_v57, %v1580_v15  ;;  %v11372_v10 = vld [vmem:[%s14459_s1 + $0x30] sm:$0xff]  ;;  %v11383_v11 = vld [vmem:[%s14459_s1 + $0x38] sm:$0xff]  ;;  %v2268_v14 = vld [vmem:[%s14458_s9 + $0x40] sm:$0xff] }
 0x3c5   :  { %v1652_v22 = vadd.f32 %v11275_v40, %v1493_v18  ;;  %v1654_v24 = vadd.f32 %v11282_v52, %v1582_v20  ;;  %8362 = vmatpush1.bf16.msra.mxu1 %v8361_v4  ;;  %8366 = vmatpush1.bf16.msra.mxu0 %v8365_v6  ;;  %v8369_v4 = vpack.c.bf16 %v2405_v61, %v2397_v60  ;;  %v2262_v15 = vld [vmem:[%s14458_s9 + $0x10] sm:$0xff]  ;;  %v2277_v20 = vld [vmem:[%s14458_s9 + $0x88] sm:$0xff] }
 0x3c6   :  { %8368 = vmatprep.subr.bf16.mxu1 %v8367_v9  ;;  %8372 = vmatprep.subr.bf16.mxu0 %v8371_v13  ;;  %v6945_v9 = vld [vmem:[%s14459_s1 + $0x28] sm:$0xff]  ;;  %v2260_v13 = vld [vmem:[%s14458_s9] sm:$0xff]  ;;  %v2270_v18 = vld [vmem:[%s14458_s9 + $0x50] sm:$0xff] }
 0x3c7   :  { %v1497_v33 = vpop.f32.mrb[28].mxu0  ;;  %v1586_v35 = vpop.f32.mrb[28].mxu1  ;;  %2144 = vmatprep.mubr.f32.mxu1 %v1652_v22  ;;  %2229 = vmatprep.mubr.f32.mxu0 %v1654_v24  ;;  %v2285_v22 = vld [vmem:[%s14458_s9 + $0xc8] sm:$0xff]  ;;  %v2279_v24 = vld [vmem:[%s14458_s9 + $0x98] sm:$0xff]  ;;  %v2294_v61 = vld [vmem:[%s14458_s9 + $0x110] sm:$0xff] }
 0x3c8   :  { %v1499_v36 = vpop.f32.mrb[29].mxu0  ;;  %v1588_v37 = vpop.f32.mrb[29].mxu1  ;;  %2145 = vmatmul.mubr.f32.gmra.mrb[42].mxu1 %v1651_v30  ;;  %2230 = vmatmul.mubr.f32.gmra.mrb[46].mxu0 %v1653_v32  ;;  %v1659_v48 = vadd.f32 %v11271_v49, %v1497_v33  ;;  %v1661_v50 = vadd.f32 %v11295_v57, %v1586_v35  ;;  %v2287_v30 = vld [vmem:[%s14458_s9 + $0xd8] sm:$0xff]  ;;  %v8377_v32 = vpack.c.bf16 %v2268_v14, %v2260_v13  ;;  %v2276_v35 = vld [vmem:[%s14458_s9 + $0x80] sm:$0xff]  ;;  %v2318_v13 = vld [vmem:[%s14458_s9 + $0x1d0] sm:$0xff] }
 0x3c9   :  { %v1660_v34 = vadd.f32 %v11275_v40, %v1499_v36  ;;  %v1662_v38 = vadd.f32 %v11282_v52, %v1588_v37  ;;  %v8409_v33 = vpack.c.bf16 %v2270_v18, %v2262_v15  ;;  %v2284_v36 = vld [vmem:[%s14458_s9 + $0xc0] sm:$0xff]  ;;  %v8379_v37 = vpack.c.bf16 %v2285_v22, %v2277_v20  ;;  %v2325_v14 = vld [vmem:[%s14458_s9 + $0x208] sm:$0xff]  ;;  %v2327_v18 = vld [vmem:[%s14458_s9 + $0x218] sm:$0xff] }
 0x3ca   :  { %v2333_v15 = vld [vmem:[%s14458_s9 + $0x248] sm:$0xff]  ;;  %v2335_v20 = vld [vmem:[%s14458_s9 + $0x258] sm:$0xff] }
 0x3cb   :  { %v1503_v53 = vpop.f32.mrb[30].mxu0  ;;  %v1592_v25 = vpop.f32.mrb[30].mxu1  ;;  %2149 = vmatprep.mubr.f32.mxu1 %v1660_v34  ;;  %2234 = vmatprep.mubr.f32.mxu0 %v1662_v38  ;;  %v8411_v34 = vpack.c.bf16 %v2287_v30, %v2279_v24  ;;  %v2278_v38 = vld [vmem:[%s14458_s9 + $0x90] sm:$0xff]  ;;  %v2324_v30 = vld [vmem:[%s14458_s9 + $0x200] sm:$0xff] }
 0x3cc   :  { %v1505_v54 = vpop.f32.mrb[31].mxu0  ;;  %v1594_v55 = vpop.f32.mrb[31].mxu1  ;;  %2150 = vmatmul.mubr.f32.gmra.mrb[44].mxu1 %v1659_v48  ;;  %2235 = vmatmul.mubr.f32.gmra.mrb[48].mxu0 %v1661_v50  ;;  %v1667_v46 = vadd.f32 %v11271_v49, %v1503_v53  ;;  %v1669_v59 = vadd.f32 %v11295_v57, %v1592_v25  ;;  %v2407_v49 = vld [vmem:[%s14456_s10 + $0x70] sm:$0xff]  ;;  %v2293_v50 = vld [vmem:[%s14458_s9 + $0x108] sm:$0xff]  ;;  %v2295_v25 = vld [vmem:[%s14458_s9 + $0x118] sm:$0xff] }
 0x3cd   :  { %v1668_v56 = vadd.f32 %v11275_v40, %v1505_v54  ;;  %v1670_v58 = vadd.f32 %v11282_v52, %v1594_v55  ;;  %v2399_v40 = vld [vmem:[%s14456_s10 + $0x30] sm:$0xff]  ;;  %v2261_v52 = vld [vmem:[%s14458_s9 + $0x8] sm:$0xff]  ;;  %v2303_v54 = vld [vmem:[%s14458_s9 + $0x158] sm:$0xff]  ;;  %v8381_v55 = vpack.c.bf16 %v2284_v36, %v2276_v35  ;;  %v8423_v35 = vpack.c.bf16 %v2335_v20, %v2327_v18 }
 0x3ce   :  { %v8373_v6 = vpack.c.bf16 %v2407_v49, %v2399_v40  ;;  %v8375_v7 = vpack.c.bf16 %v2269_v62, %v2261_v52  ;;  %v2286_v48 = vld [vmem:[%s14458_s9 + $0xd0] sm:$0xff]  ;;  %v2301_v53 = vld [vmem:[%s14458_s9 + $0x148] sm:$0xff]  ;;  %v8415_v60 = vpack.c.bf16 %v2303_v54, %v2295_v25  ;;  %v2311_v62 = vld [vmem:[%s14458_s9 + $0x198] sm:$0xff] }
 0x3cf   :  { %2154 = vmatprep.mubr.f32.mxu1 %v1668_v56  ;;  %2239 = vmatprep.mubr.f32.mxu0 %v1670_v58  ;;  %v11340_v57 = vpop.f32.mrb[32].mxu0  ;;  %v8413_v56 = vpack.c.bf16 %v2286_v48, %v2278_v38  ;;  %v2292_v58 = vld [vmem:[%s14458_s9 + $0x100] sm:$0xff]  ;;  %v2302_v40 = vld [vmem:[%s14458_s9 + $0x150] sm:$0xff]  ;;  %v2309_v49 = vld [vmem:[%s14458_s9 + $0x188] sm:$0xff] }
 0x3d0   :  { %2155 = vmatmul.mubr.f32.gmra.mrb[46].mxu1 %v1667_v46  ;;  %2240 = vmatmul.mubr.f32.gmra.mrb[50].mxu0 %v1669_v59  ;;  %v11351_v2 = vpop.f32.mrb[33].mxu0  ;;  %v2300_v46 = vld [vmem:[%s14458_s9 + $0x140] sm:$0xff]  ;;  %v8383_v59 = vpack.c.bf16 %v2301_v53, %v2293_v50  ;;  %v2317_v52 = vld [vmem:[%s14458_s9 + $0x1c8] sm:$0xff]  ;;  %v2334_v36 = vld [vmem:[%s14458_s9 + $0x250] sm:$0xff] }
 0x3d1   :  { %2485 = vmatprep.mubr.f32.mxu1 %v9334_v26  ;;  %2574 = vmatprep.mubr.f32.mxu0 %v9334_v26  ;;  %v8385_v42 = vpack.c.bf16 %v2300_v46, %v2292_v58  ;;  %v2343_v38 = vld [vmem:[%s14458_s9 + $0x298] sm:$0xff]  ;;  %v2340_v25 = vld [vmem:[%s14458_s9 + $0x280] sm:$0xff]  ;;  %v2350_v58 = vld [vmem:[%s14458_s9 + $0x2d0] sm:$0xff] }
 0x3d2   :  { %v2351_v48 = vld [vmem:[%s14458_s9 + $0x2d8] sm:$0xff]  ;;  %v2348_v54 = vld [vmem:[%s14458_s9 + $0x2c0] sm:$0xff]  ;;  %v2357_v46 = vld [vmem:[%s14458_s9 + $0x308] sm:$0xff] }
 0x3d3   :  { %v2372_v20 = vld [vmem:[%s14458_s9 + $0x380] sm:$0xff] }
 0x3d4   :  { %6948 = vmatmul.mubr.msk.f32.vlgmr.msra.gmra.mrb[48].mxu1 %vm872_vm0, %v6944_v3  ;;  %6952 = vmatmul.mubr.msk.f32.vlgmr.msra.gmra.mrb[52].mxu0 %vm872_vm0, %v6944_v3 }
 0x3d5   :  { %8370 = vmatpush1.bf16.msra.mxu1 %v8369_v4  ;;  %2491 = vmatprep.mubr.f32.mxu1 %v9334_v26  ;;  %v2308_v4 = vld [vmem:[%s14458_s9 + $0x180] sm:$0xff] }
 0x3d6   :  { %2580 = vmatprep.mubr.f32.mxu0 %v9334_v26  ;;  %8374 = vmatpush1.bf16.msra.mxu0 %v8373_v6  ;;  %v2316_v6 = vld [vmem:[%s14458_s9 + $0x1c0] sm:$0xff] }
 0x3d7   :  { %8376 = vmatprep.subr.bf16.mxu1 %v8375_v7  ;;  %8408 = vmatprep.subr.bf16.mxu0 %v8407_v8  ;;  %v8387_v7 = vpack.c.bf16 %v2317_v52, %v2309_v49  ;;  %v8419_v8 = vpack.c.bf16 %v2319_v0, %v2311_v62  ;;  %v8389_v22 = vpack.c.bf16 %v2316_v6, %v2308_v4  ;;  %v2356_v62 = vld [vmem:[%s14458_s9 + $0x300] sm:$0xff]  ;;  %v2358_v6 = vld [vmem:[%s14458_s9 + $0x310] sm:$0xff] }
 0x3d8   :  { %6949 = vmatmul.mubr.msk.f32.gmra.mrb[50].mxu1 %vm872_vm0, %v6945_v9  ;;  %6953 = vmatmul.mubr.msk.f32.gmra.mrb[54].mxu0 %vm872_vm0, %v6945_v9  ;;  %v8397_v49 = vpack.c.bf16 %v2348_v54, %v2340_v25  ;;  %v2364_v0 = vld [vmem:[%s14458_s9 + $0x340] sm:$0xff] }
 0x3d9   :  { %2497 = vmatprep.mubr.f32.mxu1 %v9334_v26  ;;  %2586 = vmatprep.mubr.f32.mxu0 %v9334_v26 }
 0x3dc   :  { %6950 = vmatmul.mubr.msk.f32.gmra.mrb[52].mxu1 %vm872_vm0, %v11372_v10  ;;  %6954 = vmatmul.mubr.msk.f32.gmra.mrb[56].mxu0 %vm872_vm0, %v11372_v10 }
 0x3dd   :  { %2503 = vmatprep.mubr.f32.mxu1 %v9334_v26  ;;  %2592 = vmatprep.mubr.f32.mxu0 %v9334_v26 }
 0x3e0   :  { %6951 = vmatmul.mubr.msk.f32.gmra.mrb[54].mxu1 %vm872_vm0, %v11383_v11  ;;  %6955 = vmatmul.mubr.msk.f32.gmra.mrb[58].mxu0 %vm872_vm0, %v11383_v11 }
 0x3e1   :  { %2663 = vmatprep.mubr.f32.mxu1 %v9334_v26  ;;  %2752 = vmatprep.mubr.f32.mxu0 %v9334_v26 }
 0x3e4   :  { %6956 = vmatmul.mubr.msk.f32.vlgmr.msra.gmra.mrb[56].mxu1 %vm872_vm0, %v6944_v3  ;;  %6960 = vmatmul.mubr.msk.f32.vlgmr.msra.gmra.mrb[60].mxu0 %vm872_vm0, %v6944_v3  ;;  %v8417_v3 = vpack.c.bf16 %v2302_v40, %v2294_v61  ;;  %v2367_v61 = vld [vmem:[%s14458_s9 + $0x358] sm:$0xff]  ;;  %v11555_v40 = vpop.f32.mrb[34].mxu0 }
 0x3e5   :  { %8378 = vmatpush1.bf16.msra.mxu1 %v8377_v32  ;;  %8410 = vmatpush1.bf16.msra.mxu0 %v8409_v33  ;;  %v2332_v32 = vld [vmem:[%s14458_s9 + $0x240] sm:$0xff]  ;;  %v8391_v33 = vpack.c.bf16 %v2333_v15, %v2325_v14  ;;  %v2383_v14 = vld [vmem:[%s14458_s9 + $0x3d8] sm:$0xff]  ;;  %v8401_v15 = vpack.c.bf16 %v2364_v0, %v2356_v62 }
 0x3e6   :  { %8380 = vmatprep.subr.bf16.mxu1 %v8379_v37  ;;  %8412 = vmatprep.subr.bf16.mxu0 %v8411_v34  ;;  %v2341_v37 = vld [vmem:[%s14458_s9 + $0x288] sm:$0xff]  ;;  %v8393_v50 = vpack.c.bf16 %v2332_v32, %v2324_v30  ;;  %v2374_v32 = vld [vmem:[%s14458_s9 + $0x390] sm:$0xff]  ;;  %v2288_v0 = vld [vmem:[%s14458_s9 + $0xe0] sm:$0xff] }
 0x3e7   :  { %2669 = vmatprep.mubr.f32.mxu1 %v9334_v26  ;;  %2758 = vmatprep.mubr.f32.mxu0 %v9334_v26  ;;  %v2349_v34 = vld [vmem:[%s14458_s9 + $0x2c8] sm:$0xff] }
 0x3e8   :  { %6957 = vmatmul.mubr.msk.f32.gmra.mrb[58].mxu1 %vm872_vm0, %v6945_v9  ;;  %6961 = vmatmul.mubr.msk.f32.gmra.mrb[62].mxu0 %vm872_vm0, %v6945_v9  ;;  %v2310_v9 = vld [vmem:[%s14458_s9 + $0x190] sm:$0xff] }
 0x3e9   :  { %8382 = vmatpush1.bf16.msra.mxu1 %v8381_v55  ;;  %8414 = vmatpush1.bf16.msra.mxu0 %v8413_v56  ;;  %v8421_v24 = vpack.c.bf16 %v2318_v13, %v2310_v9  ;;  %v8395_v55 = vpack.c.bf16 %v2349_v34, %v2341_v37  ;;  %v8427_v56 = vpack.c.bf16 %v2351_v48, %v2343_v38  ;;  %v2381_v9 = vld [vmem:[%s14458_s9 + $0x3c8] sm:$0xff]  ;;  %v2375_v13 = vld [vmem:[%s14458_s9 + $0x398] sm:$0xff]  ;;  %v2264_v48 = vld [vmem:[%s14458_s9 + $0x20] sm:$0xff] }
 0x3ea   :  { %8384 = vmatprep.subr.bf16.mxu1 %v8383_v59  ;;  %8416 = vmatprep.subr.bf16.mxu0 %v8415_v60  ;;  %v2365_v59 = vld [vmem:[%s14458_s9 + $0x348] sm:$0xff]  ;;  %v2359_v60 = vld [vmem:[%s14458_s9 + $0x318] sm:$0xff]  ;;  %v8435_v30 = vpack.c.bf16 %v2383_v14, %v2375_v13 }
 0x3eb   :  { %2675 = vmatprep.mubr.f32.mxu1 %v9334_v26  ;;  %2764 = vmatprep.mubr.f32.mxu0 %v9334_v26  ;;  %v8431_v4 = vpack.c.bf16 %v2367_v61, %v2359_v60  ;;  %v2275_v37 = vld [vmem:[%s14458_s9 + $0x78] sm:$0xff] }
 0x3ec   :  { %6958 = vmatmul.mubr.msk.f32.gmra.mrb[60].mxu1 %vm872_vm0, %v11372_v10  ;;  %6962 = vmatmul.mubr.msk.f32.gmra.mrb[64].mxu0 %vm872_vm0, %v11372_v10  ;;  %v2326_v10 = vld [vmem:[%s14458_s9 + $0x210] sm:$0xff]  ;;  %v2291_v60 = vld [vmem:[%s14458_s9 + $0xf8] sm:$0xff] }
 0x3ed   :  { %8386 = vmatpush1.bf16.msra.mxu1 %v8385_v42  ;;  %8418 = vmatpush1.bf16.msra.mxu0 %v8417_v3  ;;  %v8425_v53 = vpack.c.bf16 %v2334_v36, %v2326_v10  ;;  %v11563_v42 = vpop.f32.mrb[35].mxu0  ;;  %v8399_v3 = vpack.c.bf16 %v2365_v59, %v2357_v46  ;;  %v2273_v10 = vld [vmem:[%s14458_s9 + $0x68] sm:$0xff]  ;;  %v2267_v36 = vld [vmem:[%s14458_s9 + $0x38] sm:$0xff] }
 0x3ee   :  { %8388 = vmatprep.subr.bf16.mxu1 %v8387_v7  ;;  %8420 = vmatprep.subr.bf16.mxu0 %v8419_v8  ;;  %v2366_v7 = vld [vmem:[%s14458_s9 + $0x350] sm:$0xff]  ;;  %v2373_v8 = vld [vmem:[%s14458_s9 + $0x388] sm:$0xff]  ;;  %v8471_v54 = vpack.c.bf16 %v2275_v37, %v2267_v36  ;;  %v2283_v59 = vld [vmem:[%s14458_s9 + $0xb8] sm:$0xff] }
 0x3ef   :  { %2681 = vmatprep.mubr.f32.mxu1 %v9334_v26  ;;  %2770 = vmatprep.mubr.f32.mxu0 %v9334_v26  ;;  %v8433_v18 = vpack.c.bf16 %v2366_v7, %v2358_v6  ;;  %v2289_v46 = vld [vmem:[%s14458_s9 + $0xe8] sm:$0xff]  ;;  %v8475_v7 = vpack.c.bf16 %v2291_v60, %v2283_v59  ;;  %v2307_v13 = vld [vmem:[%s14458_s9 + $0x178] sm:$0xff] }
 0x3f0   :  { %6959 = vmatmul.mubr.msk.f32.gmra.mrb[62].mxu1 %vm872_vm0, %v11383_v11  ;;  %6963 = vmatmul.mubr.msk.f32.gmra.mrb[66].mxu0 %vm872_vm0, %v11383_v11  ;;  %v2342_v11 = vld [vmem:[%s14458_s9 + $0x290] sm:$0xff]  ;;  %v2323_v36 = vld [vmem:[%s14458_s9 + $0x1f8] sm:$0xff] }
 0x3f1   :  { %8390 = vmatpush1.bf16.msra.mxu1 %v8389_v22  ;;  %8422 = vmatpush1.bf16.msra.mxu0 %v8421_v24  ;;  %v8429_v52 = vpack.c.bf16 %v2350_v58, %v2342_v11  ;;  %v2380_v22 = vld [vmem:[%s14458_s9 + $0x3c0] sm:$0xff]  ;;  %v8403_v24 = vpack.c.bf16 %v2381_v9, %v2373_v8  ;;  %v2274_v11 = vld [vmem:[%s14458_s9 + $0x70] sm:$0xff]  ;;  %v2281_v58 = vld [vmem:[%s14458_s9 + $0xa8] sm:$0xff] }
 0x3f2   :  { %8392 = vmatprep.subr.bf16.mxu1 %v8391_v33  ;;  %8424 = vmatprep.subr.bf16.mxu0 %v8423_v35  ;;  %v2382_v33 = vld [vmem:[%s14458_s9 + $0x3d0] sm:$0xff]  ;;  %v2265_v35 = vld [vmem:[%s14458_s9 + $0x28] sm:$0xff]  ;;  %v8405_v34 = vpack.c.bf16 %v2380_v22, %v2372_v20  ;;  %v8443_v6 = vpack.c.bf16 %v2289_v46, %v2281_v58  ;;  %v2299_v9 = vld [vmem:[%s14458_s9 + $0x138] sm:$0xff] }
 0x3f3   :  { %2841 = vmatprep.mubr.f32.mxu1 %v9334_v26  ;;  %2930 = vmatprep.mubr.f32.mxu0 %v9334_v26  ;;  %v8437_v38 = vpack.c.bf16 %v2382_v33, %v2374_v32  ;;  %v8439_v25 = vpack.c.bf16 %v2273_v10, %v2265_v35  ;;  %v2305_v8 = vld [vmem:[%s14458_s9 + $0x168] sm:$0xff]  ;;  %v2304_v22 = vld [vmem:[%s14458_s9 + $0x160] sm:$0xff]  ;;  %v8479_v32 = vpack.c.bf16 %v2307_v13, %v2299_v9  ;;  %v2315_v10 = vld [vmem:[%s14458_s9 + $0x1b8] sm:$0xff] }
 0x3f4   :  { %v2313_v33 = vld [vmem:[%s14458_s9 + $0x1a8] sm:$0xff]  ;;  %v2331_v58 = vld [vmem:[%s14458_s9 + $0x238] sm:$0xff]  ;;  %v2344_v13 = vld [vmem:[%s14458_s9 + $0x2a0] sm:$0xff] }
 0x3f5   :  { %8394 = vmatpush1.bf16.msra.mxu1 %v8393_v50  ;;  %8426 = vmatpush1.bf16.msra.mxu0 %v8425_v53  ;;  %v9331_v50 = vld [vmem:[%s14460_s8] sm:$0xf]  ;;  %v2321_v35 = vld [vmem:[%s14458_s9 + $0x1e8] sm:$0xff]  ;;  %v2339_v46 = vld [vmem:[%s14458_s9 + $0x278] sm:$0xff] }
 0x3f6   :  { %8396 = vmatprep.subr.bf16.mxu1 %v8395_v55  ;;  %8428 = vmatprep.subr.bf16.mxu0 %v8427_v56  ;;  %v11614_v53 = vrot.slane %v9331_v50, %v10021_v41  ;;  %v2272_v55 = vld [vmem:[%s14458_s9 + $0x60] sm:$0xff]  ;;  %v2266_v56 = vld [vmem:[%s14458_s9 + $0x30] sm:$0xff] }
 0x3f7   :  { %v8441_v61 = vpack.c.bf16 %v2272_v55, %v2264_v48  ;;  %v2320_v48 = vld [vmem:[%s14458_s9 + $0x1e0] sm:$0xff]  ;;  %v2329_v55 = vld [vmem:[%s14458_s9 + $0x228] sm:$0xff] }
 0x3f8   :  { %v11642_v62 = vadd.f32 %v10576_v27, %v11614_v53  ;;  %v2297_v27 = vld [vmem:[%s14458_s9 + $0x128] sm:$0xff]  ;;  %v11672_v20 = vadd.f32 %v10613_v47, %v11614_v53  ;;  %v11707_v50 = vadd.f32 %v10653_v1, %v11614_v53  ;;  %v8451_v1 = vpack.c.bf16 %v2321_v35, %v2313_v33  ;;  %v2371_v33 = vld [vmem:[%s14458_s9 + $0x378] sm:$0xff] }
 0x3f9   :  { %8398 = vmatpush1.bf16.msra.mxu1 %v8397_v49  ;;  %8430 = vmatpush1.bf16.msra.mxu0 %v8429_v52  ;;  %v8473_v49 = vpack.c.bf16 %v2274_v11, %v2266_v56  ;;  %v2280_v52 = vld [vmem:[%s14458_s9 + $0xa0] sm:$0xff]  ;;  %v8447_v47 = vpack.c.bf16 %v2305_v8, %v2297_v27  ;;  %v8483_v56 = vpack.c.bf16 %v2323_v36, %v2315_v10  ;;  %v2337_v11 = vld [vmem:[%s14458_s9 + $0x268] sm:$0xff]  ;;  %v2355_v27 = vld [vmem:[%s14458_s9 + $0x2f8] sm:$0xff] }
 0x3fa   :  { %8400 = vmatprep.subr.bf16.mxu1 %v8399_v3  ;;  %8432 = vmatprep.subr.bf16.mxu0 %v8431_v4  ;;  %v2282_v3 = vld [vmem:[%s14458_s9 + $0xb0] sm:$0xff]  ;;  %v8445_v14 = vpack.c.bf16 %v2288_v0, %v2280_v52  ;;  %v11739_v52 = vadd.f32 %v10699_v12, %v11614_v53  ;;  %v8455_v0 = vpack.c.bf16 %v2337_v11, %v2329_v55  ;;  %v2353_v12 = vld [vmem:[%s14458_s9 + $0x2e8] sm:$0xff]  ;;  %v2347_v53 = vld [vmem:[%s14458_s9 + $0x2b8] sm:$0xff] }
 0x3fb   :  { %v2290_v4 = vld [vmem:[%s14458_s9 + $0xf0] sm:$0xff]  ;;  %v2360_v36 = vld [vmem:[%s14458_s9 + $0x320] sm:$0xff]  ;;  %v2385_v55 = vld [vmem:[%s14458_s9 + $0x3e8] sm:$0xff] }
 0x3fd   :  { %8402 = vmatpush1.bf16.msra.mxu1 %v8401_v15  ;;  %8434 = vmatpush1.bf16.msra.mxu0 %v8433_v18  ;;  %v8477_v15 = vpack.c.bf16 %v2290_v4, %v2282_v3  ;;  %v2296_v18 = vld [vmem:[%s14458_s9 + $0x120] sm:$0xff]  ;;  %v8487_v3 = vpack.c.bf16 %v2339_v46, %v2331_v58  ;;  %v2330_v4 = vld [vmem:[%s14458_s9 + $0x230] sm:$0xff] }
 0x3fe   :  { %8404 = vmatprep.subr.bf16.mxu1 %v8403_v24  ;;  %8436 = vmatprep.subr.bf16.mxu0 %v8435_v30  ;;  %v2298_v24 = vld [vmem:[%s14458_s9 + $0x130] sm:$0xff]  ;;  %v8449_v37 = vpack.c.bf16 %v2304_v22, %v2296_v18  ;;  %v8491_v18 = vpack.c.bf16 %v2355_v27, %v2347_v53  ;;  %v2376_v46 = vld [vmem:[%s14458_s9 + $0x3a0] sm:$0xff] }
 0x3ff   :  { %v2306_v30 = vld [vmem:[%s14458_s9 + $0x170] sm:$0xff]  ;;  %v3223_v53 = vld [vmem:[%s14462_s12 + $0x80] sm:$0xff] }
 0x400   :  { %v2346_v22 = vld [vmem:[%s14458_s9 + $0x2b0] sm:$0xff] }
 0x401   :  { %8406 = vmatpush1.bf16.msra.mxu1 %v8405_v34  ;;  %8438 = vmatpush1.bf16.msra.mxu0 %v8437_v38  ;;  %v8481_v34 = vpack.c.bf16 %v2306_v30, %v2298_v24  ;;  %v2312_v38 = vld [vmem:[%s14458_s9 + $0x1a0] sm:$0xff]  ;;  %v2354_v24 = vld [vmem:[%s14458_s9 + $0x2f0] sm:$0xff]  ;;  %v2361_v30 = vld [vmem:[%s14458_s9 + $0x328] sm:$0xff] }
 0x402   :  { %8440 = vmatprep.subr.bf16.mxu1 %v8439_v25  ;;  %8472 = vmatprep.subr.bf16.mxu0 %v8471_v54  ;;  %v2314_v25 = vld [vmem:[%s14458_s9 + $0x1b0] sm:$0xff]  ;;  %v8453_v59 = vpack.c.bf16 %v2320_v48, %v2312_v38  ;;  %v8493_v10 = vpack.c.bf16 %v2354_v24, %v2346_v22  ;;  %v3239_v24 = vld [vmem:[%s14462_s12 + $0x100] sm:$0xff] }
 0x403   :  { %v2322_v54 = vld [vmem:[%s14458_s9 + $0x1f0] sm:$0xff] }
 0x404   :  { %2842 = vmatmul.mubr.f32.vlgmr.msra.gmra.mrb[48].mxu1 %v11642_v62  ;;  %2931 = vmatmul.mubr.f32.vlgmr.msra.gmra.mrb[52].mxu0 %v11642_v62  ;;  %v8485_v60 = vpack.c.bf16 %v2322_v54, %v2314_v25  ;;  %v2362_v48 = vld [vmem:[%s14458_s9 + $0x330] sm:$0xff]  ;;  %v2377_v54 = vld [vmem:[%s14458_s9 + $0x3a8] sm:$0xff] }
 0x405   :  { %8442 = vmatpush1.bf16.msra.mxu1 %v8441_v61  ;;  %8474 = vmatpush1.bf16.msra.mxu0 %v8473_v49  ;;  %v2328_v61 = vld [vmem:[%s14458_s9 + $0x220] sm:$0xff]  ;;  %v2370_v25 = vld [vmem:[%s14458_s9 + $0x370] sm:$0xff] }
 0x406   :  { %2847 = vmatprep.mubr.f32.mxu1 %v9334_v26  ;;  %2936 = vmatprep.mubr.f32.mxu0 %v9334_v26  ;;  %v2336_v49 = vld [vmem:[%s14458_s9 + $0x260] sm:$0xff]  ;;  %v8497_v58 = vpack.c.bf16 %v2370_v25, %v2362_v48  ;;  %v6965_v48 = vld [vmem:[%s14463_s2 + $0x28] sm:$0xff] }
 0x407   :  { %8444 = vmatprep.subr.bf16.mxu1 %v8443_v6  ;;  %8476 = vmatprep.subr.bf16.mxu0 %v8475_v7  ;;  %v2338_v6 = vld [vmem:[%s14458_s9 + $0x270] sm:$0xff]  ;;  %v2345_v7 = vld [vmem:[%s14458_s9 + $0x2a8] sm:$0xff]  ;;  %v8457_v8 = vpack.c.bf16 %v2336_v49, %v2328_v61  ;;  %v2384_v61 = vld [vmem:[%s14458_s9 + $0x3e0] sm:$0xff] }
 0x408   :  { %2848 = vmatmul.mubr.f32.gmra.mrb[50].mxu1 %v11672_v20  ;;  %2937 = vmatmul.mubr.f32.gmra.mrb[54].mxu0 %v11672_v20  ;;  %v8489_v9 = vpack.c.bf16 %v2338_v6, %v2330_v4  ;;  %v2378_v49 = vld [vmem:[%s14458_s9 + $0x3b0] sm:$0xff]  ;;  %v3340_v6 = vld [vmem:[%s14461_s13] sm:$0xff] }
 0x409   :  { %8446 = vmatpush1.bf16.msra.mxu1 %v8445_v14  ;;  %8478 = vmatpush1.bf16.msra.mxu0 %v8477_v15  ;;  %v2352_v14 = vld [vmem:[%s14458_s9 + $0x2e0] sm:$0xff]  ;;  %v8459_v15 = vpack.c.bf16 %v2353_v12, %v2345_v7  ;;  %v3342_v7 = vld [vmem:[%s14461_s13 + $0x10] sm:$0xff]  ;;  %v3343_v12 = vld [vmem:[%s14461_s13 + $0x18] sm:$0xff] }
 0x40a   :  { %2853 = vmatprep.mubr.f32.mxu1 %v9334_v26  ;;  %2942 = vmatprep.mubr.f32.mxu0 %v9334_v26  ;;  %v8461_v35 = vpack.c.bf16 %v2352_v14, %v2344_v13  ;;  %v8507_v27 = vpack.c.bf16 %v3343_v12, %v3342_v7  ;;  %v6964_v13 = vld [vmem:[%s14463_s2 + $0x20] sm:$0xff]  ;;  %v3213_v12 = vld [vmem:[%s14462_s12 + $0x30] sm:$0xff] }
 0x40b   :  { %8448 = vmatprep.subr.bf16.mxu1 %v8447_v47  ;;  %8480 = vmatprep.subr.bf16.mxu0 %v8479_v32  ;;  %v2369_v47 = vld [vmem:[%s14458_s9 + $0x368] sm:$0xff]  ;;  %v2363_v32 = vld [vmem:[%s14458_s9 + $0x338] sm:$0xff] }
 0x40c   :  { %2854 = vmatmul.mubr.f32.gmra.mrb[52].mxu1 %v11707_v50  ;;  %2943 = vmatmul.mubr.f32.gmra.mrb[56].mxu0 %v11707_v50  ;;  %v8495_v38 = vpack.c.bf16 %v2371_v33, %v2363_v32  ;;  %v3240_v32 = vld [vmem:[%s14462_s12 + $0x108] sm:$0xff]  ;;  %v3226_v33 = vld [vmem:[%s14462_s12 + $0x98] sm:$0xff] }
 0x40d   :  { %8450 = vmatpush1.bf16.msra.mxu1 %v8449_v37  ;;  %8482 = vmatpush1.bf16.msra.mxu0 %v8481_v34  ;;  %v2368_v37 = vld [vmem:[%s14458_s9 + $0x360] sm:$0xff]  ;;  %v8463_v34 = vpack.c.bf16 %v2369_v47, %v2361_v30  ;;  %v3225_v30 = vld [vmem:[%s14462_s12 + $0x90] sm:$0xff]  ;;  %v8545_v25 = vpack.c.bf16 %v3240_v32, %v3239_v24  ;;  %v3264_v32 = vld [vmem:[%s14462_s12 + $0x1c8] sm:$0xff] }
 0x40e   :  { %2859 = vmatprep.mubr.f32.mxu1 %v9334_v26  ;;  %2948 = vmatprep.mubr.f32.mxu0 %v9334_v26  ;;  %v8465_v11 = vpack.c.bf16 %v2368_v37, %v2360_v36  ;;  %v3209_v36 = vld [vmem:[%s14462_s12 + $0x10] sm:$0xff]  ;;  %v3210_v37 = vld [vmem:[%s14462_s12 + $0x18] sm:$0xff]  ;;  %v3263_v24 = vld [vmem:[%s14462_s12 + $0x1c0] sm:$0xff] }
 0x40f   :  { %8452 = vmatprep.subr.bf16.mxu1 %v8451_v1  ;;  %8484 = vmatprep.subr.bf16.mxu0 %v8483_v56  ;;  %v2379_v1 = vld [vmem:[%s14458_s9 + $0x3b8] sm:$0xff] }
 0x410   :  { %2860 = vmatmul.mubr.f32.gmra.mrb[54].mxu1 %v11739_v52  ;;  %2949 = vmatmul.mubr.f32.gmra.mrb[58].mxu0 %v11739_v52  ;;  %v2387_v56 = vld [vmem:[%s14458_s9 + $0x3f8] sm:$0xff] }
 0x411   :  { %8454 = vmatpush1.bf16.msra.mxu1 %v8453_v59  ;;  %8486 = vmatpush1.bf16.msra.mxu0 %v8485_v60  ;;  %v8467_v59 = vpack.c.bf16 %v2385_v55, %v2377_v54  ;;  %v8499_v60 = vpack.c.bf16 %v2387_v56, %v2379_v1  ;;  %v8517_v54 = vpack.c.bf16 %v3210_v37, %v3209_v36  ;;  %v3241_v55 = vld [vmem:[%s14462_s12 + $0x110] sm:$0xff]  ;;  %v3242_v1 = vld [vmem:[%s14462_s12 + $0x118] sm:$0xff]  ;;  %v3247_v36 = vld [vmem:[%s14462_s12 + $0x140] sm:$0xff] }
 0x412   :  { %8456 = vmatprep.subr.bf16.mxu1 %v8455_v0  ;;  %8488 = vmatprep.subr.bf16.mxu0 %v8487_v3  ;;  %v2386_v0 = vld [vmem:[%s14458_s9 + $0x3f0] sm:$0xff]  ;;  %v8469_v3 = vpack.c.bf16 %v2384_v61, %v2376_v46  ;;  %v3211_v46 = vld [vmem:[%s14462_s12 + $0x20] sm:$0xff]  ;;  %v3248_v37 = vld [vmem:[%s14462_s12 + $0x148] sm:$0xff] }
 0x413   :  { %3019 = vmatprep.mubr.f32.mxu1 %v9334_v26  ;;  %3108 = vmatprep.mubr.f32.mxu0 %v9334_v26  ;;  %v8501_v4 = vpack.c.bf16 %v2386_v0, %v2378_v49  ;;  %v3229_v61 = vld [vmem:[%s14462_s12 + $0xb0] sm:$0xff]  ;;  %v3230_v49 = vld [vmem:[%s14462_s12 + $0xb8] sm:$0xff]  ;;  %v8549_v0 = vpack.c.bf16 %v3242_v1, %v3241_v55  ;;  %v3235_v1 = vld [vmem:[%s14462_s12 + $0xe0] sm:$0xff] }
 0x414   :  { %v8523_v7 = vpack.c.bf16 %v3230_v49, %v3229_v61  ;;  %v3266_v55 = vld [vmem:[%s14462_s12 + $0x1d8] sm:$0xff]  ;;  %v3219_v49 = vld [vmem:[%s14462_s12 + $0x60] sm:$0xff] }
 0x415   :  { %8458 = vmatpush1.bf16.msra.mxu1 %v8457_v8  ;;  %8490 = vmatpush1.bf16.msra.mxu0 %v8489_v9  ;;  %v3224_v8 = vld [vmem:[%s14462_s12 + $0x88] sm:$0xff] }
 0x416   :  { %8460 = vmatprep.subr.bf16.mxu1 %v8459_v15  ;;  %8492 = vmatprep.subr.bf16.mxu0 %v8491_v18  ;;  %v3256_v9 = vld [vmem:[%s14462_s12 + $0x188] sm:$0xff]  ;;  %v8511_v14 = vpack.c.bf16 %v3224_v8, %v3223_v53  ;;  %v3207_v15 = vld [vmem:[%s14462_s12] sm:$0xff]  ;;  %v3214_v53 = vld [vmem:[%s14462_s12 + $0x38] sm:$0xff] }
 0x417   :  { %v3208_v18 = vld [vmem:[%s14462_s12 + $0x8] sm:$0xff]  ;;  %v3231_v8 = vld [vmem:[%s14462_s12 + $0xc0] sm:$0xff] }
 0x418   :  { %v8513_v22 = vpack.c.bf16 %v3208_v18, %v3207_v15  ;;  %v3246_v15 = vld [vmem:[%s14462_s12 + $0x138] sm:$0xff] }
 0x419   :  { %8462 = vmatpush1.bf16.msra.mxu1 %v8461_v35  ;;  %8494 = vmatpush1.bf16.msra.mxu0 %v8493_v10  ;;  %v3257_v35 = vld [vmem:[%s14462_s12 + $0x190] sm:$0xff]  ;;  %v8515_v10 = vpack.c.bf16 %v3226_v33, %v3225_v30  ;;  %v3215_v30 = vld [vmem:[%s14462_s12 + $0x40] sm:$0xff] }
 0x41a   :  { %8464 = vmatprep.subr.bf16.mxu1 %v8463_v34  ;;  %8496 = vmatprep.subr.bf16.mxu0 %v8495_v38  ;;  %v3227_v34 = vld [vmem:[%s14462_s12 + $0xa0] sm:$0xff]  ;;  %v3228_v38 = vld [vmem:[%s14462_s12 + $0xa8] sm:$0xff]  ;;  %v3233_v33 = vld [vmem:[%s14462_s12 + $0xd0] sm:$0xff] }
 0x41d   :  { %8466 = vmatpush1.bf16.msra.mxu1 %v8465_v11  ;;  %8498 = vmatpush1.bf16.msra.mxu0 %v8497_v58  ;;  %v8519_v11 = vpack.c.bf16 %v3228_v38, %v3227_v34  ;;  %v3259_v58 = vld [vmem:[%s14462_s12 + $0x1a0] sm:$0xff]  ;;  %v8559_v34 = vpack.c.bf16 %v3264_v32, %v3263_v24  ;;  %v3222_v24 = vld [vmem:[%s14462_s12 + $0x78] sm:$0xff] }
 0x41e   :  { %8468 = vmatprep.subr.bf16.mxu1 %v8467_v59  ;;  %8500 = vmatprep.subr.bf16.mxu0 %v8499_v60  ;;  %v3212_v59 = vld [vmem:[%s14462_s12 + $0x28] sm:$0xff]  ;;  %v3254_v32 = vld [vmem:[%s14462_s12 + $0x178] sm:$0xff] }
 0x41f   :  { %v3260_v60 = vld [vmem:[%s14462_s12 + $0x1a8] sm:$0xff] }
 0x421   :  { %8470 = vmatpush1.bf16.msra.mxu1 %v8469_v3  ;;  %8502 = vmatpush1.bf16.msra.mxu0 %v8501_v4  ;;  %v8521_v3 = vpack.c.bf16 %v3212_v59, %v3211_v46  ;;  %v3243_v4 = vld [vmem:[%s14462_s12 + $0x120] sm:$0xff]  ;;  %v3249_v46 = vld [vmem:[%s14462_s12 + $0x150] sm:$0xff] }
 0x422   :  { %8512 = vmatprep.subr.bf16.mxu0 %v8511_v14  ;;  %v3245_v14 = vld [vmem:[%s14462_s12 + $0x130] sm:$0xff] }
 0x424   :  { %3020 = vmatmul.mubr.f32.vlgmr.msra.gmra.mrb[56].mxu1 %v11642_v62  ;;  %3109 = vmatmul.mubr.f32.vlgmr.msra.gmra.mrb[60].mxu0 %v11642_v62  ;;  %v3341_v62 = vld [vmem:[%s14461_s13 + $0x8] sm:$0xff] }
 0x425   :  { %3025 = vmatprep.mubr.f32.mxu1 %v9334_v26  ;;  %3114 = vmatprep.mubr.f32.mxu0 %v9334_v26 }
 0x426   :  { %8514 = vmatpush3.bf16.msra.mxu0 %v8513_v22 }
 0x427   :  { %8516 = vmatprep.subr.bf16.mxu0 %v8515_v10  ;;  %v8557_v10 = vpack.c.bf16 %v3246_v15, %v3245_v14  ;;  %v3270_v14 = vld [vmem:[%s14462_s12 + $0x1f8] sm:$0xff] }
 0x428   :  { %3026 = vmatmul.mubr.f32.gmra.mrb[58].mxu1 %v11672_v20  ;;  %3115 = vmatmul.mubr.f32.gmra.mrb[62].mxu0 %v11672_v20  ;;  %v8503_v20 = vpack.c.bf16 %v3341_v62, %v3340_v6  ;;  %v3244_v6 = vld [vmem:[%s14462_s12 + $0x128] sm:$0xff]  ;;  %v8551_v62 = vpack.c.bf16 %v3260_v60, %v3259_v58  ;;  %v3250_v60 = vld [vmem:[%s14462_s12 + $0x158] sm:$0xff] }
 0x429   :  { %3031 = vmatprep.mubr.f32.mxu1 %v9334_v26  ;;  %3120 = vmatprep.mubr.f32.mxu0 %v9334_v26  ;;  %v6967_v15 = vld [vmem:[%s14463_s2 + $0x38] sm:$0xff] }
 0x42a   :  { %8504 = vmatprep.subr.bf16.mxu1 %v8503_v20  ;;  %8518 = vmatpush3.bf16.msra.mxu0 %v8517_v54  ;;  %v3218_v54 = vld [vmem:[%s14462_s12 + $0x58] sm:$0xff] }
 0x42b   :  { %8506 = vmatpush3.bf16.msra.mxu1 %v8503_v20  ;;  %8520 = vmatprep.subr.bf16.mxu0 %v8519_v11  ;;  %v3261_v20 = vld [vmem:[%s14462_s12 + $0x1b0] sm:$0xff]  ;;  %v8561_v11 = vpack.c.bf16 %v3248_v37, %v3247_v36  ;;  %v3320_v37 = vld [vmem:[%s14462_s12 + $0x388] sm:$0xff] }
 0x42c   :  { %3032 = vmatmul.mubr.f32.gmra.mrb[60].mxu1 %v11707_v50  ;;  %3121 = vmatmul.mubr.f32.gmra.mrb[64].mxu0 %v11707_v50  ;;  %v3255_v50 = vld [vmem:[%s14462_s12 + $0x180] sm:$0xff] }
 0x42d   :  { %3037 = vmatprep.mubr.f32.mxu1 %v9334_v26  ;;  %3126 = vmatprep.mubr.f32.mxu0 %v9334_v26  ;;  %v8543_v47 = vpack.c.bf16 %v3256_v9, %v3255_v50  ;;  %v3232_v50 = vld [vmem:[%s14462_s12 + $0xc8] sm:$0xff]  ;;  %v8553_v9 = vpack.c.bf16 %v3244_v6, %v3243_v4  ;;  %v8565_v6 = vpack.c.bf16 %v3250_v60, %v3249_v46 }
 0x42e   :  { %8508 = vmatprep.subr.bf16.mxu1 %v8507_v27  ;;  %8522 = vmatpush3.bf16.msra.mxu0 %v8521_v3  ;;  %v8527_v22 = vpack.c.bf16 %v3232_v50, %v3231_v8  ;;  %v3267_v3 = vld [vmem:[%s14462_s12 + $0x1e0] sm:$0xff]  ;;  %v3268_v4 = vld [vmem:[%s14462_s12 + $0x1e8] sm:$0xff]  ;;  %v3238_v8 = vld [vmem:[%s14462_s12 + $0xf8] sm:$0xff] }
 0x42f   :  { %8510 = vmatpush3.bf16.msra.mxu1 %v8507_v27  ;;  %v3262_v27 = vld [vmem:[%s14462_s12 + $0x1b8] sm:$0xff]  ;;  %8524 = vmatprep.subr.bf16.mxu0 %v8523_v7  ;;  %v8567_v7 = vpack.c.bf16 %v3268_v4, %v3267_v3  ;;  %v6966_v50 = vld [vmem:[%s14463_s2 + $0x30] sm:$0xff] }
 0x430   :  { %3038 = vmatmul.mubr.f32.gmra.mrb[62].mxu1 %v11739_v52  ;;  %3127 = vmatmul.mubr.f32.gmra.mrb[66].mxu0 %v11739_v52  ;;  %v3258_v52 = vld [vmem:[%s14462_s12 + $0x198] sm:$0xff]  ;;  %v8555_v18 = vpack.c.bf16 %v3262_v27, %v3261_v20  ;;  %v3251_v20 = vld [vmem:[%s14462_s12 + $0x160] sm:$0xff]  ;;  %v3237_v27 = vld [vmem:[%s14462_s12 + $0xf0] sm:$0xff] }
 0x431   :  { %7789 = vmatprep.mubr.msk.f32.mxu1 %vm1807_vm1, %v6964_v13  ;;  %8544 = vmatprep.subr.bf16.mxu1 %v8543_v47  ;;  %v8547_v56 = vpack.c.bf16 %v3258_v52, %v3257_v35  ;;  %v8525_v13 = vpack.c.bf16 %v3214_v53, %v3213_v12  ;;  %v3216_v47 = vld [vmem:[%s14462_s12 + $0x48] sm:$0xff]  ;;  %v3234_v35 = vld [vmem:[%s14462_s12 + $0xd8] sm:$0xff] }
 0x432   :  { %v8529_v52 = vpack.c.bf16 %v3216_v47, %v3215_v30  ;;  %v8531_v38 = vpack.c.bf16 %v3234_v35, %v3233_v33  ;;  %v3252_v12 = vld [vmem:[%s14462_s12 + $0x168] sm:$0xff]  ;;  %v3253_v47 = vld [vmem:[%s14462_s12 + $0x170] sm:$0xff]  ;;  %v3287_v35 = vld [vmem:[%s14462_s12 + $0x280] sm:$0xff] }
 0x433   :  { %8526 = vmatpush3.bf16.msra.mxu0 %v8525_v13  ;;  %v8569_v53 = vpack.c.bf16 %v3252_v12, %v3251_v20  ;;  %v3269_v13 = vld [vmem:[%s14462_s12 + $0x1f0] sm:$0xff]  ;;  %v8573_v33 = vpack.c.bf16 %v3254_v32, %v3253_v47 }
 0x434   :  { %7790 = vmatmul.mubr.msk.f32.vlgmr.msra.gmra.mrb[64].mxu1 %vm1807_vm1, %v6965_v48  ;;  %8528 = vmatprep.subr.bf16.mxu0 %v8527_v22  ;;  %v3265_v48 = vld [vmem:[%s14462_s12 + $0x1d0] sm:$0xff] }
 0x435   :  { %8546 = vmatpush3.bf16.msra.mxu1 %v8545_v25  ;;  %v3217_v25 = vld [vmem:[%s14462_s12 + $0x50] sm:$0xff]  ;;  %v8563_v59 = vpack.c.bf16 %v3266_v55, %v3265_v48  ;;  %7792 = vmatprep.mubr.msk.f32.mxu1 %vm1807_vm1, %v6966_v50 }
 0x436   :  { %8548 = vmatprep.subr.bf16.mxu1 %v8547_v56  ;;  %v3236_v56 = vld [vmem:[%s14462_s12 + $0xe8] sm:$0xff]  ;;  %v8533_v58 = vpack.c.bf16 %v3218_v54, %v3217_v25  ;;  %v3221_v22 = vld [vmem:[%s14462_s12 + $0x70] sm:$0xff] }
 0x437   :  { %8530 = vmatpush3.bf16.msra.mxu0 %v8529_v52  ;;  %v8535_v61 = vpack.c.bf16 %v3236_v56, %v3235_v1  ;;  %v8541_v30 = vpack.c.bf16 %v3222_v24, %v3221_v22  ;;  %v3319_v52 = vld [vmem:[%s14462_s12 + $0x380] sm:$0xff] }
 0x438   :  { %8532 = vmatprep.subr.bf16.mxu0 %v8531_v38  ;;  %7793 = vmatmul.mubr.msk.f32.gmra.mrb[66].mxu1 %vm1807_vm1, %v6967_v15 }
 0x439   :  { %8550 = vmatpush3.bf16.msra.mxu1 %v8549_v0  ;;  %v3220_v0 = vld [vmem:[%s14462_s12 + $0x68] sm:$0xff] }
 0x43a   :  { %8552 = vmatprep.subr.bf16.mxu1 %v8551_v62  ;;  %v8537_v62 = vpack.c.bf16 %v3220_v0, %v3219_v49 }
 0x43b   :  { %8534 = vmatpush3.bf16.msra.mxu0 %v8533_v58 }
 0x43c   :  { %8536 = vmatprep.subr.bf16.mxu0 %v8535_v61 }
 0x43d   :  { %8554 = vmatpush3.bf16.msra.mxu1 %v8553_v9  ;;  %v8539_v9 = vpack.c.bf16 %v3238_v8, %v3237_v27 }
 0x43e   :  { %8556 = vmatprep.subr.bf16.mxu1 %v8555_v18  ;;  %v8571_v18 = vpack.c.bf16 %v3270_v14, %v3269_v13 }
 0x43f   :  { %8538 = vmatpush3.bf16.msra.mxu0 %v8537_v62 }
 0x440   :  { %8540 = vmatprep.subr.bf16.mxu0 %v8539_v9 }
 0x441   :  { %8558 = vmatpush3.bf16.msra.mxu1 %v8557_v10  ;;  %v3288_v10 = vld [vmem:[%s14462_s12 + $0x288] sm:$0xff] }
 0x442   :  { %8560 = vmatprep.subr.bf16.mxu1 %v8559_v34  ;;  %v8575_v36 = vpack.c.bf16 %v3288_v10, %v3287_v35  ;;  %v8607_v34 = vpack.c.bf16 %v3320_v37, %v3319_v52 }
 0x443   :  { %8542 = vmatpush3.bf16.msra.mxu0 %v8541_v30 }
 0x444   :  { %8576 = vmatprep.subr.bf16.mxu0 %v8575_v36 }
 0x445   :  { %8562 = vmatpush3.bf16.msra.mxu1 %v8561_v11 }
 0x446   :  { %8564 = vmatprep.subr.bf16.mxu1 %v8563_v59 }
 0x449   :  { %8566 = vmatpush3.bf16.msra.mxu1 %v8565_v6 }
 0x44a   :  { %8568 = vmatprep.subr.bf16.mxu1 %v8567_v7 }
 0x44d   :  { %8570 = vmatpush3.bf16.msra.mxu1 %v8569_v53 }
 0x44e   :  { %8572 = vmatprep.subr.bf16.mxu1 %v8571_v18 }
 0x451   :  { %8574 = vmatpush3.bf16.msra.mxu1 %v8573_v33 }
 0x452   :  { %8608 = vmatprep.subr.bf16.mxu1 %v8607_v34 }
 0x477   :  { %v7071_v38 = vpop.f32.mrb[32].mxu1  ;;  %v7115_v48 = vpop.f32.mrb[36].mxu0 }
 0x478   :  { %v7072_v25 = vpop.f32.mrb[33].mxu1  ;;  %v7116_v54 = vpop.f32.mrb[37].mxu0 }
 0x479   :  { %v7073_v55 = vadd.f32 %v7072_v25, %v7071_v38  ;;  %v7117_v1 = vadd.f32 %v7116_v54, %v7115_v48 }
 0x47b   :  { %v1972_v56 = vadd.f32 %v7073_v55, %v11351_v2  ;;  %v7074_v11 = vpop.f32.mrb[34].mxu1  ;;  %v7118_v58 = vpop.f32.mrb[38].mxu0 }
 0x47c   :  { %v7075_v46 = vpop.f32.mrb[35].mxu1  ;;  %v7119_v59 = vpop.f32.mrb[39].mxu0 }
 0x47d   :  { %v2057_v60 = vadd.f32 %v7117_v1, %v1972_v56  ;;  %v7076_v61 = vadd.f32 %v7075_v46, %v7074_v11  ;;  %v7120_v49 = vadd.f32 %v7119_v59, %v7118_v58 }
 0x47f   :  { %v1977_v0 = vadd.f32 %v11340_v57, %v7076_v61  ;;  %v7077_v3 = vpop.f32.mrb[36].mxu1  ;;  %v7121_v4 = vpop.f32.mrb[40].mxu0 }
 0x480   :  { %v7078_v6 = vpop.f32.mrb[37].mxu1  ;;  %v7122_v62 = vpop.f32.mrb[41].mxu0 }
 0x481   :  { %v2062_v7 = vadd.f32 %v7120_v49, %v1977_v0  ;;  %v7079_v20 = vadd.f32 %v7078_v6, %v7077_v3  ;;  %v7123_v12 = vadd.f32 %v7122_v62, %v7121_v4 }
 0x483   :  { %v1982_v53 = vadd.f32 %v7079_v20, %v11563_v42  ;;  %v7080_v27 = vpop.f32.mrb[38].mxu1  ;;  %v7124_v2 = vpop.f32.mrb[42].mxu0  ;;  %v6943_v42 = vld [vmem:[%s14465_s14] ss:$0 sm:$0xff] }
 0x484   :  { %v7081_v8 = vpop.f32.mrb[39].mxu1  ;;  %v7125_v50 = vpop.f32.mrb[43].mxu0 }
 0x485   :  { %v2067_v9 = vadd.f32 %v7123_v12, %v1982_v53  ;;  %v7082_v13 = vadd.f32 %v7081_v8, %v7080_v27  ;;  %v7126_v14 = vadd.f32 %v7125_v50, %v7124_v2  ;;  %v12097_v53 = vld [vmem:[%s14464_s11] sm:$0xff]  ;;  %v3272_v50 = vld [vmem:[%s14462_s12 + $0x208] sm:$0xff] }
 0x486   :  { %v12101_v27 = vrot.slane %v12097_v53, %v10021_v41  ;;  %v12105_v2 = vrot.slane %v12097_v53, %v11028_v43  ;;  %v3271_v8 = vld [vmem:[%s14462_s12 + $0x200] sm:$0xff] }
 0x487   :  { %v1987_v15 = vadd.f32 %v11555_v40, %v7082_v13  ;;  %v12119_v13 = vrot.slane %v12097_v53, %v11031_v44 }
 0x489   :  { %v2072_v18 = vadd.f32 %v7126_v14, %v1987_v15  ;;  %v3303_v14 = vld [vmem:[%s14462_s12 + $0x300] sm:$0xff]  ;;  %v3304_v15 = vld [vmem:[%s14462_s12 + $0x308] sm:$0xff] }
 0x497   :  { %v7159_v57 = vpop.f32.mrb[40].mxu1  ;;  %v7203_v22 = vpop.f32.mrb[44].mxu0 }
 0x498   :  { %v7160_v24 = vpop.f32.mrb[41].mxu1  ;;  %v7204_v30 = vpop.f32.mrb[45].mxu0 }
 0x499   :  { %v7161_v47 = vadd.f32 %v7160_v24, %v7159_v57  ;;  %v7205_v32 = vadd.f32 %v7204_v30, %v7203_v22  ;;  %v3290_v24 = vld [vmem:[%s14462_s12 + $0x298] sm:$0xff]  ;;  %v3321_v30 = vld [vmem:[%s14462_s12 + $0x390] sm:$0xff] }
 0x49b   :  { %v2142_v33 = vadd.f32 %v7161_v47, %v2057_v60  ;;  %v7162_v35 = vpop.f32.mrb[42].mxu1  ;;  %v7206_v10 = vpop.f32.mrb[46].mxu0  ;;  %v3322_v47 = vld [vmem:[%s14462_s12 + $0x398] sm:$0xff] }
 0x49c   :  { %v7163_v52 = vpop.f32.mrb[43].mxu1  ;;  %v7207_v36 = vpop.f32.mrb[47].mxu0 }
 0x49d   :  { %v2227_v37 = vadd.f32 %v7205_v32, %v2142_v33  ;;  %v7164_v34 = vadd.f32 %v7163_v52, %v7162_v35  ;;  %v7208_v38 = vadd.f32 %v7207_v36, %v7206_v10  ;;  %v3273_v35 = vld [vmem:[%s14462_s12 + $0x210] sm:$0xff]  ;;  %v8577_v52 = vpack.c.bf16 %v3272_v50, %v3271_v8 }
 0x49e   :  { %v8609_v36 = vpack.c.bf16 %v3304_v15, %v3303_v14  ;;  %v3293_v14 = vld [vmem:[%s14462_s12 + $0x2b0] sm:$0xff]  ;;  %v3294_v15 = vld [vmem:[%s14462_s12 + $0x2b8] sm:$0xff] }
 0x49f   :  { %v2252_v40 = vadd.f32 %v6943_v42, %v2227_v37  ;;  %v2147_v48 = vadd.f32 %v7164_v34, %v2062_v7  ;;  %v7165_v25 = vpop.f32.mrb[44].mxu1  ;;  %v7209_v54 = vpop.f32.mrb[48].mxu0  ;;  %v3274_v37 = vld [vmem:[%s14462_s12 + $0x218] sm:$0xff]  ;;  %v3305_v34 = vld [vmem:[%s14462_s12 + $0x310] sm:$0xff] }
 0x4a0   :  { %v7166_v55 = vpop.f32.mrb[45].mxu1  ;;  %v7210_v1 = vpop.f32.mrb[49].mxu0 }
 0x4a1   :  { %v2232_v56 = vadd.f32 %v7208_v38, %v2147_v48  ;;  %v7167_v11 = vadd.f32 %v7166_v55, %v7165_v25  ;;  %v7211_v58 = vadd.f32 %v7210_v1, %v7209_v54  ;;  %2256 = vst.msk [vmem:[%s14466_s15] sm:$0xff] %vm872_vm0, %v2252_v40  ;;  %v3306_v38 = vld [vmem:[%s14462_s12 + $0x318] sm:$0xff]  ;;  %v8611_v54 = vpack.c.bf16 %v3322_v47, %v3321_v30  ;;  %v3291_v55 = vld [vmem:[%s14462_s12 + $0x2a0] sm:$0xff]  ;;  %v3292_v1 = vld [vmem:[%s14462_s12 + $0x2a8] sm:$0xff] }
 0x4a3   :  { %v2253_v46 = vadd.f32 %v6943_v42, %v2232_v56  ;;  %v2152_v59 = vadd.f32 %v7167_v11, %v2067_v9  ;;  %v7168_v60 = vpop.f32.mrb[46].mxu1  ;;  %v7212_v61 = vpop.f32.mrb[50].mxu0  ;;  %v12115_v9 = vrot.slane %v12097_v53, %v10015_v39 }
 0x4a4   :  { %v7169_v49 = vpop.f32.mrb[47].mxu1  ;;  %v7213_v0 = vpop.f32.mrb[51].mxu0 }
 0x4a5   :  { %v2237_v3 = vadd.f32 %v7211_v58, %v2152_v59  ;;  %v7170_v4 = vadd.f32 %v7169_v49, %v7168_v60  ;;  %v7214_v6 = vadd.f32 %v7213_v0, %v7212_v61  ;;  %2257 = vst.msk [vmem:[%s14466_s15 + $0x8] sm:$0xff] %vm872_vm0, %v2253_v46  ;;  %v3323_v58 = vld [vmem:[%s14462_s12 + $0x3a0] sm:$0xff]  ;;  %v3324_v46 = vld [vmem:[%s14462_s12 + $0x3a8] sm:$0xff]  ;;  %v8581_v61 = vpack.c.bf16 %v3274_v37, %v3273_v35  ;;  %v3277_v35 = vld [vmem:[%s14462_s12 + $0x230] sm:$0xff] }
 0x4a6   :  { %v8613_v49 = vpack.c.bf16 %v3306_v38, %v3305_v34  ;;  %v3275_v0 = vld [vmem:[%s14462_s12 + $0x220] sm:$0xff]  ;;  %v8615_v50 = vpack.c.bf16 %v3324_v46, %v3323_v58  ;;  %v3309_v37 = vld [vmem:[%s14462_s12 + $0x330] sm:$0xff]  ;;  %v3310_v34 = vld [vmem:[%s14462_s12 + $0x338] sm:$0xff] }
 0x4a7   :  { %v2254_v62 = vadd.f32 %v6943_v42, %v2237_v3  ;;  %v2157_v7 = vadd.f32 %v7170_v4, %v2072_v18  ;;  %v3289_v18 = vld [vmem:[%s14462_s12 + $0x290] sm:$0xff] }
 0x4a8   :  { %v8579_v25 = vpack.c.bf16 %v3290_v24, %v3289_v18  ;;  %v3326_v24 = vld [vmem:[%s14462_s12 + $0x3b8] sm:$0xff] }
 0x4a9   :  { %v2242_v20 = vadd.f32 %v7214_v6, %v2157_v7  ;;  %2258 = vst.msk [vmem:[%s14466_s15 + $0x10] sm:$0xff] %vm872_vm0, %v2254_v62  ;;  %v8583_v6 = vpack.c.bf16 %v3292_v1, %v3291_v55  ;;  %v3276_v62 = vld [vmem:[%s14462_s12 + $0x228] sm:$0xff]  ;;  %v3307_v7 = vld [vmem:[%s14462_s12 + $0x320] sm:$0xff] }
 0x4ab   :  { %v2255_v12 = vadd.f32 %v6943_v42, %v2242_v20  ;;  %v3308_v20 = vld [vmem:[%s14462_s12 + $0x328] sm:$0xff] }
 0x4ad   :  { %2259 = vst.msk [vmem:[%s14466_s15 + $0x18] sm:$0xff] %vm872_vm0, %v2255_v12 }
 0x4d7   :  { %v2843_v57 = vpop.f32.mrb[48].mxu1  ;;  %v2932_v22 = vpop.f32.mrb[52].mxu0 }
 0x4d8   :  { %v2845_v32 = vpop.f32.mrb[49].mxu1  ;;  %v2934_v33 = vpop.f32.mrb[53].mxu0  ;;  %v3175_v40 = vadd.f32 %v12115_v9, %v2843_v57  ;;  %v3177_v48 = vadd.f32 %v12119_v13, %v2932_v22  ;;  %v3325_v22 = vld [vmem:[%s14462_s12 + $0x3b0] sm:$0xff] }
 0x4d9   :  { %v3176_v10 = vadd.f32 %v12101_v27, %v2845_v32  ;;  %v3178_v42 = vadd.f32 %v12105_v2, %v2934_v33  ;;  %v8585_v32 = vpack.c.bf16 %v3276_v62, %v3275_v0  ;;  %v8617_v33 = vpack.c.bf16 %v3308_v20, %v3307_v7  ;;  %v3312_v7 = vld [vmem:[%s14462_s12 + $0x348] sm:$0xff]  ;;  %v3297_v20 = vld [vmem:[%s14462_s12 + $0x2d0] sm:$0xff] }
 0x4db   :  { %v2849_v56 = vpop.f32.mrb[50].mxu1  ;;  %v2938_v11 = vpop.f32.mrb[54].mxu0  ;;  %3505 = vmatprep.mubr.f32.mxu0 %v3176_v10  ;;  %3590 = vmatprep.mubr.f32.mxu1 %v3178_v42 }
 0x4dc   :  { %v2851_v59 = vpop.f32.mrb[51].mxu1  ;;  %v2940_v60 = vpop.f32.mrb[55].mxu0  ;;  %3506 = vmatmul.mubr.f32.vlgmr.msra.gmra.mrb[68].mxu0 %v3175_v40  ;;  %3591 = vmatmul.mubr.f32.vlgmr.msra.gmra.mrb[68].mxu1 %v3177_v48  ;;  %v3183_v12 = vadd.f32 %v12115_v9, %v2849_v56  ;;  %v3185_v8 = vadd.f32 %v12119_v13, %v2938_v11  ;;  %v8619_v48 = vpack.c.bf16 %v3326_v24, %v3325_v22  ;;  %v3327_v56 = vld [vmem:[%s14462_s12 + $0x3c0] sm:$0xff]  ;;  %v3328_v11 = vld [vmem:[%s14462_s12 + $0x3c8] sm:$0xff]  ;;  %v3313_v22 = vld [vmem:[%s14462_s12 + $0x350] sm:$0xff] }
 0x4dd   :  { %v3184_v3 = vadd.f32 %v12101_v27, %v2851_v59  ;;  %v3186_v4 = vadd.f32 %v12105_v2, %v2940_v60  ;;  %8578 = vmatpush3.bf16.msra.mxu0 %v8577_v52  ;;  %8610 = vmatpush3.bf16.msra.mxu1 %v8609_v36  ;;  %v8587_v52 = vpack.c.bf16 %v3294_v15, %v3293_v14  ;;  %v3278_v36 = vld [vmem:[%s14462_s12 + $0x238] sm:$0xff]  ;;  %v3281_v14 = vld [vmem:[%s14462_s12 + $0x250] sm:$0xff] }
 0x4de   :  { %8580 = vmatprep.subr.bf16.mxu0 %v8579_v25  ;;  %8612 = vmatprep.subr.bf16.mxu1 %v8611_v54  ;;  %v3295_v25 = vld [vmem:[%s14462_s12 + $0x2c0] sm:$0xff]  ;;  %v3296_v54 = vld [vmem:[%s14462_s12 + $0x2c8] sm:$0xff]  ;;  %v8589_v59 = vpack.c.bf16 %v3278_v36, %v3277_v35  ;;  %v8621_v60 = vpack.c.bf16 %v3310_v34, %v3309_v37  ;;  %v3282_v15 = vld [vmem:[%s14462_s12 + $0x258] sm:$0xff] }
 0x4df   :  { %v2855_v18 = vpop.f32.mrb[52].mxu1  ;;  %v2944_v57 = vpop.f32.mrb[56].mxu0  ;;  %3510 = vmatprep.mubr.f32.mxu0 %v3184_v3  ;;  %3595 = vmatprep.mubr.f32.mxu1 %v3186_v4  ;;  %v8591_v0 = vpack.c.bf16 %v3296_v54, %v3295_v25  ;;  %v3279_v3 = vld [vmem:[%s14462_s12 + $0x240] sm:$0xff]  ;;  %v3280_v4 = vld [vmem:[%s14462_s12 + $0x248] sm:$0xff]  ;;  %v3314_v24 = vld [vmem:[%s14462_s12 + $0x358] sm:$0xff]  ;;  %v8597_v35 = vpack.c.bf16 %v3282_v15, %v3281_v14 }
 0x4e0   :  { %v2857_v30 = vpop.f32.mrb[53].mxu1  ;;  %v2946_v47 = vpop.f32.mrb[57].mxu0  ;;  %3511 = vmatmul.mubr.f32.gmra.mrb[70].mxu0 %v3183_v12  ;;  %3596 = vmatmul.mubr.f32.gmra.mrb[70].mxu1 %v3185_v8  ;;  %v3191_v38 = vadd.f32 %v12115_v9, %v2855_v18  ;;  %v3193_v40 = vadd.f32 %v12119_v13, %v2944_v57  ;;  %v3330_v12 = vld [vmem:[%s14462_s12 + $0x3d8] sm:$0xff]  ;;  %v8593_v8 = vpack.c.bf16 %v3280_v4, %v3279_v3  ;;  %v3315_v34 = vld [vmem:[%s14462_s12 + $0x360] sm:$0xff]  ;;  %v3333_v25 = vld [vmem:[%s14462_s12 + $0x3f0] sm:$0xff] }
 0x4e1   :  { %v3192_v10 = vadd.f32 %v12101_v27, %v2857_v30  ;;  %v3194_v42 = vadd.f32 %v12105_v2, %v2946_v47  ;;  %8582 = vmatpush3.bf16.msra.mxu0 %v8581_v61  ;;  %8614 = vmatpush3.bf16.msra.mxu1 %v8613_v49  ;;  %v3299_v30 = vld [vmem:[%s14462_s12 + $0x2e0] sm:$0xff]  ;;  %v3300_v47 = vld [vmem:[%s14462_s12 + $0x2e8] sm:$0xff]  ;;  %v3334_v54 = vld [vmem:[%s14462_s12 + $0x3f8] sm:$0xff]  ;;  %v12325_v4 = vrot.slane %v12097_v53, %v11234_v16 }
 0x4e2   :  { %8584 = vmatprep.subr.bf16.mxu0 %v8583_v6  ;;  %8616 = vmatprep.subr.bf16.mxu1 %v8615_v50  ;;  %v8599_v36 = vpack.c.bf16 %v3300_v47, %v3299_v30  ;;  %v3957_v3 = vld [vmem:[%s14456_s10 + $0x58] sm:$0xff]  ;;  %v3951_v14 = vld [vmem:[%s14456_s10 + $0x28] sm:$0xff] }
 0x4e3   :  { %v2861_v55 = vpop.f32.mrb[54].mxu1  ;;  %v2950_v1 = vpop.f32.mrb[58].mxu0  ;;  %3515 = vmatprep.mubr.f32.mxu0 %v3192_v10  ;;  %3600 = vmatprep.mubr.f32.mxu1 %v3194_v42  ;;  %v8629_v10 = vpack.c.bf16 %v3314_v24, %v3313_v22  ;;  %v3283_v42 = vld [vmem:[%s14462_s12 + $0x260] sm:$0xff]  ;;  %v3959_v15 = vld [vmem:[%s14456_s10 + $0x68] sm:$0xff]  ;;  %v3953_v22 = vld [vmem:[%s14456_s10 + $0x38] sm:$0xff] }
 0x4e4   :  { %v2863_v58 = vpop.f32.mrb[55].mxu1  ;;  %v2952_v46 = vpop.f32.mrb[59].mxu0  ;;  %3516 = vmatmul.mubr.f32.gmra.mrb[72].mxu0 %v3191_v38  ;;  %3601 = vmatmul.mubr.f32.gmra.mrb[72].mxu1 %v3193_v40  ;;  %v3199_v6 = vadd.f32 %v12115_v9, %v2861_v55  ;;  %v3201_v62 = vadd.f32 %v12119_v13, %v2950_v1  ;;  %v3298_v9 = vld [vmem:[%s14462_s12 + $0x2d8] sm:$0xff]  ;;  %v3329_v13 = vld [vmem:[%s14462_s12 + $0x3d0] sm:$0xff]  ;;  %v3316_v38 = vld [vmem:[%s14462_s12 + $0x368] sm:$0xff] }
 0x4e5   :  { %v3200_v61 = vadd.f32 %v12101_v27, %v2863_v58  ;;  %v3202_v49 = vadd.f32 %v12105_v2, %v2952_v46  ;;  %8586 = vmatpush3.bf16.msra.mxu0 %v8585_v32  ;;  %8618 = vmatpush3.bf16.msra.mxu1 %v8617_v33  ;;  %v8623_v27 = vpack.c.bf16 %v3328_v11, %v3327_v56  ;;  %v3311_v2 = vld [vmem:[%s14462_s12 + $0x340] sm:$0xff]  ;;  %v3332_v33 = vld [vmem:[%s14462_s12 + $0x3e8] sm:$0xff]  ;;  %v3301_v40 = vld [vmem:[%s14462_s12 + $0x2f0] sm:$0xff] }
 0x4e6   :  { %8588 = vmatprep.subr.bf16.mxu0 %v8587_v52  ;;  %8620 = vmatprep.subr.bf16.mxu1 %v8619_v48  ;;  %v8625_v50 = vpack.c.bf16 %v3312_v7, %v3311_v2  ;;  %v8595_v18 = vpack.c.bf16 %v3298_v9, %v3297_v20  ;;  %v8627_v57 = vpack.c.bf16 %v3330_v12, %v3329_v13  ;;  %v3331_v32 = vld [vmem:[%s14462_s12 + $0x3e0] sm:$0xff]  ;;  %v3284_v52 = vld [vmem:[%s14462_s12 + $0x268] sm:$0xff]  ;;  %v3302_v48 = vld [vmem:[%s14462_s12 + $0x2f8] sm:$0xff] }
 0x4e7   :  { %3520 = vmatprep.mubr.f32.mxu0 %v3200_v61  ;;  %3605 = vmatprep.mubr.f32.mxu1 %v3202_v49  ;;  %v8631_v37 = vpack.c.bf16 %v3332_v33, %v3331_v32  ;;  %v8601_v55 = vpack.c.bf16 %v3284_v52, %v3283_v42  ;;  %v8633_v1 = vpack.c.bf16 %v3316_v38, %v3315_v34  ;;  %v3285_v56 = vld [vmem:[%s14462_s12 + $0x270] sm:$0xff]  ;;  %v3286_v11 = vld [vmem:[%s14462_s12 + $0x278] sm:$0xff]  ;;  %v3947_v61 = vld [vmem:[%s14456_s10 + $0x8] sm:$0xff] }
 0x4e8   :  { %3521 = vmatmul.mubr.f32.gmra.mrb[74].mxu0 %v3199_v6  ;;  %3606 = vmatmul.mubr.f32.gmra.mrb[74].mxu1 %v3201_v62  ;;  %v8603_v58 = vpack.c.bf16 %v3302_v48, %v3301_v40  ;;  %v8635_v46 = vpack.c.bf16 %v3334_v54, %v3333_v25  ;;  %v3955_v49 = vld [vmem:[%s14456_s10 + $0x48] sm:$0xff]  ;;  %v12329_v6 = vrot.slane %v12097_v53, %v11237_v19  ;;  %v3946_v62 = vld [vmem:[%s14456_s10] sm:$0xff]  ;;  %v3948_v9 = vld [vmem:[%s14456_s10 + $0x10] sm:$0xff] }
 0x4e9   :  { %8590 = vmatpush3.bf16.msra.mxu0 %v8589_v59  ;;  %8622 = vmatpush3.bf16.msra.mxu1 %v8621_v60  ;;  %v3317_v59 = vld [vmem:[%s14462_s12 + $0x370] sm:$0xff]  ;;  %v3318_v60 = vld [vmem:[%s14462_s12 + $0x378] sm:$0xff]  ;;  %v8605_v2 = vpack.c.bf16 %v3286_v11, %v3285_v56  ;;  %v3954_v20 = vld [vmem:[%s14456_s10 + $0x40] sm:$0xff]  ;;  %v12349_v12 = vrot.slane %v12097_v53, %v11249_v31 }
 0x4ea   :  { %8592 = vmatprep.subr.bf16.mxu0 %v8591_v0  ;;  %8624 = vmatprep.subr.bf16.mxu1 %v8623_v27  ;;  %v3949_v0 = vld [vmem:[%s14456_s10 + $0x18] sm:$0xff]  ;;  %v12336_v27 = vrot.slane %v12097_v53, %v11240_v23  ;;  %v8637_v7 = vpack.c.bf16 %v3318_v60, %v3317_v59  ;;  %v3956_v13 = vld [vmem:[%s14456_s10 + $0x50] sm:$0xff]  ;;  %v8641_v47 = vpack.c.bf16 %v3954_v20, %v3946_v62 }
 0x4eb   :  { %v3961_v53 = vld [vmem:[%s14456_s10 + $0x78] sm:$0xff]  ;;  %v8645_v32 = vpack.c.bf16 %v3956_v13, %v3948_v9  ;;  %v3950_v13 = vld [vmem:[%s14456_s10 + $0x20] sm:$0xff] }
 0x4ed   :  { %8594 = vmatpush3.bf16.msra.mxu0 %v8593_v8  ;;  %8626 = vmatpush3.bf16.msra.mxu1 %v8625_v50  ;;  %v8639_v8 = vpack.c.bf16 %v3955_v49, %v3947_v61  ;;  %v8643_v50 = vpack.c.bf16 %v3957_v3, %v3949_v0 }
 0x4ee   :  { %8596 = vmatprep.subr.bf16.mxu0 %v8595_v18  ;;  %8628 = vmatprep.subr.bf16.mxu1 %v8627_v57 }
 0x4f1   :  { %8598 = vmatpush3.bf16.msra.mxu0 %v8597_v35  ;;  %8630 = vmatpush3.bf16.msra.mxu1 %v8629_v10  ;;  %v8647_v10 = vpack.c.bf16 %v3959_v15, %v3951_v14  ;;  %v3824_v14 = vld [vmem:[%s14458_s9 + $0x58] sm:$0xff]  ;;  %v6973_v15 = vld [vmem:[%s14459_s1 + $0x40] sm:$0xff] }
 0x4f2   :  { %8600 = vmatprep.subr.bf16.mxu0 %v8599_v36  ;;  %8632 = vmatprep.subr.bf16.mxu1 %v8631_v37  ;;  %v8651_v36 = vpack.c.bf16 %v3961_v53, %v3953_v22 }
 0x4f5   :  { %8602 = vmatpush3.bf16.msra.mxu0 %v8601_v55  ;;  %8634 = vmatpush3.bf16.msra.mxu1 %v8633_v1 }
 0x4f6   :  { %8604 = vmatprep.subr.bf16.mxu0 %v8603_v58  ;;  %8636 = vmatprep.subr.bf16.mxu1 %v8635_v46 }
 0x4f7   :  { %v3021_v18 = vpop.f32.mrb[56].mxu1  ;;  %v3110_v57 = vpop.f32.mrb[60].mxu0 }
 0x4f8   :  { %v3023_v24 = vpop.f32.mrb[57].mxu1  ;;  %v3112_v30 = vpop.f32.mrb[61].mxu0  ;;  %v3179_v42 = vadd.f32 %v12325_v4, %v3021_v18  ;;  %v3181_v52 = vadd.f32 %v12349_v12, %v3110_v57 }
 0x4f9   :  { %v3180_v33 = vadd.f32 %v12329_v6, %v3023_v24  ;;  %v3182_v35 = vadd.f32 %v12336_v27, %v3112_v30  ;;  %8606 = vmatpush3.bf16.msra.mxu0 %v8605_v2  ;;  %8638 = vmatpush3.bf16.msra.mxu1 %v8637_v7 }
 0x4fa   :  { %8640 = vmatprep.subr.bf16.mxu0 %v8639_v8  ;;  %8644 = vmatprep.subr.bf16.mxu1 %v8643_v50  ;;  %v3958_v8 = vld [vmem:[%s14456_s10 + $0x60] sm:$0xff]  ;;  %v3816_v50 = vld [vmem:[%s14458_s9 + $0x18] sm:$0xff] }
 0x4fb   :  { %v3027_v37 = vpop.f32.mrb[58].mxu1  ;;  %v3116_v34 = vpop.f32.mrb[62].mxu0  ;;  %3675 = vmatprep.mubr.f32.mxu0 %v3180_v33  ;;  %3760 = vmatprep.mubr.f32.mxu1 %v3182_v35  ;;  %v8649_v18 = vpack.c.bf16 %v3958_v8, %v3950_v13  ;;  %v8687_v30 = vpack.c.bf16 %v3824_v14, %v3816_v50  ;;  %v12437_v33 = vld [vmem:[%s14459_s1 + $0x58] sm:$0xff]  ;;  %v3813_v35 = vld [vmem:[%s14458_s9] sm:$0xff]  ;;  %v3870_v13 = vld [vmem:[%s14458_s9 + $0x1c8] sm:$0xff] }
 0x4fc   :  { %v3029_v38 = vpop.f32.mrb[59].mxu1  ;;  %v3118_v40 = vpop.f32.mrb[63].mxu0  ;;  %3676 = vmatmul.mubr.f32.vlgmr.msra.gmra.mrb[76].mxu0 %v3179_v42  ;;  %3761 = vmatmul.mubr.f32.vlgmr.msra.gmra.mrb[76].mxu1 %v3181_v52  ;;  %v3187_v54 = vadd.f32 %v12325_v4, %v3027_v37  ;;  %v3189_v55 = vadd.f32 %v12349_v12, %v3116_v34  ;;  %v3815_v42 = vld [vmem:[%s14458_s9 + $0x10] sm:$0xff]  ;;  %v3838_v37 = vld [vmem:[%s14458_s9 + $0xc8] sm:$0xff]  ;;  %v3832_v34 = vld [vmem:[%s14458_s9 + $0x98] sm:$0xff] }
 0x4fd   :  { %v3188_v48 = vadd.f32 %v12329_v6, %v3029_v38  ;;  %v3190_v25 = vadd.f32 %v12336_v27, %v3118_v40  ;;  %8642 = vmatpush1.bf16.msra.mxu0 %v8641_v47  ;;  %8646 = vmatpush1.bf16.msra.mxu1 %v8645_v32  ;;  %v6974_v47 = vld [vmem:[%s14459_s1 + $0x48] sm:$0xff]  ;;  %v12426_v32 = vld [vmem:[%s14459_s1 + $0x50] sm:$0xff]  ;;  %v3840_v38 = vld [vmem:[%s14458_s9 + $0xd8] sm:$0xff] }
 0x4fe   :  { %8648 = vmatprep.subr.bf16.mxu0 %v8647_v10  ;;  %8652 = vmatprep.subr.bf16.mxu1 %v8651_v36  ;;  %v3821_v10 = vld [vmem:[%s14458_s9 + $0x40] sm:$0xff]  ;;  %v3823_v52 = vld [vmem:[%s14458_s9 + $0x50] sm:$0xff]  ;;  %v3830_v36 = vld [vmem:[%s14458_s9 + $0x88] sm:$0xff] }
 0x4ff   :  { %v3033_v1 = vpop.f32.mrb[60].mxu1  ;;  %v3122_v56 = vpop.f32.mrb[64].mxu0  ;;  %3680 = vmatprep.mubr.f32.mxu0 %v3188_v48  ;;  %3765 = vmatprep.mubr.f32.mxu1 %v3190_v25  ;;  %v8657_v40 = vpack.c.bf16 %v3821_v10, %v3813_v35  ;;  %v8689_v48 = vpack.c.bf16 %v3823_v52, %v3815_v42  ;;  %v3829_v25 = vld [vmem:[%s14458_s9 + $0x80] sm:$0xff]  ;;  %v3864_v8 = vld [vmem:[%s14458_s9 + $0x198] sm:$0xff] }
 0x500   :  { %v3035_v11 = vpop.f32.mrb[61].mxu1  ;;  %v3124_v58 = vpop.f32.mrb[65].mxu0  ;;  %3681 = vmatmul.mubr.f32.gmra.mrb[78].mxu0 %v3187_v54  ;;  %3766 = vmatmul.mubr.f32.gmra.mrb[78].mxu1 %v3189_v55  ;;  %v3195_v60 = vadd.f32 %v12325_v4, %v3033_v1  ;;  %v3197_v61 = vadd.f32 %v12349_v12, %v3122_v56  ;;  %v3837_v54 = vld [vmem:[%s14458_s9 + $0xc0] sm:$0xff]  ;;  %v8659_v55 = vpack.c.bf16 %v3838_v37, %v3830_v36  ;;  %v3831_v56 = vld [vmem:[%s14458_s9 + $0x90] sm:$0xff]  ;;  %v3888_v35 = vld [vmem:[%s14458_s9 + $0x258] sm:$0xff] }
 0x501   :  { %v3196_v46 = vadd.f32 %v12329_v6, %v3035_v11  ;;  %v3198_v59 = vadd.f32 %v12336_v27, %v3124_v58  ;;  %v8691_v1 = vpack.c.bf16 %v3840_v38, %v3832_v34  ;;  %v3839_v11 = vld [vmem:[%s14458_s9 + $0xd0] sm:$0xff]  ;;  %v3846_v58 = vld [vmem:[%s14458_s9 + $0x108] sm:$0xff]  ;;  %v3869_v50 = vld [vmem:[%s14458_s9 + $0x1c0] sm:$0xff] }
 0x502   :  { %v3877_v52 = vld [vmem:[%s14458_s9 + $0x200] sm:$0xff]  ;;  %v3887_v38 = vld [vmem:[%s14458_s9 + $0x250] sm:$0xff] }
 0x503   :  { %v3039_v49 = vpop.f32.mrb[62].mxu1  ;;  %v3128_v0 = vpop.f32.mrb[66].mxu0  ;;  %3685 = vmatprep.mubr.f32.mxu0 %v3196_v46  ;;  %3770 = vmatprep.mubr.f32.mxu1 %v3198_v59  ;;  %v3854_v46 = vld [vmem:[%s14458_s9 + $0x148] sm:$0xff]  ;;  %v3848_v59 = vld [vmem:[%s14458_s9 + $0x118] sm:$0xff]  ;;  %v3885_v36 = vld [vmem:[%s14458_s9 + $0x240] sm:$0xff] }
 0x504   :  { %v3041_v3 = vpop.f32.mrb[63].mxu1  ;;  %v3130_v62 = vpop.f32.mrb[67].mxu0  ;;  %3686 = vmatmul.mubr.f32.gmra.mrb[80].mxu0 %v3195_v60  ;;  %3771 = vmatmul.mubr.f32.gmra.mrb[80].mxu1 %v3197_v61  ;;  %v3203_v20 = vadd.f32 %v12325_v4, %v3039_v49  ;;  %v3205_v9 = vadd.f32 %v12349_v12, %v3128_v0  ;;  %v3960_v4 = vld [vmem:[%s14456_s10 + $0x70] sm:$0xff]  ;;  %v3822_v12 = vld [vmem:[%s14458_s9 + $0x48] sm:$0xff]  ;;  %v3856_v60 = vld [vmem:[%s14458_s9 + $0x158] sm:$0xff]  ;;  %v8661_v61 = vpack.c.bf16 %v3837_v54, %v3829_v25 }
 0x505   :  { %v3204_v2 = vadd.f32 %v12329_v6, %v3041_v3  ;;  %v3206_v7 = vadd.f32 %v12336_v27, %v3130_v62  ;;  %v3952_v6 = vld [vmem:[%s14456_s10 + $0x30] sm:$0xff]  ;;  %v3814_v27 = vld [vmem:[%s14458_s9 + $0x8] sm:$0xff]  ;;  %v8693_v49 = vpack.c.bf16 %v3839_v11, %v3831_v56  ;;  %v3845_v0 = vld [vmem:[%s14458_s9 + $0x100] sm:$0xff]  ;;  %v8663_v62 = vpack.c.bf16 %v3854_v46, %v3846_v58 }
 0x506   :  { %v8653_v22 = vpack.c.bf16 %v3960_v4, %v3952_v6  ;;  %v8655_v24 = vpack.c.bf16 %v3822_v12, %v3814_v27  ;;  %v3853_v3 = vld [vmem:[%s14458_s9 + $0x140] sm:$0xff]  ;;  %v3872_v6 = vld [vmem:[%s14458_s9 + $0x1d8] sm:$0xff] }
 0x507   :  { %3690 = vmatprep.mubr.f32.mxu0 %v3204_v2  ;;  %3775 = vmatprep.mubr.f32.mxu1 %v3206_v7  ;;  %v12408_v57 = vpop.f32.mrb[64].mxu1  ;;  %v8695_v2 = vpack.c.bf16 %v3856_v60, %v3848_v59  ;;  %v3847_v7 = vld [vmem:[%s14458_s9 + $0x110] sm:$0xff]  ;;  %v8665_v4 = vpack.c.bf16 %v3853_v3, %v3845_v0  ;;  %v3861_v12 = vld [vmem:[%s14458_s9 + $0x180] sm:$0xff]  ;;  %v3896_v25 = vld [vmem:[%s14458_s9 + $0x298] sm:$0xff] }
 0x508   :  { %3691 = vmatmul.mubr.f32.gmra.mrb[82].mxu0 %v3203_v20  ;;  %3776 = vmatmul.mubr.f32.gmra.mrb[82].mxu1 %v3205_v9  ;;  %v12410_v53 = vpop.f32.mrb[65].mxu1  ;;  %v3855_v20 = vld [vmem:[%s14458_s9 + $0x150] sm:$0xff]  ;;  %v3862_v9 = vld [vmem:[%s14458_s9 + $0x188] sm:$0xff]  ;;  %v8669_v10 = vpack.c.bf16 %v3869_v50, %v3861_v12  ;;  %v3904_v54 = vld [vmem:[%s14458_s9 + $0x2d8] sm:$0xff] }
 0x509   :  { %4038 = vmatprep.mubr.f32.mxu0 %v9334_v26  ;;  %4127 = vmatprep.mubr.f32.mxu1 %v9334_v26  ;;  %v8697_v27 = vpack.c.bf16 %v3855_v20, %v3847_v7  ;;  %v8667_v14 = vpack.c.bf16 %v3870_v13, %v3862_v9  ;;  %v3893_v56 = vld [vmem:[%s14458_s9 + $0x280] sm:$0xff]  ;;  %v8707_v46 = vpack.c.bf16 %v3904_v54, %v3896_v25  ;;  %v3903_v59 = vld [vmem:[%s14458_s9 + $0x2d0] sm:$0xff]  ;;  %v3910_v60 = vld [vmem:[%s14458_s9 + $0x308] sm:$0xff] }
 0x50a   :  { %v3901_v11 = vld [vmem:[%s14458_s9 + $0x2c0] sm:$0xff]  ;;  %v3920_v0 = vld [vmem:[%s14458_s9 + $0x358] sm:$0xff]  ;;  %v3934_v12 = vld [vmem:[%s14458_s9 + $0x3c8] sm:$0xff] }
 0x50b   :  { %v12609_v3 = vpop.f32.mrb[66].mxu1  ;;  %v3909_v20 = vld [vmem:[%s14458_s9 + $0x300] sm:$0xff]  ;;  %v3928_v50 = vld [vmem:[%s14458_s9 + $0x398] sm:$0xff] }
 0x50c   :  { %6977 = vmatmul.mubr.msk.f32.vlgmr.msra.gmra.mrb[84].mxu0 %vm872_vm0, %v6973_v15  ;;  %6981 = vmatmul.mubr.msk.f32.vlgmr.msra.gmra.mrb[84].mxu1 %vm872_vm0, %v6973_v15  ;;  %v3917_v9 = vld [vmem:[%s14458_s9 + $0x340] sm:$0xff] }
 0x50d   :  { %8650 = vmatpush1.bf16.msra.mxu0 %v8649_v18  ;;  %4044 = vmatprep.mubr.f32.mxu0 %v9334_v26  ;;  %v3863_v18 = vld [vmem:[%s14458_s9 + $0x190] sm:$0xff] }
 0x50e   :  { %4133 = vmatprep.mubr.f32.mxu1 %v9334_v26  ;;  %8654 = vmatpush1.bf16.msra.mxu1 %v8653_v22  ;;  %v3871_v22 = vld [vmem:[%s14458_s9 + $0x1d0] sm:$0xff] }
 0x50f   :  { %8656 = vmatprep.subr.bf16.mxu0 %v8655_v24  ;;  %8688 = vmatprep.subr.bf16.mxu1 %v8687_v30  ;;  %v3878_v24 = vld [vmem:[%s14458_s9 + $0x208] sm:$0xff]  ;;  %v8701_v42 = vpack.c.bf16 %v3871_v22, %v3863_v18  ;;  %v3925_v22 = vld [vmem:[%s14458_s9 + $0x380] sm:$0xff] }
 0x510   :  { %6978 = vmatmul.mubr.msk.f32.gmra.mrb[86].mxu0 %vm872_vm0, %v6974_v47  ;;  %6982 = vmatmul.mubr.msk.f32.gmra.mrb[86].mxu1 %vm872_vm0, %v6974_v47  ;;  %v3886_v30 = vld [vmem:[%s14458_s9 + $0x248] sm:$0xff] }
 0x511   :  { %4050 = vmatprep.mubr.f32.mxu0 %v9334_v26  ;;  %4139 = vmatprep.mubr.f32.mxu1 %v9334_v26  ;;  %v8671_v37 = vpack.c.bf16 %v3886_v30, %v3878_v24  ;;  %v3933_v24 = vld [vmem:[%s14458_s9 + $0x3c0] sm:$0xff] }
 0x514   :  { %6979 = vmatmul.mubr.msk.f32.gmra.mrb[88].mxu0 %vm872_vm0, %v12426_v32  ;;  %6983 = vmatmul.mubr.msk.f32.gmra.mrb[88].mxu1 %vm872_vm0, %v12426_v32 }
 0x515   :  { %4056 = vmatprep.mubr.f32.mxu0 %v9334_v26  ;;  %4145 = vmatprep.mubr.f32.mxu1 %v9334_v26 }
 0x518   :  { %6980 = vmatmul.mubr.msk.f32.gmra.mrb[90].mxu0 %vm872_vm0, %v12437_v33  ;;  %6984 = vmatmul.mubr.msk.f32.gmra.mrb[90].mxu1 %vm872_vm0, %v12437_v33 }
 0x519   :  { %4216 = vmatprep.mubr.f32.mxu0 %v9334_v26  ;;  %4305 = vmatprep.mubr.f32.mxu1 %v9334_v26 }
 0x51c   :  { %6985 = vmatmul.mubr.msk.f32.vlgmr.msra.gmra.mrb[92].mxu0 %vm872_vm0, %v6973_v15  ;;  %6989 = vmatmul.mubr.msk.f32.vlgmr.msra.gmra.mrb[92].mxu1 %vm872_vm0, %v6973_v15  ;;  %v8699_v15 = vpack.c.bf16 %v3872_v6, %v3864_v8  ;;  %v3911_v6 = vld [vmem:[%s14458_s9 + $0x310] sm:$0xff] }
 0x51d   :  { %8658 = vmatpush1.bf16.msra.mxu0 %v8657_v40  ;;  %8690 = vmatpush1.bf16.msra.mxu1 %v8689_v48  ;;  %v3894_v40 = vld [vmem:[%s14458_s9 + $0x288] sm:$0xff] }
 0x51e   :  { %8660 = vmatprep.subr.bf16.mxu0 %v8659_v55  ;;  %8692 = vmatprep.subr.bf16.mxu1 %v8691_v1  ;;  %v3902_v48 = vld [vmem:[%s14458_s9 + $0x2c8] sm:$0xff]  ;;  %v8673_v55 = vpack.c.bf16 %v3885_v36, %v3877_v52  ;;  %v3820_v36 = vld [vmem:[%s14458_s9 + $0x38] sm:$0xff] }
 0x51f   :  { %4222 = vmatprep.mubr.f32.mxu0 %v9334_v26  ;;  %4311 = vmatprep.mubr.f32.mxu1 %v9334_v26  ;;  %v8675_v58 = vpack.c.bf16 %v3902_v48, %v3894_v40  ;;  %v3826_v52 = vld [vmem:[%s14458_s9 + $0x68] sm:$0xff]  ;;  %v9332_v40 = vld [vmem:[%s14460_s8] sm:$0xf] }
 0x520   :  { %6986 = vmatmul.mubr.msk.f32.gmra.mrb[94].mxu0 %vm872_vm0, %v6974_v47  ;;  %6990 = vmatmul.mubr.msk.f32.gmra.mrb[94].mxu1 %vm872_vm0, %v6974_v47  ;;  %v3880_v47 = vld [vmem:[%s14458_s9 + $0x218] sm:$0xff]  ;;  %v12668_v48 = vrot.slane %v9332_v40, %v11031_v44 }
 0x521   :  { %8662 = vmatpush1.bf16.msra.mxu0 %v8661_v61  ;;  %8694 = vmatpush1.bf16.msra.mxu1 %v8693_v49  ;;  %v8703_v34 = vpack.c.bf16 %v3888_v35, %v3880_v47  ;;  %v3918_v61 = vld [vmem:[%s14458_s9 + $0x348] sm:$0xff]  ;;  %v3912_v49 = vld [vmem:[%s14458_s9 + $0x318] sm:$0xff]  ;;  %v3927_v35 = vld [vmem:[%s14458_s9 + $0x390] sm:$0xff] }
 0x522   :  { %8664 = vmatprep.subr.bf16.mxu0 %v8663_v62  ;;  %8696 = vmatprep.subr.bf16.mxu1 %v8695_v2  ;;  %v12611_v62 = vpop.f32.mrb[67].mxu1  ;;  %v8677_v2 = vpack.c.bf16 %v3901_v11, %v3893_v56  ;;  %v8679_v13 = vpack.c.bf16 %v3918_v61, %v3910_v60  ;;  %v8711_v8 = vpack.c.bf16 %v3920_v0, %v3912_v49  ;;  %v3827_v56 = vld [vmem:[%s14458_s9 + $0x70] sm:$0xff]  ;;  %v3834_v11 = vld [vmem:[%s14458_s9 + $0xa8] sm:$0xff]  ;;  %v3833_v61 = vld [vmem:[%s14458_s9 + $0xa0] sm:$0xff] }
 0x523   :  { %4228 = vmatprep.mubr.f32.mxu0 %v9334_v26  ;;  %4317 = vmatprep.mubr.f32.mxu1 %v9334_v26  ;;  %v12696_v49 = vadd.f32 %v10568_v21, %v12668_v48  ;;  %v3841_v0 = vld [vmem:[%s14458_s9 + $0xe0] sm:$0xff]  ;;  %v3850_v21 = vld [vmem:[%s14458_s9 + $0x128] sm:$0xff] }
 0x524   :  { %6987 = vmatmul.mubr.msk.f32.gmra.mrb[96].mxu0 %vm872_vm0, %v12426_v32  ;;  %6991 = vmatmul.mubr.msk.f32.gmra.mrb[96].mxu1 %vm872_vm0, %v12426_v32  ;;  %v3879_v32 = vld [vmem:[%s14458_s9 + $0x210] sm:$0xff] }
 0x525   :  { %8666 = vmatpush1.bf16.msra.mxu0 %v8665_v4  ;;  %8698 = vmatpush1.bf16.msra.mxu1 %v8697_v27  ;;  %v8705_v1 = vpack.c.bf16 %v3887_v38, %v3879_v32  ;;  %v3919_v4 = vld [vmem:[%s14458_s9 + $0x350] sm:$0xff]  ;;  %v3926_v27 = vld [vmem:[%s14458_s9 + $0x388] sm:$0xff]  ;;  %v3817_v38 = vld [vmem:[%s14458_s9 + $0x20] sm:$0xff] }
 0x526   :  { %8668 = vmatprep.subr.bf16.mxu0 %v8667_v14  ;;  %8700 = vmatprep.subr.bf16.mxu1 %v8699_v15  ;;  %v3936_v14 = vld [vmem:[%s14458_s9 + $0x3d8] sm:$0xff]  ;;  %v8681_v15 = vpack.c.bf16 %v3917_v9, %v3909_v20  ;;  %v8713_v18 = vpack.c.bf16 %v3919_v4, %v3911_v6  ;;  %v8683_v30 = vpack.c.bf16 %v3934_v12, %v3926_v27  ;;  %v3849_v12 = vld [vmem:[%s14458_s9 + $0x120] sm:$0xff] }
 0x527   :  { %4234 = vmatprep.mubr.f32.mxu0 %v9334_v26  ;;  %4323 = vmatprep.mubr.f32.mxu1 %v9334_v26  ;;  %v8715_v47 = vpack.c.bf16 %v3936_v14, %v3928_v50  ;;  %v3860_v6 = vld [vmem:[%s14458_s9 + $0x178] sm:$0xff]  ;;  %v8725_v4 = vpack.c.bf16 %v3841_v0, %v3833_v61  ;;  %v12726_v50 = vadd.f32 %v10606_v45, %v12668_v48  ;;  %v3857_v14 = vld [vmem:[%s14458_s9 + $0x160] sm:$0xff]  ;;  %v3891_v61 = vld [vmem:[%s14458_s9 + $0x270] sm:$0xff] }
 0x528   :  { %6988 = vmatmul.mubr.msk.f32.gmra.mrb[98].mxu0 %vm872_vm0, %v12437_v33  ;;  %6992 = vmatmul.mubr.msk.f32.gmra.mrb[98].mxu1 %vm872_vm0, %v12437_v33  ;;  %v3895_v33 = vld [vmem:[%s14458_s9 + $0x290] sm:$0xff]  ;;  %v3898_v0 = vld [vmem:[%s14458_s9 + $0x2a8] sm:$0xff] }
 0x529   :  { %8670 = vmatpush1.bf16.msra.mxu0 %v8669_v10  ;;  %8702 = vmatpush1.bf16.msra.mxu1 %v8701_v42  ;;  %v8709_v7 = vpack.c.bf16 %v3903_v59, %v3895_v33  ;;  %v3935_v10 = vld [vmem:[%s14458_s9 + $0x3d0] sm:$0xff]  ;;  %v3818_v42 = vld [vmem:[%s14458_s9 + $0x28] sm:$0xff]  ;;  %v3844_v33 = vld [vmem:[%s14458_s9 + $0xf8] sm:$0xff] }
 0x52a   :  { %8672 = vmatprep.subr.bf16.mxu0 %v8671_v37  ;;  %8704 = vmatprep.subr.bf16.mxu1 %v8703_v34  ;;  %v3828_v37 = vld [vmem:[%s14458_s9 + $0x78] sm:$0xff]  ;;  %v8685_v34 = vpack.c.bf16 %v3933_v24, %v3925_v22  ;;  %v8717_v32 = vpack.c.bf16 %v3935_v10, %v3927_v35  ;;  %v8719_v25 = vpack.c.bf16 %v3826_v52, %v3818_v42  ;;  %v3866_v24 = vld [vmem:[%s14458_s9 + $0x1a8] sm:$0xff]  ;;  %v3865_v52 = vld [vmem:[%s14458_s9 + $0x1a0] sm:$0xff] }
 0x52b   :  { %4394 = vmatprep.mubr.f32.mxu0 %v9334_v26  ;;  %4483 = vmatprep.mubr.f32.mxu1 %v9334_v26  ;;  %v8751_v54 = vpack.c.bf16 %v3828_v37, %v3820_v36  ;;  %v3876_v35 = vld [vmem:[%s14458_s9 + $0x1f8] sm:$0xff]  ;;  %v8729_v10 = vpack.c.bf16 %v3857_v14, %v3849_v12  ;;  %v3873_v36 = vld [vmem:[%s14458_s9 + $0x1e0] sm:$0xff]  ;;  %v12761_v37 = vadd.f32 %v10646_v63, %v12668_v48  ;;  %v3922_v12 = vld [vmem:[%s14458_s9 + $0x368] sm:$0xff] }
 0x52c   :  { %v3916_v14 = vld [vmem:[%s14458_s9 + $0x338] sm:$0xff] }
 0x52d   :  { %8674 = vmatpush1.bf16.msra.mxu0 %v8673_v55  ;;  %8706 = vmatpush1.bf16.msra.mxu1 %v8705_v1  ;;  %v3825_v55 = vld [vmem:[%s14458_s9 + $0x60] sm:$0xff]  ;;  %v3819_v1 = vld [vmem:[%s14458_s9 + $0x30] sm:$0xff] }
 0x52e   :  { %8676 = vmatprep.subr.bf16.mxu0 %v8675_v58  ;;  %8708 = vmatprep.subr.bf16.mxu1 %v8707_v46  ;;  %v3842_v58 = vld [vmem:[%s14458_s9 + $0xe8] sm:$0xff]  ;;  %v3836_v46 = vld [vmem:[%s14458_s9 + $0xb8] sm:$0xff]  ;;  %v8721_v59 = vpack.c.bf16 %v3825_v55, %v3817_v38  ;;  %v8753_v60 = vpack.c.bf16 %v3827_v56, %v3819_v1  ;;  %v8733_v1 = vpack.c.bf16 %v3873_v36, %v3865_v52 }
 0x52f   :  { %v8723_v20 = vpack.c.bf16 %v3842_v58, %v3834_v11  ;;  %v8755_v9 = vpack.c.bf16 %v3844_v33, %v3836_v46  ;;  %v3882_v38 = vld [vmem:[%s14458_s9 + $0x228] sm:$0xff]  ;;  %v3892_v55 = vld [vmem:[%s14458_s9 + $0x278] sm:$0xff]  ;;  %v3881_v11 = vld [vmem:[%s14458_s9 + $0x220] sm:$0xff]  ;;  %v12793_v46 = vadd.f32 %v10683_v17, %v12668_v48 }
 0x530   :  { %v3889_v58 = vld [vmem:[%s14458_s9 + $0x260] sm:$0xff]  ;;  %v3906_v17 = vld [vmem:[%s14458_s9 + $0x2e8] sm:$0xff]  ;;  %v3900_v48 = vld [vmem:[%s14458_s9 + $0x2b8] sm:$0xff] }
 0x531   :  { %8678 = vmatpush1.bf16.msra.mxu0 %v8677_v2  ;;  %8710 = vmatpush1.bf16.msra.mxu1 %v8709_v7  ;;  %v3835_v2 = vld [vmem:[%s14458_s9 + $0xb0] sm:$0xff]  ;;  %v3938_v52 = vld [vmem:[%s14458_s9 + $0x3e8] sm:$0xff]  ;;  %v3932_v36 = vld [vmem:[%s14458_s9 + $0x3b8] sm:$0xff] }
 0x532   :  { %8680 = vmatprep.subr.bf16.mxu0 %v8679_v13  ;;  %8712 = vmatprep.subr.bf16.mxu1 %v8711_v8  ;;  %v3843_v7 = vld [vmem:[%s14458_s9 + $0xf0] sm:$0xff]  ;;  %v3858_v13 = vld [vmem:[%s14458_s9 + $0x168] sm:$0xff]  ;;  %v3852_v8 = vld [vmem:[%s14458_s9 + $0x138] sm:$0xff] }
 0x533   :  { %v8757_v27 = vpack.c.bf16 %v3843_v7, %v3835_v2  ;;  %v8727_v45 = vpack.c.bf16 %v3858_v13, %v3850_v21  ;;  %v8759_v22 = vpack.c.bf16 %v3860_v6, %v3852_v8  ;;  %v3908_v2 = vld [vmem:[%s14458_s9 + $0x2f8] sm:$0xff]  ;;  %v8737_v7 = vpack.c.bf16 %v3889_v58, %v3881_v11  ;;  %v3905_v21 = vld [vmem:[%s14458_s9 + $0x2e0] sm:$0xff]  ;;  %v3899_v6 = vld [vmem:[%s14458_s9 + $0x2b0] sm:$0xff] }
 0x534   :  { %v8739_v13 = vpack.c.bf16 %v3906_v17, %v3898_v0  ;;  %v8771_v8 = vpack.c.bf16 %v3908_v2, %v3900_v48  ;;  %v4895_v58 = vld [vmem:[%s14461_s13 + $0x10] sm:$0xff]  ;;  %v4777_v0 = vld [vmem:[%s14462_s12 + $0x88] sm:$0xff]  ;;  %v4808_v17 = vld [vmem:[%s14462_s12 + $0x180] sm:$0xff] }
 0x535   :  { %8682 = vmatpush1.bf16.msra.mxu0 %v8681_v15  ;;  %8714 = vmatpush1.bf16.msra.mxu1 %v8713_v18  ;;  %v3851_v15 = vld [vmem:[%s14458_s9 + $0x130] sm:$0xff]  ;;  %v4809_v2 = vld [vmem:[%s14462_s12 + $0x188] sm:$0xff] }
 0x536   :  { %8684 = vmatprep.subr.bf16.mxu0 %v8683_v30  ;;  %8716 = vmatprep.subr.bf16.mxu1 %v8715_v47  ;;  %v3859_v18 = vld [vmem:[%s14458_s9 + $0x170] sm:$0xff]  ;;  %v3874_v30 = vld [vmem:[%s14458_s9 + $0x1e8] sm:$0xff]  ;;  %v3868_v47 = vld [vmem:[%s14458_s9 + $0x1b8] sm:$0xff] }
 0x537   :  { %v8761_v42 = vpack.c.bf16 %v3859_v18, %v3851_v15  ;;  %v8731_v63 = vpack.c.bf16 %v3874_v30, %v3866_v24  ;;  %v8763_v40 = vpack.c.bf16 %v3876_v35, %v3868_v47  ;;  %v3924_v15 = vld [vmem:[%s14458_s9 + $0x378] sm:$0xff]  ;;  %v3921_v24 = vld [vmem:[%s14458_s9 + $0x360] sm:$0xff]  ;;  %v3915_v35 = vld [vmem:[%s14458_s9 + $0x330] sm:$0xff] }
 0x538   :  { %v8775_v47 = vpack.c.bf16 %v3924_v15, %v3916_v14  ;;  %v4763_v14 = vld [vmem:[%s14462_s12 + $0x18] sm:$0xff] }
 0x539   :  { %8686 = vmatpush1.bf16.msra.mxu0 %v8685_v34  ;;  %8718 = vmatpush1.bf16.msra.mxu1 %v8717_v32  ;;  %v3867_v34 = vld [vmem:[%s14458_s9 + $0x1b0] sm:$0xff]  ;;  %v4811_v15 = vld [vmem:[%s14462_s12 + $0x198] sm:$0xff] }
 0x53a   :  { %8720 = vmatprep.subr.bf16.mxu0 %v8719_v25  ;;  %8752 = vmatprep.subr.bf16.mxu1 %v8751_v54  ;;  %v3875_v32 = vld [vmem:[%s14458_s9 + $0x1f0] sm:$0xff]  ;;  %v3890_v25 = vld [vmem:[%s14458_s9 + $0x268] sm:$0xff]  ;;  %v3884_v54 = vld [vmem:[%s14458_s9 + $0x238] sm:$0xff] }
 0x53b   :  { %v8765_v56 = vpack.c.bf16 %v3875_v32, %v3867_v34  ;;  %v8735_v33 = vpack.c.bf16 %v3890_v25, %v3882_v38  ;;  %v3940_v34 = vld [vmem:[%s14458_s9 + $0x3f8] sm:$0xff] }
 0x53c   :  { %4395 = vmatmul.mubr.f32.vlgmr.msra.gmra.mrb[84].mxu0 %v12696_v49  ;;  %4484 = vmatmul.mubr.f32.vlgmr.msra.gmra.mrb[84].mxu1 %v12696_v49  ;;  %v8779_v25 = vpack.c.bf16 %v3940_v34, %v3932_v36  ;;  %v4812_v34 = vld [vmem:[%s14462_s12 + $0x1a0] sm:$0xff] }
 0x53d   :  { %8722 = vmatpush1.bf16.msra.mxu0 %v8721_v59  ;;  %8754 = vmatpush1.bf16.msra.mxu1 %v8753_v60  ;;  %v8767_v59 = vpack.c.bf16 %v3892_v55, %v3884_v54  ;;  %v3883_v60 = vld [vmem:[%s14458_s9 + $0x230] sm:$0xff]  ;;  %v3937_v54 = vld [vmem:[%s14458_s9 + $0x3e0] sm:$0xff] }
 0x53e   :  { %4400 = vmatprep.mubr.f32.mxu0 %v9334_v26  ;;  %4489 = vmatprep.mubr.f32.mxu1 %v9334_v26  ;;  %v3931_v55 = vld [vmem:[%s14458_s9 + $0x3b0] sm:$0xff] }
 0x53f   :  { %8724 = vmatprep.subr.bf16.mxu0 %v8723_v20  ;;  %8756 = vmatprep.subr.bf16.mxu1 %v8755_v9  ;;  %v8769_v20 = vpack.c.bf16 %v3891_v61, %v3883_v60  ;;  %v3897_v9 = vld [vmem:[%s14458_s9 + $0x2a0] sm:$0xff] }
 0x540   :  { %4401 = vmatmul.mubr.f32.gmra.mrb[86].mxu0 %v12726_v50  ;;  %4490 = vmatmul.mubr.f32.gmra.mrb[86].mxu1 %v12726_v50  ;;  %v8741_v18 = vpack.c.bf16 %v3905_v21, %v3897_v9  ;;  %v4776_v60 = vld [vmem:[%s14462_s12 + $0x80] sm:$0xff] }
 0x541   :  { %8726 = vmatpush1.bf16.msra.mxu0 %v8725_v4  ;;  %8758 = vmatpush1.bf16.msra.mxu1 %v8757_v27  ;;  %v3907_v4 = vld [vmem:[%s14458_s9 + $0x2f0] sm:$0xff]  ;;  %v3914_v27 = vld [vmem:[%s14458_s9 + $0x328] sm:$0xff]  ;;  %v8791_v48 = vpack.c.bf16 %v4777_v0, %v4776_v60  ;;  %v4792_v21 = vld [vmem:[%s14462_s12 + $0x100] sm:$0xff] }
 0x542   :  { %4406 = vmatprep.mubr.f32.mxu0 %v9334_v26  ;;  %4495 = vmatprep.mubr.f32.mxu1 %v9334_v26  ;;  %v8743_v30 = vpack.c.bf16 %v3922_v12, %v3914_v27  ;;  %v4810_v27 = vld [vmem:[%s14462_s12 + $0x190] sm:$0xff]  ;;  %v4769_v0 = vld [vmem:[%s14462_s12 + $0x48] sm:$0xff] }
 0x543   :  { %8728 = vmatprep.subr.bf16.mxu0 %v8727_v45  ;;  %8760 = vmatprep.subr.bf16.mxu1 %v8759_v22  ;;  %v8773_v45 = vpack.c.bf16 %v3907_v4, %v3899_v6  ;;  %v3913_v22 = vld [vmem:[%s14458_s9 + $0x320] sm:$0xff]  ;;  %v8823_v6 = vpack.c.bf16 %v4809_v2, %v4808_v17  ;;  %v4762_v12 = vld [vmem:[%s14462_s12 + $0x10] sm:$0xff]  ;;  %v8827_v36 = vpack.c.bf16 %v4811_v15, %v4810_v27 }
 0x544   :  { %4407 = vmatmul.mubr.f32.gmra.mrb[88].mxu0 %v12761_v37  ;;  %4496 = vmatmul.mubr.f32.gmra.mrb[88].mxu1 %v12761_v37  ;;  %v8745_v32 = vpack.c.bf16 %v3921_v24, %v3913_v22  ;;  %v4781_v22 = vld [vmem:[%s14462_s12 + $0xa8] sm:$0xff]  ;;  %v4786_v17 = vld [vmem:[%s14462_s12 + $0xd0] sm:$0xff]  ;;  %v4788_v27 = vld [vmem:[%s14462_s12 + $0xe0] sm:$0xff] }
 0x545   :  { %8730 = vmatpush1.bf16.msra.mxu0 %v8729_v10  ;;  %8762 = vmatpush1.bf16.msra.mxu1 %v8761_v42  ;;  %v3923_v10 = vld [vmem:[%s14458_s9 + $0x370] sm:$0xff]  ;;  %v3930_v42 = vld [vmem:[%s14458_s9 + $0x3a8] sm:$0xff] }
 0x546   :  { %4412 = vmatprep.mubr.f32.mxu0 %v9334_v26  ;;  %4501 = vmatprep.mubr.f32.mxu1 %v9334_v26  ;;  %v8777_v38 = vpack.c.bf16 %v3923_v10, %v3915_v35  ;;  %v6994_v24 = vld [vmem:[%s14463_s2 + $0x48] sm:$0xff]  ;;  %v4794_v10 = vld [vmem:[%s14462_s12 + $0x110] sm:$0xff] }
 0x547   :  { %8732 = vmatprep.subr.bf16.mxu0 %v8731_v63  ;;  %8764 = vmatprep.subr.bf16.mxu1 %v8763_v40  ;;  %v3929_v63 = vld [vmem:[%s14458_s9 + $0x3a0] sm:$0xff]  ;;  %v8747_v40 = vpack.c.bf16 %v3938_v52, %v3930_v42  ;;  %v4795_v42 = vld [vmem:[%s14462_s12 + $0x118] sm:$0xff]  ;;  %v4765_v52 = vld [vmem:[%s14462_s12 + $0x28] sm:$0xff] }
 0x548   :  { %4413 = vmatmul.mubr.f32.gmra.mrb[90].mxu0 %v12793_v46  ;;  %4502 = vmatmul.mubr.f32.gmra.mrb[90].mxu1 %v12793_v46 }
 0x549   :  { %8734 = vmatpush1.bf16.msra.mxu0 %v8733_v1  ;;  %8766 = vmatpush1.bf16.msra.mxu1 %v8765_v56  ;;  %v3939_v1 = vld [vmem:[%s14458_s9 + $0x3f0] sm:$0xff]  ;;  %v8749_v56 = vpack.c.bf16 %v3937_v54, %v3929_v63  ;;  %v4783_v63 = vld [vmem:[%s14462_s12 + $0xb8] sm:$0xff] }
 0x54a   :  { %8736 = vmatprep.subr.bf16.mxu0 %v8735_v33  ;;  %8768 = vmatprep.subr.bf16.mxu1 %v8767_v59  ;;  %v8781_v11 = vpack.c.bf16 %v3939_v1, %v3931_v55  ;;  %v6993_v59 = vld [vmem:[%s14463_s2 + $0x40] sm:$0xff]  ;;  %v4766_v54 = vld [vmem:[%s14462_s12 + $0x30] sm:$0xff]  ;;  %v4767_v55 = vld [vmem:[%s14462_s12 + $0x38] sm:$0xff] }
 0x54b   :  { %4572 = vmatprep.mubr.f32.mxu0 %v9334_v26  ;;  %4661 = vmatprep.mubr.f32.mxu1 %v9334_v26  ;;  %v4784_v1 = vld [vmem:[%s14462_s12 + $0xc0] sm:$0xff] }
 0x54d   :  { %8738 = vmatpush1.bf16.msra.mxu0 %v8737_v7  ;;  %8770 = vmatpush1.bf16.msra.mxu1 %v8769_v20  ;;  %v4760_v7 = vld [vmem:[%s14462_s12] sm:$0xff]  ;;  %v4761_v20 = vld [vmem:[%s14462_s12 + $0x8] sm:$0xff] }
 0x54e   :  { %8740 = vmatprep.subr.bf16.mxu0 %v8739_v13  ;;  %8772 = vmatprep.subr.bf16.mxu1 %v8771_v8  ;;  %v8793_v9 = vpack.c.bf16 %v4761_v20, %v4760_v7  ;;  %v4793_v13 = vld [vmem:[%s14462_s12 + $0x108] sm:$0xff]  ;;  %v4779_v8 = vld [vmem:[%s14462_s12 + $0x98] sm:$0xff]  ;;  %v4798_v20 = vld [vmem:[%s14462_s12 + $0x130] sm:$0xff] }
 0x54f   :  { %v8825_v35 = vpack.c.bf16 %v4793_v13, %v4792_v21  ;;  %v4817_v13 = vld [vmem:[%s14462_s12 + $0x1c8] sm:$0xff] }
 0x551   :  { %8742 = vmatpush1.bf16.msra.mxu0 %v8741_v18  ;;  %8774 = vmatpush1.bf16.msra.mxu1 %v8773_v45  ;;  %v8797_v18 = vpack.c.bf16 %v4763_v14, %v4762_v12  ;;  %v4780_v45 = vld [vmem:[%s14462_s12 + $0xa0] sm:$0xff]  ;;  %v4789_v12 = vld [vmem:[%s14462_s12 + $0xe8] sm:$0xff] }
 0x552   :  { %8744 = vmatprep.subr.bf16.mxu0 %v8743_v30  ;;  %8776 = vmatprep.subr.bf16.mxu1 %v8775_v47  ;;  %v8799_v30 = vpack.c.bf16 %v4781_v22, %v4780_v45  ;;  %v4764_v47 = vld [vmem:[%s14462_s12 + $0x20] sm:$0xff]  ;;  %v4801_v45 = vld [vmem:[%s14462_s12 + $0x148] sm:$0xff]  ;;  %v4818_v22 = vld [vmem:[%s14462_s12 + $0x1d0] sm:$0xff] }
 0x555   :  { %8746 = vmatpush1.bf16.msra.mxu0 %v8745_v32  ;;  %8778 = vmatpush1.bf16.msra.mxu1 %v8777_v38  ;;  %v8801_v32 = vpack.c.bf16 %v4765_v52, %v4764_v47  ;;  %v4782_v38 = vld [vmem:[%s14462_s12 + $0xb0] sm:$0xff]  ;;  %v8815_v47 = vpack.c.bf16 %v4789_v12, %v4788_v27 }
 0x556   :  { %8748 = vmatprep.subr.bf16.mxu0 %v8747_v40  ;;  %8780 = vmatprep.subr.bf16.mxu1 %v8779_v25  ;;  %v4813_v40 = vld [vmem:[%s14462_s12 + $0x1a8] sm:$0xff]  ;;  %v8803_v25 = vpack.c.bf16 %v4783_v63, %v4782_v38  ;;  %v4820_v38 = vld [vmem:[%s14462_s12 + $0x1e0] sm:$0xff] }
 0x557   :  { %v4821_v63 = vld [vmem:[%s14462_s12 + $0x1e8] sm:$0xff] }
 0x559   :  { %8750 = vmatpush1.bf16.msra.mxu0 %v8749_v56  ;;  %8782 = vmatpush1.bf16.msra.mxu1 %v8781_v11  ;;  %v8829_v56 = vpack.c.bf16 %v4795_v42, %v4794_v10  ;;  %v4785_v11 = vld [vmem:[%s14462_s12 + $0xc8] sm:$0xff] }
 0x55a   :  { %8792 = vmatprep.subr.bf16.mxu1 %v8791_v48  ;;  %v8807_v60 = vpack.c.bf16 %v4785_v11, %v4784_v1  ;;  %v4787_v48 = vld [vmem:[%s14462_s12 + $0xd8] sm:$0xff]  ;;  %v4773_v10 = vld [vmem:[%s14462_s12 + $0x68] sm:$0xff] }
 0x55b   :  { %v4791_v11 = vld [vmem:[%s14462_s12 + $0xf8] sm:$0xff] }
 0x55c   :  { %4573 = vmatmul.mubr.f32.vlgmr.msra.gmra.mrb[92].mxu0 %v12696_v49  ;;  %4662 = vmatmul.mubr.f32.vlgmr.msra.gmra.mrb[92].mxu1 %v12696_v49  ;;  %v4893_v49 = vld [vmem:[%s14461_s13] sm:$0xff] }
 0x55d   :  { %4578 = vmatprep.mubr.f32.mxu0 %v9334_v26  ;;  %4667 = vmatprep.mubr.f32.mxu1 %v9334_v26 }
 0x55e   :  { %8794 = vmatpush3.bf16.msra.mxu1 %v8793_v9  ;;  %v4799_v9 = vld [vmem:[%s14462_s12 + $0x138] sm:$0xff] }
 0x55f   :  { %v8837_v14 = vpack.c.bf16 %v4799_v9, %v4798_v20  ;;  %v4841_v20 = vld [vmem:[%s14462_s12 + $0x288] sm:$0xff]  ;;  %v4872_v9 = vld [vmem:[%s14462_s12 + $0x380] sm:$0xff] }
 0x560   :  { %4579 = vmatmul.mubr.f32.gmra.mrb[94].mxu0 %v12726_v50  ;;  %4668 = vmatmul.mubr.f32.gmra.mrb[94].mxu1 %v12726_v50  ;;  %v4894_v50 = vld [vmem:[%s14461_s13 + $0x8] sm:$0xff] }
 0x561   :  { %4584 = vmatprep.mubr.f32.mxu0 %v9334_v26  ;;  %4673 = vmatprep.mubr.f32.mxu1 %v9334_v26  ;;  %v8783_v33 = vpack.c.bf16 %v4894_v50, %v4893_v49  ;;  %v8831_v49 = vpack.c.bf16 %v4813_v40, %v4812_v34  ;;  %v4796_v50 = vld [vmem:[%s14462_s12 + $0x120] sm:$0xff]  ;;  %v4803_v34 = vld [vmem:[%s14462_s12 + $0x158] sm:$0xff] }
 0x563   :  { %8784 = vmatprep.subr.bf16.mxu0 %v8783_v33 }
 0x564   :  { %4585 = vmatmul.mubr.f32.gmra.mrb[96].mxu0 %v12761_v37  ;;  %4674 = vmatmul.mubr.f32.gmra.mrb[96].mxu1 %v12761_v37  ;;  %v4896_v37 = vld [vmem:[%s14461_s13 + $0x18] sm:$0xff] }
 0x565   :  { %4590 = vmatprep.mubr.f32.mxu0 %v9334_v26  ;;  %4679 = vmatprep.mubr.f32.mxu1 %v9334_v26  ;;  %v8787_v61 = vpack.c.bf16 %v4896_v37, %v4895_v58  ;;  %v4797_v58 = vld [vmem:[%s14462_s12 + $0x128] sm:$0xff]  ;;  %v8805_v37 = vpack.c.bf16 %v4767_v55, %v4766_v54  ;;  %v4804_v54 = vld [vmem:[%s14462_s12 + $0x160] sm:$0xff] }
 0x566   :  { %8786 = vmatpush3.bf16.msra.mxu0 %v8783_v33  ;;  %v4814_v33 = vld [vmem:[%s14462_s12 + $0x1b0] sm:$0xff]  ;;  %v8833_v2 = vpack.c.bf16 %v4797_v58, %v4796_v50  ;;  %v4805_v55 = vld [vmem:[%s14462_s12 + $0x168] sm:$0xff] }
 0x567   :  { %8788 = vmatprep.subr.bf16.mxu0 %v8787_v61  ;;  %v8849_v1 = vpack.c.bf16 %v4805_v55, %v4804_v54  ;;  %v4822_v58 = vld [vmem:[%s14462_s12 + $0x1f0] sm:$0xff] }
 0x568   :  { %4591 = vmatmul.mubr.f32.gmra.mrb[98].mxu0 %v12793_v46  ;;  %4680 = vmatmul.mubr.f32.gmra.mrb[98].mxu1 %v12793_v46  ;;  %v4778_v46 = vld [vmem:[%s14462_s12 + $0x90] sm:$0xff] }
 0x569   :  { %7803 = vmatprep.mubr.msk.f32.mxu0 %vm1807_vm1, %v6993_v59  ;;  %v8795_v4 = vpack.c.bf16 %v4779_v8, %v4778_v46  ;;  %v4815_v59 = vld [vmem:[%s14462_s12 + $0x1b8] sm:$0xff]  ;;  %v4816_v46 = vld [vmem:[%s14462_s12 + $0x1c0] sm:$0xff]  ;;  %v8811_v8 = vpack.c.bf16 %v4787_v48, %v4786_v17  ;;  %v4806_v17 = vld [vmem:[%s14462_s12 + $0x170] sm:$0xff] }
 0x56a   :  { %8790 = vmatpush3.bf16.msra.mxu0 %v8787_v61  ;;  %v4768_v61 = vld [vmem:[%s14462_s12 + $0x40] sm:$0xff]  ;;  %v8835_v7 = vpack.c.bf16 %v4815_v59, %v4814_v33  ;;  %v8839_v15 = vpack.c.bf16 %v4817_v13, %v4816_v46  ;;  %v4823_v33 = vld [vmem:[%s14462_s12 + $0x1f8] sm:$0xff] }
 0x56b   :  { %8796 = vmatprep.subr.bf16.mxu1 %v8795_v4  ;;  %8824 = vmatprep.subr.bf16.mxu0 %v8823_v6  ;;  %v8809_v21 = vpack.c.bf16 %v4769_v0, %v4768_v61  ;;  %v4770_v6 = vld [vmem:[%s14462_s12 + $0x50] sm:$0xff]  ;;  %v4771_v4 = vld [vmem:[%s14462_s12 + $0x58] sm:$0xff]  ;;  %v8851_v59 = vpack.c.bf16 %v4823_v33, %v4822_v58 }
 0x56c   :  { %8798 = vmatpush3.bf16.msra.mxu1 %v8797_v18  ;;  %v4800_v18 = vld [vmem:[%s14462_s12 + $0x140] sm:$0xff]  ;;  %v4775_v61 = vld [vmem:[%s14462_s12 + $0x78] sm:$0xff] }
 0x56d   :  { %8800 = vmatprep.subr.bf16.mxu1 %v8799_v30  ;;  %7804 = vmatmul.mubr.msk.f32.vlgmr.msra.gmra.mrb[100].mxu0 %vm1807_vm1, %v6994_v24  ;;  %v8813_v24 = vpack.c.bf16 %v4771_v4, %v4770_v6  ;;  %v4819_v30 = vld [vmem:[%s14462_s12 + $0x1d8] sm:$0xff]  ;;  %v8841_v42 = vpack.c.bf16 %v4801_v45, %v4800_v18 }
 0x56e   :  { %8826 = vmatpush3.bf16.msra.mxu0 %v8825_v35  ;;  %v4772_v35 = vld [vmem:[%s14462_s12 + $0x60] sm:$0xff]  ;;  %v8843_v52 = vpack.c.bf16 %v4819_v30, %v4818_v22  ;;  %v4807_v48 = vld [vmem:[%s14462_s12 + $0x178] sm:$0xff] }
 0x56f   :  { %8828 = vmatprep.subr.bf16.mxu0 %v8827_v36  ;;  %v4802_v36 = vld [vmem:[%s14462_s12 + $0x150] sm:$0xff] }
 0x570   :  { %8802 = vmatpush3.bf16.msra.mxu1 %v8801_v32  ;;  %v8817_v32 = vpack.c.bf16 %v4773_v10, %v4772_v35  ;;  %v8845_v40 = vpack.c.bf16 %v4803_v34, %v4802_v36 }
 0x571   :  { %8804 = vmatprep.subr.bf16.mxu1 %v8803_v25  ;;  %v8847_v25 = vpack.c.bf16 %v4821_v63, %v4820_v38 }
 0x572   :  { %8830 = vmatpush3.bf16.msra.mxu0 %v8829_v56  ;;  %v4790_v56 = vld [vmem:[%s14462_s12 + $0xf0] sm:$0xff] }
 0x573   :  { %8832 = vmatprep.subr.bf16.mxu0 %v8831_v49  ;;  %v6995_v49 = vld [vmem:[%s14463_s2 + $0x50] sm:$0xff]  ;;  %v8819_v50 = vpack.c.bf16 %v4791_v11, %v4790_v56 }
 0x574   :  { %8806 = vmatpush3.bf16.msra.mxu1 %v8805_v37  ;;  %7806 = vmatprep.mubr.msk.f32.mxu0 %vm1807_vm1, %v6995_v49  ;;  %v6996_v37 = vld [vmem:[%s14463_s2 + $0x58] sm:$0xff] }
 0x575   :  { %8808 = vmatprep.subr.bf16.mxu1 %v8807_v60  ;;  %v4774_v60 = vld [vmem:[%s14462_s12 + $0x70] sm:$0xff]  ;;  %7807 = vmatmul.mubr.msk.f32.gmra.mrb[102].mxu0 %vm1807_vm1, %v6996_v37 }
 0x576   :  { %8834 = vmatpush3.bf16.msra.mxu0 %v8833_v2  ;;  %v8821_v0 = vpack.c.bf16 %v4775_v61, %v4774_v60  ;;  %v8853_v2 = vpack.c.bf16 %v4807_v48, %v4806_v17 }
 0x577   :  { %8836 = vmatprep.subr.bf16.mxu0 %v8835_v7  ;;  %v4840_v7 = vld [vmem:[%s14462_s12 + $0x280] sm:$0xff] }
 0x578   :  { %8810 = vmatpush3.bf16.msra.mxu1 %v8809_v21  ;;  %v8855_v46 = vpack.c.bf16 %v4841_v20, %v4840_v7  ;;  %v4873_v21 = vld [vmem:[%s14462_s12 + $0x388] sm:$0xff] }
 0x579   :  { %8812 = vmatprep.subr.bf16.mxu1 %v8811_v8  ;;  %v8887_v13 = vpack.c.bf16 %v4873_v21, %v4872_v9 }
 0x57a   :  { %8838 = vmatpush3.bf16.msra.mxu0 %v8837_v14 }
 0x57b   :  { %8840 = vmatprep.subr.bf16.mxu0 %v8839_v15 }
 0x57c   :  { %8814 = vmatpush3.bf16.msra.mxu1 %v8813_v24 }
 0x57d   :  { %8816 = vmatprep.subr.bf16.mxu1 %v8815_v47 }
 0x57e   :  { %8842 = vmatpush3.bf16.msra.mxu0 %v8841_v42 }
 0x57f   :  { %8844 = vmatprep.subr.bf16.mxu0 %v8843_v52 }
 0x580   :  { %8818 = vmatpush3.bf16.msra.mxu1 %v8817_v32 }
 0x581   :  { %8820 = vmatprep.subr.bf16.mxu1 %v8819_v50 }
 0x582   :  { %8846 = vmatpush3.bf16.msra.mxu0 %v8845_v40 }
 0x583   :  { %8848 = vmatprep.subr.bf16.mxu0 %v8847_v25 }
 0x584   :  { %8822 = vmatpush3.bf16.msra.mxu1 %v8821_v0 }
 0x585   :  { %8856 = vmatprep.subr.bf16.mxu1 %v8855_v46 }
 0x586   :  { %8850 = vmatpush3.bf16.msra.mxu0 %v8849_v1 }
 0x587   :  { %8852 = vmatprep.subr.bf16.mxu0 %v8851_v59 }
 0x58a   :  { %8854 = vmatpush3.bf16.msra.mxu0 %v8853_v2  ;;  %v6972_v2 = vld [vmem:[%s14465_s14] ss:$0 sm:$0xff] }
 0x58b   :  { %8888 = vmatprep.subr.bf16.mxu0 %v8887_v13 }
 0x5af   :  { %v7255_v8 = vpop.f32.mrb[68].mxu0  ;;  %v7299_v6 = vpop.f32.mrb[68].mxu1 }
 0x5b0   :  { %v7256_v4 = vpop.f32.mrb[69].mxu0  ;;  %v7300_v27 = vpop.f32.mrb[69].mxu1 }
 0x5b1   :  { %v7257_v12 = vadd.f32 %v7256_v4, %v7255_v8  ;;  %v7301_v14 = vadd.f32 %v7300_v27, %v7299_v6 }
 0x5b3   :  { %v3508_v15 = vadd.f32 %v7257_v12, %v12410_v53  ;;  %v7258_v18 = vpop.f32.mrb[70].mxu0  ;;  %v7302_v45 = vpop.f32.mrb[70].mxu1 }
 0x5b4   :  { %v7259_v22 = vpop.f32.mrb[71].mxu0  ;;  %v7303_v24 = vpop.f32.mrb[71].mxu1 }
 0x5b5   :  { %v3593_v30 = vadd.f32 %v7301_v14, %v3508_v15  ;;  %v7260_v47 = vadd.f32 %v7259_v22, %v7258_v18  ;;  %v7304_v35 = vadd.f32 %v7303_v24, %v7302_v45 }
 0x5b7   :  { %v3513_v10 = vadd.f32 %v12408_v57, %v7260_v47  ;;  %v7261_v42 = vpop.f32.mrb[72].mxu0  ;;  %v7305_v52 = vpop.f32.mrb[72].mxu1 }
 0x5b8   :  { %v7262_v36 = vpop.f32.mrb[73].mxu0  ;;  %v7306_v34 = vpop.f32.mrb[73].mxu1 }
 0x5b9   :  { %v3598_v32 = vadd.f32 %v7304_v35, %v3513_v10  ;;  %v7263_v38 = vadd.f32 %v7262_v36, %v7261_v42  ;;  %v7307_v63 = vadd.f32 %v7306_v34, %v7305_v52  ;;  %v13135_v34 = vld [vmem:[%s14464_s11] sm:$0xff] }
 0x5bb   :  { %v3518_v40 = vadd.f32 %v7263_v38, %v12611_v62  ;;  %v7264_v25 = vpop.f32.mrb[74].mxu0  ;;  %v7308_v53 = vpop.f32.mrb[74].mxu1  ;;  %v13143_v38 = vrot.slane %v13135_v34, %v11028_v43 }
 0x5bc   :  { %v7265_v54 = vpop.f32.mrb[75].mxu0  ;;  %v7309_v55 = vpop.f32.mrb[75].mxu1 }
 0x5bd   :  { %v3603_v1 = vadd.f32 %v7307_v63, %v3518_v40  ;;  %v7266_v56 = vadd.f32 %v7265_v54, %v7264_v25  ;;  %v7310_v11 = vadd.f32 %v7309_v55, %v7308_v53  ;;  %v4824_v63 = vld [vmem:[%s14462_s12 + $0x200] sm:$0xff]  ;;  %v4825_v40 = vld [vmem:[%s14462_s12 + $0x208] sm:$0xff]  ;;  %v13153_v25 = vrot.slane %v13135_v34, %v10015_v39 }
 0x5be   :  { %v13157_v53 = vrot.slane %v13135_v34, %v11031_v44  ;;  %v4856_v54 = vld [vmem:[%s14462_s12 + $0x300] sm:$0xff]  ;;  %v4857_v55 = vld [vmem:[%s14462_s12 + $0x308] sm:$0xff] }
 0x5bf   :  { %v3523_v49 = vadd.f32 %v12609_v3, %v7266_v56 }
 0x5c1   :  { %v3608_v50 = vadd.f32 %v7310_v11, %v3523_v49  ;;  %v4843_v49 = vld [vmem:[%s14462_s12 + $0x298] sm:$0xff] }
 0x5cf   :  { %v7343_v57 = vpop.f32.mrb[76].mxu0  ;;  %v7387_v58 = vpop.f32.mrb[76].mxu1 }
 0x5d0   :  { %v7344_v33 = vpop.f32.mrb[77].mxu0  ;;  %v7388_v37 = vpop.f32.mrb[77].mxu1 }
 0x5d1   :  { %v7345_v59 = vadd.f32 %v7344_v33, %v7343_v57  ;;  %v7389_v60 = vadd.f32 %v7388_v37, %v7387_v58  ;;  %v4875_v57 = vld [vmem:[%s14462_s12 + $0x398] sm:$0xff]  ;;  %v4826_v37 = vld [vmem:[%s14462_s12 + $0x210] sm:$0xff] }
 0x5d3   :  { %v3678_v61 = vadd.f32 %v7345_v59, %v3593_v30  ;;  %v7346_v0 = vpop.f32.mrb[78].mxu0  ;;  %v7390_v17 = vpop.f32.mrb[78].mxu1 }
 0x5d4   :  { %v7347_v62 = vpop.f32.mrb[79].mxu0  ;;  %v7391_v48 = vpop.f32.mrb[79].mxu1 }
 0x5d5   :  { %v3763_v7 = vadd.f32 %v7389_v60, %v3678_v61  ;;  %v7348_v20 = vadd.f32 %v7347_v62, %v7346_v0  ;;  %v7392_v9 = vadd.f32 %v7391_v48, %v7390_v17  ;;  %v8857_v61 = vpack.c.bf16 %v4825_v40, %v4824_v63  ;;  %v4827_v17 = vld [vmem:[%s14462_s12 + $0x218] sm:$0xff]  ;;  %v4858_v62 = vld [vmem:[%s14462_s12 + $0x310] sm:$0xff] }
 0x5d6   :  { %v8889_v0 = vpack.c.bf16 %v4857_v55, %v4856_v54  ;;  %v4859_v48 = vld [vmem:[%s14462_s12 + $0x318] sm:$0xff]  ;;  %v4878_v54 = vld [vmem:[%s14462_s12 + $0x3b0] sm:$0xff] }
 0x5d7   :  { %v3683_v3 = vadd.f32 %v7348_v20, %v3598_v32  ;;  %v7349_v46 = vpop.f32.mrb[80].mxu0  ;;  %v7393_v21 = vpop.f32.mrb[80].mxu1  ;;  %v3788_v13 = vadd.f32 %v6972_v2, %v3763_v7  ;;  %v13139_v32 = vrot.slane %v13135_v34, %v10021_v41  ;;  %v4879_v55 = vld [vmem:[%s14462_s12 + $0x3b8] sm:$0xff] }
 0x5d8   :  { %v7350_v8 = vpop.f32.mrb[81].mxu0  ;;  %v7394_v6 = vpop.f32.mrb[81].mxu1 }
 0x5d9   :  { %v3768_v4 = vadd.f32 %v7392_v9, %v3683_v3  ;;  %v7351_v27 = vadd.f32 %v7350_v8, %v7349_v46  ;;  %v7395_v12 = vadd.f32 %v7394_v6, %v7393_v21  ;;  %3796 = vrot.lane.b32.xlu0 %v3788_v13, %s9335_s22  ;;  %v4844_v3 = vld [vmem:[%s14462_s12 + $0x2a0] sm:$0xff]  ;;  %v4845_v46 = vld [vmem:[%s14462_s12 + $0x2a8] sm:$0xff] }
 0x5da   :  { %v4876_v8 = vld [vmem:[%s14462_s12 + $0x3a0] sm:$0xff]  ;;  %v4877_v6 = vld [vmem:[%s14462_s12 + $0x3a8] sm:$0xff] }
 0x5db   :  { %v3688_v14 = vadd.f32 %v7351_v27, %v3603_v1  ;;  %v7352_v15 = vpop.f32.mrb[82].mxu0  ;;  %v7396_v18 = vpop.f32.mrb[82].mxu1  ;;  %v3789_v45 = vadd.f32 %v6972_v2, %v3768_v4  ;;  %v4842_v1 = vld [vmem:[%s14462_s12 + $0x290] sm:$0xff] }
 0x5dc   :  { %v7353_v22 = vpop.f32.mrb[83].mxu0  ;;  %v7397_v24 = vpop.f32.mrb[83].mxu1  ;;  %v8859_v20 = vpack.c.bf16 %v4843_v49, %v4842_v1 }
 0x5dd   :  { %v3773_v30 = vadd.f32 %v7395_v12, %v3688_v14  ;;  %v7354_v47 = vadd.f32 %v7353_v22, %v7352_v15  ;;  %v7398_v35 = vadd.f32 %v7397_v24, %v7396_v18  ;;  %3798 = vrot.lane.b32.xlu0 %v3789_v45, %s9335_s22  ;;  %v8861_v12 = vpack.c.bf16 %v4827_v17, %v4826_v37  ;;  %v4828_v15 = vld [vmem:[%s14462_s12 + $0x220] sm:$0xff]  ;;  %v4829_v24 = vld [vmem:[%s14462_s12 + $0x228] sm:$0xff]  ;;  %v4831_v37 = vld [vmem:[%s14462_s12 + $0x238] sm:$0xff] }
 0x5de   :  { %v8893_v14 = vpack.c.bf16 %v4859_v48, %v4858_v62  ;;  %v8863_v22 = vpack.c.bf16 %v4845_v46, %v4844_v3  ;;  %v8899_v17 = vpack.c.bf16 %v4879_v55, %v4878_v54  ;;  %v4848_v62 = vld [vmem:[%s14462_s12 + $0x2c0] sm:$0xff]  ;;  %v4849_v48 = vld [vmem:[%s14462_s12 + $0x2c8] sm:$0xff] }
 0x5df   :  { %v3693_v10 = vadd.f32 %v7354_v47, %v3608_v50  ;;  %v3790_v42 = vadd.f32 %v6972_v2, %v3773_v30  ;;  %v4874_v50 = vld [vmem:[%s14462_s12 + $0x390] sm:$0xff]  ;;  %v4860_v30 = vld [vmem:[%s14462_s12 + $0x320] sm:$0xff]  ;;  %v4861_v47 = vld [vmem:[%s14462_s12 + $0x328] sm:$0xff] }
 0x5e0   :  { %v8891_v9 = vpack.c.bf16 %v4875_v57, %v4874_v50  ;;  %v8897_v49 = vpack.c.bf16 %v4861_v47, %v4860_v30  ;;  %v4830_v50 = vld [vmem:[%s14462_s12 + $0x230] sm:$0xff]  ;;  %v4884_v54 = vld [vmem:[%s14462_s12 + $0x3e0] sm:$0xff]  ;;  %v4885_v55 = vld [vmem:[%s14462_s12 + $0x3e8] sm:$0xff] }
 0x5e1   :  { %v3778_v52 = vadd.f32 %v7398_v35, %v3693_v10  ;;  %3800 = vrot.lane.b32.xlu1 %v3790_v42, %s9335_s22  ;;  %v8895_v42 = vpack.c.bf16 %v4877_v6, %v4876_v8  ;;  %v4834_v47 = vld [vmem:[%s14462_s12 + $0x250] sm:$0xff] }
 0x5e3   :  { %v3791_v36 = vadd.f32 %v6972_v2, %v3778_v52  ;;  %v4846_v52 = vld [vmem:[%s14462_s12 + $0x2b0] sm:$0xff] }
 0x5e5   :  { %3802 = vrot.lane.b32.xlu1 %v3791_v36, %s9335_s22  ;;  %v4847_v36 = vld [vmem:[%s14462_s12 + $0x2b8] sm:$0xff] }
 0x60f   :  { %v4396_v56 = vpop.f32.mrb[84].mxu0  ;;  %v4485_v11 = vpop.f32.mrb[84].mxu1 }
 0x610   :  { %v4398_v58 = vpop.f32.mrb[85].mxu0  ;;  %v4487_v33 = vpop.f32.mrb[85].mxu1  ;;  %v4728_v2 = vadd.f32 %v13153_v25, %v4396_v56  ;;  %v4730_v7 = vadd.f32 %v13157_v53, %v4485_v11  ;;  %v8865_v11 = vpack.c.bf16 %v4829_v24, %v4828_v15 }
 0x611   :  { %v4729_v59 = vadd.f32 %v13139_v32, %v4398_v58  ;;  %v4731_v60 = vadd.f32 %v13143_v38, %v4487_v33  ;;  %v8867_v33 = vpack.c.bf16 %v4847_v36, %v4846_v52  ;;  %v4866_v52 = vld [vmem:[%s14462_s12 + $0x350] sm:$0xff]  ;;  %v4867_v36 = vld [vmem:[%s14462_s12 + $0x358] sm:$0xff] }
 0x613   :  { %v4402_v21 = vpop.f32.mrb[86].mxu0  ;;  %v4491_v13 = vpop.f32.mrb[86].mxu1  ;;  %5058 = vmatprep.mubr.f32.mxu1 %v4729_v59  ;;  %5143 = vmatprep.mubr.f32.mxu0 %v4731_v60  ;;  %v4862_v59 = vld [vmem:[%s14462_s12 + $0x330] sm:$0xff]  ;;  %v4863_v60 = vld [vmem:[%s14462_s12 + $0x338] sm:$0xff] }
 0x614   :  { %v4404_v4 = vpop.f32.mrb[87].mxu0  ;;  %v4493_v27 = vpop.f32.mrb[87].mxu1  ;;  %5059 = vmatmul.mubr.f32.vlgmr.msra.gmra.mrb[100].mxu1 %v4728_v2  ;;  %5144 = vmatmul.mubr.f32.vlgmr.msra.gmra.mrb[104].mxu0 %v4730_v7  ;;  %v4736_v35 = vadd.f32 %v13153_v25, %v4402_v21  ;;  %v4738_v10 = vadd.f32 %v13157_v53, %v4491_v13  ;;  %v8869_v21 = vpack.c.bf16 %v4831_v37, %v4830_v50  ;;  %v4854_v37 = vld [vmem:[%s14462_s12 + $0x2f0] sm:$0xff] }
 0x615   :  { %v4737_v18 = vadd.f32 %v13139_v32, %v4404_v4  ;;  %v4739_v45 = vadd.f32 %v13143_v38, %v4493_v27  ;;  %8858 = vmatpush3.bf16.msra.mxu1 %v8857_v61  ;;  %8890 = vmatpush3.bf16.msra.mxu0 %v8889_v0  ;;  %v8901_v13 = vpack.c.bf16 %v4863_v60, %v4862_v59  ;;  %v4832_v27 = vld [vmem:[%s14462_s12 + $0x240] sm:$0xff]  ;;  %v4855_v59 = vld [vmem:[%s14462_s12 + $0x2f8] sm:$0xff]  ;;  %v4886_v60 = vld [vmem:[%s14462_s12 + $0x3f0] sm:$0xff] }
 0x616   :  { %8860 = vmatprep.subr.bf16.mxu1 %v8859_v20  ;;  %8892 = vmatprep.subr.bf16.mxu0 %v8891_v9  ;;  %v4880_v20 = vld [vmem:[%s14462_s12 + $0x3c0] sm:$0xff]  ;;  %v4881_v9 = vld [vmem:[%s14462_s12 + $0x3c8] sm:$0xff]  ;;  %v8871_v4 = vpack.c.bf16 %v4849_v48, %v4848_v62  ;;  %v4838_v62 = vld [vmem:[%s14462_s12 + $0x270] sm:$0xff] }
 0x617   :  { %v4408_v63 = vpop.f32.mrb[88].mxu0  ;;  %v4497_v40 = vpop.f32.mrb[88].mxu1  ;;  %5063 = vmatprep.mubr.f32.mxu1 %v4737_v18  ;;  %5148 = vmatprep.mubr.f32.mxu0 %v4739_v45  ;;  %v4865_v18 = vld [vmem:[%s14462_s12 + $0x348] sm:$0xff]  ;;  %v4850_v45 = vld [vmem:[%s14462_s12 + $0x2d0] sm:$0xff]  ;;  %v4839_v48 = vld [vmem:[%s14462_s12 + $0x278] sm:$0xff] }
 0x618   :  { %v4410_v1 = vpop.f32.mrb[89].mxu0  ;;  %v4499_v56 = vpop.f32.mrb[89].mxu1  ;;  %5064 = vmatmul.mubr.f32.gmra.mrb[102].mxu1 %v4736_v35  ;;  %5149 = vmatmul.mubr.f32.gmra.mrb[106].mxu0 %v4738_v10  ;;  %v4744_v61 = vadd.f32 %v13153_v25, %v4408_v63  ;;  %v4746_v0 = vadd.f32 %v13157_v53, %v4497_v40  ;;  %v4835_v35 = vld [vmem:[%s14462_s12 + $0x258] sm:$0xff]  ;;  %v4852_v63 = vld [vmem:[%s14462_s12 + $0x2e0] sm:$0xff]  ;;  %v4853_v40 = vld [vmem:[%s14462_s12 + $0x2e8] sm:$0xff] }
 0x619   :  { %v4745_v57 = vadd.f32 %v13139_v32, %v4410_v1  ;;  %v4747_v58 = vadd.f32 %v13143_v38, %v4499_v56  ;;  %8862 = vmatpush3.bf16.msra.mxu1 %v8861_v12  ;;  %8894 = vmatpush3.bf16.msra.mxu0 %v8893_v14  ;;  %v4833_v12 = vld [vmem:[%s14462_s12 + $0x248] sm:$0xff]  ;;  %v8877_v1 = vpack.c.bf16 %v4835_v35, %v4834_v47  ;;  %v5506_v47 = vld [vmem:[%s14456_s10 + $0x38] sm:$0xff] }
 0x61a   :  { %8864 = vmatprep.subr.bf16.mxu1 %v8863_v22  ;;  %8896 = vmatprep.subr.bf16.mxu0 %v8895_v42  ;;  %v4883_v22 = vld [vmem:[%s14462_s12 + $0x3d8] sm:$0xff]  ;;  %v8873_v24 = vpack.c.bf16 %v4833_v12, %v4832_v27  ;;  %v8909_v56 = vpack.c.bf16 %v4867_v36, %v4866_v52  ;;  %v8879_v50 = vpack.c.bf16 %v4853_v40, %v4852_v63 }
 0x61b   :  { %v4414_v2 = vpop.f32.mrb[90].mxu0  ;;  %v4503_v7 = vpop.f32.mrb[90].mxu1  ;;  %5068 = vmatprep.mubr.f32.mxu1 %v4745_v57  ;;  %5153 = vmatprep.mubr.f32.mxu0 %v4747_v58  ;;  %v8911_v57 = vpack.c.bf16 %v4885_v55, %v4884_v54  ;;  %v4868_v58 = vld [vmem:[%s14462_s12 + $0x360] sm:$0xff]  ;;  %v13374_v27 = vrot.slane %v13135_v34, %v11240_v23  ;;  %v8885_v12 = vpack.c.bf16 %v4839_v48, %v4838_v62 }
 0x61c   :  { %v4416_v3 = vpop.f32.mrb[91].mxu0  ;;  %v4505_v46 = vpop.f32.mrb[91].mxu1  ;;  %5069 = vmatmul.mubr.f32.gmra.mrb[104].mxu1 %v4744_v61  ;;  %5154 = vmatmul.mubr.f32.gmra.mrb[108].mxu0 %v4746_v0  ;;  %v4752_v14 = vadd.f32 %v13153_v25, %v4414_v2  ;;  %v4754_v15 = vadd.f32 %v13157_v53, %v4503_v7  ;;  %v4851_v25 = vld [vmem:[%s14462_s12 + $0x2d8] sm:$0xff]  ;;  %v4882_v53 = vld [vmem:[%s14462_s12 + $0x3d0] sm:$0xff]  ;;  %v8883_v2 = vpack.c.bf16 %v4855_v59, %v4854_v37 }
 0x61d   :  { %v4753_v8 = vadd.f32 %v13139_v32, %v4416_v3  ;;  %v4755_v6 = vadd.f32 %v13143_v38, %v4505_v46  ;;  %8866 = vmatpush3.bf16.msra.mxu1 %v8865_v11  ;;  %8898 = vmatpush3.bf16.msra.mxu0 %v8897_v49  ;;  %v8903_v32 = vpack.c.bf16 %v4881_v9, %v4880_v20  ;;  %v4864_v38 = vld [vmem:[%s14462_s12 + $0x340] sm:$0xff]  ;;  %v4837_v49 = vld [vmem:[%s14462_s12 + $0x268] sm:$0xff]  ;;  %v4887_v61 = vld [vmem:[%s14462_s12 + $0x3f8] sm:$0xff] }
 0x61e   :  { %8868 = vmatprep.subr.bf16.mxu1 %v8867_v33  ;;  %8900 = vmatprep.subr.bf16.mxu0 %v8899_v17  ;;  %v8905_v30 = vpack.c.bf16 %v4865_v18, %v4864_v38  ;;  %v8875_v10 = vpack.c.bf16 %v4851_v25, %v4850_v45  ;;  %v8907_v42 = vpack.c.bf16 %v4883_v22, %v4882_v53  ;;  %v4836_v11 = vld [vmem:[%s14462_s12 + $0x260] sm:$0xff]  ;;  %v4869_v33 = vld [vmem:[%s14462_s12 + $0x368] sm:$0xff]  ;;  %v4870_v20 = vld [vmem:[%s14462_s12 + $0x370] sm:$0xff] }
 0x61f   :  { %5073 = vmatprep.mubr.f32.mxu1 %v4753_v8  ;;  %5158 = vmatprep.mubr.f32.mxu0 %v4755_v6  ;;  %v8881_v0 = vpack.c.bf16 %v4837_v49, %v4836_v11  ;;  %v8913_v17 = vpack.c.bf16 %v4869_v33, %v4868_v58  ;;  %v8915_v7 = vpack.c.bf16 %v4887_v61, %v4886_v60  ;;  %v4871_v9 = vld [vmem:[%s14462_s12 + $0x378] sm:$0xff]  ;;  %v5500_v3 = vld [vmem:[%s14456_s10 + $0x8] sm:$0xff]  ;;  %v5509_v38 = vld [vmem:[%s14456_s10 + $0x50] sm:$0xff] }
 0x620   :  { %5074 = vmatmul.mubr.f32.gmra.mrb[106].mxu1 %v4752_v14  ;;  %5159 = vmatmul.mubr.f32.gmra.mrb[110].mxu0 %v4754_v15  ;;  %v5508_v46 = vld [vmem:[%s14456_s10 + $0x48] sm:$0xff]  ;;  %v13363_v8 = vrot.slane %v13135_v34, %v11234_v16  ;;  %v13367_v6 = vrot.slane %v13135_v34, %v11237_v19  ;;  %v8917_v14 = vpack.c.bf16 %v4871_v9, %v4870_v20  ;;  %v5507_v15 = vld [vmem:[%s14456_s10 + $0x40] sm:$0xff] }
 0x621   :  { %8870 = vmatpush3.bf16.msra.mxu1 %v8869_v21  ;;  %8902 = vmatpush3.bf16.msra.mxu0 %v8901_v13  ;;  %v5502_v21 = vld [vmem:[%s14456_s10 + $0x18] sm:$0xff]  ;;  %v13387_v18 = vrot.slane %v13135_v34, %v11249_v31  ;;  %v8919_v45 = vpack.c.bf16 %v5508_v46, %v5500_v3  ;;  %v5504_v53 = vld [vmem:[%s14456_s10 + $0x28] sm:$0xff] }
 0x622   :  { %8872 = vmatprep.subr.bf16.mxu1 %v8871_v4  ;;  %8904 = vmatprep.subr.bf16.mxu0 %v8903_v32  ;;  %v5510_v13 = vld [vmem:[%s14456_s10 + $0x58] sm:$0xff]  ;;  %v5499_v4 = vld [vmem:[%s14456_s10] sm:$0xff]  ;;  %v5501_v32 = vld [vmem:[%s14456_s10 + $0x10] sm:$0xff] }
 0x623   :  { %v8923_v25 = vpack.c.bf16 %v5510_v13, %v5502_v21  ;;  %v5512_v22 = vld [vmem:[%s14456_s10 + $0x68] sm:$0xff]  ;;  %v5514_v34 = vld [vmem:[%s14456_s10 + $0x78] sm:$0xff]  ;;  %v8925_v52 = vpack.c.bf16 %v5509_v38, %v5501_v32 }
 0x624   :  { %v8927_v40 = vpack.c.bf16 %v5512_v22, %v5504_v53  ;;  %v5369_v32 = vld [vmem:[%s14458_s9 + $0x18] sm:$0xff] }
 0x625   :  { %8874 = vmatpush3.bf16.msra.mxu1 %v8873_v24  ;;  %8906 = vmatpush3.bf16.msra.mxu0 %v8905_v30  ;;  %v5377_v38 = vld [vmem:[%s14458_s9 + $0x58] sm:$0xff] }
 0x626   :  { %8876 = vmatprep.subr.bf16.mxu1 %v8875_v10  ;;  %8908 = vmatprep.subr.bf16.mxu0 %v8907_v42  ;;  %v8921_v42 = vpack.c.bf16 %v5507_v15, %v5499_v4  ;;  %v5375_v15 = vld [vmem:[%s14458_s9 + $0x48] sm:$0xff]  ;;  %v8967_v22 = vpack.c.bf16 %v5377_v38, %v5369_v32  ;;  %v5422_v32 = vld [vmem:[%s14458_s9 + $0x1c0] sm:$0xff] }
 0x629   :  { %8878 = vmatpush3.bf16.msra.mxu1 %v8877_v1  ;;  %8910 = vmatpush3.bf16.msra.mxu0 %v8909_v56  ;;  %v8931_v1 = vpack.c.bf16 %v5514_v34, %v5506_v47  ;;  %v13468_v34 = vld [vmem:[%s14459_s1 + $0x70] sm:$0xff] }
 0x62a   :  { %8880 = vmatprep.subr.bf16.mxu1 %v8879_v50  ;;  %8912 = vmatprep.subr.bf16.mxu0 %v8911_v57 }
 0x62d   :  { %8882 = vmatpush3.bf16.msra.mxu1 %v8881_v0  ;;  %8914 = vmatpush3.bf16.msra.mxu0 %v8913_v17 }
 0x62e   :  { %8884 = vmatprep.subr.bf16.mxu1 %v8883_v2  ;;  %8916 = vmatprep.subr.bf16.mxu0 %v8915_v7 }
 0x62f   :  { %v4574_v24 = vpop.f32.mrb[92].mxu0  ;;  %v4663_v30 = vpop.f32.mrb[92].mxu1 }
 0x630   :  { %v4576_v35 = vpop.f32.mrb[93].mxu0  ;;  %v4665_v10 = vpop.f32.mrb[93].mxu1  ;;  %v4732_v54 = vadd.f32 %v13363_v8, %v4574_v24  ;;  %v4734_v55 = vadd.f32 %v13387_v18, %v4663_v30  ;;  %v13454_v30 = vld [vmem:[%s14459_s1 + $0x68] sm:$0xff] }
 0x631   :  { %v4733_v36 = vadd.f32 %v13367_v6, %v4576_v35  ;;  %v4735_v63 = vadd.f32 %v13374_v27, %v4665_v10  ;;  %8886 = vmatpush3.bf16.msra.mxu1 %v8885_v12  ;;  %8918 = vmatpush3.bf16.msra.mxu0 %v8917_v14  ;;  %v5503_v12 = vld [vmem:[%s14456_s10 + $0x20] sm:$0xff]  ;;  %v13483_v10 = vld [vmem:[%s14459_s1 + $0x78] sm:$0xff] }
 0x632   :  { %8920 = vmatprep.subr.bf16.mxu1 %v8919_v45  ;;  %8924 = vmatprep.subr.bf16.mxu0 %v8923_v25  ;;  %v5511_v14 = vld [vmem:[%s14456_s10 + $0x60] sm:$0xff] }
 0x633   :  { %v4580_v56 = vpop.f32.mrb[94].mxu0  ;;  %v4669_v11 = vpop.f32.mrb[94].mxu1  ;;  %5228 = vmatprep.mubr.f32.mxu1 %v4733_v36  ;;  %5313 = vmatprep.mubr.f32.mxu0 %v4735_v63  ;;  %v8929_v45 = vpack.c.bf16 %v5511_v14, %v5503_v12  ;;  %v5368_v36 = vld [vmem:[%s14458_s9 + $0x10] sm:$0xff]  ;;  %v5423_v12 = vld [vmem:[%s14458_s9 + $0x1c8] sm:$0xff]  ;;  %v5417_v14 = vld [vmem:[%s14458_s9 + $0x198] sm:$0xff] }
 0x634   :  { %v4582_v49 = vpop.f32.mrb[95].mxu0  ;;  %v4671_v50 = vpop.f32.mrb[95].mxu1  ;;  %5229 = vmatmul.mubr.f32.vlgmr.msra.gmra.mrb[108].mxu1 %v4732_v54  ;;  %5314 = vmatmul.mubr.f32.vlgmr.msra.gmra.mrb[112].mxu0 %v4734_v55  ;;  %v4740_v33 = vadd.f32 %v13363_v8, %v4580_v56  ;;  %v4742_v37 = vadd.f32 %v13387_v18, %v4669_v11  ;;  %v5376_v63 = vld [vmem:[%s14458_s9 + $0x50] sm:$0xff]  ;;  %v5391_v55 = vld [vmem:[%s14458_s9 + $0xc8] sm:$0xff]  ;;  %v5393_v56 = vld [vmem:[%s14458_s9 + $0xd8] sm:$0xff] }
 0x635   :  { %v4741_v57 = vadd.f32 %v13367_v6, %v4582_v49  ;;  %v4743_v58 = vadd.f32 %v13374_v27, %v4671_v50  ;;  %8922 = vmatpush1.bf16.msra.mxu1 %v8921_v42  ;;  %8926 = vmatpush1.bf16.msra.mxu0 %v8925_v52  ;;  %v5366_v42 = vld [vmem:[%s14458_s9] sm:$0xff]  ;;  %v8969_v49 = vpack.c.bf16 %v5376_v63, %v5368_v36 }
 0x636   :  { %8928 = vmatprep.subr.bf16.mxu1 %v8927_v40  ;;  %8932 = vmatprep.subr.bf16.mxu0 %v8931_v1  ;;  %v5374_v52 = vld [vmem:[%s14458_s9 + $0x40] sm:$0xff]  ;;  %v5383_v40 = vld [vmem:[%s14458_s9 + $0x88] sm:$0xff]  ;;  %v5385_v1 = vld [vmem:[%s14458_s9 + $0x98] sm:$0xff] }
 0x637   :  { %v4586_v59 = vpop.f32.mrb[96].mxu0  ;;  %v4675_v60 = vpop.f32.mrb[96].mxu1  ;;  %5233 = vmatprep.mubr.f32.mxu1 %v4741_v57  ;;  %5318 = vmatprep.mubr.f32.mxu0 %v4743_v58  ;;  %v8937_v11 = vpack.c.bf16 %v5374_v52, %v5366_v42  ;;  %v5382_v50 = vld [vmem:[%s14458_s9 + $0x80] sm:$0xff]  ;;  %v8939_v58 = vpack.c.bf16 %v5391_v55, %v5383_v40  ;;  %v5440_v55 = vld [vmem:[%s14458_s9 + $0x250] sm:$0xff] }
 0x638   :  { %v4588_v61 = vpop.f32.mrb[97].mxu0  ;;  %v4677_v0 = vpop.f32.mrb[97].mxu1  ;;  %5234 = vmatmul.mubr.f32.gmra.mrb[110].mxu1 %v4740_v33  ;;  %5319 = vmatmul.mubr.f32.gmra.mrb[114].mxu0 %v4742_v37  ;;  %v4748_v48 = vadd.f32 %v13363_v8, %v4586_v59  ;;  %v4750_v2 = vadd.f32 %v13387_v18, %v4675_v60  ;;  %v5390_v57 = vld [vmem:[%s14458_s9 + $0xc0] sm:$0xff]  ;;  %v8971_v33 = vpack.c.bf16 %v5393_v56, %v5385_v1  ;;  %v5384_v37 = vld [vmem:[%s14458_s9 + $0x90] sm:$0xff]  ;;  %v5399_v60 = vld [vmem:[%s14458_s9 + $0x108] sm:$0xff] }
 0x639   :  { %v4749_v17 = vadd.f32 %v13367_v6, %v4588_v61  ;;  %v4751_v62 = vadd.f32 %v13374_v27, %v4677_v0  ;;  %v5392_v59 = vld [vmem:[%s14458_s9 + $0xd0] sm:$0xff]  ;;  %v5407_v0 = vld [vmem:[%s14458_s9 + $0x148] sm:$0xff]  ;;  %v5430_v36 = vld [vmem:[%s14458_s9 + $0x200] sm:$0xff] }
 0x63a   :  { %v5438_v63 = vld [vmem:[%s14458_s9 + $0x240] sm:$0xff]  ;;  %v5447_v1 = vld [vmem:[%s14458_s9 + $0x288] sm:$0xff] }
 0x63b   :  { %v4592_v7 = vpop.f32.mrb[98].mxu0  ;;  %v4681_v20 = vpop.f32.mrb[98].mxu1  ;;  %5238 = vmatprep.mubr.f32.mxu1 %v4749_v17  ;;  %5323 = vmatprep.mubr.f32.mxu0 %v4751_v62  ;;  %v5401_v17 = vld [vmem:[%s14458_s9 + $0x118] sm:$0xff]  ;;  %v5455_v56 = vld [vmem:[%s14458_s9 + $0x2c8] sm:$0xff] }
 0x63c   :  { %v4594_v9 = vpop.f32.mrb[99].mxu0  ;;  %v4683_v3 = vpop.f32.mrb[99].mxu1  ;;  %5239 = vmatmul.mubr.f32.gmra.mrb[112].mxu1 %v4748_v48  ;;  %5324 = vmatmul.mubr.f32.gmra.mrb[116].mxu0 %v4750_v2  ;;  %v4756_v13 = vadd.f32 %v13363_v8, %v4592_v7  ;;  %v4758_v4 = vadd.f32 %v13387_v18, %v4681_v20  ;;  %v5513_v8 = vld [vmem:[%s14456_s10 + $0x70] sm:$0xff]  ;;  %v7002_v18 = vld [vmem:[%s14459_s1 + $0x60] sm:$0xff]  ;;  %v5409_v62 = vld [vmem:[%s14458_s9 + $0x158] sm:$0xff]  ;;  %v8941_v48 = vpack.c.bf16 %v5390_v57, %v5382_v50 }
 0x63d   :  { %v4757_v46 = vadd.f32 %v13367_v6, %v4594_v9  ;;  %v4759_v21 = vadd.f32 %v13374_v27, %v4683_v3  ;;  %v5505_v6 = vld [vmem:[%s14456_s10 + $0x30] sm:$0xff]  ;;  %v5367_v27 = vld [vmem:[%s14458_s9 + $0x8] sm:$0xff]  ;;  %v8973_v2 = vpack.c.bf16 %v5392_v59, %v5384_v37  ;;  %v5398_v7 = vld [vmem:[%s14458_s9 + $0x100] sm:$0xff]  ;;  %v8943_v9 = vpack.c.bf16 %v5407_v0, %v5399_v60 }
 0x63e   :  { %v8933_v25 = vpack.c.bf16 %v5513_v8, %v5505_v6  ;;  %v8935_v53 = vpack.c.bf16 %v5375_v15, %v5367_v27  ;;  %v5406_v20 = vld [vmem:[%s14458_s9 + $0x140] sm:$0xff]  ;;  %v8975_v3 = vpack.c.bf16 %v5409_v62, %v5401_v17  ;;  %v5425_v6 = vld [vmem:[%s14458_s9 + $0x1d8] sm:$0xff]  ;;  %v8953_v50 = vpack.c.bf16 %v5438_v63, %v5430_v36  ;;  %v5456_v60 = vld [vmem:[%s14458_s9 + $0x2d0] sm:$0xff] }
 0x63f   :  { %5243 = vmatprep.mubr.f32.mxu1 %v4757_v46  ;;  %5328 = vmatprep.mubr.f32.mxu0 %v4759_v21  ;;  %v5400_v46 = vld [vmem:[%s14458_s9 + $0x110] sm:$0xff]  ;;  %v8945_v8 = vpack.c.bf16 %v5406_v20, %v5398_v7  ;;  %v5414_v15 = vld [vmem:[%s14458_s9 + $0x180] sm:$0xff]  ;;  %v8955_v37 = vpack.c.bf16 %v5455_v56, %v5447_v1  ;;  %v5471_v0 = vld [vmem:[%s14458_s9 + $0x348] sm:$0xff] }
 0x640   :  { %5244 = vmatmul.mubr.f32.gmra.mrb[114].mxu1 %v4756_v13  ;;  %5329 = vmatmul.mubr.f32.gmra.mrb[118].mxu0 %v4758_v4  ;;  %v13448_v24 = vpop.f32.mrb[100].mxu0  ;;  %v5408_v21 = vld [vmem:[%s14458_s9 + $0x150] sm:$0xff]  ;;  %v5415_v13 = vld [vmem:[%s14458_s9 + $0x188] sm:$0xff]  ;;  %v8949_v42 = vpack.c.bf16 %v5422_v32, %v5414_v15  ;;  %v5465_v17 = vld [vmem:[%s14458_s9 + $0x318] sm:$0xff] }
 0x641   :  { %5591 = vmatprep.mubr.f32.mxu1 %v9334_v26  ;;  %5680 = vmatprep.mubr.f32.mxu0 %v9334_v26  ;;  %v13456_v47 = vpop.f32.mrb[101].mxu0  ;;  %v8977_v27 = vpack.c.bf16 %v5408_v21, %v5400_v46  ;;  %v8947_v38 = vpack.c.bf16 %v5423_v12, %v5415_v13  ;;  %v5473_v62 = vld [vmem:[%s14458_s9 + $0x358] sm:$0xff]  ;;  %v5464_v13 = vld [vmem:[%s14458_s9 + $0x310] sm:$0xff]  ;;  %v5479_v12 = vld [vmem:[%s14458_s9 + $0x388] sm:$0xff] }
 0x642   :  { %v8991_v21 = vpack.c.bf16 %v5473_v62, %v5465_v17  ;;  %v5478_v32 = vld [vmem:[%s14458_s9 + $0x380] sm:$0xff]  ;;  %v5372_v56 = vld [vmem:[%s14458_s9 + $0x30] sm:$0xff] }
 0x643   :  { %v5370_v63 = vld [vmem:[%s14458_s9 + $0x20] sm:$0xff] }
 0x644   :  { %7006 = vmatmul.mubr.msk.f32.vlgmr.msra.gmra.mrb[116].mxu1 %vm872_vm0, %v7002_v18  ;;  %7010 = vmatmul.mubr.msk.f32.vlgmr.msra.gmra.mrb[120].mxu0 %vm872_vm0, %v7002_v18  ;;  %v5378_v1 = vld [vmem:[%s14458_s9 + $0x60] sm:$0xff] }
 0x645   :  { %8930 = vmatpush1.bf16.msra.mxu1 %v8929_v45  ;;  %5597 = vmatprep.mubr.f32.mxu1 %v9334_v26  ;;  %v5416_v45 = vld [vmem:[%s14458_s9 + $0x190] sm:$0xff] }
 0x646   :  { %5686 = vmatprep.mubr.f32.mxu0 %v9334_v26  ;;  %8934 = vmatpush1.bf16.msra.mxu0 %v8933_v25  ;;  %v5424_v25 = vld [vmem:[%s14458_s9 + $0x1d0] sm:$0xff] }
 0x647   :  { %8936 = vmatprep.subr.bf16.mxu1 %v8935_v53  ;;  %8968 = vmatprep.subr.bf16.mxu0 %v8967_v22  ;;  %v5431_v53 = vld [vmem:[%s14458_s9 + $0x208] sm:$0xff]  ;;  %v8981_v52 = vpack.c.bf16 %v5424_v25, %v5416_v45  ;;  %v5480_v25 = vld [vmem:[%s14458_s9 + $0x390] sm:$0xff] }
 0x648   :  { %7007 = vmatmul.mubr.msk.f32.gmra.mrb[118].mxu1 %vm872_vm0, %v13454_v30  ;;  %7011 = vmatmul.mubr.msk.f32.gmra.mrb[122].mxu0 %vm872_vm0, %v13454_v30  ;;  %v5439_v22 = vld [vmem:[%s14458_s9 + $0x248] sm:$0xff] }
 0x649   :  { %5603 = vmatprep.mubr.f32.mxu1 %v9334_v26  ;;  %5692 = vmatprep.mubr.f32.mxu0 %v9334_v26  ;;  %v8951_v40 = vpack.c.bf16 %v5439_v22, %v5431_v53  ;;  %v5488_v53 = vld [vmem:[%s14458_s9 + $0x3d0] sm:$0xff]  ;;  %v5371_v22 = vld [vmem:[%s14458_s9 + $0x28] sm:$0xff] }
 0x64a   :  { %v8997_v36 = vpack.c.bf16 %v5488_v53, %v5480_v25  ;;  %v5426_v25 = vld [vmem:[%s14458_s9 + $0x1e0] sm:$0xff] }
 0x64b   :  { %v3797_v35 = vpop.permute.xlu0 %3796 }
 0x64c   :  { %3809 = vst.msk [vmem:[%s14466_s15] sm:$0xff] %vm3808_vm2, %v3797_v35  ;;  %7008 = vmatmul.mubr.msk.f32.gmra.mrb[120].mxu1 %vm872_vm0, %v13468_v34  ;;  %7012 = vmatmul.mubr.msk.f32.gmra.mrb[124].mxu0 %vm872_vm0, %v13468_v34  ;;  %v5441_v35 = vld [vmem:[%s14458_s9 + $0x258] sm:$0xff] }
 0x64d   :  { %5609 = vmatprep.mubr.f32.mxu1 %v9334_v26  ;;  %5698 = vmatprep.mubr.f32.mxu0 %v9334_v26 }
 0x64f   :  { %v3799_v54 = vpop.permute.xlu0 %3798 }
 0x650   :  { %3810 = vst.msk [vmem:[%s14466_s15 + $0x8] sm:$0xff] %vm3808_vm2, %v3799_v54  ;;  %7009 = vmatmul.mubr.msk.f32.gmra.mrb[122].mxu1 %vm872_vm0, %v13483_v10  ;;  %7013 = vmatmul.mubr.msk.f32.gmra.mrb[126].mxu0 %vm872_vm0, %v13483_v10 }
 0x651   :  { %5769 = vmatprep.mubr.f32.mxu1 %v9334_v26  ;;  %5858 = vmatprep.mubr.f32.mxu0 %v9334_v26 }
 0x653   :  { %v3801_v61 = vpop.permute.xlu1 %3800 }
 0x654   :  { %3811 = vst.msk [vmem:[%s14466_s15 + $0x10] sm:$0xff] %vm3808_vm2, %v3801_v61  ;;  %7014 = vmatmul.mubr.msk.f32.vlgmr.msra.gmra.mrb[124].mxu1 %vm872_vm0, %v7002_v18  ;;  %7018 = vmatmul.mubr.msk.f32.vlgmr.msra.gmra.mrb[128].mxu0 %vm872_vm0, %v7002_v18  ;;  %v8979_v18 = vpack.c.bf16 %v5425_v6, %v5417_v14  ;;  %v5463_v61 = vld [vmem:[%s14458_s9 + $0x308] sm:$0xff]  ;;  %v5481_v6 = vld [vmem:[%s14458_s9 + $0x398] sm:$0xff] }
 0x655   :  { %8938 = vmatpush1.bf16.msra.mxu1 %v8937_v11  ;;  %8970 = vmatpush1.bf16.msra.mxu0 %v8969_v49  ;;  %v5449_v11 = vld [vmem:[%s14458_s9 + $0x298] sm:$0xff]  ;;  %v8959_v46 = vpack.c.bf16 %v5471_v0, %v5463_v61  ;;  %v5487_v14 = vld [vmem:[%s14458_s9 + $0x3c8] sm:$0xff]  ;;  %v5388_v61 = vld [vmem:[%s14458_s9 + $0xb0] sm:$0xff] }
 0x656   :  { %8940 = vmatprep.subr.bf16.mxu1 %v8939_v58  ;;  %8972 = vmatprep.subr.bf16.mxu0 %v8971_v33  ;;  %v5457_v49 = vld [vmem:[%s14458_s9 + $0x2d8] sm:$0xff]  ;;  %v5446_v58 = vld [vmem:[%s14458_s9 + $0x280] sm:$0xff]  ;;  %v5396_v0 = vld [vmem:[%s14458_s9 + $0xf0] sm:$0xff] }
 0x657   :  { %v3803_v4 = vpop.permute.xlu1 %3802  ;;  %5775 = vmatprep.mubr.f32.mxu1 %v9334_v26  ;;  %5864 = vmatprep.mubr.f32.mxu0 %v9334_v26  ;;  %v5454_v33 = vld [vmem:[%s14458_s9 + $0x2c0] sm:$0xff]  ;;  %v8987_v59 = vpack.c.bf16 %v5457_v49, %v5449_v11  ;;  %v5380_v11 = vld [vmem:[%s14458_s9 + $0x70] sm:$0xff]  ;;  %v5387_v49 = vld [vmem:[%s14458_s9 + $0xa8] sm:$0xff] }
 0x658   :  { %3812 = vst.msk [vmem:[%s14466_s15 + $0x18] sm:$0xff] %vm3808_vm2, %v3803_v4  ;;  %7015 = vmatmul.mubr.msk.f32.gmra.mrb[126].mxu1 %vm872_vm0, %v13454_v30  ;;  %7019 = vmatmul.mubr.msk.f32.gmra.mrb[130].mxu0 %vm872_vm0, %v13454_v30  ;;  %v5433_v30 = vld [vmem:[%s14458_s9 + $0x218] sm:$0xff]  ;;  %v8957_v7 = vpack.c.bf16 %v5454_v33, %v5446_v58  ;;  %v5472_v4 = vld [vmem:[%s14458_s9 + $0x350] sm:$0xff]  ;;  %v9001_v33 = vpack.c.bf16 %v5378_v1, %v5370_v63  ;;  %v5442_v1 = vld [vmem:[%s14458_s9 + $0x260] sm:$0xff] }
 0x659   :  { %8942 = vmatpush1.bf16.msra.mxu1 %v8941_v48  ;;  %8974 = vmatpush1.bf16.msra.mxu0 %v8973_v2  ;;  %v8983_v54 = vpack.c.bf16 %v5441_v35, %v5433_v30  ;;  %v13669_v48 = vpop.f32.mrb[102].mxu0  ;;  %v8993_v15 = vpack.c.bf16 %v5472_v4, %v5464_v13  ;;  %v5379_v30 = vld [vmem:[%s14458_s9 + $0x68] sm:$0xff]  ;;  %v5373_v35 = vld [vmem:[%s14458_s9 + $0x38] sm:$0xff]  ;;  %v5410_v4 = vld [vmem:[%s14458_s9 + $0x160] sm:$0xff] }
 0x65a   :  { %8944 = vmatprep.subr.bf16.mxu1 %v8943_v9  ;;  %8976 = vmatprep.subr.bf16.mxu0 %v8975_v3  ;;  %v13671_v2 = vpop.f32.mrb[103].mxu0  ;;  %v5462_v9 = vld [vmem:[%s14458_s9 + $0x300] sm:$0xff]  ;;  %v5397_v58 = vld [vmem:[%s14458_s9 + $0xf8] sm:$0xff] }
 0x65b   :  { %5781 = vmatprep.mubr.f32.mxu1 %v9334_v26  ;;  %5870 = vmatprep.mubr.f32.mxu0 %v9334_v26  ;;  %v5470_v3 = vld [vmem:[%s14458_s9 + $0x340] sm:$0xff]  ;;  %v5445_v63 = vld [vmem:[%s14458_s9 + $0x278] sm:$0xff] }
 0x65c   :  { %7016 = vmatmul.mubr.msk.f32.gmra.mrb[128].mxu1 %vm872_vm0, %v13468_v34  ;;  %7020 = vmatmul.mubr.msk.f32.gmra.mrb[132].mxu0 %vm872_vm0, %v13468_v34  ;;  %v5432_v34 = vld [vmem:[%s14458_s9 + $0x210] sm:$0xff] }
 0x65d   :  { %8946 = vmatpush1.bf16.msra.mxu1 %v8945_v8  ;;  %8978 = vmatpush1.bf16.msra.mxu0 %v8977_v27  ;;  %v8985_v57 = vpack.c.bf16 %v5440_v55, %v5432_v34  ;;  %v5489_v8 = vld [vmem:[%s14458_s9 + $0x3d8] sm:$0xff]  ;;  %v8961_v27 = vpack.c.bf16 %v5470_v3, %v5462_v9  ;;  %v8999_v34 = vpack.c.bf16 %v5379_v30, %v5371_v22  ;;  %v5420_v22 = vld [vmem:[%s14458_s9 + $0x1b0] sm:$0xff] }
 0x65e   :  { %8948 = vmatprep.subr.bf16.mxu1 %v8947_v38  ;;  %8980 = vmatprep.subr.bf16.mxu0 %v8979_v18  ;;  %v5486_v38 = vld [vmem:[%s14458_s9 + $0x3c0] sm:$0xff]  ;;  %v8963_v18 = vpack.c.bf16 %v5487_v14, %v5479_v12  ;;  %v8995_v45 = vpack.c.bf16 %v5489_v8, %v5481_v6  ;;  %v5413_v9 = vld [vmem:[%s14458_s9 + $0x178] sm:$0xff]  ;;  %v5404_v12 = vld [vmem:[%s14458_s9 + $0x130] sm:$0xff] }
 0x65f   :  { %5787 = vmatprep.mubr.f32.mxu1 %v9334_v26  ;;  %5876 = vmatprep.mubr.f32.mxu0 %v9334_v26  ;;  %v5412_v14 = vld [vmem:[%s14458_s9 + $0x170] sm:$0xff]  ;;  %v5419_v8 = vld [vmem:[%s14458_s9 + $0x1a8] sm:$0xff] }
 0x660   :  { %7017 = vmatmul.mubr.msk.f32.gmra.mrb[130].mxu1 %vm872_vm0, %v13483_v10  ;;  %7021 = vmatmul.mubr.msk.f32.gmra.mrb[134].mxu0 %vm872_vm0, %v13483_v10  ;;  %v5448_v10 = vld [vmem:[%s14458_s9 + $0x290] sm:$0xff] }
 0x661   :  { %8950 = vmatpush1.bf16.msra.mxu1 %v8949_v42  ;;  %8982 = vmatpush1.bf16.msra.mxu0 %v8981_v52  ;;  %v8989_v20 = vpack.c.bf16 %v5456_v60, %v5448_v10  ;;  %v5381_v42 = vld [vmem:[%s14458_s9 + $0x78] sm:$0xff]  ;;  %v8965_v52 = vpack.c.bf16 %v5486_v38, %v5478_v32  ;;  %v5394_v60 = vld [vmem:[%s14458_s9 + $0xe0] sm:$0xff]  ;;  %v5428_v30 = vld [vmem:[%s14458_s9 + $0x1f0] sm:$0xff] }
 0x662   :  { %8952 = vmatprep.subr.bf16.mxu1 %v8951_v40  ;;  %8984 = vmatprep.subr.bf16.mxu0 %v8983_v54  ;;  %v9333_v40 = vld [vmem:[%s14460_s8] sm:$0xf]  ;;  %v9031_v55 = vpack.c.bf16 %v5381_v42, %v5373_v35  ;;  %v5429_v32 = vld [vmem:[%s14458_s9 + $0x1f8] sm:$0xff]  ;;  %v5435_v35 = vld [vmem:[%s14458_s9 + $0x228] sm:$0xff]  ;;  %s9337_s8 = smov 48  }
 0x663   :  { %5947 = vmatprep.mubr.f32.mxu1 %v9334_v26  ;;  %6036 = vmatprep.mubr.f32.mxu0 %v9334_v26  ;;  %v13728_v54 = vrot.slane %v9333_v40, %v11028_v43 }
 0x665   :  { %8954 = vmatpush1.bf16.msra.mxu1 %v8953_v50  ;;  %8986 = vmatpush1.bf16.msra.mxu0 %v8985_v57  ;;  %v5395_v50 = vld [vmem:[%s14458_s9 + $0xe8] sm:$0xff]  ;;  %v5389_v57 = vld [vmem:[%s14458_s9 + $0xb8] sm:$0xff]  ;;  %v13756_v10 = vadd.f32 %v10578_v28, %v13728_v54  ;;  %v13786_v13 = vadd.f32 %v10624_v51, %v13728_v54  ;;  %v13821_v53 = vadd.f32 %v10664_v5, %v13728_v54 }
 0x666   :  { %8956 = vmatprep.subr.bf16.mxu1 %v8955_v37  ;;  %8988 = vmatprep.subr.bf16.mxu0 %v8987_v59  ;;  %v9033_v37 = vpack.c.bf16 %v5380_v11, %v5372_v56  ;;  %v5386_v59 = vld [vmem:[%s14458_s9 + $0xa0] sm:$0xff]  ;;  %v9003_v17 = vpack.c.bf16 %v5395_v50, %v5387_v49  ;;  %v9035_v62 = vpack.c.bf16 %v5397_v58, %v5389_v57  ;;  %v5403_v28 = vld [vmem:[%s14458_s9 + $0x128] sm:$0xff]  ;;  %v5436_v50 = vld [vmem:[%s14458_s9 + $0x230] sm:$0xff] }
 0x667   :  { %v9005_v3 = vpack.c.bf16 %v5394_v60, %v5386_v59  ;;  %v13853_v56 = vadd.f32 %v10701_v29, %v13728_v54  ;;  %v5444_v57 = vld [vmem:[%s14458_s9 + $0x270] sm:$0xff]  ;;  %v5451_v58 = vld [vmem:[%s14458_s9 + $0x2a8] sm:$0xff]  ;;  %v5453_v54 = vld [vmem:[%s14458_s9 + $0x2b8] sm:$0xff] }
 0x668   :  { %v5459_v29 = vld [vmem:[%s14458_s9 + $0x2e8] sm:$0xff]  ;;  %v9049_v59 = vpack.c.bf16 %v5444_v57, %v5436_v50  ;;  %v5450_v60 = vld [vmem:[%s14458_s9 + $0x2a0] sm:$0xff] }
 0x669   :  { %8958 = vmatpush1.bf16.msra.mxu1 %v8957_v7  ;;  %8990 = vmatpush1.bf16.msra.mxu0 %v8989_v20  ;;  %v5411_v7 = vld [vmem:[%s14458_s9 + $0x168] sm:$0xff]  ;;  %v5405_v20 = vld [vmem:[%s14458_s9 + $0x138] sm:$0xff]  ;;  %v6313_v57 = vld [vmem:[%s14462_s12] sm:$0xff] }
 0x66a   :  { %8960 = vmatprep.subr.bf16.mxu1 %v8959_v46  ;;  %8992 = vmatprep.subr.bf16.mxu0 %v8991_v21  ;;  %v9037_v46 = vpack.c.bf16 %v5396_v0, %v5388_v61  ;;  %v5402_v21 = vld [vmem:[%s14458_s9 + $0x120] sm:$0xff]  ;;  %v9007_v51 = vpack.c.bf16 %v5411_v7, %v5403_v28  ;;  %v9039_v6 = vpack.c.bf16 %v5413_v9, %v5405_v20  ;;  %v5460_v28 = vld [vmem:[%s14458_s9 + $0x2f0] sm:$0xff]  ;;  %v5467_v7 = vld [vmem:[%s14458_s9 + $0x328] sm:$0xff] }
 0x66b   :  { %v9009_v38 = vpack.c.bf16 %v5410_v4, %v5402_v21  ;;  %v5458_v61 = vld [vmem:[%s14458_s9 + $0x2e0] sm:$0xff]  ;;  %v9019_v0 = vpack.c.bf16 %v5459_v29, %v5451_v58  ;;  %v5475_v20 = vld [vmem:[%s14458_s9 + $0x368] sm:$0xff]  ;;  %v5469_v9 = vld [vmem:[%s14458_s9 + $0x338] sm:$0xff] }
 0x66c   :  { %v5466_v4 = vld [vmem:[%s14458_s9 + $0x320] sm:$0xff]  ;;  %v6362_v50 = vld [vmem:[%s14462_s12 + $0x188] sm:$0xff] }
 0x66d   :  { %8962 = vmatpush1.bf16.msra.mxu1 %v8961_v27  ;;  %8994 = vmatpush1.bf16.msra.mxu0 %v8993_v15  ;;  %v5427_v27 = vld [vmem:[%s14458_s9 + $0x1e8] sm:$0xff]  ;;  %v5421_v15 = vld [vmem:[%s14458_s9 + $0x1b8] sm:$0xff] }
 0x66e   :  { %8964 = vmatprep.subr.bf16.mxu1 %v8963_v18  ;;  %8996 = vmatprep.subr.bf16.mxu0 %v8995_v45  ;;  %v9041_v18 = vpack.c.bf16 %v5412_v14, %v5404_v12  ;;  %v5418_v45 = vld [vmem:[%s14458_s9 + $0x1a0] sm:$0xff]  ;;  %v9011_v5 = vpack.c.bf16 %v5427_v27, %v5419_v8  ;;  %v9043_v42 = vpack.c.bf16 %v5429_v32, %v5421_v15  ;;  %v5476_v8 = vld [vmem:[%s14458_s9 + $0x370] sm:$0xff]  ;;  %v5483_v27 = vld [vmem:[%s14458_s9 + $0x3a8] sm:$0xff] }
 0x66f   :  { %v9013_v40 = vpack.c.bf16 %v5426_v25, %v5418_v45  ;;  %v5474_v12 = vld [vmem:[%s14458_s9 + $0x360] sm:$0xff]  ;;  %v9023_v14 = vpack.c.bf16 %v5475_v20, %v5467_v7  ;;  %v5491_v15 = vld [vmem:[%s14458_s9 + $0x3e8] sm:$0xff]  ;;  %v5485_v32 = vld [vmem:[%s14458_s9 + $0x3b8] sm:$0xff] }
 0x670   :  { %v5482_v25 = vld [vmem:[%s14458_s9 + $0x3a0] sm:$0xff]  ;;  %v6314_v58 = vld [vmem:[%s14462_s12 + $0x8] sm:$0xff] }
 0x671   :  { %8966 = vmatpush1.bf16.msra.mxu1 %v8965_v52  ;;  %8998 = vmatpush1.bf16.msra.mxu0 %v8997_v36  ;;  %v5443_v52 = vld [vmem:[%s14458_s9 + $0x268] sm:$0xff]  ;;  %v5437_v36 = vld [vmem:[%s14458_s9 + $0x238] sm:$0xff]  ;;  %v9073_v29 = vpack.c.bf16 %v6314_v58, %v6313_v57  ;;  %v6333_v7 = vld [vmem:[%s14462_s12 + $0xa0] sm:$0xff] }
 0x672   :  { %9000 = vmatprep.subr.bf16.mxu1 %v8999_v34  ;;  %9032 = vmatprep.subr.bf16.mxu0 %v9031_v55  ;;  %v9045_v34 = vpack.c.bf16 %v5428_v30, %v5420_v22  ;;  %v5434_v55 = vld [vmem:[%s14458_s9 + $0x220] sm:$0xff]  ;;  %v9015_v11 = vpack.c.bf16 %v5443_v52, %v5435_v35  ;;  %v9047_v49 = vpack.c.bf16 %v5445_v63, %v5437_v36  ;;  %v6448_v63 = vld [vmem:[%s14461_s13 + $0x10] sm:$0xff]  ;;  %v6334_v20 = vld [vmem:[%s14462_s12 + $0xa8] sm:$0xff] }
 0x673   :  { %v9027_v22 = vpack.c.bf16 %v5491_v15, %v5483_v27  ;;  %v5490_v35 = vld [vmem:[%s14458_s9 + $0x3e0] sm:$0xff]  ;;  %v6335_v27 = vld [vmem:[%s14462_s12 + $0xb0] sm:$0xff]  ;;  %v6336_v15 = vld [vmem:[%s14462_s12 + $0xb8] sm:$0xff] }
 0x674   :  { %5948 = vmatmul.mubr.f32.vlgmr.msra.gmra.mrb[116].mxu1 %v13756_v10  ;;  %6037 = vmatmul.mubr.f32.vlgmr.msra.gmra.mrb[120].mxu0 %v13756_v10  ;;  %v9029_v52 = vpack.c.bf16 %v5490_v35, %v5482_v25  ;;  %v6337_v25 = vld [vmem:[%s14462_s12 + $0xc0] sm:$0xff]  ;;  %v6370_v57 = vld [vmem:[%s14462_s12 + $0x1c8] sm:$0xff] }
 0x675   :  { %9002 = vmatpush1.bf16.msra.mxu1 %v9001_v33  ;;  %9034 = vmatpush1.bf16.msra.mxu0 %v9033_v37  ;;  %v5461_v33 = vld [vmem:[%s14458_s9 + $0x2f8] sm:$0xff]  ;;  %v9017_v37 = vpack.c.bf16 %v5442_v1, %v5434_v55  ;;  %v6330_v1 = vld [vmem:[%s14462_s12 + $0x88] sm:$0xff] }
 0x676   :  { %5953 = vmatprep.mubr.f32.mxu1 %v9334_v26  ;;  %6042 = vmatprep.mubr.f32.mxu0 %v9334_v26 }
 0x677   :  { %9004 = vmatprep.subr.bf16.mxu1 %v9003_v17  ;;  %9036 = vmatprep.subr.bf16.mxu0 %v9035_v62  ;;  %v9051_v17 = vpack.c.bf16 %v5461_v33, %v5453_v54  ;;  %v5452_v62 = vld [vmem:[%s14458_s9 + $0x2b0] sm:$0xff]  ;;  %v6345_v54 = vld [vmem:[%s14462_s12 + $0x100] sm:$0xff]  ;;  %v6346_v33 = vld [vmem:[%s14462_s12 + $0x108] sm:$0xff] }
 0x678   :  { %5954 = vmatmul.mubr.f32.gmra.mrb[118].mxu1 %v13786_v13  ;;  %6043 = vmatmul.mubr.f32.gmra.mrb[122].mxu0 %v13786_v13  ;;  %v9053_v21 = vpack.c.bf16 %v5460_v28, %v5452_v62  ;;  %v6364_v62 = vld [vmem:[%s14462_s12 + $0x198] sm:$0xff] }
 0x679   :  { %9006 = vmatpush1.bf16.msra.mxu1 %v9005_v3  ;;  %9038 = vmatpush1.bf16.msra.mxu0 %v9037_v46  ;;  %v5477_v3 = vld [vmem:[%s14458_s9 + $0x378] sm:$0xff]  ;;  %v9021_v46 = vpack.c.bf16 %v5458_v61, %v5450_v60  ;;  %v6363_v61 = vld [vmem:[%s14462_s12 + $0x190] sm:$0xff] }
 0x67a   :  { %5959 = vmatprep.mubr.f32.mxu1 %v9334_v26  ;;  %6048 = vmatprep.mubr.f32.mxu0 %v9334_v26 }
 0x67b   :  { %9008 = vmatprep.subr.bf16.mxu1 %v9007_v51  ;;  %9040 = vmatprep.subr.bf16.mxu0 %v9039_v6  ;;  %v9055_v51 = vpack.c.bf16 %v5477_v3, %v5469_v9  ;;  %v5468_v6 = vld [vmem:[%s14458_s9 + $0x330] sm:$0xff]  ;;  %v7023_v9 = vld [vmem:[%s14463_s2 + $0x68] sm:$0xff]  ;;  %v9079_v3 = vpack.c.bf16 %v6334_v20, %v6333_v7  ;;  %v6325_v7 = vld [vmem:[%s14462_s12 + $0x60] sm:$0xff] }
 0x67c   :  { %5960 = vmatmul.mubr.f32.gmra.mrb[120].mxu1 %v13821_v53  ;;  %6049 = vmatmul.mubr.f32.gmra.mrb[124].mxu0 %v13821_v53  ;;  %v9057_v45 = vpack.c.bf16 %v5476_v8, %v5468_v6  ;;  %v6365_v6 = vld [vmem:[%s14462_s12 + $0x1a0] sm:$0xff]  ;;  %v6326_v20 = vld [vmem:[%s14462_s12 + $0x68] sm:$0xff] }
 0x67d   :  { %9010 = vmatpush1.bf16.msra.mxu1 %v9009_v38  ;;  %9042 = vmatpush1.bf16.msra.mxu0 %v9041_v18  ;;  %v5493_v38 = vld [vmem:[%s14458_s9 + $0x3f8] sm:$0xff]  ;;  %v9025_v18 = vpack.c.bf16 %v5474_v12, %v5466_v4  ;;  %v6347_v4 = vld [vmem:[%s14462_s12 + $0x110] sm:$0xff] }
 0x67e   :  { %5965 = vmatprep.mubr.f32.mxu1 %v9334_v26  ;;  %6054 = vmatprep.mubr.f32.mxu0 %v9334_v26  ;;  %v9059_v30 = vpack.c.bf16 %v5493_v38, %v5485_v32  ;;  %v6348_v12 = vld [vmem:[%s14462_s12 + $0x118] sm:$0xff]  ;;  %v6366_v32 = vld [vmem:[%s14462_s12 + $0x1a8] sm:$0xff]  ;;  %v9083_v38 = vpack.c.bf16 %v6336_v15, %v6335_v27 }
 0x67f   :  { %9012 = vmatprep.subr.bf16.mxu1 %v9011_v5  ;;  %9044 = vmatprep.subr.bf16.mxu0 %v9043_v42  ;;  %v5484_v5 = vld [vmem:[%s14458_s9 + $0x3b0] sm:$0xff]  ;;  %v9111_v35 = vpack.c.bf16 %v6366_v32, %v6365_v6  ;;  %v6358_v27 = vld [vmem:[%s14462_s12 + $0x168] sm:$0xff] }
 0x680   :  { %5966 = vmatmul.mubr.f32.gmra.mrb[122].mxu1 %v13853_v56  ;;  %6055 = vmatmul.mubr.f32.gmra.mrb[126].mxu0 %v13853_v56  ;;  %v5492_v42 = vld [vmem:[%s14458_s9 + $0x3f0] sm:$0xff] }
 0x681   :  { %9014 = vmatpush1.bf16.msra.mxu1 %v9013_v40  ;;  %9046 = vmatpush1.bf16.msra.mxu0 %v9045_v34  ;;  %v9061_v36 = vpack.c.bf16 %v5492_v42, %v5484_v5  ;;  %v6329_v34 = vld [vmem:[%s14462_s12 + $0x80] sm:$0xff]  ;;  %v6350_v42 = vld [vmem:[%s14462_s12 + $0x128] sm:$0xff]  ;;  %v6343_v32 = vld [vmem:[%s14462_s12 + $0xf0] sm:$0xff] }
 0x682   :  { %9016 = vmatprep.subr.bf16.mxu1 %v9015_v11  ;;  %9048 = vmatprep.subr.bf16.mxu0 %v9047_v49  ;;  %v6361_v11 = vld [vmem:[%s14462_s12 + $0x180] sm:$0xff]  ;;  %v9071_v49 = vpack.c.bf16 %v6330_v1, %v6329_v34  ;;  %v6351_v1 = vld [vmem:[%s14462_s12 + $0x130] sm:$0xff] }
 0x683   :  { %6125 = vmatprep.mubr.f32.mxu1 %v9334_v26  ;;  %6214 = vmatprep.mubr.f32.mxu0 %v9334_v26  ;;  %v6349_v5 = vld [vmem:[%s14462_s12 + $0x120] sm:$0xff] }
 0x684   :  { %v9113_v34 = vpack.c.bf16 %v6350_v42, %v6349_v5  ;;  %v6327_v5 = vld [vmem:[%s14462_s12 + $0x70] sm:$0xff]  ;;  %v6328_v42 = vld [vmem:[%s14462_s12 + $0x78] sm:$0xff] }
 0x685   :  { %9018 = vmatpush1.bf16.msra.mxu1 %v9017_v37  ;;  %9050 = vmatpush1.bf16.msra.mxu0 %v9049_v59  ;;  %v6332_v37 = vld [vmem:[%s14462_s12 + $0x98] sm:$0xff]  ;;  %v9103_v59 = vpack.c.bf16 %v6362_v50, %v6361_v11 }
 0x686   :  { %9020 = vmatprep.subr.bf16.mxu1 %v9019_v0  ;;  %9052 = vmatprep.subr.bf16.mxu0 %v9051_v17  ;;  %v6315_v0 = vld [vmem:[%s14462_s12 + $0x10] sm:$0xff]  ;;  %v6316_v17 = vld [vmem:[%s14462_s12 + $0x18] sm:$0xff] }
 0x687   :  { %v9077_v28 = vpack.c.bf16 %v6316_v17, %v6315_v0  ;;  %v6352_v11 = vld [vmem:[%s14462_s12 + $0x138] sm:$0xff]  ;;  %v6371_v0 = vld [vmem:[%s14462_s12 + $0x1d0] sm:$0xff] }
 0x689   :  { %9022 = vmatpush1.bf16.msra.mxu1 %v9021_v46  ;;  %9054 = vmatpush1.bf16.msra.mxu0 %v9053_v21  ;;  %v6317_v46 = vld [vmem:[%s14462_s12 + $0x20] sm:$0xff]  ;;  %v9105_v21 = vpack.c.bf16 %v6346_v33, %v6345_v54  ;;  %v6342_v33 = vld [vmem:[%s14462_s12 + $0xe8] sm:$0xff] }
 0x68a   :  { %9024 = vmatprep.subr.bf16.mxu1 %v9023_v14  ;;  %9056 = vmatprep.subr.bf16.mxu0 %v9055_v51  ;;  %v6318_v14 = vld [vmem:[%s14462_s12 + $0x28] sm:$0xff]  ;;  %v9107_v51 = vpack.c.bf16 %v6364_v62, %v6363_v61  ;;  %v6341_v54 = vld [vmem:[%s14462_s12 + $0xe0] sm:$0xff]  ;;  %v6372_v62 = vld [vmem:[%s14462_s12 + $0x1d8] sm:$0xff] }
 0x68b   :  { %v9081_v8 = vpack.c.bf16 %v6318_v14, %v6317_v46  ;;  %v6354_v61 = vld [vmem:[%s14462_s12 + $0x148] sm:$0xff]  ;;  %v6355_v46 = vld [vmem:[%s14462_s12 + $0x150] sm:$0xff] }
 0x68c   :  { %v6374_v14 = vld [vmem:[%s14462_s12 + $0x1e8] sm:$0xff] }
 0x68d   :  { %9026 = vmatpush1.bf16.msra.mxu1 %v9025_v18  ;;  %9058 = vmatpush1.bf16.msra.mxu0 %v9057_v45  ;;  %v6319_v18 = vld [vmem:[%s14462_s12 + $0x30] sm:$0xff]  ;;  %v6320_v45 = vld [vmem:[%s14462_s12 + $0x38] sm:$0xff] }
 0x68e   :  { %9028 = vmatprep.subr.bf16.mxu1 %v9027_v22  ;;  %9060 = vmatprep.subr.bf16.mxu0 %v9059_v30  ;;  %v9109_v22 = vpack.c.bf16 %v6348_v12, %v6347_v4  ;;  %v6338_v30 = vld [vmem:[%s14462_s12 + $0xc8] sm:$0xff]  ;;  %v9097_v4 = vpack.c.bf16 %v6326_v20, %v6325_v7  ;;  %v6373_v12 = vld [vmem:[%s14462_s12 + $0x1e0] sm:$0xff] }
 0x68f   :  { %v9127_v6 = vpack.c.bf16 %v6374_v14, %v6373_v12 }
 0x691   :  { %9030 = vmatpush1.bf16.msra.mxu1 %v9029_v52  ;;  %9062 = vmatpush1.bf16.msra.mxu0 %v9061_v36  ;;  %v6367_v52 = vld [vmem:[%s14462_s12 + $0x1b0] sm:$0xff]  ;;  %v9085_v36 = vpack.c.bf16 %v6320_v45, %v6319_v18 }
 0x692   :  { %9072 = vmatprep.subr.bf16.mxu0 %v9071_v49  ;;  %v6369_v49 = vld [vmem:[%s14462_s12 + $0x1c0] sm:$0xff]  ;;  %v7024_v18 = vld [vmem:[%s14463_s2 + $0x70] sm:$0xff] }
 0x694   :  { %6126 = vmatmul.mubr.f32.vlgmr.msra.gmra.mrb[124].mxu1 %v13756_v10  ;;  %6215 = vmatmul.mubr.f32.vlgmr.msra.gmra.mrb[128].mxu0 %v13756_v10  ;;  %v6446_v10 = vld [vmem:[%s14461_s13] sm:$0xff] }
 0x695   :  { %6131 = vmatprep.mubr.f32.mxu1 %v9334_v26  ;;  %6220 = vmatprep.mubr.f32.mxu0 %v9334_v26 }
 0x696   :  { %9074 = vmatpush3.bf16.msra.mxu0 %v9073_v29  ;;  %v6323_v29 = vld [vmem:[%s14462_s12 + $0x50] sm:$0xff] }
 0x698   :  { %6132 = vmatmul.mubr.f32.gmra.mrb[126].mxu1 %v13786_v13  ;;  %6221 = vmatmul.mubr.f32.gmra.mrb[130].mxu0 %v13786_v13  ;;  %v6447_v13 = vld [vmem:[%s14461_s13 + $0x8] sm:$0xff] }
 0x699   :  { %6137 = vmatprep.mubr.f32.mxu1 %v9334_v26  ;;  %6226 = vmatprep.mubr.f32.mxu0 %v9334_v26  ;;  %v9063_v40 = vpack.c.bf16 %v6447_v13, %v6446_v10  ;;  %v6368_v10 = vld [vmem:[%s14462_s12 + $0x1b8] sm:$0xff]  ;;  %v9087_v13 = vpack.c.bf16 %v6338_v30, %v6337_v25  ;;  %v6375_v25 = vld [vmem:[%s14462_s12 + $0x1f0] sm:$0xff] }
 0x69a   :  { %v7025_v30 = vld [vmem:[%s14463_s2 + $0x78] sm:$0xff] }
 0x69b   :  { %9064 = vmatprep.subr.bf16.mxu1 %v9063_v40 }
 0x69c   :  { %6138 = vmatmul.mubr.f32.gmra.mrb[128].mxu1 %v13821_v53  ;;  %6227 = vmatmul.mubr.f32.gmra.mrb[132].mxu0 %v13821_v53  ;;  %v6449_v53 = vld [vmem:[%s14461_s13 + $0x18] sm:$0xff] }
 0x69d   :  { %6143 = vmatprep.mubr.f32.mxu1 %v9334_v26  ;;  %6232 = vmatprep.mubr.f32.mxu0 %v9334_v26  ;;  %v7022_v26 = vld [vmem:[%s14463_s2 + $0x60] sm:$0xff]  ;;  %v9067_v55 = vpack.c.bf16 %v6449_v53, %v6448_v63  ;;  %v6339_v53 = vld [vmem:[%s14462_s12 + $0xd0] sm:$0xff] }
 0x69e   :  { %9066 = vmatpush3.bf16.msra.mxu1 %v9063_v40  ;;  %v6321_v63 = vld [vmem:[%s14462_s12 + $0x40] sm:$0xff]  ;;  %v6322_v40 = vld [vmem:[%s14462_s12 + $0x48] sm:$0xff] }
 0x69f   :  { %9068 = vmatprep.subr.bf16.mxu1 %v9067_v55  ;;  %v9089_v50 = vpack.c.bf16 %v6322_v40, %v6321_v63  ;;  %v6393_v63 = vld [vmem:[%s14462_s12 + $0x280] sm:$0xff]  ;;  %v6394_v40 = vld [vmem:[%s14462_s12 + $0x288] sm:$0xff] }
 0x6a0   :  { %6144 = vmatmul.mubr.f32.gmra.mrb[130].mxu1 %v13853_v56  ;;  %6233 = vmatmul.mubr.f32.gmra.mrb[134].mxu0 %v13853_v56  ;;  %v6331_v56 = vld [vmem:[%s14462_s12 + $0x90] sm:$0xff] }
 0x6a1   :  { %7817 = vmatprep.mubr.msk.f32.mxu1 %vm1807_vm1, %v7022_v26  ;;  %v9075_v60 = vpack.c.bf16 %v6332_v37, %v6331_v56  ;;  %v6340_v26 = vld [vmem:[%s14462_s12 + $0xd8] sm:$0xff]  ;;  %v9117_v37 = vpack.c.bf16 %v6352_v11, %v6351_v1 }
 0x6a2   :  { %9070 = vmatpush3.bf16.msra.mxu1 %v9067_v55  ;;  %v9115_v55 = vpack.c.bf16 %v6368_v10, %v6367_v52  ;;  %v9091_v58 = vpack.c.bf16 %v6340_v26, %v6339_v53  ;;  %v6324_v56 = vld [vmem:[%s14462_s12 + $0x58] sm:$0xff]  ;;  %v9101_v52 = vpack.c.bf16 %v6328_v42, %v6327_v5  ;;  %v6425_v53 = vld [vmem:[%s14462_s12 + $0x380] sm:$0xff]  ;;  %v9135_v26 = vpack.c.bf16 %v6394_v40, %v6393_v63 }
 0x6a3   :  { %9076 = vmatprep.subr.bf16.mxu0 %v9075_v60  ;;  %9104 = vmatprep.subr.bf16.mxu1 %v9103_v59  ;;  %v9119_v59 = vpack.c.bf16 %v6370_v57, %v6369_v49  ;;  %v6353_v60 = vld [vmem:[%s14462_s12 + $0x140] sm:$0xff]  ;;  %v9093_v17 = vpack.c.bf16 %v6324_v56, %v6323_v29  ;;  %v6360_v10 = vld [vmem:[%s14462_s12 + $0x178] sm:$0xff] }
 0x6a4   :  { %9078 = vmatpush3.bf16.msra.mxu0 %v9077_v28  ;;  %v9095_v28 = vpack.c.bf16 %v6342_v33, %v6341_v54  ;;  %v14192_v5 = vld [vmem:[%s14465_s14] ss:$0 sm:$0xff] }
 0x6a5   :  { %9080 = vmatprep.subr.bf16.mxu0 %v9079_v3  ;;  %7818 = vmatmul.mubr.msk.f32.vlgmr.msra.gmra.mrb[132].mxu1 %vm1807_vm1, %v7023_v9  ;;  %v9121_v9 = vpack.c.bf16 %v6354_v61, %v6353_v60  ;;  %v9123_v3 = vpack.c.bf16 %v6372_v62, %v6371_v0 }
 0x6a6   :  { %9106 = vmatpush3.bf16.msra.mxu1 %v9105_v21  ;;  %v6356_v21 = vld [vmem:[%s14462_s12 + $0x158] sm:$0xff]  ;;  %7820 = vmatprep.mubr.msk.f32.mxu1 %vm1807_vm1, %v7024_v18 }
 0x6a7   :  { %9108 = vmatprep.subr.bf16.mxu1 %v9107_v51  ;;  %v9125_v51 = vpack.c.bf16 %v6356_v21, %v6355_v46 }
 0x6a8   :  { %9082 = vmatpush3.bf16.msra.mxu0 %v9081_v8  ;;  %v6357_v8 = vld [vmem:[%s14462_s12 + $0x160] sm:$0xff] }
 0x6a9   :  { %9084 = vmatprep.subr.bf16.mxu0 %v9083_v38  ;;  %v9129_v15 = vpack.c.bf16 %v6358_v27, %v6357_v8  ;;  %v6344_v38 = vld [vmem:[%s14462_s12 + $0xf8] sm:$0xff]  ;;  %7821 = vmatmul.mubr.msk.f32.gmra.mrb[134].mxu1 %vm1807_vm1, %v7025_v30 }
 0x6aa   :  { %9110 = vmatpush3.bf16.msra.mxu1 %v9109_v22  ;;  %v9099_v45 = vpack.c.bf16 %v6344_v38, %v6343_v32  ;;  %v6376_v22 = vld [vmem:[%s14462_s12 + $0x1f8] sm:$0xff] }
 0x6ab   :  { %9112 = vmatprep.subr.bf16.mxu1 %v9111_v35  ;;  %v9131_v35 = vpack.c.bf16 %v6376_v22, %v6375_v25 }
 0x6ac   :  { %9086 = vmatpush3.bf16.msra.mxu0 %v9085_v36  ;;  %v6359_v36 = vld [vmem:[%s14462_s12 + $0x170] sm:$0xff] }
 0x6ad   :  { %9088 = vmatprep.subr.bf16.mxu0 %v9087_v13  ;;  %v9133_v13 = vpack.c.bf16 %v6360_v10, %v6359_v36 }
 0x6ae   :  { %9114 = vmatpush3.bf16.msra.mxu1 %v9113_v34  ;;  %v6426_v34 = vld [vmem:[%s14462_s12 + $0x388] sm:$0xff] }
 0x6af   :  { %9116 = vmatprep.subr.bf16.mxu1 %v9115_v55  ;;  %v9167_v55 = vpack.c.bf16 %v6426_v34, %v6425_v53 }
 0x6b0   :  { %9090 = vmatpush3.bf16.msra.mxu0 %v9089_v50 }
 0x6b1   :  { %9092 = vmatprep.subr.bf16.mxu0 %v9091_v58 }
 0x6b2   :  { %9118 = vmatpush3.bf16.msra.mxu1 %v9117_v37 }
 0x6b3   :  { %9120 = vmatprep.subr.bf16.mxu1 %v9119_v59 }
 0x6b4   :  { %9094 = vmatpush3.bf16.msra.mxu0 %v9093_v17 }
 0x6b5   :  { %9096 = vmatprep.subr.bf16.mxu0 %v9095_v28 }
 0x6b6   :  { %9122 = vmatpush3.bf16.msra.mxu1 %v9121_v9 }
 0x6b7   :  { %9124 = vmatprep.subr.bf16.mxu1 %v9123_v3 }
 0x6b8   :  { %9098 = vmatpush3.bf16.msra.mxu0 %v9097_v4 }
 0x6b9   :  { %9100 = vmatprep.subr.bf16.mxu0 %v9099_v45 }
 0x6ba   :  { %9126 = vmatpush3.bf16.msra.mxu1 %v9125_v51 }
 0x6bb   :  { %9128 = vmatprep.subr.bf16.mxu1 %v9127_v6 }
 0x6bc   :  { %9102 = vmatpush3.bf16.msra.mxu0 %v9101_v52 }
 0x6bd   :  { %9136 = vmatprep.subr.bf16.mxu0 %v9135_v26 }
 0x6be   :  { %9130 = vmatpush3.bf16.msra.mxu1 %v9129_v15 }
 0x6bf   :  { %9132 = vmatprep.subr.bf16.mxu1 %v9131_v35 }
 0x6c2   :  { %9134 = vmatpush3.bf16.msra.mxu1 %v9133_v13 }
 0x6c3   :  { %9168 = vmatprep.subr.bf16.mxu1 %v9167_v55 }
 0x6e7   :  { %v7439_v1 = vpop.f32.mrb[100].mxu1  ;;  %v7483_v11 = vpop.f32.mrb[104].mxu0 }
 0x6e8   :  { %v7440_v49 = vpop.f32.mrb[101].mxu1  ;;  %v7484_v50 = vpop.f32.mrb[105].mxu0 }
 0x6e9   :  { %v7441_v57 = vadd.f32 %v7440_v49, %v7439_v1  ;;  %v7485_v58 = vadd.f32 %v7484_v50, %v7483_v11 }
 0x6eb   :  { %v5061_v29 = vadd.f32 %v7441_v57, %v13456_v47  ;;  %v7442_v56 = vpop.f32.mrb[102].mxu1  ;;  %v7486_v54 = vpop.f32.mrb[106].mxu0 }
 0x6ec   :  { %v7443_v33 = vpop.f32.mrb[103].mxu1  ;;  %v7487_v37 = vpop.f32.mrb[107].mxu0 }
 0x6ed   :  { %v5146_v59 = vadd.f32 %v7485_v58, %v5061_v29  ;;  %v7444_v60 = vadd.f32 %v7443_v33, %v7442_v56  ;;  %v7488_v61 = vadd.f32 %v7487_v37, %v7486_v54 }
 0x6ef   :  { %v5066_v0 = vadd.f32 %v13448_v24, %v7444_v60  ;;  %v7445_v17 = vpop.f32.mrb[104].mxu1  ;;  %v7489_v62 = vpop.f32.mrb[108].mxu0 }
 0x6f0   :  { %v7446_v28 = vpop.f32.mrb[105].mxu1  ;;  %v7490_v7 = vpop.f32.mrb[109].mxu0 }
 0x6f1   :  { %v5151_v20 = vadd.f32 %v7488_v61, %v5066_v0  ;;  %v7447_v9 = vadd.f32 %v7446_v28, %v7445_v17  ;;  %v7491_v3 = vadd.f32 %v7490_v7, %v7489_v62  ;;  %v14201_v61 = vld [vmem:[%s14464_s11] sm:$0xff]  ;;  %v6378_v28 = vld [vmem:[%s14462_s12 + $0x208] sm:$0xff] }
 0x6f2   :  { %v14205_v0 = vrot.slane %v14201_v61, %v10021_v41  ;;  %v14209_v17 = vrot.slane %v14201_v61, %v11028_v43  ;;  %v6377_v62 = vld [vmem:[%s14462_s12 + $0x200] sm:$0xff]  ;;  %v14219_v7 = vrot.slane %v14201_v61, %v10015_v39  ;;  %v14223_v41 = vrot.slane %v14201_v61, %v11031_v44  ;;  %v6396_v39 = vld [vmem:[%s14462_s12 + $0x298] sm:$0xff]  ;;  %v6427_v44 = vld [vmem:[%s14462_s12 + $0x390] sm:$0xff] }
 0x6f3   :  { %v5071_v46 = vadd.f32 %v7447_v9, %v13671_v2  ;;  %v7448_v21 = vpop.f32.mrb[106].mxu1  ;;  %v7492_v47 = vpop.f32.mrb[110].mxu0  ;;  %v6409_v43 = vld [vmem:[%s14462_s12 + $0x300] sm:$0xff]  ;;  %v6395_v9 = vld [vmem:[%s14462_s12 + $0x290] sm:$0xff] }
 0x6f4   :  { %v7449_v4 = vpop.f32.mrb[107].mxu1  ;;  %v7493_v12 = vpop.f32.mrb[111].mxu0 }
 0x6f5   :  { %v5156_v14 = vadd.f32 %v7491_v3, %v5071_v46  ;;  %v7450_v51 = vadd.f32 %v7449_v4, %v7448_v21  ;;  %v7494_v6 = vadd.f32 %v7493_v12, %v7492_v47  ;;  %v6428_v21 = vld [vmem:[%s14462_s12 + $0x398] sm:$0xff]  ;;  %v6379_v12 = vld [vmem:[%s14462_s12 + $0x210] sm:$0xff] }
 0x6f7   :  { %v5076_v8 = vadd.f32 %v13669_v48, %v7450_v51 }
 0x6f9   :  { %v5161_v27 = vadd.f32 %v7494_v6, %v5076_v8  ;;  %v9137_v6 = vpack.c.bf16 %v6378_v28, %v6377_v62  ;;  %v6383_v62 = vld [vmem:[%s14462_s12 + $0x230] sm:$0xff] }
 0x707   :  { %v7527_v24 = vpop.f32.mrb[108].mxu1  ;;  %v7571_v15 = vpop.f32.mrb[112].mxu0 }
 0x708   :  { %v7528_v32 = vpop.f32.mrb[109].mxu1  ;;  %v7572_v38 = vpop.f32.mrb[113].mxu0 }
 0x709   :  { %v7529_v18 = vadd.f32 %v7528_v32, %v7527_v24  ;;  %v7573_v45 = vadd.f32 %v7572_v38, %v7571_v15  ;;  %v6411_v24 = vld [vmem:[%s14462_s12 + $0x310] sm:$0xff]  ;;  %v6412_v15 = vld [vmem:[%s14462_s12 + $0x318] sm:$0xff] }
 0x70b   :  { %v5231_v25 = vadd.f32 %v7529_v18, %v5146_v59  ;;  %v7530_v22 = vpop.f32.mrb[110].mxu1  ;;  %v7574_v30 = vpop.f32.mrb[114].mxu0  ;;  %v9139_v18 = vpack.c.bf16 %v6396_v39, %v6395_v9  ;;  %v6384_v9 = vld [vmem:[%s14462_s12 + $0x238] sm:$0xff] }
 0x70c   :  { %v7531_v2 = vpop.f32.mrb[111].mxu1  ;;  %v7575_v35 = vpop.f32.mrb[115].mxu0 }
 0x70d   :  { %v5316_v42 = vadd.f32 %v7573_v45, %v5231_v25  ;;  %v7532_v52 = vadd.f32 %v7531_v2, %v7530_v22  ;;  %v7576_v48 = vadd.f32 %v7575_v35, %v7574_v30  ;;  %v9171_v45 = vpack.c.bf16 %v6428_v21, %v6427_v44  ;;  %v6397_v25 = vld [vmem:[%s14462_s12 + $0x2a0] sm:$0xff]  ;;  %v6398_v22 = vld [vmem:[%s14462_s12 + $0x2a8] sm:$0xff] }
 0x70e   :  { %v6429_v35 = vld [vmem:[%s14462_s12 + $0x3a0] sm:$0xff] }
 0x70f   :  { %v5236_v36 = vadd.f32 %v7532_v52, %v5151_v20  ;;  %v7533_v10 = vpop.f32.mrb[112].mxu1  ;;  %v7577_v13 = vpop.f32.mrb[116].mxu0  ;;  %v5341_v63 = vadd.f32 %v14192_v5, %v5316_v42  ;;  %v6410_v20 = vld [vmem:[%s14462_s12 + $0x308] sm:$0xff] }
 0x710   :  { %v7534_v40 = vpop.f32.mrb[113].mxu1  ;;  %v7578_v53 = vpop.f32.mrb[117].mxu0  ;;  %v9169_v8 = vpack.c.bf16 %v6410_v20, %v6409_v43  ;;  %v6430_v42 = vld [vmem:[%s14462_s12 + $0x3a8] sm:$0xff] }
 0x711   :  { %v5321_v26 = vadd.f32 %v7576_v48, %v5236_v36  ;;  %v7535_v34 = vadd.f32 %v7534_v40, %v7533_v10  ;;  %v7579_v55 = vadd.f32 %v7578_v53, %v7577_v13  ;;  %5349 = vrot.lane.b32.xlu0 %v5341_v63, %s9336_s5  ;;  %v9173_v10 = vpack.c.bf16 %v6412_v15, %v6411_v24  ;;  %v6381_v13 = vld [vmem:[%s14462_s12 + $0x220] sm:$0xff] }
 0x712   :  { %v9143_v53 = vpack.c.bf16 %v6398_v22, %v6397_v25  ;;  %v9149_v24 = vpack.c.bf16 %v6384_v9, %v6383_v62  ;;  %v6386_v25 = vld [vmem:[%s14462_s12 + $0x248] sm:$0xff] }
 0x713   :  { %v5241_v1 = vadd.f32 %v7535_v34, %v5156_v14  ;;  %v7536_v11 = vpop.f32.mrb[114].mxu1  ;;  %v7580_v49 = vpop.f32.mrb[118].mxu0  ;;  %v5342_v50 = vadd.f32 %v14192_v5, %v5321_v26  ;;  %v6382_v26 = vld [vmem:[%s14462_s12 + $0x228] sm:$0xff]  ;;  %v6413_v34 = vld [vmem:[%s14462_s12 + $0x320] sm:$0xff] }
 0x714   :  { %v7537_v57 = vpop.f32.mrb[115].mxu1  ;;  %v7581_v58 = vpop.f32.mrb[119].mxu0 }
 0x715   :  { %v5326_v29 = vadd.f32 %v7579_v55, %v5241_v1  ;;  %v7538_v56 = vadd.f32 %v7537_v57, %v7536_v11  ;;  %v7582_v54 = vadd.f32 %v7581_v58, %v7580_v49  ;;  %5351 = vrot.lane.b32.xlu1 %v5342_v50, %s9336_s5  ;;  %v6414_v55 = vld [vmem:[%s14462_s12 + $0x328] sm:$0xff]  ;;  %v9175_v49 = vpack.c.bf16 %v6430_v42, %v6429_v35  ;;  %v6399_v50 = vld [vmem:[%s14462_s12 + $0x2b0] sm:$0xff]  ;;  %v6400_v57 = vld [vmem:[%s14462_s12 + $0x2b8] sm:$0xff] }
 0x716   :  { %v9147_v20 = vpack.c.bf16 %v6400_v57, %v6399_v50  ;;  %v6403_v35 = vld [vmem:[%s14462_s12 + $0x2d0] sm:$0xff]  ;;  %v6436_v42 = vld [vmem:[%s14462_s12 + $0x3d8] sm:$0xff]  ;;  %v6389_v50 = vld [vmem:[%s14462_s12 + $0x260] sm:$0xff] }
 0x717   :  { %v5246_v33 = vadd.f32 %v7538_v56, %v5161_v27  ;;  %v5343_v37 = vadd.f32 %v14192_v5, %v5326_v29  ;;  %v6380_v27 = vld [vmem:[%s14462_s12 + $0x218] sm:$0xff]  ;;  %v6431_v56 = vld [vmem:[%s14462_s12 + $0x3b0] sm:$0xff]  ;;  %v6390_v57 = vld [vmem:[%s14462_s12 + $0x268] sm:$0xff] }
 0x718   :  { %v9141_v36 = vpack.c.bf16 %v6380_v27, %v6379_v12  ;;  %v9161_v62 = vpack.c.bf16 %v6390_v57, %v6389_v50 }
 0x719   :  { %v5331_v59 = vadd.f32 %v7582_v54, %v5246_v33  ;;  %5353 = vrot.lane.b32.xlu0 %v5343_v37, %s9336_s5  ;;  %v6432_v54 = vld [vmem:[%s14462_s12 + $0x3b8] sm:$0xff] }
 0x71a   :  { %v9179_v21 = vpack.c.bf16 %v6432_v54, %v6431_v56  ;;  %v6421_v56 = vld [vmem:[%s14462_s12 + $0x360] sm:$0xff]  ;;  %v6422_v54 = vld [vmem:[%s14462_s12 + $0x368] sm:$0xff] }
 0x71b   :  { %v5344_v60 = vadd.f32 %v14192_v5, %v5331_v59  ;;  %v9145_v59 = vpack.c.bf16 %v6382_v26, %v6381_v13  ;;  %v6405_v26 = vld [vmem:[%s14462_s12 + $0x2e0] sm:$0xff] }
 0x71d   :  { %5355 = vrot.lane.b32.xlu1 %v5344_v60, %s9336_s5  ;;  %v9177_v60 = vpack.c.bf16 %v6414_v55, %v6413_v34  ;;  %v6406_v34 = vld [vmem:[%s14462_s12 + $0x2e8] sm:$0xff]  ;;  %v6437_v55 = vld [vmem:[%s14462_s12 + $0x3e0] sm:$0xff] }
 0x747   :  { %v5949_v3 = vpop.f32.mrb[116].mxu1  ;;  %v6038_v46 = vpop.f32.mrb[120].mxu0 }
 0x748   :  { %v5951_v47 = vpop.f32.mrb[117].mxu1  ;;  %v6040_v4 = vpop.f32.mrb[121].mxu0  ;;  %v6281_v32 = vadd.f32 %v14219_v7, %v5949_v3  ;;  %v6283_v38 = vadd.f32 %v14223_v41, %v6038_v46  ;;  %v6415_v3 = vld [vmem:[%s14462_s12 + $0x330] sm:$0xff]  ;;  %v6416_v46 = vld [vmem:[%s14462_s12 + $0x338] sm:$0xff] }
 0x749   :  { %v6282_v14 = vadd.f32 %v14205_v0, %v5951_v47  ;;  %v6284_v51 = vadd.f32 %v14209_v17, %v6040_v4  ;;  %v6401_v47 = vld [vmem:[%s14462_s12 + $0x2c0] sm:$0xff]  ;;  %v6402_v4 = vld [vmem:[%s14462_s12 + $0x2c8] sm:$0xff]  ;;  %v9181_v15 = vpack.c.bf16 %v6416_v46, %v6415_v3  ;;  %v6392_v3 = vld [vmem:[%s14462_s12 + $0x278] sm:$0xff] }
 0x74a   :  { %v6423_v46 = vld [vmem:[%s14462_s12 + $0x370] sm:$0xff] }
 0x74b   :  { %v5955_v30 = vpop.f32.mrb[118].mxu1  ;;  %v6044_v2 = vpop.f32.mrb[122].mxu0  ;;  %6611 = vmatprep.mubr.f32.mxu0 %v6282_v14  ;;  %6696 = vmatprep.mubr.f32.mxu1 %v6284_v51  ;;  %v6433_v51 = vld [vmem:[%s14462_s12 + $0x3c0] sm:$0xff] }
 0x74c   :  { %v5957_v52 = vpop.f32.mrb[119].mxu1  ;;  %v6046_v48 = vpop.f32.mrb[123].mxu0  ;;  %6612 = vmatmul.mubr.f32.vlgmr.msra.gmra.mrb[136].mxu0 %v6281_v32  ;;  %6697 = vmatmul.mubr.f32.vlgmr.msra.gmra.mrb[136].mxu1 %v6283_v38  ;;  %v6289_v1 = vadd.f32 %v14219_v7, %v5955_v30  ;;  %v6291_v11 = vadd.f32 %v14223_v41, %v6044_v2  ;;  %v6418_v2 = vld [vmem:[%s14462_s12 + $0x348] sm:$0xff] }
 0x74d   :  { %v6290_v63 = vadd.f32 %v14205_v0, %v5957_v52  ;;  %v6292_v40 = vadd.f32 %v14209_v17, %v6046_v48  ;;  %9138 = vmatpush3.bf16.msra.mxu0 %v9137_v6  ;;  %9170 = vmatpush3.bf16.msra.mxu1 %v9169_v8  ;;  %v6434_v6 = vld [vmem:[%s14462_s12 + $0x3c8] sm:$0xff] }
 0x74e   :  { %9140 = vmatprep.subr.bf16.mxu0 %v9139_v18  ;;  %9172 = vmatprep.subr.bf16.mxu1 %v9171_v45  ;;  %v9151_v18 = vpack.c.bf16 %v6402_v4, %v6401_v47  ;;  %v6385_v45 = vld [vmem:[%s14462_s12 + $0x240] sm:$0xff] }
 0x74f   :  { %v5961_v58 = vpop.f32.mrb[120].mxu1  ;;  %v6050_v29 = vpop.f32.mrb[124].mxu0  ;;  %6616 = vmatprep.mubr.f32.mxu0 %v6290_v63  ;;  %6701 = vmatprep.mubr.f32.mxu1 %v6292_v40  ;;  %v9153_v52 = vpack.c.bf16 %v6386_v25, %v6385_v45  ;;  %v6419_v40 = vld [vmem:[%s14462_s12 + $0x350] sm:$0xff] }
 0x750   :  { %v5963_v33 = vpop.f32.mrb[121].mxu1  ;;  %v6052_v37 = vpop.f32.mrb[125].mxu0  ;;  %6617 = vmatmul.mubr.f32.gmra.mrb[138].mxu0 %v6289_v1  ;;  %6702 = vmatmul.mubr.f32.gmra.mrb[138].mxu1 %v6291_v11  ;;  %v6297_v39 = vadd.f32 %v14219_v7, %v5961_v58  ;;  %v6299_v44 = vadd.f32 %v14223_v41, %v6050_v29  ;;  %v6438_v1 = vld [vmem:[%s14462_s12 + $0x3e8] sm:$0xff]  ;;  %v9159_v58 = vpack.c.bf16 %v6406_v34, %v6405_v26 }
 0x751   :  { %v6298_v28 = vadd.f32 %v14205_v0, %v5963_v33  ;;  %v6300_v43 = vadd.f32 %v14209_v17, %v6052_v37  ;;  %9142 = vmatpush3.bf16.msra.mxu0 %v9141_v36  ;;  %9174 = vmatpush3.bf16.msra.mxu1 %v9173_v10  ;;  %v6387_v36 = vld [vmem:[%s14462_s12 + $0x250] sm:$0xff]  ;;  %v6388_v10 = vld [vmem:[%s14462_s12 + $0x258] sm:$0xff]  ;;  %v9191_v29 = vpack.c.bf16 %v6438_v1, %v6437_v55 }
 0x752   :  { %9144 = vmatprep.subr.bf16.mxu0 %v9143_v53  ;;  %9176 = vmatprep.subr.bf16.mxu1 %v9175_v49  ;;  %v6420_v53 = vld [vmem:[%s14462_s12 + $0x358] sm:$0xff]  ;;  %v9157_v11 = vpack.c.bf16 %v6388_v10, %v6387_v36  ;;  %v6407_v33 = vld [vmem:[%s14462_s12 + $0x2f0] sm:$0xff] }
 0x753   :  { %v5967_v12 = vpop.f32.mrb[122].mxu1  ;;  %v6056_v14 = vpop.f32.mrb[126].mxu0  ;;  %6621 = vmatprep.mubr.f32.mxu0 %v6298_v28  ;;  %6706 = vmatprep.mubr.f32.mxu1 %v6300_v43  ;;  %v9189_v49 = vpack.c.bf16 %v6420_v53, %v6419_v40  ;;  %v6408_v37 = vld [vmem:[%s14462_s12 + $0x2f8] sm:$0xff]  ;;  %v9193_v28 = vpack.c.bf16 %v6422_v54, %v6421_v56  ;;  %v6391_v43 = vld [vmem:[%s14462_s12 + $0x270] sm:$0xff] }
 0x754   :  { %v5969_v8 = vpop.f32.mrb[123].mxu1  ;;  %v6058_v27 = vpop.f32.mrb[127].mxu0  ;;  %6622 = vmatmul.mubr.f32.gmra.mrb[140].mxu0 %v6297_v39  ;;  %6707 = vmatmul.mubr.f32.gmra.mrb[140].mxu1 %v6299_v44  ;;  %v6305_v22 = vadd.f32 %v14219_v7, %v5967_v12  ;;  %v6307_v30 = vadd.f32 %v14223_v41, %v6056_v14  ;;  %v6404_v7 = vld [vmem:[%s14462_s12 + $0x2d8] sm:$0xff]  ;;  %v6435_v41 = vld [vmem:[%s14462_s12 + $0x3d0] sm:$0xff]  ;;  %v6264_v44 = vrot.slane %v14201_v61, %v11237_v19 }
 0x755   :  { %v6306_v32 = vadd.f32 %v14205_v0, %v5969_v8  ;;  %v6308_v38 = vadd.f32 %v14209_v17, %v6058_v27  ;;  %9146 = vmatpush3.bf16.msra.mxu0 %v9145_v59  ;;  %9178 = vmatpush3.bf16.msra.mxu1 %v9177_v60  ;;  %v9183_v0 = vpack.c.bf16 %v6434_v6, %v6433_v51  ;;  %v6417_v17 = vld [vmem:[%s14462_s12 + $0x340] sm:$0xff]  ;;  %v6439_v59 = vld [vmem:[%s14462_s12 + $0x3f0] sm:$0xff]  ;;  %v6440_v60 = vld [vmem:[%s14462_s12 + $0x3f8] sm:$0xff] }
 0x756   :  { %9148 = vmatprep.subr.bf16.mxu0 %v9147_v20  ;;  %9180 = vmatprep.subr.bf16.mxu1 %v9179_v21  ;;  %v9185_v48 = vpack.c.bf16 %v6418_v2, %v6417_v17  ;;  %v9155_v13 = vpack.c.bf16 %v6404_v7, %v6403_v35  ;;  %v9187_v63 = vpack.c.bf16 %v6436_v42, %v6435_v41  ;;  %v6424_v39 = vld [vmem:[%s14462_s12 + $0x378] sm:$0xff] }
 0x757   :  { %6626 = vmatprep.mubr.f32.mxu0 %v6306_v32  ;;  %6711 = vmatprep.mubr.f32.mxu1 %v6308_v38  ;;  %v9163_v20 = vpack.c.bf16 %v6408_v37, %v6407_v33  ;;  %v9195_v9 = vpack.c.bf16 %v6440_v60, %v6439_v59  ;;  %v6272_v21 = vrot.slane %v14201_v61, %v11240_v23 }
 0x758   :  { %6627 = vmatmul.mubr.f32.gmra.mrb[142].mxu0 %v6305_v22  ;;  %6712 = vmatmul.mubr.f32.gmra.mrb[142].mxu1 %v6307_v30  ;;  %v9165_v47 = vpack.c.bf16 %v6392_v3, %v6391_v43  ;;  %v9197_v4 = vpack.c.bf16 %v6424_v39, %v6423_v46  ;;  %v6260_v12 = vrot.slane %v14201_v61, %v11234_v16 }
 0x759   :  { %9150 = vmatpush3.bf16.msra.mxu0 %v9149_v24  ;;  %9182 = vmatpush3.bf16.msra.mxu1 %v9181_v15  ;;  %v6268_v14 = vrot.slane %v14201_v61, %v11249_v31 }
 0x75a   :  { %9152 = vmatprep.subr.bf16.mxu0 %v9151_v18  ;;  %9184 = vmatprep.subr.bf16.mxu1 %v9183_v0 }
 0x75d   :  { %9154 = vmatpush3.bf16.msra.mxu0 %v9153_v52  ;;  %9186 = vmatpush3.bf16.msra.mxu1 %v9185_v48 }
 0x75e   :  { %9156 = vmatprep.subr.bf16.mxu0 %v9155_v13  ;;  %9188 = vmatprep.subr.bf16.mxu1 %v9187_v63 }
 0x761   :  { %9158 = vmatpush3.bf16.msra.mxu0 %v9157_v11  ;;  %9190 = vmatpush3.bf16.msra.mxu1 %v9189_v49 }
 0x762   :  { %9160 = vmatprep.subr.bf16.mxu0 %v9159_v58  ;;  %9192 = vmatprep.subr.bf16.mxu1 %v9191_v29 }
 0x765   :  { %9162 = vmatpush3.bf16.msra.mxu0 %v9161_v62  ;;  %9194 = vmatpush3.bf16.msra.mxu1 %v9193_v28 }
 0x766   :  { %9164 = vmatprep.subr.bf16.mxu0 %v9163_v20  ;;  %9196 = vmatprep.subr.bf16.mxu1 %v9195_v9 }
 0x767   :  { %v6127_v51 = vpop.f32.mrb[124].mxu1  ;;  %v6216_v6 = vpop.f32.mrb[128].mxu0 }
 0x768   :  { %v6129_v8 = vpop.f32.mrb[125].mxu1  ;;  %v6218_v27 = vpop.f32.mrb[129].mxu0  ;;  %v6285_v15 = vadd.f32 %v6260_v12, %v6127_v51  ;;  %v6287_v23 = vadd.f32 %v6268_v14, %v6216_v6 }
 0x769   :  { %v6286_v19 = vadd.f32 %v6264_v44, %v6129_v8  ;;  %v6288_v24 = vadd.f32 %v6272_v21, %v6218_v27  ;;  %9166 = vmatpush3.bf16.msra.mxu0 %v9165_v47  ;;  %9198 = vmatpush3.bf16.msra.mxu1 %v9197_v4 }
 0x76b   :  { %v6133_v32 = vpop.f32.mrb[126].mxu1  ;;  %v6222_v38 = vpop.f32.mrb[130].mxu0  ;;  %6781 = vmatprep.mubr.f32.mxu0 %v6286_v19  ;;  %6866 = vmatprep.mubr.f32.mxu1 %v6288_v24 }
 0x76c   :  { %v6135_v16 = vpop.f32.mrb[127].mxu1  ;;  %v6224_v18 = vpop.f32.mrb[131].mxu0  ;;  %6782 = vmatmul.mubr.f32.vlgmr.msra.gmra.mrb[144].mxu0 %v6285_v15  ;;  %6867 = vmatmul.mubr.f32.vlgmr.msra.gmra.mrb[144].mxu1 %v6287_v23  ;;  %v6293_v45 = vadd.f32 %v6260_v12, %v6133_v32  ;;  %v6295_v25 = vadd.f32 %v6268_v14, %v6222_v38 }
 0x76d   :  { %v6294_v31 = vadd.f32 %v6264_v44, %v6135_v16  ;;  %v6296_v61 = vadd.f32 %v6272_v21, %v6224_v18 }
 0x76f   :  { %v6139_v22 = vpop.f32.mrb[128].mxu1  ;;  %v6228_v30 = vpop.f32.mrb[132].mxu0  ;;  %6786 = vmatprep.mubr.f32.mxu0 %v6294_v31  ;;  %6871 = vmatprep.mubr.f32.mxu1 %v6296_v61 }
 0x770   :  { %v6141_v0 = vpop.f32.mrb[129].mxu1  ;;  %v6230_v17 = vpop.f32.mrb[133].mxu0  ;;  %6787 = vmatmul.mubr.f32.gmra.mrb[146].mxu0 %v6293_v45  ;;  %6872 = vmatmul.mubr.f32.gmra.mrb[146].mxu1 %v6295_v25  ;;  %v6301_v7 = vadd.f32 %v6260_v12, %v6139_v22  ;;  %v6303_v41 = vadd.f32 %v6268_v14, %v6228_v30 }
 0x771   :  { %v6302_v2 = vadd.f32 %v6264_v44, %v6141_v0  ;;  %v6304_v35 = vadd.f32 %v6272_v21, %v6230_v17 }
 0x773   :  { %v6145_v42 = vpop.f32.mrb[130].mxu1  ;;  %v6234_v52 = vpop.f32.mrb[134].mxu0  ;;  %6791 = vmatprep.mubr.f32.mxu0 %v6302_v2  ;;  %6876 = vmatprep.mubr.f32.mxu1 %v6304_v35 }
 0x774   :  { %v6147_v48 = vpop.f32.mrb[131].mxu1  ;;  %v6236_v36 = vpop.f32.mrb[135].mxu0  ;;  %6792 = vmatmul.mubr.f32.gmra.mrb[148].mxu0 %v6301_v7  ;;  %6877 = vmatmul.mubr.f32.gmra.mrb[148].mxu1 %v6303_v41  ;;  %v6309_v63 = vadd.f32 %v6260_v12, %v6145_v42  ;;  %v6311_v40 = vadd.f32 %v6268_v14, %v6234_v52 }
 0x775   :  { %v6310_v10 = vadd.f32 %v6264_v44, %v6147_v48  ;;  %v6312_v13 = vadd.f32 %v6272_v21, %v6236_v36 }
 0x777   :  { %6796 = vmatprep.mubr.f32.mxu0 %v6310_v10  ;;  %6881 = vmatprep.mubr.f32.mxu1 %v6312_v13 }
 0x778   :  { %6797 = vmatmul.mubr.f32.gmra.mrb[150].mxu0 %v6309_v63  ;;  %6882 = vmatmul.mubr.f32.gmra.mrb[150].mxu1 %v6311_v40  ;;  %v7819_v53 = vpop.f32.mrb[132].mxu1 }
 0x779   :  { %v6528_v26 = vpop.f32.mrb[133].mxu1 }
 0x77c   :  { %v7822_v49 = vpop.f32.mrb[134].mxu1 }
 0x77d   :  { %v6538_v50 = vpop.f32.mrb[135].mxu1 }
 0x783   :  { %v5350_v34 = vpop.permute.xlu0 %5349 }
 0x784   :  { %5362 = vst.msk [vmem:[%s14466_s15] sm:$0xff] %vm5361_vm3, %v5350_v34 }
 0x787   :  { %v5352_v55 = vpop.permute.xlu1 %5351 }
 0x788   :  { %5363 = vst.msk [vmem:[%s14466_s15 + $0x8] sm:$0xff] %vm5361_vm3, %v5352_v55 }
 0x78b   :  { %v5354_v1 = vpop.permute.xlu0 %5353 }
 0x78c   :  { %5364 = vst.msk [vmem:[%s14466_s15 + $0x10] sm:$0xff] %vm5361_vm3, %v5354_v1 }
 0x78f   :  { %v5356_v11 = vpop.permute.xlu1 %5355 }
 0x790   :  { %5365 = vst.msk [vmem:[%s14466_s15 + $0x18] sm:$0xff] %vm5361_vm3, %v5356_v11 }
 0x81f   :  { %v7623_v57 = vpop.f32.mrb[136].mxu0  ;;  %v7667_v58 = vpop.f32.mrb[136].mxu1 }
 0x820   :  { %v7624_v29 = vpop.f32.mrb[137].mxu0  ;;  %v7668_v56 = vpop.f32.mrb[137].mxu1 }
 0x821   :  { %v7625_v54 = vadd.f32 %v7624_v29, %v7623_v57  ;;  %v7669_v33 = vadd.f32 %v7668_v56, %v7667_v58 }
 0x823   :  { %v6614_v37 = vadd.f32 %v7625_v54, %v6528_v26  ;;  %v7626_v59 = vpop.f32.mrb[138].mxu0  ;;  %v7670_v60 = vpop.f32.mrb[138].mxu1 }
 0x824   :  { %v7627_v62 = vpop.f32.mrb[139].mxu0  ;;  %v7671_v28 = vpop.f32.mrb[139].mxu1 }
 0x825   :  { %v6699_v43 = vadd.f32 %v7669_v33, %v6614_v37  ;;  %v7628_v20 = vadd.f32 %v7627_v62, %v7626_v59  ;;  %v7672_v9 = vadd.f32 %v7671_v28, %v7670_v60 }
 0x827   :  { %v6619_v3 = vadd.f32 %v7819_v53, %v7628_v20  ;;  %v7629_v46 = vpop.f32.mrb[140].mxu0  ;;  %v7673_v39 = vpop.f32.mrb[140].mxu1 }
 0x828   :  { %v7630_v44 = vpop.f32.mrb[141].mxu0  ;;  %v7674_v21 = vpop.f32.mrb[141].mxu1 }
 0x829   :  { %v6704_v47 = vadd.f32 %v7672_v9, %v6619_v3  ;;  %v7631_v4 = vadd.f32 %v7630_v44, %v7629_v46  ;;  %v7675_v12 = vadd.f32 %v7674_v21, %v7673_v39 }
 0x82b   :  { %v6624_v14 = vadd.f32 %v7631_v4, %v6538_v50  ;;  %v7632_v51 = vpop.f32.mrb[142].mxu0  ;;  %v7676_v6 = vpop.f32.mrb[142].mxu1 }
 0x82c   :  { %v7633_v8 = vpop.f32.mrb[143].mxu0  ;;  %v7677_v27 = vpop.f32.mrb[143].mxu1 }
 0x82d   :  { %v6709_v19 = vadd.f32 %v7675_v12, %v6624_v14  ;;  %v7634_v24 = vadd.f32 %v7633_v8, %v7632_v51  ;;  %v7678_v15 = vadd.f32 %v7677_v27, %v7676_v6 }
 0x82f   :  { %v6629_v23 = vadd.f32 %v7822_v49, %v7634_v24 }
 0x831   :  { %v6714_v32 = vadd.f32 %v7678_v15, %v6629_v23 }
 0x83f   :  { %v7711_v38 = vpop.f32.mrb[144].mxu0  ;;  %v7755_v16 = vpop.f32.mrb[144].mxu1 }
 0x840   :  { %v7712_v18 = vpop.f32.mrb[145].mxu0  ;;  %v7756_v31 = vpop.f32.mrb[145].mxu1 }
 0x841   :  { %v7713_v61 = vadd.f32 %v7712_v18, %v7711_v38  ;;  %v7757_v45 = vadd.f32 %v7756_v31, %v7755_v16 }
 0x843   :  { %v6784_v25 = vadd.f32 %v7713_v61, %v6699_v43  ;;  %v7714_v22 = vpop.f32.mrb[146].mxu0  ;;  %v7758_v30 = vpop.f32.mrb[146].mxu1 }
 0x844   :  { %v7715_v0 = vpop.f32.mrb[147].mxu0  ;;  %v7759_v17 = vpop.f32.mrb[147].mxu1 }
 0x845   :  { %v6869_v2 = vadd.f32 %v7757_v45, %v6784_v25  ;;  %v7716_v35 = vadd.f32 %v7715_v0, %v7714_v22  ;;  %v7760_v7 = vadd.f32 %v7759_v17, %v7758_v30 }
 0x847   :  { %v6789_v41 = vadd.f32 %v7716_v35, %v6704_v47  ;;  %v7717_v42 = vpop.f32.mrb[148].mxu0  ;;  %v7761_v52 = vpop.f32.mrb[148].mxu1  ;;  %v6894_v48 = vadd.f32 %v14192_v5, %v6869_v2 }
 0x848   :  { %v7718_v36 = vpop.f32.mrb[149].mxu0  ;;  %v7762_v10 = vpop.f32.mrb[149].mxu1 }
 0x849   :  { %v6874_v13 = vadd.f32 %v7760_v7, %v6789_v41  ;;  %v7719_v63 = vadd.f32 %v7718_v36, %v7717_v42  ;;  %v7763_v40 = vadd.f32 %v7762_v10, %v7761_v52  ;;  %6902 = vrot.lane.b32.xlu0 %v6894_v48, %s9337_s8 }
 0x84b   :  { %v6794_v53 = vadd.f32 %v7719_v63, %v6709_v19  ;;  %v7720_v26 = vpop.f32.mrb[150].mxu0  ;;  %v7764_v34 = vpop.f32.mrb[150].mxu1  ;;  %v6895_v55 = vadd.f32 %v14192_v5, %v6874_v13 }
 0x84c   :  { %v7721_v1 = vpop.f32.mrb[151].mxu0  ;;  %v7765_v11 = vpop.f32.mrb[151].mxu1 }
 0x84d   :  { %v6879_v49 = vadd.f32 %v7763_v40, %v6794_v53  ;;  %v7722_v50 = vadd.f32 %v7721_v1, %v7720_v26  ;;  %v7766_v57 = vadd.f32 %v7765_v11, %v7764_v34  ;;  %6904 = vrot.lane.b32.xlu1 %v6895_v55, %s9337_s8 }
 0x84f   :  { %v6799_v58 = vadd.f32 %v7722_v50, %v6714_v32  ;;  %v6896_v29 = vadd.f32 %v14192_v5, %v6879_v49 }
 0x851   :  { %v6884_v56 = vadd.f32 %v7766_v57, %v6799_v58  ;;  %6906 = vrot.lane.b32.xlu0 %v6896_v29, %s9337_s8 }
 0x853   :  { %v6897_v54 = vadd.f32 %v14192_v5, %v6884_v56 }
 0x855   :  { %6908 = vrot.lane.b32.xlu1 %v6897_v54, %s9337_s8 }
 0x8bb   :  { %v6903_v33 = vpop.permute.xlu0 %6902 }
 0x8bc   :  { %6915 = vst.msk [vmem:[%s14466_s15] sm:$0xff] %vm6914_vm4, %v6903_v33 }
 0x8bf   :  { %v6905_v37 = vpop.permute.xlu1 %6904 }
 0x8c0   :  { %6916 = vst.msk [vmem:[%s14466_s15 + $0x8] sm:$0xff] %vm6914_vm4, %v6905_v37 }
 0x8c3   :  { %v6907_v59 = vpop.permute.xlu0 %6906 }
 0x8c4   :  { %6917 = vst.msk [vmem:[%s14466_s15 + $0x10] sm:$0xff] %vm6914_vm4, %v6907_v59 }
 0x8c7   :  { %v6909_v60 = vpop.permute.xlu1 %6908 }
 0x8c8   :  { %6918 = vst.msk [vmem:[%s14466_s15 + $0x18] sm:$0xff] %vm6914_vm4, %v6909_v60 }

</bundles_post_ra>
